<compile_context>
chip_gen: v5e
topology: v5e:2x2
jax: 0.10.0
libtpu: 0.0.40
codegen_flags: <defaults>
</compile_context>

<pallas_src>
import jax
import jax.numpy as jnp
from jax import lax
from jax.experimental import pallas as pl
from jax.experimental.pallas import tpu as pltpu

KSIZE = 5                 # conv kernel size (all three layers)
STRIDE = 2                # conv stride of the original network
_DIL = (1, 2, 4)          # a-trous dilations replacing the three stride-2 convs
_RS1 = 8                  # sublane rows per tap in the layer-1 patch matrix (f32)
_RS2 = 16                 # sublane rows per tap in the layer-2 patch matrix (bf16)
_TAPS = tuple((i, j) for i in range(KSIZE) for j in range(KSIZE))


def conv2d_size_out(size, kernel_size=KSIZE, stride=STRIDE):
    return (size - (kernel_size - 1) - 1) // stride + 1


def _round_up(x, m):
    return ((x + m - 1) // m) * m


def _geometry(h, w):
    """Static geometry of the fused a-trous network on the flat (h*w) grid."""
    h1, w1 = conv2d_size_out(h), conv2d_size_out(w)
    h2, w2 = conv2d_size_out(h1), conv2d_size_out(w1)
    h3, w3 = conv2d_size_out(h2), conv2d_size_out(w2)
    assert h3 >= 1 and w3 >= 1, "input too small for three stride-2 5x5 convs"
    span = 8 * (w3 - 1) + 1                      # contiguous cover of one conv3 row
    q3 = 8 * (h3 - 1) * w + span                 # layer-3 flat extent actually consumed
    q2 = q3 + _DIL[2] * (KSIZE - 1) * (w + 1)    # + max dilation-4 tap offset
    q1 = q2 + _DIL[1] * (KSIZE - 1) * (w + 1)    # + max dilation-2 tap offset
    # layer-1 (dilation-1) taps must stay inside the h*w input plane
    assert (q1 - 1) + _DIL[0] * (KSIZE - 1) * (w + 1) <= h * w - 1, \
        "a-trous layer-1 taps would read past the input plane"
    return h3, w3, span, (q1, q2, q3)


# ------------------------------ Pallas kernel --------------------------------
def _make_kernel(w_img, bs, h_out, w_out, span, qs, qps, c3):
    """One grid step == `bs` samples; whole forward pass stays in VMEM."""
    q1, q2, q3 = qs
    q1p, q2p = qps

    def kernel(x_ref, w1_ref, b1_ref, w2_ref, b2_ref, w3_ref, b3_ref,
               wh_ref, bh_ref, o_ref, p1, p2, a1, a2, yh):
        # ---- conv1 + bn1 + relu (dilation 1), f32 patches, f32 matmul -------
        for s in range(bs):
            for t, (i, j) in enumerate(_TAPS):
                off = _DIL[0] * (i * w_img + j)
                p1[t * _RS1:(t + 1) * _RS1, s * q1p:s * q1p + q1] = \
                    x_ref[s, :, off:off + q1]
        y1 = jnp.dot(w1_ref[...], p1[...], preferred_element_type=jnp.float32)
        a1[...] = jnp.maximum(y1 + b1_ref[...], 0.0).astype(jnp.bfloat16)

        # ---- conv2 + bn2 + relu (dilation 2), bf16 patches -------------------
        for s in range(bs):
            for t, (i, j) in enumerate(_TAPS):
                off = _DIL[1] * (i * w_img + j)
                p2[t * _RS2:(t + 1) * _RS2, s * q2p:s * q2p + q2] = \
                    a1[:, s * q1p + off:s * q1p + off + q2]
        y2 = jnp.dot(w2_ref[...], p2[...], preferred_element_type=jnp.float32)
        a2[...] = jnp.maximum(y2 + b2_ref[...], 0.0).astype(jnp.bfloat16)

        # ---- conv3 + bn3 + relu (dilation 4): only consumed rows, no patch ---
        for s in range(bs):
            for ho in range(h_out):
                base = s * q2p + 8 * ho * w_img
                acc = jnp.zeros((c3, span), jnp.float32)
                for t, (i, j) in enumerate(_TAPS):
                    off = base + _DIL[2] * (i * w_img + j)
                    acc = acc + jnp.dot(w3_ref[t], a2[:, off:off + span],
                                        preferred_element_type=jnp.float32)
                y3 = jnp.maximum(acc + b3_ref[...], 0.0)        # (c3, span) f32
                for wo in range(w_out):
                    k = ho * w_out + wo
                    yh[k * c3:(k + 1) * c3, s:s + 1] = y3[:, 8 * wo:8 * wo + 1]

        # ---- linear head: one matmul over the gathered conv3 columns --------
        out = jnp.dot(wh_ref[...], yh[...], preferred_element_type=jnp.float32)
        for s in range(bs):
            o_ref[s, :, :] = out[:, s:s + 1] + bh_ref[...]

    return kernel


# -------------------------------- forward ------------------------------------
def dqn_forward(params, x_nchw, block_batch=None):
    """params: output of prepare_params().  x_nchw: (N, 3, H, W) float32."""
    n, cin, h, w = x_nchw.shape
    assert cin <= _RS1, "expected <= 8 input channels"
    h3, w3, span, qs = _geometry(h, w)
    q1, q2, q3 = qs
    c1 = params["b1"].shape[0]
    c2 = params["b2"].shape[0]
    c3 = params["b3"].shape[0]
    n_out = params["bh"].shape[0]

    # samples per grid step: amortize per-step overhead but keep >= 2 grid
    # steps so both v7x TensorCores get work, and keep VMEM modest.
    if block_batch is None:
        bs = 1
        for cand in (2, 4):
            if n >= 2 * cand:
                bs = cand
    else:
        bs = int(block_batch)
    nb = (n + bs - 1) // bs
    n_pad = nb * bs

    q1p = _round_up(q1, 128)        # per-sample lane segment (keeps writes aligned)
    q2p = _round_up(q2, 128)

    # pad channels to 8 (zeros) and batch up to a multiple of bs, once, in HBM
    x_flat = x_nchw.reshape(n, cin, h * w)
    x_flat = jnp.pad(x_flat, ((0, n_pad - n), (0, _RS1 - cin), (0, 0)))

    def full_spec(arr):
        nd = arr.ndim
        return pl.BlockSpec(arr.shape, lambda i, _nd=nd: (0,) * _nd)

    weight_names = ("w1", "b1", "w2", "b2", "w3", "b3", "wh", "bh")

    out = pl.pallas_call(
        _make_kernel(w, bs, h3, w3, span, qs, (q1p, q2p), c3),
        out_shape=jax.ShapeDtypeStruct((n_pad, n_out, 1), jnp.float32),
        grid=(nb,),
        in_specs=[pl.BlockSpec((bs, _RS1, h * w), lambda i: (i, 0, 0))]
                 + [full_spec(params[k]) for k in weight_names],
        out_specs=pl.BlockSpec((bs, n_out, 1), lambda i: (i, 0, 0)),
        scratch_shapes=[
            pltpu.VMEM((KSIZE * KSIZE * _RS1, bs * q1p), jnp.float32),   # p1 patches
            pltpu.VMEM((KSIZE * KSIZE * _RS2, bs * q2p), jnp.bfloat16),  # p2 patches
            pltpu.VMEM((c1, bs * q1p), jnp.bfloat16),                    # act1
            pltpu.VMEM((c2, bs * q2p), jnp.bfloat16),                    # act2
            pltpu.VMEM((c3 * h3 * w3, bs), jnp.float32),                 # head input
        ],
        compiler_params=pltpu.CompilerParams(
            dimension_semantics=("parallel",),
            vmem_limit_bytes=32 * 1024 * 1024),
    )(x_flat, *[params[k] for k in weight_names])
    return out.reshape(n_pad, n_out)[:n]


# --------------------------- parameter construction --------------------------
def init_dqn_params(h, w, outputs, key):
    """Raw parameters mirroring the PyTorch module (conv/BN/linear)."""
    keys = jax.random.split(key, 24)

    def conv_layer(cin, cout, base):
        fan_in = cin * KSIZE * KSIZE
        return dict(
            w=jax.random.normal(keys[base + 0], (cout, cin, KSIZE, KSIZE),
                                jnp.float32) * (1.0 / jnp.sqrt(fan_in)),
            b=0.05 * jax.random.normal(keys[base + 1], (cout,), jnp.float32),
            gamma=1.0 + 0.1 * jax.random.normal(keys[base + 2], (cout,), jnp.float32),
            beta=0.1 * jax.random.normal(keys[base + 3], (cout,), jnp.float32),
            mean=0.1 * jax.random.normal(keys[base + 4], (cout,), jnp.float32),
            var=1.0 + 0.1 * jnp.abs(
                jax.random.normal(keys[base + 5], (cout,), jnp.float32)),
        )

    convw = conv2d_size_out(conv2d_size_out(conv2d_size_out(w)))
    convh = conv2d_size_out(conv2d_size_out(conv2d_size_out(h)))
    lin_in = convw * convh * 32
    return {
        "c1": conv_layer(3, 16, 0),
        "c2": conv_layer(16, 32, 6),
        "c3": conv_layer(32, 32, 12),
        "head_w": jax.random.normal(keys[20], (outputs, lin_in), jnp.float32)
                  * (1.0 / jnp.sqrt(lin_in)),
        "head_b": 0.05 * jax.random.normal(keys[21], (outputs,), jnp.float32),
    }


def prepare_params(raw, h, w, eps=1e-5):
    """One-time weight prep: BN fold, tap layout, head permutation, dtype cast."""
    out_h, out_w, _, _ = _geometry(h, w)

    def bn_scale_bias(p):
        scale = p["gamma"] * lax.rsqrt(p["var"] + eps)
        bias = (p["b"] - p["mean"]) * scale + p["beta"]
        return scale, bias

    def fold_patch_major(p, rs, dtype):
        cout, cin, kh, kw = p["w"].shape
        scale, bias = bn_scale_bias(p)
        wm = p["w"] * scale[:, None, None, None]              # fold BN scale
        wm = jnp.transpose(wm, (0, 2, 3, 1)).reshape(cout, kh * kw, cin)
        wm = jnp.pad(wm, ((0, 0), (0, 0), (0, rs - cin)))     # zero pad channel rows
        return (wm.reshape(cout, kh * kw * rs).astype(dtype),
                bias.reshape(cout, 1).astype(jnp.float32))

    wc1, bc1 = fold_patch_major(raw["c1"], _RS1, jnp.float32)   # f32 (see p1)
    wc2, bc2 = fold_patch_major(raw["c2"], _RS2, jnp.bfloat16)

    c3p = raw["c3"]
    cout3, cin3, kh, kw = c3p["w"].shape
    scale3, bias3 = bn_scale_bias(c3p)
    wm3 = c3p["w"] * scale3[:, None, None, None]
    wc3 = jnp.transpose(wm3, (2, 3, 0, 1)).reshape(kh * kw, cout3, cin3)
    wc3 = wc3.astype(jnp.bfloat16)                              # (25, 32, 32) tap-major
    bc3 = bias3.reshape(cout3, 1).astype(jnp.float32)

    n_out = raw["head_w"].shape[0]
    # PyTorch flatten order: feature = c*(out_h*out_w) + ho*out_w + wo.
    # Kernel gathers the head input as [(ho*out_w + wo)*c3 + c].
    wh = raw["head_w"].reshape(n_out, cout3, out_h * out_w)
    wh = jnp.transpose(wh, (0, 2, 1)).reshape(n_out, out_h * out_w * cout3)
    return dict(w1=wc1, b1=bc1, w2=wc2, b2=bc2, w3=wc3, b3=bc3,
                wh=wh.astype(jnp.float32),
                bh=raw["head_b"].reshape(n_out, 1).astype(jnp.float32))


# -------------------------- pure-JAX reference (f32) -------------------------
def dqn_reference(raw, x, eps=1e-5):
    def cbr(x, p):
        y = lax.conv_general_dilated(
            x, p["w"], window_strides=(STRIDE, STRIDE), padding="VALID",
            dimension_numbers=("NCHW", "OIHW", "NCHW"))
        y = y + p["b"][None, :, None, None]
        scale = p["gamma"] * lax.rsqrt(p["var"] + eps)
        y = (y - p["mean"][None, :, None, None]) * scale[None, :, None, None] \
            + p["beta"][None, :, None, None]
        return jnp.maximum(y, 0.0)

    for name in ("c1", "c2", "c3"):
        x = cbr(x, raw[name])
    flat = x.reshape(x.shape[0], -1)
    return flat @ raw["head_w"].T + raw["head_b"][None, :]


if __name__ == "__main__":
    key = jax.random.PRNGKey(0)
    k_param, k_x1, k_x2 = jax.random.split(key, 3)

    H, W_IMG, OUTPUTS = 40, 40, 4                   # 40 -> 18 -> 7 -> 2 spatial
    raw = init_dqn_params(H, W_IMG, OUTPUTS, k_param)
    params = prepare_params(raw, H, W_IMG)          # hoisted one-time prep

    fwd = jax.jit(dqn_forward)
    ref_fn = jax.jit(dqn_reference)

    # batch=2 -> bs=1 (2 grid steps); batch=5 -> bs=2 (3 grid steps + batch pad)
    for batch, kx in ((2, k_x1), (5, k_x2)):
        x = jax.random.normal(kx, (batch, 3, H, W_IMG), jnp.float32)
        out = jax.block_until_ready(fwd(params, x))
        ref = jax.block_until_ready(ref_fn(raw, x))
        assert out.shape == (batch, OUTPUTS), out.shape
        assert bool(jnp.all(jnp.isfinite(out)))
        err = float(jnp.max(jnp.abs(out - ref)))
        assert err < 7.5e-2, f"batch={batch}: max |err| vs f32 reference = {err}"

    print("KERNEL_OK")
</pallas_src>

<mosaic_0001>
module attributes {stable_mosaic.version = 11 : i64} {
  func.func @kernel(%arg0: i32, %arg1: memref<1x8x1600xf32, #tpu.memory_space<vmem>>, %arg2: memref<16x200xf32, #tpu.memory_space<vmem>>, %arg3: memref<16x1xf32, #tpu.memory_space<vmem>>, %arg4: memref<32x400xbf16, #tpu.memory_space<vmem>>, %arg5: memref<32x1xf32, #tpu.memory_space<vmem>>, %arg6: memref<25x32x32xbf16, #tpu.memory_space<vmem>>, %arg7: memref<32x1xf32, #tpu.memory_space<vmem>>, %arg8: memref<4x128xf32, #tpu.memory_space<vmem>>, %arg9: memref<4x1xf32, #tpu.memory_space<vmem>>, %arg10: memref<1x4x1xf32, #tpu.memory_space<vmem>>, %arg11: memref<200x1408xf32, #tpu.memory_space<vmem>>, %arg12: memref<400x1024xbf16, #tpu.memory_space<vmem>>, %arg13: memref<16x1408xbf16, #tpu.memory_space<vmem>>, %arg14: memref<32x1024xbf16, #tpu.memory_space<vmem>>, %arg15: memref<128x1xf32, #tpu.memory_space<vmem>>) attributes {dimension_semantics = [#tpu.dimension_semantics<parallel>], iteration_bounds = array<i64: 2>, scalar_prefetch = 0 : i64, scratch_operands = 5 : i64, tpu.core_type = #tpu.core_type<tc>, window_params = [{transform_indices = @transform_0, window_bounds = array<i64: 1, 8, 1600>}, {pipeline_mode = #tpu.pipeline_mode<synchronous>, transform_indices = @transform_1, window_bounds = array<i64: 16, 200>}, {pipeline_mode = #tpu.pipeline_mode<synchronous>, transform_indices = @transform_2, window_bounds = array<i64: 16, 1>}, {pipeline_mode = #tpu.pipeline_mode<synchronous>, transform_indices = @transform_3, window_bounds = array<i64: 32, 400>}, {pipeline_mode = #tpu.pipeline_mode<synchronous>, transform_indices = @transform_4, window_bounds = array<i64: 32, 1>}, {pipeline_mode = #tpu.pipeline_mode<synchronous>, transform_indices = @transform_5, window_bounds = array<i64: 25, 32, 32>}, {pipeline_mode = #tpu.pipeline_mode<synchronous>, transform_indices = @transform_6, window_bounds = array<i64: 32, 1>}, {pipeline_mode = #tpu.pipeline_mode<synchronous>, transform_indices = @transform_7, window_bounds = array<i64: 4, 128>}, {pipeline_mode = #tpu.pipeline_mode<synchronous>, transform_indices = @transform_8, window_bounds = array<i64: 4, 1>}, {transform_indices = @transform_9, window_bounds = array<i64: 1, 4, 1>}]} {
    %c0 = arith.constant 0 : index
    %c0_0 = arith.constant 0 : index
    %c0_1 = arith.constant 0 : index
    %0 = vector.load %arg1[%c0, %c0_0, %c0_1] : memref<1x8x1600xf32, #tpu.memory_space<vmem>>, vector<1x8x1313xf32>
    %1 = vector.shape_cast %0 : vector<1x8x1313xf32> to vector<8x1313xf32>
    %c0_2 = arith.constant 0 : index
    %c0_3 = arith.constant 0 : index
    %2 = vector.load %arg11[%c0_2, %c0_3] : memref<200x1408xf32, #tpu.memory_space<vmem>>, vector<8x1313xf32>
    tpu.vector_store %arg11[%c0_2, %c0_3], %1 {strides = array<i32>} : memref<200x1408xf32, #tpu.memory_space<vmem>>, vector<8x1313xf32>,
    %c0_4 = arith.constant 0 : index
    %c0_5 = arith.constant 0 : index
    %c1 = arith.constant 1 : index
    %3 = vector.load %arg1[%c0_4, %c0_5, %c1] : memref<1x8x1600xf32, #tpu.memory_space<vmem>>, vector<1x8x1313xf32>
    %4 = vector.shape_cast %3 : vector<1x8x1313xf32> to vector<8x1313xf32>
    %c8 = arith.constant 8 : index
    %c0_6 = arith.constant 0 : index
    %5 = vector.load %arg11[%c8, %c0_6] : memref<200x1408xf32, #tpu.memory_space<vmem>>, vector<8x1313xf32>
    tpu.vector_store %arg11[%c8, %c0_6], %4 {strides = array<i32>} : memref<200x1408xf32, #tpu.memory_space<vmem>>, vector<8x1313xf32>,
    %c0_7 = arith.constant 0 : index
    %c0_8 = arith.constant 0 : index
    %c2 = arith.constant 2 : index
    %6 = vector.load %arg1[%c0_7, %c0_8, %c2] : memref<1x8x1600xf32, #tpu.memory_space<vmem>>, vector<1x8x1313xf32>
    %7 = vector.shape_cast %6 : vector<1x8x1313xf32> to vector<8x1313xf32>
    %c16 = arith.constant 16 : index
    %c0_9 = arith.constant 0 : index
    %8 = vector.load %arg11[%c16, %c0_9] : memref<200x1408xf32, #tpu.memory_space<vmem>>, vector<8x1313xf32>
    tpu.vector_store %arg11[%c16, %c0_9], %7 {strides = array<i32>} : memref<200x1408xf32, #tpu.memory_space<vmem>>, vector<8x1313xf32>,
    %c0_10 = arith.constant 0 : index
    %c0_11 = arith.constant 0 : index
    %c3 = arith.constant 3 : index
    %9 = vector.load %arg1[%c0_10, %c0_11, %c3] : memref<1x8x1600xf32, #tpu.memory_space<vmem>>, vector<1x8x1313xf32>
    %10 = vector.shape_cast %9 : vector<1x8x1313xf32> to vector<8x1313xf32>
    %c24 = arith.constant 24 : index
    %c0_12 = arith.constant 0 : index
    %11 = vector.load %arg11[%c24, %c0_12] : memref<200x1408xf32, #tpu.memory_space<vmem>>, vector<8x1313xf32>
    tpu.vector_store %arg11[%c24, %c0_12], %10 {strides = array<i32>} : memref<200x1408xf32, #tpu.memory_space<vmem>>, vector<8x1313xf32>,
    %c0_13 = arith.constant 0 : index
    %c0_14 = arith.constant 0 : index
    %c4 = arith.constant 4 : index
    %12 = vector.load %arg1[%c0_13, %c0_14, %c4] : memref<1x8x1600xf32, #tpu.memory_space<vmem>>, vector<1x8x1313xf32>
    %13 = vector.shape_cast %12 : vector<1x8x1313xf32> to vector<8x1313xf32>
    %c32 = arith.constant 32 : index
    %c0_15 = arith.constant 0 : index
    %14 = vector.load %arg11[%c32, %c0_15] : memref<200x1408xf32, #tpu.memory_space<vmem>>, vector<8x1313xf32>
    tpu.vector_store %arg11[%c32, %c0_15], %13 {strides = array<i32>} : memref<200x1408xf32, #tpu.memory_space<vmem>>, vector<8x1313xf32>,
    %c0_16 = arith.constant 0 : index
    %c0_17 = arith.constant 0 : index
    %c40 = arith.constant 40 : index
    %15 = vector.load %arg1[%c0_16, %c0_17, %c40] : memref<1x8x1600xf32, #tpu.memory_space<vmem>>, vector<1x8x1313xf32>
    %16 = vector.shape_cast %15 : vector<1x8x1313xf32> to vector<8x1313xf32>
    %c40_18 = arith.constant 40 : index
    %c0_19 = arith.constant 0 : index
    %17 = vector.load %arg11[%c40_18, %c0_19] : memref<200x1408xf32, #tpu.memory_space<vmem>>, vector<8x1313xf32>
    tpu.vector_store %arg11[%c40_18, %c0_19], %16 {strides = array<i32>} : memref<200x1408xf32, #tpu.memory_space<vmem>>, vector<8x1313xf32>,
    %c0_20 = arith.constant 0 : index
    %c0_21 = arith.constant 0 : index
    %c41 = arith.constant 41 : index
    %18 = vector.load %arg1[%c0_20, %c0_21, %c41] : memref<1x8x1600xf32, #tpu.memory_space<vmem>>, vector<1x8x1313xf32>
    %19 = vector.shape_cast %18 : vector<1x8x1313xf32> to vector<8x1313xf32>
    %c48 = arith.constant 48 : index
    %c0_22 = arith.constant 0 : index
    %20 = vector.load %arg11[%c48, %c0_22] : memref<200x1408xf32, #tpu.memory_space<vmem>>, vector<8x1313xf32>
    tpu.vector_store %arg11[%c48, %c0_22], %19 {strides = array<i32>} : memref<200x1408xf32, #tpu.memory_space<vmem>>, vector<8x1313xf32>,
    %c0_23 = arith.constant 0 : index
    %c0_24 = arith.constant 0 : index
    %c42 = arith.constant 42 : index
    %21 = vector.load %arg1[%c0_23, %c0_24, %c42] : memref<1x8x1600xf32, #tpu.memory_space<vmem>>, vector<1x8x1313xf32>
    %22 = vector.shape_cast %21 : vector<1x8x1313xf32> to vector<8x1313xf32>
    %c56 = arith.constant 56 : index
    %c0_25 = arith.constant 0 : index
    %23 = vector.load %arg11[%c56, %c0_25] : memref<200x1408xf32, #tpu.memory_space<vmem>>, vector<8x1313xf32>
    tpu.vector_store %arg11[%c56, %c0_25], %22 {strides = array<i32>} : memref<200x1408xf32, #tpu.memory_space<vmem>>, vector<8x1313xf32>,
    %c0_26 = arith.constant 0 : index
    %c0_27 = arith.constant 0 : index
    %c43 = arith.constant 43 : index
    %24 = vector.load %arg1[%c0_26, %c0_27, %c43] : memref<1x8x1600xf32, #tpu.memory_space<vmem>>, vector<1x8x1313xf32>
    %25 = vector.shape_cast %24 : vector<1x8x1313xf32> to vector<8x1313xf32>
    %c64 = arith.constant 64 : index
    %c0_28 = arith.constant 0 : index
    %26 = vector.load %arg11[%c64, %c0_28] : memref<200x1408xf32, #tpu.memory_space<vmem>>, vector<8x1313xf32>
    tpu.vector_store %arg11[%c64, %c0_28], %25 {strides = array<i32>} : memref<200x1408xf32, #tpu.memory_space<vmem>>, vector<8x1313xf32>,
    %c0_29 = arith.constant 0 : index
    %c0_30 = arith.constant 0 : index
    %c44 = arith.constant 44 : index
    %27 = vector.load %arg1[%c0_29, %c0_30, %c44] : memref<1x8x1600xf32, #tpu.memory_space<vmem>>, vector<1x8x1313xf32>
    %28 = vector.shape_cast %27 : vector<1x8x1313xf32> to vector<8x1313xf32>
    %c72 = arith.constant 72 : index
    %c0_31 = arith.constant 0 : index
    %29 = vector.load %arg11[%c72, %c0_31] : memref<200x1408xf32, #tpu.memory_space<vmem>>, vector<8x1313xf32>
    tpu.vector_store %arg11[%c72, %c0_31], %28 {strides = array<i32>} : memref<200x1408xf32, #tpu.memory_space<vmem>>, vector<8x1313xf32>,
    %c0_32 = arith.constant 0 : index
    %c0_33 = arith.constant 0 : index
    %c80 = arith.constant 80 : index
    %30 = vector.load %arg1[%c0_32, %c0_33, %c80] : memref<1x8x1600xf32, #tpu.memory_space<vmem>>, vector<1x8x1313xf32>
    %31 = vector.shape_cast %30 : vector<1x8x1313xf32> to vector<8x1313xf32>
    %c80_34 = arith.constant 80 : index
    %c0_35 = arith.constant 0 : index
    %32 = vector.load %arg11[%c80_34, %c0_35] : memref<200x1408xf32, #tpu.memory_space<vmem>>, vector<8x1313xf32>
    tpu.vector_store %arg11[%c80_34, %c0_35], %31 {strides = array<i32>} : memref<200x1408xf32, #tpu.memory_space<vmem>>, vector<8x1313xf32>,
    %c0_36 = arith.constant 0 : index
    %c0_37 = arith.constant 0 : index
    %c81 = arith.constant 81 : index
    %33 = vector.load %arg1[%c0_36, %c0_37, %c81] : memref<1x8x1600xf32, #tpu.memory_space<vmem>>, vector<1x8x1313xf32>
    %34 = vector.shape_cast %33 : vector<1x8x1313xf32> to vector<8x1313xf32>
    %c88 = arith.constant 88 : index
    %c0_38 = arith.constant 0 : index
    %35 = vector.load %arg11[%c88, %c0_38] : memref<200x1408xf32, #tpu.memory_space<vmem>>, vector<8x1313xf32>
    tpu.vector_store %arg11[%c88, %c0_38], %34 {strides = array<i32>} : memref<200x1408xf32, #tpu.memory_space<vmem>>, vector<8x1313xf32>,
    %c0_39 = arith.constant 0 : index
    %c0_40 = arith.constant 0 : index
    %c82 = arith.constant 82 : index
    %36 = vector.load %arg1[%c0_39, %c0_40, %c82] : memref<1x8x1600xf32, #tpu.memory_space<vmem>>, vector<1x8x1313xf32>
    %37 = vector.shape_cast %36 : vector<1x8x1313xf32> to vector<8x1313xf32>
    %c96 = arith.constant 96 : index
    %c0_41 = arith.constant 0 : index
    %38 = vector.load %arg11[%c96, %c0_41] : memref<200x1408xf32, #tpu.memory_space<vmem>>, vector<8x1313xf32>
    tpu.vector_store %arg11[%c96, %c0_41], %37 {strides = array<i32>} : memref<200x1408xf32, #tpu.memory_space<vmem>>, vector<8x1313xf32>,
    %c0_42 = arith.constant 0 : index
    %c0_43 = arith.constant 0 : index
    %c83 = arith.constant 83 : index
    %39 = vector.load %arg1[%c0_42, %c0_43, %c83] : memref<1x8x1600xf32, #tpu.memory_space<vmem>>, vector<1x8x1313xf32>
    %40 = vector.shape_cast %39 : vector<1x8x1313xf32> to vector<8x1313xf32>
    %c104 = arith.constant 104 : index
    %c0_44 = arith.constant 0 : index
    %41 = vector.load %arg11[%c104, %c0_44] : memref<200x1408xf32, #tpu.memory_space<vmem>>, vector<8x1313xf32>
    tpu.vector_store %arg11[%c104, %c0_44], %40 {strides = array<i32>} : memref<200x1408xf32, #tpu.memory_space<vmem>>, vector<8x1313xf32>,
    %c0_45 = arith.constant 0 : index
    %c0_46 = arith.constant 0 : index
    %c84 = arith.constant 84 : index
    %42 = vector.load %arg1[%c0_45, %c0_46, %c84] : memref<1x8x1600xf32, #tpu.memory_space<vmem>>, vector<1x8x1313xf32>
    %43 = vector.shape_cast %42 : vector<1x8x1313xf32> to vector<8x1313xf32>
    %c112 = arith.constant 112 : index
    %c0_47 = arith.constant 0 : index
    %44 = vector.load %arg11[%c112, %c0_47] : memref<200x1408xf32, #tpu.memory_space<vmem>>, vector<8x1313xf32>
    tpu.vector_store %arg11[%c112, %c0_47], %43 {strides = array<i32>} : memref<200x1408xf32, #tpu.memory_space<vmem>>, vector<8x1313xf32>,
    %c0_48 = arith.constant 0 : index
    %c0_49 = arith.constant 0 : index
    %c120 = arith.constant 120 : index
    %45 = vector.load %arg1[%c0_48, %c0_49, %c120] : memref<1x8x1600xf32, #tpu.memory_space<vmem>>, vector<1x8x1313xf32>
    %46 = vector.shape_cast %45 : vector<1x8x1313xf32> to vector<8x1313xf32>
    %c120_50 = arith.constant 120 : index
    %c0_51 = arith.constant 0 : index
    %47 = vector.load %arg11[%c120_50, %c0_51] : memref<200x1408xf32, #tpu.memory_space<vmem>>, vector<8x1313xf32>
    tpu.vector_store %arg11[%c120_50, %c0_51], %46 {strides = array<i32>} : memref<200x1408xf32, #tpu.memory_space<vmem>>, vector<8x1313xf32>,
    %c0_52 = arith.constant 0 : index
    %c0_53 = arith.constant 0 : index
    %c121 = arith.constant 121 : index
    %48 = vector.load %arg1[%c0_52, %c0_53, %c121] : memref<1x8x1600xf32, #tpu.memory_space<vmem>>, vector<1x8x1313xf32>
    %49 = vector.shape_cast %48 : vector<1x8x1313xf32> to vector<8x1313xf32>
    %c128 = arith.constant 128 : index
    %c0_54 = arith.constant 0 : index
    %50 = vector.load %arg11[%c128, %c0_54] : memref<200x1408xf32, #tpu.memory_space<vmem>>, vector<8x1313xf32>
    tpu.vector_store %arg11[%c128, %c0_54], %49 {strides = array<i32>} : memref<200x1408xf32, #tpu.memory_space<vmem>>, vector<8x1313xf32>,
    %c0_55 = arith.constant 0 : index
    %c0_56 = arith.constant 0 : index
    %c122 = arith.constant 122 : index
    %51 = vector.load %arg1[%c0_55, %c0_56, %c122] : memref<1x8x1600xf32, #tpu.memory_space<vmem>>, vector<1x8x1313xf32>
    %52 = vector.shape_cast %51 : vector<1x8x1313xf32> to vector<8x1313xf32>
    %c136 = arith.constant 136 : index
    %c0_57 = arith.constant 0 : index
    %53 = vector.load %arg11[%c136, %c0_57] : memref<200x1408xf32, #tpu.memory_space<vmem>>, vector<8x1313xf32>
    tpu.vector_store %arg11[%c136, %c0_57], %52 {strides = array<i32>} : memref<200x1408xf32, #tpu.memory_space<vmem>>, vector<8x1313xf32>,
    %c0_58 = arith.constant 0 : index
    %c0_59 = arith.constant 0 : index
    %c123 = arith.constant 123 : index
    %54 = vector.load %arg1[%c0_58, %c0_59, %c123] : memref<1x8x1600xf32, #tpu.memory_space<vmem>>, vector<1x8x1313xf32>
    %55 = vector.shape_cast %54 : vector<1x8x1313xf32> to vector<8x1313xf32>
    %c144 = arith.constant 144 : index
    %c0_60 = arith.constant 0 : index
    %56 = vector.load %arg11[%c144, %c0_60] : memref<200x1408xf32, #tpu.memory_space<vmem>>, vector<8x1313xf32>
    tpu.vector_store %arg11[%c144, %c0_60], %55 {strides = array<i32>} : memref<200x1408xf32, #tpu.memory_space<vmem>>, vector<8x1313xf32>,
    %c0_61 = arith.constant 0 : index
    %c0_62 = arith.constant 0 : index
    %c124 = arith.constant 124 : index
    %57 = vector.load %arg1[%c0_61, %c0_62, %c124] : memref<1x8x1600xf32, #tpu.memory_space<vmem>>, vector<1x8x1313xf32>
    %58 = vector.shape_cast %57 : vector<1x8x1313xf32> to vector<8x1313xf32>
    %c152 = arith.constant 152 : index
    %c0_63 = arith.constant 0 : index
    %59 = vector.load %arg11[%c152, %c0_63] : memref<200x1408xf32, #tpu.memory_space<vmem>>, vector<8x1313xf32>
    tpu.vector_store %arg11[%c152, %c0_63], %58 {strides = array<i32>} : memref<200x1408xf32, #tpu.memory_space<vmem>>, vector<8x1313xf32>,
    %c0_64 = arith.constant 0 : index
    %c0_65 = arith.constant 0 : index
    %c160 = arith.constant 160 : index
    %60 = vector.load %arg1[%c0_64, %c0_65, %c160] : memref<1x8x1600xf32, #tpu.memory_space<vmem>>, vector<1x8x1313xf32>
    %61 = vector.shape_cast %60 : vector<1x8x1313xf32> to vector<8x1313xf32>
    %c160_66 = arith.constant 160 : index
    %c0_67 = arith.constant 0 : index
    %62 = vector.load %arg11[%c160_66, %c0_67] : memref<200x1408xf32, #tpu.memory_space<vmem>>, vector<8x1313xf32>
    tpu.vector_store %arg11[%c160_66, %c0_67], %61 {strides = array<i32>} : memref<200x1408xf32, #tpu.memory_space<vmem>>, vector<8x1313xf32>,
    %c0_68 = arith.constant 0 : index
    %c0_69 = arith.constant 0 : index
    %c161 = arith.constant 161 : index
    %63 = vector.load %arg1[%c0_68, %c0_69, %c161] : memref<1x8x1600xf32, #tpu.memory_space<vmem>>, vector<1x8x1313xf32>
    %64 = vector.shape_cast %63 : vector<1x8x1313xf32> to vector<8x1313xf32>
    %c168 = arith.constant 168 : index
    %c0_70 = arith.constant 0 : index
    %65 = vector.load %arg11[%c168, %c0_70] : memref<200x1408xf32, #tpu.memory_space<vmem>>, vector<8x1313xf32>
    tpu.vector_store %arg11[%c168, %c0_70], %64 {strides = array<i32>} : memref<200x1408xf32, #tpu.memory_space<vmem>>, vector<8x1313xf32>,
    %c0_71 = arith.constant 0 : index
    %c0_72 = arith.constant 0 : index
    %c162 = arith.constant 162 : index
    %66 = vector.load %arg1[%c0_71, %c0_72, %c162] : memref<1x8x1600xf32, #tpu.memory_space<vmem>>, vector<1x8x1313xf32>
    %67 = vector.shape_cast %66 : vector<1x8x1313xf32> to vector<8x1313xf32>
    %c176 = arith.constant 176 : index
    %c0_73 = arith.constant 0 : index
    %68 = vector.load %arg11[%c176, %c0_73] : memref<200x1408xf32, #tpu.memory_space<vmem>>, vector<8x1313xf32>
    tpu.vector_store %arg11[%c176, %c0_73], %67 {strides = array<i32>} : memref<200x1408xf32, #tpu.memory_space<vmem>>, vector<8x1313xf32>,
    %c0_74 = arith.constant 0 : index
    %c0_75 = arith.constant 0 : index
    %c163 = arith.constant 163 : index
    %69 = vector.load %arg1[%c0_74, %c0_75, %c163] : memref<1x8x1600xf32, #tpu.memory_space<vmem>>, vector<1x8x1313xf32>
    %70 = vector.shape_cast %69 : vector<1x8x1313xf32> to vector<8x1313xf32>
    %c184 = arith.constant 184 : index
    %c0_76 = arith.constant 0 : index
    %71 = vector.load %arg11[%c184, %c0_76] : memref<200x1408xf32, #tpu.memory_space<vmem>>, vector<8x1313xf32>
    tpu.vector_store %arg11[%c184, %c0_76], %70 {strides = array<i32>} : memref<200x1408xf32, #tpu.memory_space<vmem>>, vector<8x1313xf32>,
    %c0_77 = arith.constant 0 : index
    %c0_78 = arith.constant 0 : index
    %c164 = arith.constant 164 : index
    %72 = vector.load %arg1[%c0_77, %c0_78, %c164] : memref<1x8x1600xf32, #tpu.memory_space<vmem>>, vector<1x8x1313xf32>
    %73 = vector.shape_cast %72 : vector<1x8x1313xf32> to vector<8x1313xf32>
    %c192 = arith.constant 192 : index
    %c0_79 = arith.constant 0 : index
    %74 = vector.load %arg11[%c192, %c0_79] : memref<200x1408xf32, #tpu.memory_space<vmem>>, vector<8x1313xf32>
    tpu.vector_store %arg11[%c192, %c0_79], %73 {strides = array<i32>} : memref<200x1408xf32, #tpu.memory_space<vmem>>, vector<8x1313xf32>,
    %c0_80 = arith.constant 0 : index
    %c0_81 = arith.constant 0 : index
    %75 = vector.load %arg2[%c0_80, %c0_81] : memref<16x200xf32, #tpu.memory_space<vmem>>, vector<16x200xf32>
    %c0_82 = arith.constant 0 : index
    %c0_83 = arith.constant 0 : index
    %76 = vector.load %arg11[%c0_82, %c0_83] : memref<200x1408xf32, #tpu.memory_space<vmem>>, vector<200x1408xf32>
    %cst = arith.constant dense<0.000000e+00> : vector<16x1408xf32>
    %77 = tpu.matmul %75, %76, %cst {dimension_numbers = #tpu.dot_dimension_numbers<[1], [0], [0], [1], [0, 0, 1, 1], [], []>} : vector<16x200xf32>, vector<200x1408xf32>, vector<16x1408xf32> -> vector<16x1408xf32>
    %c0_84 = arith.constant 0 : index
    %c0_85 = arith.constant 0 : index
    %78 = vector.load %arg3[%c0_84, %c0_85] : memref<16x1xf32, #tpu.memory_space<vmem>>, vector<16x1xf32>
    %79 = vector.broadcast %78 : vector<16x1xf32> to vector<16x1408xf32>
    %80 = arith.addf %77, %79 : vector<16x1408xf32>
    %cst_86 = arith.constant 0.000000e+00 : f32
    %81 = vector.broadcast %cst_86 : f32 to vector<16x1408xf32>
    %82 = arith.maximumf %80, %81 : vector<16x1408xf32>
    %83 = arith.truncf %82 : vector<16x1408xf32> to vector<16x1408xbf16>
    %c0_87 = arith.constant 0 : index
    %c0_88 = arith.constant 0 : index
    %84 = vector.load %arg13[%c0_87, %c0_88] : memref<16x1408xbf16, #tpu.memory_space<vmem>>, vector<16x1408xbf16>
    tpu.vector_store %arg13[%c0_87, %c0_88], %83 {strides = array<i32>} : memref<16x1408xbf16, #tpu.memory_space<vmem>>, vector<16x1408xbf16>,
    %c0_89 = arith.constant 0 : index
    %c0_90 = arith.constant 0 : index
    %85 = vector.load %arg13[%c0_89, %c0_90] : memref<16x1408xbf16, #tpu.memory_space<vmem>>, vector<16x985xbf16>
    %c0_91 = arith.constant 0 : index
    %c0_92 = arith.constant 0 : index
    %86 = vector.load %arg12[%c0_91, %c0_92] : memref<400x1024xbf16, #tpu.memory_space<vmem>>, vector<16x985xbf16>
    tpu.vector_store %arg12[%c0_91, %c0_92], %85 {strides = array<i32>} : memref<400x1024xbf16, #tpu.memory_space<vmem>>, vector<16x985xbf16>,
    %c0_93 = arith.constant 0 : index
    %c2_94 = arith.constant 2 : index
    %87 = vector.load %arg13[%c0_93, %c2_94] : memref<16x1408xbf16, #tpu.memory_space<vmem>>, vector<16x985xbf16>
    %c16_95 = arith.constant 16 : index
    %c0_96 = arith.constant 0 : index
    %88 = vector.load %arg12[%c16_95, %c0_96] : memref<400x1024xbf16, #tpu.memory_space<vmem>>, vector<16x985xbf16>
    tpu.vector_store %arg12[%c16_95, %c0_96], %87 {strides = array<i32>} : memref<400x1024xbf16, #tpu.memory_space<vmem>>, vector<16x985xbf16>,
    %c0_97 = arith.constant 0 : index
    %c4_98 = arith.constant 4 : index
    %89 = vector.load %arg13[%c0_97, %c4_98] : memref<16x1408xbf16, #tpu.memory_space<vmem>>, vector<16x985xbf16>
    %c32_99 = arith.constant 32 : index
    %c0_100 = arith.constant 0 : index
    %90 = vector.load %arg12[%c32_99, %c0_100] : memref<400x1024xbf16, #tpu.memory_space<vmem>>, vector<16x985xbf16>
    tpu.vector_store %arg12[%c32_99, %c0_100], %89 {strides = array<i32>} : memref<400x1024xbf16, #tpu.memory_space<vmem>>, vector<16x985xbf16>,
    %c0_101 = arith.constant 0 : index
    %c6 = arith.constant 6 : index
    %91 = vector.load %arg13[%c0_101, %c6] : memref<16x1408xbf16, #tpu.memory_space<vmem>>, vector<16x985xbf16>
    %c48_102 = arith.constant 48 : index
    %c0_103 = arith.constant 0 : index
    %92 = vector.load %arg12[%c48_102, %c0_103] : memref<400x1024xbf16, #tpu.memory_space<vmem>>, vector<16x985xbf16>
    tpu.vector_store %arg12[%c48_102, %c0_103], %91 {strides = array<i32>} : memref<400x1024xbf16, #tpu.memory_space<vmem>>, vector<16x985xbf16>,
    %c0_104 = arith.constant 0 : index
    %c8_105 = arith.constant 8 : index
    %93 = vector.load %arg13[%c0_104, %c8_105] : memref<16x1408xbf16, #tpu.memory_space<vmem>>, vector<16x985xbf16>
    %c64_106 = arith.constant 64 : index
    %c0_107 = arith.constant 0 : index
    %94 = vector.load %arg12[%c64_106, %c0_107] : memref<400x1024xbf16, #tpu.memory_space<vmem>>, vector<16x985xbf16>
    tpu.vector_store %arg12[%c64_106, %c0_107], %93 {strides = array<i32>} : memref<400x1024xbf16, #tpu.memory_space<vmem>>, vector<16x985xbf16>,
    %c0_108 = arith.constant 0 : index
    %c80_109 = arith.constant 80 : index
    %95 = vector.load %arg13[%c0_108, %c80_109] : memref<16x1408xbf16, #tpu.memory_space<vmem>>, vector<16x985xbf16>
    %c80_110 = arith.constant 80 : index
    %c0_111 = arith.constant 0 : index
    %96 = vector.load %arg12[%c80_110, %c0_111] : memref<400x1024xbf16, #tpu.memory_space<vmem>>, vector<16x985xbf16>
    tpu.vector_store %arg12[%c80_110, %c0_111], %95 {strides = array<i32>} : memref<400x1024xbf16, #tpu.memory_space<vmem>>, vector<16x985xbf16>,
    %c0_112 = arith.constant 0 : index
    %c82_113 = arith.constant 82 : index
    %97 = vector.load %arg13[%c0_112, %c82_113] : memref<16x1408xbf16, #tpu.memory_space<vmem>>, vector<16x985xbf16>
    %c96_114 = arith.constant 96 : index
    %c0_115 = arith.constant 0 : index
    %98 = vector.load %arg12[%c96_114, %c0_115] : memref<400x1024xbf16, #tpu.memory_space<vmem>>, vector<16x985xbf16>
    tpu.vector_store %arg12[%c96_114, %c0_115], %97 {strides = array<i32>} : memref<400x1024xbf16, #tpu.memory_space<vmem>>, vector<16x985xbf16>,
    %c0_116 = arith.constant 0 : index
    %c84_117 = arith.constant 84 : index
    %99 = vector.load %arg13[%c0_116, %c84_117] : memref<16x1408xbf16, #tpu.memory_space<vmem>>, vector<16x985xbf16>
    %c112_118 = arith.constant 112 : index
    %c0_119 = arith.constant 0 : index
    %100 = vector.load %arg12[%c112_118, %c0_119] : memref<400x1024xbf16, #tpu.memory_space<vmem>>, vector<16x985xbf16>
    tpu.vector_store %arg12[%c112_118, %c0_119], %99 {strides = array<i32>} : memref<400x1024xbf16, #tpu.memory_space<vmem>>, vector<16x985xbf16>,
    %c0_120 = arith.constant 0 : index
    %c86 = arith.constant 86 : index
    %101 = vector.load %arg13[%c0_120, %c86] : memref<16x1408xbf16, #tpu.memory_space<vmem>>, vector<16x985xbf16>
    %c128_121 = arith.constant 128 : index
    %c0_122 = arith.constant 0 : index
    %102 = vector.load %arg12[%c128_121, %c0_122] : memref<400x1024xbf16, #tpu.memory_space<vmem>>, vector<16x985xbf16>
    tpu.vector_store %arg12[%c128_121, %c0_122], %101 {strides = array<i32>} : memref<400x1024xbf16, #tpu.memory_space<vmem>>, vector<16x985xbf16>,
    %c0_123 = arith.constant 0 : index
    %c88_124 = arith.constant 88 : index
    %103 = vector.load %arg13[%c0_123, %c88_124] : memref<16x1408xbf16, #tpu.memory_space<vmem>>, vector<16x985xbf16>
    %c144_125 = arith.constant 144 : index
    %c0_126 = arith.constant 0 : index
    %104 = vector.load %arg12[%c144_125, %c0_126] : memref<400x1024xbf16, #tpu.memory_space<vmem>>, vector<16x985xbf16>
    tpu.vector_store %arg12[%c144_125, %c0_126], %103 {strides = array<i32>} : memref<400x1024xbf16, #tpu.memory_space<vmem>>, vector<16x985xbf16>,
    %c0_127 = arith.constant 0 : index
    %c160_128 = arith.constant 160 : index
    %105 = vector.load %arg13[%c0_127, %c160_128] : memref<16x1408xbf16, #tpu.memory_space<vmem>>, vector<16x985xbf16>
    %c160_129 = arith.constant 160 : index
    %c0_130 = arith.constant 0 : index
    %106 = vector.load %arg12[%c160_129, %c0_130] : memref<400x1024xbf16, #tpu.memory_space<vmem>>, vector<16x985xbf16>
    tpu.vector_store %arg12[%c160_129, %c0_130], %105 {strides = array<i32>} : memref<400x1024xbf16, #tpu.memory_space<vmem>>, vector<16x985xbf16>,
    %c0_131 = arith.constant 0 : index
    %c162_132 = arith.constant 162 : index
    %107 = vector.load %arg13[%c0_131, %c162_132] : memref<16x1408xbf16, #tpu.memory_space<vmem>>, vector<16x985xbf16>
    %c176_133 = arith.constant 176 : index
    %c0_134 = arith.constant 0 : index
    %108 = vector.load %arg12[%c176_133, %c0_134] : memref<400x1024xbf16, #tpu.memory_space<vmem>>, vector<16x985xbf16>
    tpu.vector_store %arg12[%c176_133, %c0_134], %107 {strides = array<i32>} : memref<400x1024xbf16, #tpu.memory_space<vmem>>, vector<16x985xbf16>,
    %c0_135 = arith.constant 0 : index
    %c164_136 = arith.constant 164 : index
    %109 = vector.load %arg13[%c0_135, %c164_136] : memref<16x1408xbf16, #tpu.memory_space<vmem>>, vector<16x985xbf16>
    %c192_137 = arith.constant 192 : index
    %c0_138 = arith.constant 0 : index
    %110 = vector.load %arg12[%c192_137, %c0_138] : memref<400x1024xbf16, #tpu.memory_space<vmem>>, vector<16x985xbf16>
    tpu.vector_store %arg12[%c192_137, %c0_138], %109 {strides = array<i32>} : memref<400x1024xbf16, #tpu.memory_space<vmem>>, vector<16x985xbf16>,
    %c0_139 = arith.constant 0 : index
    %c166 = arith.constant 166 : index
    %111 = vector.load %arg13[%c0_139, %c166] : memref<16x1408xbf16, #tpu.memory_space<vmem>>, vector<16x985xbf16>
    %c208 = arith.constant 208 : index
    %c0_140 = arith.constant 0 : index
    %112 = vector.load %arg12[%c208, %c0_140] : memref<400x1024xbf16, #tpu.memory_space<vmem>>, vector<16x985xbf16>
    tpu.vector_store %arg12[%c208, %c0_140], %111 {strides = array<i32>} : memref<400x1024xbf16, #tpu.memory_space<vmem>>, vector<16x985xbf16>,
    %c0_141 = arith.constant 0 : index
    %c168_142 = arith.constant 168 : index
    %113 = vector.load %arg13[%c0_141, %c168_142] : memref<16x1408xbf16, #tpu.memory_space<vmem>>, vector<16x985xbf16>
    %c224 = arith.constant 224 : index
    %c0_143 = arith.constant 0 : index
    %114 = vector.load %arg12[%c224, %c0_143] : memref<400x1024xbf16, #tpu.memory_space<vmem>>, vector<16x985xbf16>
    tpu.vector_store %arg12[%c224, %c0_143], %113 {strides = array<i32>} : memref<400x1024xbf16, #tpu.memory_space<vmem>>, vector<16x985xbf16>,
    %c0_144 = arith.constant 0 : index
    %c240 = arith.constant 240 : index
    %115 = vector.load %arg13[%c0_144, %c240] : memref<16x1408xbf16, #tpu.memory_space<vmem>>, vector<16x985xbf16>
    %c240_145 = arith.constant 240 : index
    %c0_146 = arith.constant 0 : index
    %116 = vector.load %arg12[%c240_145, %c0_146] : memref<400x1024xbf16, #tpu.memory_space<vmem>>, vector<16x985xbf16>
    tpu.vector_store %arg12[%c240_145, %c0_146], %115 {strides = array<i32>} : memref<400x1024xbf16, #tpu.memory_space<vmem>>, vector<16x985xbf16>,
    %c0_147 = arith.constant 0 : index
    %c242 = arith.constant 242 : index
    %117 = vector.load %arg13[%c0_147, %c242] : memref<16x1408xbf16, #tpu.memory_space<vmem>>, vector<16x985xbf16>
    %c256 = arith.constant 256 : index
    %c0_148 = arith.constant 0 : index
    %118 = vector.load %arg12[%c256, %c0_148] : memref<400x1024xbf16, #tpu.memory_space<vmem>>, vector<16x985xbf16>
    tpu.vector_store %arg12[%c256, %c0_148], %117 {strides = array<i32>} : memref<400x1024xbf16, #tpu.memory_space<vmem>>, vector<16x985xbf16>,
    %c0_149 = arith.constant 0 : index
    %c244 = arith.constant 244 : index
    %119 = vector.load %arg13[%c0_149, %c244] : memref<16x1408xbf16, #tpu.memory_space<vmem>>, vector<16x985xbf16>
    %c272 = arith.constant 272 : index
    %c0_150 = arith.constant 0 : index
    %120 = vector.load %arg12[%c272, %c0_150] : memref<400x1024xbf16, #tpu.memory_space<vmem>>, vector<16x985xbf16>
    tpu.vector_store %arg12[%c272, %c0_150], %119 {strides = array<i32>} : memref<400x1024xbf16, #tpu.memory_space<vmem>>, vector<16x985xbf16>,
    %c0_151 = arith.constant 0 : index
    %c246 = arith.constant 246 : index
    %121 = vector.load %arg13[%c0_151, %c246] : memref<16x1408xbf16, #tpu.memory_space<vmem>>, vector<16x985xbf16>
    %c288 = arith.constant 288 : index
    %c0_152 = arith.constant 0 : index
    %122 = vector.load %arg12[%c288, %c0_152] : memref<400x1024xbf16, #tpu.memory_space<vmem>>, vector<16x985xbf16>
    tpu.vector_store %arg12[%c288, %c0_152], %121 {strides = array<i32>} : memref<400x1024xbf16, #tpu.memory_space<vmem>>, vector<16x985xbf16>,
    %c0_153 = arith.constant 0 : index
    %c248 = arith.constant 248 : index
    %123 = vector.load %arg13[%c0_153, %c248] : memref<16x1408xbf16, #tpu.memory_space<vmem>>, vector<16x985xbf16>
    %c304 = arith.constant 304 : index
    %c0_154 = arith.constant 0 : index
    %124 = vector.load %arg12[%c304, %c0_154] : memref<400x1024xbf16, #tpu.memory_space<vmem>>, vector<16x985xbf16>
    tpu.vector_store %arg12[%c304, %c0_154], %123 {strides = array<i32>} : memref<400x1024xbf16, #tpu.memory_space<vmem>>, vector<16x985xbf16>,
    %c0_155 = arith.constant 0 : index
    %c320 = arith.constant 320 : index
    %125 = vector.load %arg13[%c0_155, %c320] : memref<16x1408xbf16, #tpu.memory_space<vmem>>, vector<16x985xbf16>
    %c320_156 = arith.constant 320 : index
    %c0_157 = arith.constant 0 : index
    %126 = vector.load %arg12[%c320_156, %c0_157] : memref<400x1024xbf16, #tpu.memory_space<vmem>>, vector<16x985xbf16>
    tpu.vector_store %arg12[%c320_156, %c0_157], %125 {strides = array<i32>} : memref<400x1024xbf16, #tpu.memory_space<vmem>>, vector<16x985xbf16>,
    %c0_158 = arith.constant 0 : index
    %c322 = arith.constant 322 : index
    %127 = vector.load %arg13[%c0_158, %c322] : memref<16x1408xbf16, #tpu.memory_space<vmem>>, vector<16x985xbf16>
    %c336 = arith.constant 336 : index
    %c0_159 = arith.constant 0 : index
    %128 = vector.load %arg12[%c336, %c0_159] : memref<400x1024xbf16, #tpu.memory_space<vmem>>, vector<16x985xbf16>
    tpu.vector_store %arg12[%c336, %c0_159], %127 {strides = array<i32>} : memref<400x1024xbf16, #tpu.memory_space<vmem>>, vector<16x985xbf16>,
    %c0_160 = arith.constant 0 : index
    %c324 = arith.constant 324 : index
    %129 = vector.load %arg13[%c0_160, %c324] : memref<16x1408xbf16, #tpu.memory_space<vmem>>, vector<16x985xbf16>
    %c352 = arith.constant 352 : index
    %c0_161 = arith.constant 0 : index
    %130 = vector.load %arg12[%c352, %c0_161] : memref<400x1024xbf16, #tpu.memory_space<vmem>>, vector<16x985xbf16>
    tpu.vector_store %arg12[%c352, %c0_161], %129 {strides = array<i32>} : memref<400x1024xbf16, #tpu.memory_space<vmem>>, vector<16x985xbf16>,
    %c0_162 = arith.constant 0 : index
    %c326 = arith.constant 326 : index
    %131 = vector.load %arg13[%c0_162, %c326] : memref<16x1408xbf16, #tpu.memory_space<vmem>>, vector<16x985xbf16>
    %c368 = arith.constant 368 : index
    %c0_163 = arith.constant 0 : index
    %132 = vector.load %arg12[%c368, %c0_163] : memref<400x1024xbf16, #tpu.memory_space<vmem>>, vector<16x985xbf16>
    tpu.vector_store %arg12[%c368, %c0_163], %131 {strides = array<i32>} : memref<400x1024xbf16, #tpu.memory_space<vmem>>, vector<16x985xbf16>,
    %c0_164 = arith.constant 0 : index
    %c328 = arith.constant 328 : index
    %133 = vector.load %arg13[%c0_164, %c328] : memref<16x1408xbf16, #tpu.memory_space<vmem>>, vector<16x985xbf16>
    %c384 = arith.constant 384 : index
    %c0_165 = arith.constant 0 : index
    %134 = vector.load %arg12[%c384, %c0_165] : memref<400x1024xbf16, #tpu.memory_space<vmem>>, vector<16x985xbf16>
    tpu.vector_store %arg12[%c384, %c0_165], %133 {strides = array<i32>} : memref<400x1024xbf16, #tpu.memory_space<vmem>>, vector<16x985xbf16>,
    %c0_166 = arith.constant 0 : index
    %c0_167 = arith.constant 0 : index
    %135 = vector.load %arg4[%c0_166, %c0_167] : memref<32x400xbf16, #tpu.memory_space<vmem>>, vector<32x400xbf16>
    %c0_168 = arith.constant 0 : index
    %c0_169 = arith.constant 0 : index
    %136 = vector.load %arg12[%c0_168, %c0_169] : memref<400x1024xbf16, #tpu.memory_space<vmem>>, vector<400x1024xbf16>
    %cst_170 = arith.constant dense<0.000000e+00> : vector<32x1024xf32>
    %137 = tpu.matmul %135, %136, %cst_170 {dimension_numbers = #tpu.dot_dimension_numbers<[1], [0], [0], [1], [0, 0, 1, 1], [], []>} : vector<32x400xbf16>, vector<400x1024xbf16>, vector<32x1024xf32> -> vector<32x1024xf32>
    %c0_171 = arith.constant 0 : index
    %c0_172 = arith.constant 0 : index
    %138 = vector.load %arg5[%c0_171, %c0_172] : memref<32x1xf32, #tpu.memory_space<vmem>>, vector<32x1xf32>
    %139 = vector.broadcast %138 : vector<32x1xf32> to vector<32x1024xf32>
    %140 = arith.addf %137, %139 : vector<32x1024xf32>
    %cst_173 = arith.constant 0.000000e+00 : f32
    %141 = vector.broadcast %cst_173 : f32 to vector<32x1024xf32>
    %142 = arith.maximumf %140, %141 : vector<32x1024xf32>
    %143 = arith.truncf %142 : vector<32x1024xf32> to vector<32x1024xbf16>
    %c0_174 = arith.constant 0 : index
    %c0_175 = arith.constant 0 : index
    %144 = vector.load %arg14[%c0_174, %c0_175] : memref<32x1024xbf16, #tpu.memory_space<vmem>>, vector<32x1024xbf16>
    tpu.vector_store %arg14[%c0_174, %c0_175], %143 {strides = array<i32>} : memref<32x1024xbf16, #tpu.memory_space<vmem>>, vector<32x1024xbf16>,
    %cst_176 = arith.constant 0.000000e+00 : f32
    %145 = vector.broadcast %cst_176 : f32 to vector<32x9xf32>
    %c0_177 = arith.constant 0 : index
    %c0_178 = arith.constant 0 : index
    %c0_179 = arith.constant 0 : index
    %146 = vector.load %arg6[%c0_177, %c0_178, %c0_179] : memref<25x32x32xbf16, #tpu.memory_space<vmem>>, vector<1x32x32xbf16>
    %147 = vector.shape_cast %146 : vector<1x32x32xbf16> to vector<32x32xbf16>
    %c0_180 = arith.constant 0 : index
    %c0_181 = arith.constant 0 : index
    %148 = vector.load %arg14[%c0_180, %c0_181] : memref<32x1024xbf16, #tpu.memory_space<vmem>>, vector<32x9xbf16>
    %cst_182 = arith.constant dense<0.000000e+00> : vector<32x9xf32>
    %149 = tpu.matmul %147, %148, %cst_182 {dimension_numbers = #tpu.dot_dimension_numbers<[1], [0], [0], [1], [0, 0, 1, 1], [], []>} : vector<32x32xbf16>, vector<32x9xbf16>, vector<32x9xf32> -> vector<32x9xf32>
    %150 = arith.addf %145, %149 : vector<32x9xf32>
    %c1_183 = arith.constant 1 : index
    %c0_184 = arith.constant 0 : index
    %c0_185 = arith.constant 0 : index
    %151 = vector.load %arg6[%c1_183, %c0_184, %c0_185] : memref<25x32x32xbf16, #tpu.memory_space<vmem>>, vector<1x32x32xbf16>
    %152 = vector.shape_cast %151 : vector<1x32x32xbf16> to vector<32x32xbf16>
    %c0_186 = arith.constant 0 : index
    %c4_187 = arith.constant 4 : index
    %153 = vector.load %arg14[%c0_186, %c4_187] : memref<32x1024xbf16, #tpu.memory_space<vmem>>, vector<32x9xbf16>
    %cst_188 = arith.constant dense<0.000000e+00> : vector<32x9xf32>
    %154 = tpu.matmul %152, %153, %cst_188 {dimension_numbers = #tpu.dot_dimension_numbers<[1], [0], [0], [1], [0, 0, 1, 1], [], []>} : vector<32x32xbf16>, vector<32x9xbf16>, vector<32x9xf32> -> vector<32x9xf32>
    %155 = arith.addf %150, %154 : vector<32x9xf32>
    %c2_189 = arith.constant 2 : index
    %c0_190 = arith.constant 0 : index
    %c0_191 = arith.constant 0 : index
    %156 = vector.load %arg6[%c2_189, %c0_190, %c0_191] : memref<25x32x32xbf16, #tpu.memory_space<vmem>>, vector<1x32x32xbf16>
    %157 = vector.shape_cast %156 : vector<1x32x32xbf16> to vector<32x32xbf16>
    %c0_192 = arith.constant 0 : index
    %c8_193 = arith.constant 8 : index
    %158 = vector.load %arg14[%c0_192, %c8_193] : memref<32x1024xbf16, #tpu.memory_space<vmem>>, vector<32x9xbf16>
    %cst_194 = arith.constant dense<0.000000e+00> : vector<32x9xf32>
    %159 = tpu.matmul %157, %158, %cst_194 {dimension_numbers = #tpu.dot_dimension_numbers<[1], [0], [0], [1], [0, 0, 1, 1], [], []>} : vector<32x32xbf16>, vector<32x9xbf16>, vector<32x9xf32> -> vector<32x9xf32>
    %160 = arith.addf %155, %159 : vector<32x9xf32>
    %c3_195 = arith.constant 3 : index
    %c0_196 = arith.constant 0 : index
    %c0_197 = arith.constant 0 : index
    %161 = vector.load %arg6[%c3_195, %c0_196, %c0_197] : memref<25x32x32xbf16, #tpu.memory_space<vmem>>, vector<1x32x32xbf16>
    %162 = vector.shape_cast %161 : vector<1x32x32xbf16> to vector<32x32xbf16>
    %c0_198 = arith.constant 0 : index
    %c12 = arith.constant 12 : index
    %163 = vector.load %arg14[%c0_198, %c12] : memref<32x1024xbf16, #tpu.memory_space<vmem>>, vector<32x9xbf16>
    %cst_199 = arith.constant dense<0.000000e+00> : vector<32x9xf32>
    %164 = tpu.matmul %162, %163, %cst_199 {dimension_numbers = #tpu.dot_dimension_numbers<[1], [0], [0], [1], [0, 0, 1, 1], [], []>} : vector<32x32xbf16>, vector<32x9xbf16>, vector<32x9xf32> -> vector<32x9xf32>
    %165 = arith.addf %160, %164 : vector<32x9xf32>
    %c4_200 = arith.constant 4 : index
    %c0_201 = arith.constant 0 : index
    %c0_202 = arith.constant 0 : index
    %166 = vector.load %arg6[%c4_200, %c0_201, %c0_202] : memref<25x32x32xbf16, #tpu.memory_space<vmem>>, vector<1x32x32xbf16>
    %167 = vector.shape_cast %166 : vector<1x32x32xbf16> to vector<32x32xbf16>
    %c0_203 = arith.constant 0 : index
    %c16_204 = arith.constant 16 : index
    %168 = vector.load %arg14[%c0_203, %c16_204] : memref<32x1024xbf16, #tpu.memory_space<vmem>>, vector<32x9xbf16>
    %cst_205 = arith.constant dense<0.000000e+00> : vector<32x9xf32>
    %169 = tpu.matmul %167, %168, %cst_205 {dimension_numbers = #tpu.dot_dimension_numbers<[1], [0], [0], [1], [0, 0, 1, 1], [], []>} : vector<32x32xbf16>, vector<32x9xbf16>, vector<32x9xf32> -> vector<32x9xf32>
    %170 = arith.addf %165, %169 : vector<32x9xf32>
    %c5 = arith.constant 5 : index
    %c0_206 = arith.constant 0 : index
    %c0_207 = arith.constant 0 : index
    %171 = vector.load %arg6[%c5, %c0_206, %c0_207] : memref<25x32x32xbf16, #tpu.memory_space<vmem>>, vector<1x32x32xbf16>
    %172 = vector.shape_cast %171 : vector<1x32x32xbf16> to vector<32x32xbf16>
    %c0_208 = arith.constant 0 : index
    %c160_209 = arith.constant 160 : index
    %173 = vector.load %arg14[%c0_208, %c160_209] : memref<32x1024xbf16, #tpu.memory_space<vmem>>, vector<32x9xbf16>
    %cst_210 = arith.constant dense<0.000000e+00> : vector<32x9xf32>
    %174 = tpu.matmul %172, %173, %cst_210 {dimension_numbers = #tpu.dot_dimension_numbers<[1], [0], [0], [1], [0, 0, 1, 1], [], []>} : vector<32x32xbf16>, vector<32x9xbf16>, vector<32x9xf32> -> vector<32x9xf32>
    %175 = arith.addf %170, %174 : vector<32x9xf32>
    %c6_211 = arith.constant 6 : index
    %c0_212 = arith.constant 0 : index
    %c0_213 = arith.constant 0 : index
    %176 = vector.load %arg6[%c6_211, %c0_212, %c0_213] : memref<25x32x32xbf16, #tpu.memory_space<vmem>>, vector<1x32x32xbf16>
    %177 = vector.shape_cast %176 : vector<1x32x32xbf16> to vector<32x32xbf16>
    %c0_214 = arith.constant 0 : index
    %c164_215 = arith.constant 164 : index
    %178 = vector.load %arg14[%c0_214, %c164_215] : memref<32x1024xbf16, #tpu.memory_space<vmem>>, vector<32x9xbf16>
    %cst_216 = arith.constant dense<0.000000e+00> : vector<32x9xf32>
    %179 = tpu.matmul %177, %178, %cst_216 {dimension_numbers = #tpu.dot_dimension_numbers<[1], [0], [0], [1], [0, 0, 1, 1], [], []>} : vector<32x32xbf16>, vector<32x9xbf16>, vector<32x9xf32> -> vector<32x9xf32>
    %180 = arith.addf %175, %179 : vector<32x9xf32>
    %c7 = arith.constant 7 : index
    %c0_217 = arith.constant 0 : index
    %c0_218 = arith.constant 0 : index
    %181 = vector.load %arg6[%c7, %c0_217, %c0_218] : memref<25x32x32xbf16, #tpu.memory_space<vmem>>, vector<1x32x32xbf16>
    %182 = vector.shape_cast %181 : vector<1x32x32xbf16> to vector<32x32xbf16>
    %c0_219 = arith.constant 0 : index
    %c168_220 = arith.constant 168 : index
    %183 = vector.load %arg14[%c0_219, %c168_220] : memref<32x1024xbf16, #tpu.memory_space<vmem>>, vector<32x9xbf16>
    %cst_221 = arith.constant dense<0.000000e+00> : vector<32x9xf32>
    %184 = tpu.matmul %182, %183, %cst_221 {dimension_numbers = #tpu.dot_dimension_numbers<[1], [0], [0], [1], [0, 0, 1, 1], [], []>} : vector<32x32xbf16>, vector<32x9xbf16>, vector<32x9xf32> -> vector<32x9xf32>
    %185 = arith.addf %180, %184 : vector<32x9xf32>
    %c8_222 = arith.constant 8 : index
    %c0_223 = arith.constant 0 : index
    %c0_224 = arith.constant 0 : index
    %186 = vector.load %arg6[%c8_222, %c0_223, %c0_224] : memref<25x32x32xbf16, #tpu.memory_space<vmem>>, vector<1x32x32xbf16>
    %187 = vector.shape_cast %186 : vector<1x32x32xbf16> to vector<32x32xbf16>
    %c0_225 = arith.constant 0 : index
    %c172 = arith.constant 172 : index
    %188 = vector.load %arg14[%c0_225, %c172] : memref<32x1024xbf16, #tpu.memory_space<vmem>>, vector<32x9xbf16>
    %cst_226 = arith.constant dense<0.000000e+00> : vector<32x9xf32>
    %189 = tpu.matmul %187, %188, %cst_226 {dimension_numbers = #tpu.dot_dimension_numbers<[1], [0], [0], [1], [0, 0, 1, 1], [], []>} : vector<32x32xbf16>, vector<32x9xbf16>, vector<32x9xf32> -> vector<32x9xf32>
    %190 = arith.addf %185, %189 : vector<32x9xf32>
    %c9 = arith.constant 9 : index
    %c0_227 = arith.constant 0 : index
    %c0_228 = arith.constant 0 : index
    %191 = vector.load %arg6[%c9, %c0_227, %c0_228] : memref<25x32x32xbf16, #tpu.memory_space<vmem>>, vector<1x32x32xbf16>
    %192 = vector.shape_cast %191 : vector<1x32x32xbf16> to vector<32x32xbf16>
    %c0_229 = arith.constant 0 : index
    %c176_230 = arith.constant 176 : index
    %193 = vector.load %arg14[%c0_229, %c176_230] : memref<32x1024xbf16, #tpu.memory_space<vmem>>, vector<32x9xbf16>
    %cst_231 = arith.constant dense<0.000000e+00> : vector<32x9xf32>
    %194 = tpu.matmul %192, %193, %cst_231 {dimension_numbers = #tpu.dot_dimension_numbers<[1], [0], [0], [1], [0, 0, 1, 1], [], []>} : vector<32x32xbf16>, vector<32x9xbf16>, vector<32x9xf32> -> vector<32x9xf32>
    %195 = arith.addf %190, %194 : vector<32x9xf32>
    %c10 = arith.constant 10 : index
    %c0_232 = arith.constant 0 : index
    %c0_233 = arith.constant 0 : index
    %196 = vector.load %arg6[%c10, %c0_232, %c0_233] : memref<25x32x32xbf16, #tpu.memory_space<vmem>>, vector<1x32x32xbf16>
    %197 = vector.shape_cast %196 : vector<1x32x32xbf16> to vector<32x32xbf16>
    %c0_234 = arith.constant 0 : index
    %c320_235 = arith.constant 320 : index
    %198 = vector.load %arg14[%c0_234, %c320_235] : memref<32x1024xbf16, #tpu.memory_space<vmem>>, vector<32x9xbf16>
    %cst_236 = arith.constant dense<0.000000e+00> : vector<32x9xf32>
    %199 = tpu.matmul %197, %198, %cst_236 {dimension_numbers = #tpu.dot_dimension_numbers<[1], [0], [0], [1], [0, 0, 1, 1], [], []>} : vector<32x32xbf16>, vector<32x9xbf16>, vector<32x9xf32> -> vector<32x9xf32>
    %200 = arith.addf %195, %199 : vector<32x9xf32>
    %c11 = arith.constant 11 : index
    %c0_237 = arith.constant 0 : index
    %c0_238 = arith.constant 0 : index
    %201 = vector.load %arg6[%c11, %c0_237, %c0_238] : memref<25x32x32xbf16, #tpu.memory_space<vmem>>, vector<1x32x32xbf16>
    %202 = vector.shape_cast %201 : vector<1x32x32xbf16> to vector<32x32xbf16>
    %c0_239 = arith.constant 0 : index
    %c324_240 = arith.constant 324 : index
    %203 = vector.load %arg14[%c0_239, %c324_240] : memref<32x1024xbf16, #tpu.memory_space<vmem>>, vector<32x9xbf16>
    %cst_241 = arith.constant dense<0.000000e+00> : vector<32x9xf32>
    %204 = tpu.matmul %202, %203, %cst_241 {dimension_numbers = #tpu.dot_dimension_numbers<[1], [0], [0], [1], [0, 0, 1, 1], [], []>} : vector<32x32xbf16>, vector<32x9xbf16>, vector<32x9xf32> -> vector<32x9xf32>
    %205 = arith.addf %200, %204 : vector<32x9xf32>
    %c12_242 = arith.constant 12 : index
    %c0_243 = arith.constant 0 : index
    %c0_244 = arith.constant 0 : index
    %206 = vector.load %arg6[%c12_242, %c0_243, %c0_244] : memref<25x32x32xbf16, #tpu.memory_space<vmem>>, vector<1x32x32xbf16>
    %207 = vector.shape_cast %206 : vector<1x32x32xbf16> to vector<32x32xbf16>
    %c0_245 = arith.constant 0 : index
    %c328_246 = arith.constant 328 : index
    %208 = vector.load %arg14[%c0_245, %c328_246] : memref<32x1024xbf16, #tpu.memory_space<vmem>>, vector<32x9xbf16>
    %cst_247 = arith.constant dense<0.000000e+00> : vector<32x9xf32>
    %209 = tpu.matmul %207, %208, %cst_247 {dimension_numbers = #tpu.dot_dimension_numbers<[1], [0], [0], [1], [0, 0, 1, 1], [], []>} : vector<32x32xbf16>, vector<32x9xbf16>, vector<32x9xf32> -> vector<32x9xf32>
    %210 = arith.addf %205, %209 : vector<32x9xf32>
    %c13 = arith.constant 13 : index
    %c0_248 = arith.constant 0 : index
    %c0_249 = arith.constant 0 : index
    %211 = vector.load %arg6[%c13, %c0_248, %c0_249] : memref<25x32x32xbf16, #tpu.memory_space<vmem>>, vector<1x32x32xbf16>
    %212 = vector.shape_cast %211 : vector<1x32x32xbf16> to vector<32x32xbf16>
    %c0_250 = arith.constant 0 : index
    %c332 = arith.constant 332 : index
    %213 = vector.load %arg14[%c0_250, %c332] : memref<32x1024xbf16, #tpu.memory_space<vmem>>, vector<32x9xbf16>
    %cst_251 = arith.constant dense<0.000000e+00> : vector<32x9xf32>
    %214 = tpu.matmul %212, %213, %cst_251 {dimension_numbers = #tpu.dot_dimension_numbers<[1], [0], [0], [1], [0, 0, 1, 1], [], []>} : vector<32x32xbf16>, vector<32x9xbf16>, vector<32x9xf32> -> vector<32x9xf32>
    %215 = arith.addf %210, %214 : vector<32x9xf32>
    %c14 = arith.constant 14 : index
    %c0_252 = arith.constant 0 : index
    %c0_253 = arith.constant 0 : index
    %216 = vector.load %arg6[%c14, %c0_252, %c0_253] : memref<25x32x32xbf16, #tpu.memory_space<vmem>>, vector<1x32x32xbf16>
    %217 = vector.shape_cast %216 : vector<1x32x32xbf16> to vector<32x32xbf16>
    %c0_254 = arith.constant 0 : index
    %c336_255 = arith.constant 336 : index
    %218 = vector.load %arg14[%c0_254, %c336_255] : memref<32x1024xbf16, #tpu.memory_space<vmem>>, vector<32x9xbf16>
    %cst_256 = arith.constant dense<0.000000e+00> : vector<32x9xf32>
    %219 = tpu.matmul %217, %218, %cst_256 {dimension_numbers = #tpu.dot_dimension_numbers<[1], [0], [0], [1], [0, 0, 1, 1], [], []>} : vector<32x32xbf16>, vector<32x9xbf16>, vector<32x9xf32> -> vector<32x9xf32>
    %220 = arith.addf %215, %219 : vector<32x9xf32>
    %c15 = arith.constant 15 : index
    %c0_257 = arith.constant 0 : index
    %c0_258 = arith.constant 0 : index
    %221 = vector.load %arg6[%c15, %c0_257, %c0_258] : memref<25x32x32xbf16, #tpu.memory_space<vmem>>, vector<1x32x32xbf16>
    %222 = vector.shape_cast %221 : vector<1x32x32xbf16> to vector<32x32xbf16>
    %c0_259 = arith.constant 0 : index
    %c480 = arith.constant 480 : index
    %223 = vector.load %arg14[%c0_259, %c480] : memref<32x1024xbf16, #tpu.memory_space<vmem>>, vector<32x9xbf16>
    %cst_260 = arith.constant dense<0.000000e+00> : vector<32x9xf32>
    %224 = tpu.matmul %222, %223, %cst_260 {dimension_numbers = #tpu.dot_dimension_numbers<[1], [0], [0], [1], [0, 0, 1, 1], [], []>} : vector<32x32xbf16>, vector<32x9xbf16>, vector<32x9xf32> -> vector<32x9xf32>
    %225 = arith.addf %220, %224 : vector<32x9xf32>
    %c16_261 = arith.constant 16 : index
    %c0_262 = arith.constant 0 : index
    %c0_263 = arith.constant 0 : index
    %226 = vector.load %arg6[%c16_261, %c0_262, %c0_263] : memref<25x32x32xbf16, #tpu.memory_space<vmem>>, vector<1x32x32xbf16>
    %227 = vector.shape_cast %226 : vector<1x32x32xbf16> to vector<32x32xbf16>
    %c0_264 = arith.constant 0 : index
    %c484 = arith.constant 484 : index
    %228 = vector.load %arg14[%c0_264, %c484] : memref<32x1024xbf16, #tpu.memory_space<vmem>>, vector<32x9xbf16>
    %cst_265 = arith.constant dense<0.000000e+00> : vector<32x9xf32>
    %229 = tpu.matmul %227, %228, %cst_265 {dimension_numbers = #tpu.dot_dimension_numbers<[1], [0], [0], [1], [0, 0, 1, 1], [], []>} : vector<32x32xbf16>, vector<32x9xbf16>, vector<32x9xf32> -> vector<32x9xf32>
    %230 = arith.addf %225, %229 : vector<32x9xf32>
    %c17 = arith.constant 17 : index
    %c0_266 = arith.constant 0 : index
    %c0_267 = arith.constant 0 : index
    %231 = vector.load %arg6[%c17, %c0_266, %c0_267] : memref<25x32x32xbf16, #tpu.memory_space<vmem>>, vector<1x32x32xbf16>
    %232 = vector.shape_cast %231 : vector<1x32x32xbf16> to vector<32x32xbf16>
    %c0_268 = arith.constant 0 : index
    %c488 = arith.constant 488 : index
    %233 = vector.load %arg14[%c0_268, %c488] : memref<32x1024xbf16, #tpu.memory_space<vmem>>, vector<32x9xbf16>
    %cst_269 = arith.constant dense<0.000000e+00> : vector<32x9xf32>
    %234 = tpu.matmul %232, %233, %cst_269 {dimension_numbers = #tpu.dot_dimension_numbers<[1], [0], [0], [1], [0, 0, 1, 1], [], []>} : vector<32x32xbf16>, vector<32x9xbf16>, vector<32x9xf32> -> vector<32x9xf32>
    %235 = arith.addf %230, %234 : vector<32x9xf32>
    %c18 = arith.constant 18 : index
    %c0_270 = arith.constant 0 : index
    %c0_271 = arith.constant 0 : index
    %236 = vector.load %arg6[%c18, %c0_270, %c0_271] : memref<25x32x32xbf16, #tpu.memory_space<vmem>>, vector<1x32x32xbf16>
    %237 = vector.shape_cast %236 : vector<1x32x32xbf16> to vector<32x32xbf16>
    %c0_272 = arith.constant 0 : index
    %c492 = arith.constant 492 : index
    %238 = vector.load %arg14[%c0_272, %c492] : memref<32x1024xbf16, #tpu.memory_space<vmem>>, vector<32x9xbf16>
    %cst_273 = arith.constant dense<0.000000e+00> : vector<32x9xf32>
    %239 = tpu.matmul %237, %238, %cst_273 {dimension_numbers = #tpu.dot_dimension_numbers<[1], [0], [0], [1], [0, 0, 1, 1], [], []>} : vector<32x32xbf16>, vector<32x9xbf16>, vector<32x9xf32> -> vector<32x9xf32>
    %240 = arith.addf %235, %239 : vector<32x9xf32>
    %c19 = arith.constant 19 : index
    %c0_274 = arith.constant 0 : index
    %c0_275 = arith.constant 0 : index
    %241 = vector.load %arg6[%c19, %c0_274, %c0_275] : memref<25x32x32xbf16, #tpu.memory_space<vmem>>, vector<1x32x32xbf16>
    %242 = vector.shape_cast %241 : vector<1x32x32xbf16> to vector<32x32xbf16>
    %c0_276 = arith.constant 0 : index
    %c496 = arith.constant 496 : index
    %243 = vector.load %arg14[%c0_276, %c496] : memref<32x1024xbf16, #tpu.memory_space<vmem>>, vector<32x9xbf16>
    %cst_277 = arith.constant dense<0.000000e+00> : vector<32x9xf32>
    %244 = tpu.matmul %242, %243, %cst_277 {dimension_numbers = #tpu.dot_dimension_numbers<[1], [0], [0], [1], [0, 0, 1, 1], [], []>} : vector<32x32xbf16>, vector<32x9xbf16>, vector<32x9xf32> -> vector<32x9xf32>
    %245 = arith.addf %240, %244 : vector<32x9xf32>
    %c20 = arith.constant 20 : index
    %c0_278 = arith.constant 0 : index
    %c0_279 = arith.constant 0 : index
    %246 = vector.load %arg6[%c20, %c0_278, %c0_279] : memref<25x32x32xbf16, #tpu.memory_space<vmem>>, vector<1x32x32xbf16>
    %247 = vector.shape_cast %246 : vector<1x32x32xbf16> to vector<32x32xbf16>
    %c0_280 = arith.constant 0 : index
    %c640 = arith.constant 640 : index
    %248 = vector.load %arg14[%c0_280, %c640] : memref<32x1024xbf16, #tpu.memory_space<vmem>>, vector<32x9xbf16>
    %cst_281 = arith.constant dense<0.000000e+00> : vector<32x9xf32>
    %249 = tpu.matmul %247, %248, %cst_281 {dimension_numbers = #tpu.dot_dimension_numbers<[1], [0], [0], [1], [0, 0, 1, 1], [], []>} : vector<32x32xbf16>, vector<32x9xbf16>, vector<32x9xf32> -> vector<32x9xf32>
    %250 = arith.addf %245, %249 : vector<32x9xf32>
    %c21 = arith.constant 21 : index
    %c0_282 = arith.constant 0 : index
    %c0_283 = arith.constant 0 : index
    %251 = vector.load %arg6[%c21, %c0_282, %c0_283] : memref<25x32x32xbf16, #tpu.memory_space<vmem>>, vector<1x32x32xbf16>
    %252 = vector.shape_cast %251 : vector<1x32x32xbf16> to vector<32x32xbf16>
    %c0_284 = arith.constant 0 : index
    %c644 = arith.constant 644 : index
    %253 = vector.load %arg14[%c0_284, %c644] : memref<32x1024xbf16, #tpu.memory_space<vmem>>, vector<32x9xbf16>
    %cst_285 = arith.constant dense<0.000000e+00> : vector<32x9xf32>
    %254 = tpu.matmul %252, %253, %cst_285 {dimension_numbers = #tpu.dot_dimension_numbers<[1], [0], [0], [1], [0, 0, 1, 1], [], []>} : vector<32x32xbf16>, vector<32x9xbf16>, vector<32x9xf32> -> vector<32x9xf32>
    %255 = arith.addf %250, %254 : vector<32x9xf32>
    %c22 = arith.constant 22 : index
    %c0_286 = arith.constant 0 : index
    %c0_287 = arith.constant 0 : index
    %256 = vector.load %arg6[%c22, %c0_286, %c0_287] : memref<25x32x32xbf16, #tpu.memory_space<vmem>>, vector<1x32x32xbf16>
    %257 = vector.shape_cast %256 : vector<1x32x32xbf16> to vector<32x32xbf16>
    %c0_288 = arith.constant 0 : index
    %c648 = arith.constant 648 : index
    %258 = vector.load %arg14[%c0_288, %c648] : memref<32x1024xbf16, #tpu.memory_space<vmem>>, vector<32x9xbf16>
    %cst_289 = arith.constant dense<0.000000e+00> : vector<32x9xf32>
    %259 = tpu.matmul %257, %258, %cst_289 {dimension_numbers = #tpu.dot_dimension_numbers<[1], [0], [0], [1], [0, 0, 1, 1], [], []>} : vector<32x32xbf16>, vector<32x9xbf16>, vector<32x9xf32> -> vector<32x9xf32>
    %260 = arith.addf %255, %259 : vector<32x9xf32>
    %c23 = arith.constant 23 : index
    %c0_290 = arith.constant 0 : index
    %c0_291 = arith.constant 0 : index
    %261 = vector.load %arg6[%c23, %c0_290, %c0_291] : memref<25x32x32xbf16, #tpu.memory_space<vmem>>, vector<1x32x32xbf16>
    %262 = vector.shape_cast %261 : vector<1x32x32xbf16> to vector<32x32xbf16>
    %c0_292 = arith.constant 0 : index
    %c652 = arith.constant 652 : index
    %263 = vector.load %arg14[%c0_292, %c652] : memref<32x1024xbf16, #tpu.memory_space<vmem>>, vector<32x9xbf16>
    %cst_293 = arith.constant dense<0.000000e+00> : vector<32x9xf32>
    %264 = tpu.matmul %262, %263, %cst_293 {dimension_numbers = #tpu.dot_dimension_numbers<[1], [0], [0], [1], [0, 0, 1, 1], [], []>} : vector<32x32xbf16>, vector<32x9xbf16>, vector<32x9xf32> -> vector<32x9xf32>
    %265 = arith.addf %260, %264 : vector<32x9xf32>
    %c24_294 = arith.constant 24 : index
    %c0_295 = arith.constant 0 : index
    %c0_296 = arith.constant 0 : index
    %266 = vector.load %arg6[%c24_294, %c0_295, %c0_296] : memref<25x32x32xbf16, #tpu.memory_space<vmem>>, vector<1x32x32xbf16>
    %267 = vector.shape_cast %266 : vector<1x32x32xbf16> to vector<32x32xbf16>
    %c0_297 = arith.constant 0 : index
    %c656 = arith.constant 656 : index
    %268 = vector.load %arg14[%c0_297, %c656] : memref<32x1024xbf16, #tpu.memory_space<vmem>>, vector<32x9xbf16>
    %cst_298 = arith.constant dense<0.000000e+00> : vector<32x9xf32>
    %269 = tpu.matmul %267, %268, %cst_298 {dimension_numbers = #tpu.dot_dimension_numbers<[1], [0], [0], [1], [0, 0, 1, 1], [], []>} : vector<32x32xbf16>, vector<32x9xbf16>, vector<32x9xf32> -> vector<32x9xf32>
    %270 = arith.addf %265, %269 : vector<32x9xf32>
    %c0_299 = arith.constant 0 : index
    %c0_300 = arith.constant 0 : index
    %271 = vector.load %arg7[%c0_299, %c0_300] : memref<32x1xf32, #tpu.memory_space<vmem>>, vector<32x1xf32>
    %272 = vector.broadcast %271 : vector<32x1xf32> to vector<32x9xf32>
    %273 = arith.addf %270, %272 : vector<32x9xf32>
    %cst_301 = arith.constant 0.000000e+00 : f32
    %274 = vector.broadcast %cst_301 : f32 to vector<32x9xf32>
    %275 = arith.maximumf %273, %274 : vector<32x9xf32>
    %276 = vector.extract_strided_slice %275 {offsets = [0, 0], sizes = [32, 1], strides = [1, 1]} : vector<32x9xf32> to vector<32x1xf32>
    %c0_302 = arith.constant 0 : index
    %c0_303 = arith.constant 0 : index
    %277 = vector.load %arg15[%c0_302, %c0_303] : memref<128x1xf32, #tpu.memory_space<vmem>>, vector<32x1xf32>
    tpu.vector_store %arg15[%c0_302, %c0_303], %276 {strides = array<i32>} : memref<128x1xf32, #tpu.memory_space<vmem>>, vector<32x1xf32>,
    %278 = vector.extract_strided_slice %275 {offsets = [0, 8], sizes = [32, 1], strides = [1, 1]} : vector<32x9xf32> to vector<32x1xf32>
    %c32_304 = arith.constant 32 : index
    %c0_305 = arith.constant 0 : index
    %279 = vector.load %arg15[%c32_304, %c0_305] : memref<128x1xf32, #tpu.memory_space<vmem>>, vector<32x1xf32>
    tpu.vector_store %arg15[%c32_304, %c0_305], %278 {strides = array<i32>} : memref<128x1xf32, #tpu.memory_space<vmem>>, vector<32x1xf32>,
    %cst_306 = arith.constant 0.000000e+00 : f32
    %280 = vector.broadcast %cst_306 : f32 to vector<32x9xf32>
    %c0_307 = arith.constant 0 : index
    %c0_308 = arith.constant 0 : index
    %c0_309 = arith.constant 0 : index
    %281 = vector.load %arg6[%c0_307, %c0_308, %c0_309] : memref<25x32x32xbf16, #tpu.memory_space<vmem>>, vector<1x32x32xbf16>
    %282 = vector.shape_cast %281 : vector<1x32x32xbf16> to vector<32x32xbf16>
    %c0_310 = arith.constant 0 : index
    %c320_311 = arith.constant 320 : index
    %283 = vector.load %arg14[%c0_310, %c320_311] : memref<32x1024xbf16, #tpu.memory_space<vmem>>, vector<32x9xbf16>
    %cst_312 = arith.constant dense<0.000000e+00> : vector<32x9xf32>
    %284 = tpu.matmul %282, %283, %cst_312 {dimension_numbers = #tpu.dot_dimension_numbers<[1], [0], [0], [1], [0, 0, 1, 1], [], []>} : vector<32x32xbf16>, vector<32x9xbf16>, vector<32x9xf32> -> vector<32x9xf32>
    %285 = arith.addf %280, %284 : vector<32x9xf32>
    %c1_313 = arith.constant 1 : index
    %c0_314 = arith.constant 0 : index
    %c0_315 = arith.constant 0 : index
    %286 = vector.load %arg6[%c1_313, %c0_314, %c0_315] : memref<25x32x32xbf16, #tpu.memory_space<vmem>>, vector<1x32x32xbf16>
    %287 = vector.shape_cast %286 : vector<1x32x32xbf16> to vector<32x32xbf16>
    %c0_316 = arith.constant 0 : index
    %c324_317 = arith.constant 324 : index
    %288 = vector.load %arg14[%c0_316, %c324_317] : memref<32x1024xbf16, #tpu.memory_space<vmem>>, vector<32x9xbf16>
    %cst_318 = arith.constant dense<0.000000e+00> : vector<32x9xf32>
    %289 = tpu.matmul %287, %288, %cst_318 {dimension_numbers = #tpu.dot_dimension_numbers<[1], [0], [0], [1], [0, 0, 1, 1], [], []>} : vector<32x32xbf16>, vector<32x9xbf16>, vector<32x9xf32> -> vector<32x9xf32>
    %290 = arith.addf %285, %289 : vector<32x9xf32>
    %c2_319 = arith.constant 2 : index
    %c0_320 = arith.constant 0 : index
    %c0_321 = arith.constant 0 : index
    %291 = vector.load %arg6[%c2_319, %c0_320, %c0_321] : memref<25x32x32xbf16, #tpu.memory_space<vmem>>, vector<1x32x32xbf16>
    %292 = vector.shape_cast %291 : vector<1x32x32xbf16> to vector<32x32xbf16>
    %c0_322 = arith.constant 0 : index
    %c328_323 = arith.constant 328 : index
    %293 = vector.load %arg14[%c0_322, %c328_323] : memref<32x1024xbf16, #tpu.memory_space<vmem>>, vector<32x9xbf16>
    %cst_324 = arith.constant dense<0.000000e+00> : vector<32x9xf32>
    %294 = tpu.matmul %292, %293, %cst_324 {dimension_numbers = #tpu.dot_dimension_numbers<[1], [0], [0], [1], [0, 0, 1, 1], [], []>} : vector<32x32xbf16>, vector<32x9xbf16>, vector<32x9xf32> -> vector<32x9xf32>
    %295 = arith.addf %290, %294 : vector<32x9xf32>
    %c3_325 = arith.constant 3 : index
    %c0_326 = arith.constant 0 : index
    %c0_327 = arith.constant 0 : index
    %296 = vector.load %arg6[%c3_325, %c0_326, %c0_327] : memref<25x32x32xbf16, #tpu.memory_space<vmem>>, vector<1x32x32xbf16>
    %297 = vector.shape_cast %296 : vector<1x32x32xbf16> to vector<32x32xbf16>
    %c0_328 = arith.constant 0 : index
    %c332_329 = arith.constant 332 : index
    %298 = vector.load %arg14[%c0_328, %c332_329] : memref<32x1024xbf16, #tpu.memory_space<vmem>>, vector<32x9xbf16>
    %cst_330 = arith.constant dense<0.000000e+00> : vector<32x9xf32>
    %299 = tpu.matmul %297, %298, %cst_330 {dimension_numbers = #tpu.dot_dimension_numbers<[1], [0], [0], [1], [0, 0, 1, 1], [], []>} : vector<32x32xbf16>, vector<32x9xbf16>, vector<32x9xf32> -> vector<32x9xf32>
    %300 = arith.addf %295, %299 : vector<32x9xf32>
    %c4_331 = arith.constant 4 : index
    %c0_332 = arith.constant 0 : index
    %c0_333 = arith.constant 0 : index
    %301 = vector.load %arg6[%c4_331, %c0_332, %c0_333] : memref<25x32x32xbf16, #tpu.memory_space<vmem>>, vector<1x32x32xbf16>
    %302 = vector.shape_cast %301 : vector<1x32x32xbf16> to vector<32x32xbf16>
    %c0_334 = arith.constant 0 : index
    %c336_335 = arith.constant 336 : index
    %303 = vector.load %arg14[%c0_334, %c336_335] : memref<32x1024xbf16, #tpu.memory_space<vmem>>, vector<32x9xbf16>
    %cst_336 = arith.constant dense<0.000000e+00> : vector<32x9xf32>
    %304 = tpu.matmul %302, %303, %cst_336 {dimension_numbers = #tpu.dot_dimension_numbers<[1], [0], [0], [1], [0, 0, 1, 1], [], []>} : vector<32x32xbf16>, vector<32x9xbf16>, vector<32x9xf32> -> vector<32x9xf32>
    %305 = arith.addf %300, %304 : vector<32x9xf32>
    %c5_337 = arith.constant 5 : index
    %c0_338 = arith.constant 0 : index
    %c0_339 = arith.constant 0 : index
    %306 = vector.load %arg6[%c5_337, %c0_338, %c0_339] : memref<25x32x32xbf16, #tpu.memory_space<vmem>>, vector<1x32x32xbf16>
    %307 = vector.shape_cast %306 : vector<1x32x32xbf16> to vector<32x32xbf16>
    %c0_340 = arith.constant 0 : index
    %c480_341 = arith.constant 480 : index
    %308 = vector.load %arg14[%c0_340, %c480_341] : memref<32x1024xbf16, #tpu.memory_space<vmem>>, vector<32x9xbf16>
    %cst_342 = arith.constant dense<0.000000e+00> : vector<32x9xf32>
    %309 = tpu.matmul %307, %308, %cst_342 {dimension_numbers = #tpu.dot_dimension_numbers<[1], [0], [0], [1], [0, 0, 1, 1], [], []>} : vector<32x32xbf16>, vector<32x9xbf16>, vector<32x9xf32> -> vector<32x9xf32>
    %310 = arith.addf %305, %309 : vector<32x9xf32>
    %c6_343 = arith.constant 6 : index
    %c0_344 = arith.constant 0 : index
    %c0_345 = arith.constant 0 : index
    %311 = vector.load %arg6[%c6_343, %c0_344, %c0_345] : memref<25x32x32xbf16, #tpu.memory_space<vmem>>, vector<1x32x32xbf16>
    %312 = vector.shape_cast %311 : vector<1x32x32xbf16> to vector<32x32xbf16>
    %c0_346 = arith.constant 0 : index
    %c484_347 = arith.constant 484 : index
    %313 = vector.load %arg14[%c0_346, %c484_347] : memref<32x1024xbf16, #tpu.memory_space<vmem>>, vector<32x9xbf16>
    %cst_348 = arith.constant dense<0.000000e+00> : vector<32x9xf32>
    %314 = tpu.matmul %312, %313, %cst_348 {dimension_numbers = #tpu.dot_dimension_numbers<[1], [0], [0], [1], [0, 0, 1, 1], [], []>} : vector<32x32xbf16>, vector<32x9xbf16>, vector<32x9xf32> -> vector<32x9xf32>
    %315 = arith.addf %310, %314 : vector<32x9xf32>
    %c7_349 = arith.constant 7 : index
    %c0_350 = arith.constant 0 : index
    %c0_351 = arith.constant 0 : index
    %316 = vector.load %arg6[%c7_349, %c0_350, %c0_351] : memref<25x32x32xbf16, #tpu.memory_space<vmem>>, vector<1x32x32xbf16>
    %317 = vector.shape_cast %316 : vector<1x32x32xbf16> to vector<32x32xbf16>
    %c0_352 = arith.constant 0 : index
    %c488_353 = arith.constant 488 : index
    %318 = vector.load %arg14[%c0_352, %c488_353] : memref<32x1024xbf16, #tpu.memory_space<vmem>>, vector<32x9xbf16>
    %cst_354 = arith.constant dense<0.000000e+00> : vector<32x9xf32>
    %319 = tpu.matmul %317, %318, %cst_354 {dimension_numbers = #tpu.dot_dimension_numbers<[1], [0], [0], [1], [0, 0, 1, 1], [], []>} : vector<32x32xbf16>, vector<32x9xbf16>, vector<32x9xf32> -> vector<32x9xf32>
    %320 = arith.addf %315, %319 : vector<32x9xf32>
    %c8_355 = arith.constant 8 : index
    %c0_356 = arith.constant 0 : index
    %c0_357 = arith.constant 0 : index
    %321 = vector.load %arg6[%c8_355, %c0_356, %c0_357] : memref<25x32x32xbf16, #tpu.memory_space<vmem>>, vector<1x32x32xbf16>
    %322 = vector.shape_cast %321 : vector<1x32x32xbf16> to vector<32x32xbf16>
    %c0_358 = arith.constant 0 : index
    %c492_359 = arith.constant 492 : index
    %323 = vector.load %arg14[%c0_358, %c492_359] : memref<32x1024xbf16, #tpu.memory_space<vmem>>, vector<32x9xbf16>
    %cst_360 = arith.constant dense<0.000000e+00> : vector<32x9xf32>
    %324 = tpu.matmul %322, %323, %cst_360 {dimension_numbers = #tpu.dot_dimension_numbers<[1], [0], [0], [1], [0, 0, 1, 1], [], []>} : vector<32x32xbf16>, vector<32x9xbf16>, vector<32x9xf32> -> vector<32x9xf32>
    %325 = arith.addf %320, %324 : vector<32x9xf32>
    %c9_361 = arith.constant 9 : index
    %c0_362 = arith.constant 0 : index
    %c0_363 = arith.constant 0 : index
    %326 = vector.load %arg6[%c9_361, %c0_362, %c0_363] : memref<25x32x32xbf16, #tpu.memory_space<vmem>>, vector<1x32x32xbf16>
    %327 = vector.shape_cast %326 : vector<1x32x32xbf16> to vector<32x32xbf16>
    %c0_364 = arith.constant 0 : index
    %c496_365 = arith.constant 496 : index
    %328 = vector.load %arg14[%c0_364, %c496_365] : memref<32x1024xbf16, #tpu.memory_space<vmem>>, vector<32x9xbf16>
    %cst_366 = arith.constant dense<0.000000e+00> : vector<32x9xf32>
    %329 = tpu.matmul %327, %328, %cst_366 {dimension_numbers = #tpu.dot_dimension_numbers<[1], [0], [0], [1], [0, 0, 1, 1], [], []>} : vector<32x32xbf16>, vector<32x9xbf16>, vector<32x9xf32> -> vector<32x9xf32>
    %330 = arith.addf %325, %329 : vector<32x9xf32>
    %c10_367 = arith.constant 10 : index
    %c0_368 = arith.constant 0 : index
    %c0_369 = arith.constant 0 : index
    %331 = vector.load %arg6[%c10_367, %c0_368, %c0_369] : memref<25x32x32xbf16, #tpu.memory_space<vmem>>, vector<1x32x32xbf16>
    %332 = vector.shape_cast %331 : vector<1x32x32xbf16> to vector<32x32xbf16>
    %c0_370 = arith.constant 0 : index
    %c640_371 = arith.constant 640 : index
    %333 = vector.load %arg14[%c0_370, %c640_371] : memref<32x1024xbf16, #tpu.memory_space<vmem>>, vector<32x9xbf16>
    %cst_372 = arith.constant dense<0.000000e+00> : vector<32x9xf32>
    %334 = tpu.matmul %332, %333, %cst_372 {dimension_numbers = #tpu.dot_dimension_numbers<[1], [0], [0], [1], [0, 0, 1, 1], [], []>} : vector<32x32xbf16>, vector<32x9xbf16>, vector<32x9xf32> -> vector<32x9xf32>
    %335 = arith.addf %330, %334 : vector<32x9xf32>
    %c11_373 = arith.constant 11 : index
    %c0_374 = arith.constant 0 : index
    %c0_375 = arith.constant 0 : index
    %336 = vector.load %arg6[%c11_373, %c0_374, %c0_375] : memref<25x32x32xbf16, #tpu.memory_space<vmem>>, vector<1x32x32xbf16>
    %337 = vector.shape_cast %336 : vector<1x32x32xbf16> to vector<32x32xbf16>
    %c0_376 = arith.constant 0 : index
    %c644_377 = arith.constant 644 : index
    %338 = vector.load %arg14[%c0_376, %c644_377] : memref<32x1024xbf16, #tpu.memory_space<vmem>>, vector<32x9xbf16>
    %cst_378 = arith.constant dense<0.000000e+00> : vector<32x9xf32>
    %339 = tpu.matmul %337, %338, %cst_378 {dimension_numbers = #tpu.dot_dimension_numbers<[1], [0], [0], [1], [0, 0, 1, 1], [], []>} : vector<32x32xbf16>, vector<32x9xbf16>, vector<32x9xf32> -> vector<32x9xf32>
    %340 = arith.addf %335, %339 : vector<32x9xf32>
    %c12_379 = arith.constant 12 : index
    %c0_380 = arith.constant 0 : index
    %c0_381 = arith.constant 0 : index
    %341 = vector.load %arg6[%c12_379, %c0_380, %c0_381] : memref<25x32x32xbf16, #tpu.memory_space<vmem>>, vector<1x32x32xbf16>
    %342 = vector.shape_cast %341 : vector<1x32x32xbf16> to vector<32x32xbf16>
    %c0_382 = arith.constant 0 : index
    %c648_383 = arith.constant 648 : index
    %343 = vector.load %arg14[%c0_382, %c648_383] : memref<32x1024xbf16, #tpu.memory_space<vmem>>, vector<32x9xbf16>
    %cst_384 = arith.constant dense<0.000000e+00> : vector<32x9xf32>
    %344 = tpu.matmul %342, %343, %cst_384 {dimension_numbers = #tpu.dot_dimension_numbers<[1], [0], [0], [1], [0, 0, 1, 1], [], []>} : vector<32x32xbf16>, vector<32x9xbf16>, vector<32x9xf32> -> vector<32x9xf32>
    %345 = arith.addf %340, %344 : vector<32x9xf32>
    %c13_385 = arith.constant 13 : index
    %c0_386 = arith.constant 0 : index
    %c0_387 = arith.constant 0 : index
    %346 = vector.load %arg6[%c13_385, %c0_386, %c0_387] : memref<25x32x32xbf16, #tpu.memory_space<vmem>>, vector<1x32x32xbf16>
    %347 = vector.shape_cast %346 : vector<1x32x32xbf16> to vector<32x32xbf16>
    %c0_388 = arith.constant 0 : index
    %c652_389 = arith.constant 652 : index
    %348 = vector.load %arg14[%c0_388, %c652_389] : memref<32x1024xbf16, #tpu.memory_space<vmem>>, vector<32x9xbf16>
    %cst_390 = arith.constant dense<0.000000e+00> : vector<32x9xf32>
    %349 = tpu.matmul %347, %348, %cst_390 {dimension_numbers = #tpu.dot_dimension_numbers<[1], [0], [0], [1], [0, 0, 1, 1], [], []>} : vector<32x32xbf16>, vector<32x9xbf16>, vector<32x9xf32> -> vector<32x9xf32>
    %350 = arith.addf %345, %349 : vector<32x9xf32>
    %c14_391 = arith.constant 14 : index
    %c0_392 = arith.constant 0 : index
    %c0_393 = arith.constant 0 : index
    %351 = vector.load %arg6[%c14_391, %c0_392, %c0_393] : memref<25x32x32xbf16, #tpu.memory_space<vmem>>, vector<1x32x32xbf16>
    %352 = vector.shape_cast %351 : vector<1x32x32xbf16> to vector<32x32xbf16>
    %c0_394 = arith.constant 0 : index
    %c656_395 = arith.constant 656 : index
    %353 = vector.load %arg14[%c0_394, %c656_395] : memref<32x1024xbf16, #tpu.memory_space<vmem>>, vector<32x9xbf16>
    %cst_396 = arith.constant dense<0.000000e+00> : vector<32x9xf32>
    %354 = tpu.matmul %352, %353, %cst_396 {dimension_numbers = #tpu.dot_dimension_numbers<[1], [0], [0], [1], [0, 0, 1, 1], [], []>} : vector<32x32xbf16>, vector<32x9xbf16>, vector<32x9xf32> -> vector<32x9xf32>
    %355 = arith.addf %350, %354 : vector<32x9xf32>
    %c15_397 = arith.constant 15 : index
    %c0_398 = arith.constant 0 : index
    %c0_399 = arith.constant 0 : index
    %356 = vector.load %arg6[%c15_397, %c0_398, %c0_399] : memref<25x32x32xbf16, #tpu.memory_space<vmem>>, vector<1x32x32xbf16>
    %357 = vector.shape_cast %356 : vector<1x32x32xbf16> to vector<32x32xbf16>
    %c0_400 = arith.constant 0 : index
    %c800 = arith.constant 800 : index
    %358 = vector.load %arg14[%c0_400, %c800] : memref<32x1024xbf16, #tpu.memory_space<vmem>>, vector<32x9xbf16>
    %cst_401 = arith.constant dense<0.000000e+00> : vector<32x9xf32>
    %359 = tpu.matmul %357, %358, %cst_401 {dimension_numbers = #tpu.dot_dimension_numbers<[1], [0], [0], [1], [0, 0, 1, 1], [], []>} : vector<32x32xbf16>, vector<32x9xbf16>, vector<32x9xf32> -> vector<32x9xf32>
    %360 = arith.addf %355, %359 : vector<32x9xf32>
    %c16_402 = arith.constant 16 : index
    %c0_403 = arith.constant 0 : index
    %c0_404 = arith.constant 0 : index
    %361 = vector.load %arg6[%c16_402, %c0_403, %c0_404] : memref<25x32x32xbf16, #tpu.memory_space<vmem>>, vector<1x32x32xbf16>
    %362 = vector.shape_cast %361 : vector<1x32x32xbf16> to vector<32x32xbf16>
    %c0_405 = arith.constant 0 : index
    %c804 = arith.constant 804 : index
    %363 = vector.load %arg14[%c0_405, %c804] : memref<32x1024xbf16, #tpu.memory_space<vmem>>, vector<32x9xbf16>
    %cst_406 = arith.constant dense<0.000000e+00> : vector<32x9xf32>
    %364 = tpu.matmul %362, %363, %cst_406 {dimension_numbers = #tpu.dot_dimension_numbers<[1], [0], [0], [1], [0, 0, 1, 1], [], []>} : vector<32x32xbf16>, vector<32x9xbf16>, vector<32x9xf32> -> vector<32x9xf32>
    %365 = arith.addf %360, %364 : vector<32x9xf32>
    %c17_407 = arith.constant 17 : index
    %c0_408 = arith.constant 0 : index
    %c0_409 = arith.constant 0 : index
    %366 = vector.load %arg6[%c17_407, %c0_408, %c0_409] : memref<25x32x32xbf16, #tpu.memory_space<vmem>>, vector<1x32x32xbf16>
    %367 = vector.shape_cast %366 : vector<1x32x32xbf16> to vector<32x32xbf16>
    %c0_410 = arith.constant 0 : index
    %c808 = arith.constant 808 : index
    %368 = vector.load %arg14[%c0_410, %c808] : memref<32x1024xbf16, #tpu.memory_space<vmem>>, vector<32x9xbf16>
    %cst_411 = arith.constant dense<0.000000e+00> : vector<32x9xf32>
    %369 = tpu.matmul %367, %368, %cst_411 {dimension_numbers = #tpu.dot_dimension_numbers<[1], [0], [0], [1], [0, 0, 1, 1], [], []>} : vector<32x32xbf16>, vector<32x9xbf16>, vector<32x9xf32> -> vector<32x9xf32>
    %370 = arith.addf %365, %369 : vector<32x9xf32>
    %c18_412 = arith.constant 18 : index
    %c0_413 = arith.constant 0 : index
    %c0_414 = arith.constant 0 : index
    %371 = vector.load %arg6[%c18_412, %c0_413, %c0_414] : memref<25x32x32xbf16, #tpu.memory_space<vmem>>, vector<1x32x32xbf16>
    %372 = vector.shape_cast %371 : vector<1x32x32xbf16> to vector<32x32xbf16>
    %c0_415 = arith.constant 0 : index
    %c812 = arith.constant 812 : index
    %373 = vector.load %arg14[%c0_415, %c812] : memref<32x1024xbf16, #tpu.memory_space<vmem>>, vector<32x9xbf16>
    %cst_416 = arith.constant dense<0.000000e+00> : vector<32x9xf32>
    %374 = tpu.matmul %372, %373, %cst_416 {dimension_numbers = #tpu.dot_dimension_numbers<[1], [0], [0], [1], [0, 0, 1, 1], [], []>} : vector<32x32xbf16>, vector<32x9xbf16>, vector<32x9xf32> -> vector<32x9xf32>
    %375 = arith.addf %370, %374 : vector<32x9xf32>
    %c19_417 = arith.constant 19 : index
    %c0_418 = arith.constant 0 : index
    %c0_419 = arith.constant 0 : index
    %376 = vector.load %arg6[%c19_417, %c0_418, %c0_419] : memref<25x32x32xbf16, #tpu.memory_space<vmem>>, vector<1x32x32xbf16>
    %377 = vector.shape_cast %376 : vector<1x32x32xbf16> to vector<32x32xbf16>
    %c0_420 = arith.constant 0 : index
    %c816 = arith.constant 816 : index
    %378 = vector.load %arg14[%c0_420, %c816] : memref<32x1024xbf16, #tpu.memory_space<vmem>>, vector<32x9xbf16>
    %cst_421 = arith.constant dense<0.000000e+00> : vector<32x9xf32>
    %379 = tpu.matmul %377, %378, %cst_421 {dimension_numbers = #tpu.dot_dimension_numbers<[1], [0], [0], [1], [0, 0, 1, 1], [], []>} : vector<32x32xbf16>, vector<32x9xbf16>, vector<32x9xf32> -> vector<32x9xf32>
    %380 = arith.addf %375, %379 : vector<32x9xf32>
    %c20_422 = arith.constant 20 : index
    %c0_423 = arith.constant 0 : index
    %c0_424 = arith.constant 0 : index
    %381 = vector.load %arg6[%c20_422, %c0_423, %c0_424] : memref<25x32x32xbf16, #tpu.memory_space<vmem>>, vector<1x32x32xbf16>
    %382 = vector.shape_cast %381 : vector<1x32x32xbf16> to vector<32x32xbf16>
    %c0_425 = arith.constant 0 : index
    %c960 = arith.constant 960 : index
    %383 = vector.load %arg14[%c0_425, %c960] : memref<32x1024xbf16, #tpu.memory_space<vmem>>, vector<32x9xbf16>
    %cst_426 = arith.constant dense<0.000000e+00> : vector<32x9xf32>
    %384 = tpu.matmul %382, %383, %cst_426 {dimension_numbers = #tpu.dot_dimension_numbers<[1], [0], [0], [1], [0, 0, 1, 1], [], []>} : vector<32x32xbf16>, vector<32x9xbf16>, vector<32x9xf32> -> vector<32x9xf32>
    %385 = arith.addf %380, %384 : vector<32x9xf32>
    %c21_427 = arith.constant 21 : index
    %c0_428 = arith.constant 0 : index
    %c0_429 = arith.constant 0 : index
    %386 = vector.load %arg6[%c21_427, %c0_428, %c0_429] : memref<25x32x32xbf16, #tpu.memory_space<vmem>>, vector<1x32x32xbf16>
    %387 = vector.shape_cast %386 : vector<1x32x32xbf16> to vector<32x32xbf16>
    %c0_430 = arith.constant 0 : index
    %c964 = arith.constant 964 : index
    %388 = vector.load %arg14[%c0_430, %c964] : memref<32x1024xbf16, #tpu.memory_space<vmem>>, vector<32x9xbf16>
    %cst_431 = arith.constant dense<0.000000e+00> : vector<32x9xf32>
    %389 = tpu.matmul %387, %388, %cst_431 {dimension_numbers = #tpu.dot_dimension_numbers<[1], [0], [0], [1], [0, 0, 1, 1], [], []>} : vector<32x32xbf16>, vector<32x9xbf16>, vector<32x9xf32> -> vector<32x9xf32>
    %390 = arith.addf %385, %389 : vector<32x9xf32>
    %c22_432 = arith.constant 22 : index
    %c0_433 = arith.constant 0 : index
    %c0_434 = arith.constant 0 : index
    %391 = vector.load %arg6[%c22_432, %c0_433, %c0_434] : memref<25x32x32xbf16, #tpu.memory_space<vmem>>, vector<1x32x32xbf16>
    %392 = vector.shape_cast %391 : vector<1x32x32xbf16> to vector<32x32xbf16>
    %c0_435 = arith.constant 0 : index
    %c968 = arith.constant 968 : index
    %393 = vector.load %arg14[%c0_435, %c968] : memref<32x1024xbf16, #tpu.memory_space<vmem>>, vector<32x9xbf16>
    %cst_436 = arith.constant dense<0.000000e+00> : vector<32x9xf32>
    %394 = tpu.matmul %392, %393, %cst_436 {dimension_numbers = #tpu.dot_dimension_numbers<[1], [0], [0], [1], [0, 0, 1, 1], [], []>} : vector<32x32xbf16>, vector<32x9xbf16>, vector<32x9xf32> -> vector<32x9xf32>
    %395 = arith.addf %390, %394 : vector<32x9xf32>
    %c23_437 = arith.constant 23 : index
    %c0_438 = arith.constant 0 : index
    %c0_439 = arith.constant 0 : index
    %396 = vector.load %arg6[%c23_437, %c0_438, %c0_439] : memref<25x32x32xbf16, #tpu.memory_space<vmem>>, vector<1x32x32xbf16>
    %397 = vector.shape_cast %396 : vector<1x32x32xbf16> to vector<32x32xbf16>
    %c0_440 = arith.constant 0 : index
    %c972 = arith.constant 972 : index
    %398 = vector.load %arg14[%c0_440, %c972] : memref<32x1024xbf16, #tpu.memory_space<vmem>>, vector<32x9xbf16>
    %cst_441 = arith.constant dense<0.000000e+00> : vector<32x9xf32>
    %399 = tpu.matmul %397, %398, %cst_441 {dimension_numbers = #tpu.dot_dimension_numbers<[1], [0], [0], [1], [0, 0, 1, 1], [], []>} : vector<32x32xbf16>, vector<32x9xbf16>, vector<32x9xf32> -> vector<32x9xf32>
    %400 = arith.addf %395, %399 : vector<32x9xf32>
    %c24_442 = arith.constant 24 : index
    %c0_443 = arith.constant 0 : index
    %c0_444 = arith.constant 0 : index
    %401 = vector.load %arg6[%c24_442, %c0_443, %c0_444] : memref<25x32x32xbf16, #tpu.memory_space<vmem>>, vector<1x32x32xbf16>
    %402 = vector.shape_cast %401 : vector<1x32x32xbf16> to vector<32x32xbf16>
    %c0_445 = arith.constant 0 : index
    %c976 = arith.constant 976 : index
    %403 = vector.load %arg14[%c0_445, %c976] : memref<32x1024xbf16, #tpu.memory_space<vmem>>, vector<32x9xbf16>
    %cst_446 = arith.constant dense<0.000000e+00> : vector<32x9xf32>
    %404 = tpu.matmul %402, %403, %cst_446 {dimension_numbers = #tpu.dot_dimension_numbers<[1], [0], [0], [1], [0, 0, 1, 1], [], []>} : vector<32x32xbf16>, vector<32x9xbf16>, vector<32x9xf32> -> vector<32x9xf32>
    %405 = arith.addf %400, %404 : vector<32x9xf32>
    %c0_447 = arith.constant 0 : index
    %c0_448 = arith.constant 0 : index
    %406 = vector.load %arg7[%c0_447, %c0_448] : memref<32x1xf32, #tpu.memory_space<vmem>>, vector<32x1xf32>
    %407 = vector.broadcast %406 : vector<32x1xf32> to vector<32x9xf32>
    %408 = arith.addf %405, %407 : vector<32x9xf32>
    %cst_449 = arith.constant 0.000000e+00 : f32
    %409 = vector.broadcast %cst_449 : f32 to vector<32x9xf32>
    %410 = arith.maximumf %408, %409 : vector<32x9xf32>
    %411 = vector.extract_strided_slice %410 {offsets = [0, 0], sizes = [32, 1], strides = [1, 1]} : vector<32x9xf32> to vector<32x1xf32>
    %c64_450 = arith.constant 64 : index
    %c0_451 = arith.constant 0 : index
    %412 = vector.load %arg15[%c64_450, %c0_451] : memref<128x1xf32, #tpu.memory_space<vmem>>, vector<32x1xf32>
    tpu.vector_store %arg15[%c64_450, %c0_451], %411 {strides = array<i32>} : memref<128x1xf32, #tpu.memory_space<vmem>>, vector<32x1xf32>,
    %413 = vector.extract_strided_slice %410 {offsets = [0, 8], sizes = [32, 1], strides = [1, 1]} : vector<32x9xf32> to vector<32x1xf32>
    %c96_452 = arith.constant 96 : index
    %c0_453 = arith.constant 0 : index
    %414 = vector.load %arg15[%c96_452, %c0_453] : memref<128x1xf32, #tpu.memory_space<vmem>>, vector<32x1xf32>
    tpu.vector_store %arg15[%c96_452, %c0_453], %413 {strides = array<i32>} : memref<128x1xf32, #tpu.memory_space<vmem>>, vector<32x1xf32>,
    %c0_454 = arith.constant 0 : index
    %c0_455 = arith.constant 0 : index
    %415 = vector.load %arg8[%c0_454, %c0_455] : memref<4x128xf32, #tpu.memory_space<vmem>>, vector<4x128xf32>
    %c0_456 = arith.constant 0 : index
    %c0_457 = arith.constant 0 : index
    %416 = vector.load %arg15[%c0_456, %c0_457] : memref<128x1xf32, #tpu.memory_space<vmem>>, vector<128x1xf32>
    %cst_458 = arith.constant dense<0.000000e+00> : vector<4x1xf32>
    %417 = tpu.matmul %415, %416, %cst_458 {dimension_numbers = #tpu.dot_dimension_numbers<[1], [0], [0], [1], [0, 0, 1, 1], [], []>} : vector<4x128xf32>, vector<128x1xf32>, vector<4x1xf32> -> vector<4x1xf32>
    %c0_459 = arith.constant 0 : index
    %c0_460 = arith.constant 0 : index
    %418 = vector.load %arg9[%c0_459, %c0_460] : memref<4x1xf32, #tpu.memory_space<vmem>>, vector<4x1xf32>
    %419 = arith.addf %417, %418 : vector<4x1xf32>
    %c0_461 = arith.constant 0 : index
    %c0_462 = arith.constant 0 : index
    %c0_463 = arith.constant 0 : index
    %420 = vector.load %arg10[%c0_461, %c0_462, %c0_463] : memref<1x4x1xf32, #tpu.memory_space<vmem>>, vector<1x4x1xf32>
    %421 = vector.shape_cast %420 : vector<1x4x1xf32> to vector<4x1xf32>
    %422 = vector.shape_cast %419 : vector<4x1xf32> to vector<1x4x1xf32>
    tpu.vector_store %arg10[%c0_461, %c0_462, %c0_463], %422 {strides = array<i32>} : memref<1x4x1xf32, #tpu.memory_space<vmem>>, vector<1x4x1xf32>,
    return
  }
  func.func @transform_0(%arg0: i32) -> (i32, i32, i32) {
    %c0_i32 = arith.constant 0 : i32
    %c0_i32_0 = arith.constant 0 : i32
    %c0_i32_1 = arith.constant 0 : i32
    return %arg0, %c0_i32, %c0_i32_0 : i32, i32, i32
  }
  func.func @transform_1(%arg0: i32) -> (i32, i32) {
    %c0_i32 = arith.constant 0 : i32
    %c0_i32_0 = arith.constant 0 : i32
    %c0_i32_1 = arith.constant 0 : i32
    return %c0_i32, %c0_i32_0 : i32, i32
  }
  func.func @transform_2(%arg0: i32) -> (i32, i32) {
    %c0_i32 = arith.constant 0 : i32
    %c0_i32_0 = arith.constant 0 : i32
    %c0_i32_1 = arith.constant 0 : i32
    return %c0_i32, %c0_i32_0 : i32, i32
  }
  func.func @transform_3(%arg0: i32) -> (i32, i32) {
    %c0_i32 = arith.constant 0 : i32
    %c0_i32_0 = arith.constant 0 : i32
    %c0_i32_1 = arith.constant 0 : i32
    return %c0_i32, %c0_i32_0 : i32, i32
  }
  func.func @transform_4(%arg0: i32) -> (i32, i32) {
    %c0_i32 = arith.constant 0 : i32
    %c0_i32_0 = arith.constant 0 : i32
    %c0_i32_1 = arith.constant 0 : i32
    return %c0_i32, %c0_i32_0 : i32, i32
  }
  func.func @transform_5(%arg0: i32) -> (i32, i32, i32) {
    %c0_i32 = arith.constant 0 : i32
    %c0_i32_0 = arith.constant 0 : i32
    %c0_i32_1 = arith.constant 0 : i32
    %c0_i32_2 = arith.constant 0 : i32
    return %c0_i32, %c0_i32_0, %c0_i32_1 : i32, i32, i32
  }
  func.func @transform_6(%arg0: i32) -> (i32, i32) {
    %c0_i32 = arith.constant 0 : i32
    %c0_i32_0 = arith.constant 0 : i32
    %c0_i32_1 = arith.constant 0 : i32
    return %c0_i32, %c0_i32_0 : i32, i32
  }
  func.func @transform_7(%arg0: i32) -> (i32, i32) {
    %c0_i32 = arith.constant 0 : i32
    %c0_i32_0 = arith.constant 0 : i32
    %c0_i32_1 = arith.constant 0 : i32
    return %c0_i32, %c0_i32_0 : i32, i32
  }
  func.func @transform_8(%arg0: i32) -> (i32, i32) {
    %c0_i32 = arith.constant 0 : i32
    %c0_i32_0 = arith.constant 0 : i32
    %c0_i32_1 = arith.constant 0 : i32
    return %c0_i32, %c0_i32_0 : i32, i32
  }
  func.func @transform_9(%arg0: i32) -> (i32, i32, i32) {
    %c0_i32 = arith.constant 0 : i32
    %c0_i32_0 = arith.constant 0 : i32
    %c0_i32_1 = arith.constant 0 : i32
    return %arg0, %c0_i32, %c0_i32_0 : i32, i32, i32
  }
}

</mosaic_0001>

<bundles_post_ra>
// kernel: dqn_forward.1
= control target key start
LH: loop header
LB: loop body
LE: loop exit
PB: predicated region body
PF: predicated region fallthrough
CT: control target
= control target key end

     0   :  { %s11893_s30 = smov 0   ;;  %s16508_s0 = inlined_call_operand.vmem [shape: f32[2,8,1600], index: 0, kind: input, shape index: {}]   ;;  %s16509_s1 = inlined_call_operand.vmem [shape: f32[16,200], index: 1, kind: input, shape index: {}]   ;;  %s16510_s2 = inlined_call_operand.vmem [shape: f32[16,1], index: 2, kind: input, shape index: {}]   ;;  %s16511_s3 = inlined_call_operand.vmem [shape: bf16[32,400], index: 3, kind: input, shape index: {}]   ;;  %s16512_s4 = inlined_call_operand.vmem [shape: f32[32,1], index: 4, kind: input, shape index: {}]   ;;  %s16513_s5 = inlined_call_operand.vmem [shape: bf16[25,32,32], index: 5, kind: input, shape index: {}]   ;;  %s16514_s6 = inlined_call_operand.vmem [shape: f32[32,1], index: 6, kind: input, shape index: {}]   ;;  %s16515_s7 = inlined_call_operand.vmem [shape: f32[4,128], index: 7, kind: input, shape index: {}]   ;;  %s16516_s8 = inlined_call_operand.vmem [shape: f32[4,1], index: 8, kind: input, shape index: {}]   ;;  %s16517_s9 = inlined_call_operand.vmem [shape: f32[2,4,1], index: 9, kind: output, shape index: {}]  }
   0x1   :  { %16786 = sst [smem:[#allocation35_spill]] %s16508_s0 }
   0x2 LB: > { %s9736_s10 = sadd.s32 4294967295, %s11794_s30   ;;  %p9740_p0 = scmp.ge.s32.totalorder %s11794_s30, 1  ;;  %s11794_s30 = sphi %s11893_s30, %s19_s30  }
   0x3   : > { %p287_p1 = scmp.lt.s32.totalorder %s11794_s30, 3 }
   0x5   : > { %p288_p2 = pnand %p9740_p0, %p287_p1 }
   0x7   : > { %291 = sbr.rel (%p288_p2) target bundleno = 2592 (0xa20), region = 56 }
   0xc   : > { %p322_p3 = scmp.lt.s32.totalorder %s9736_s10, 1  ;;  %s16787_s0 = sld [smem:[#allocation35_spill]]  ;;  %vm399_vm0 = vcmask 1039360   ;;  %vm353_vm1 = vcmask 269312   ;;  %vm16518_vm2 = vcmask 1031168   ;;  %vm553_vm3 = vcmask 1022976  }
   0xd   : > { %s11796_s15 = smov 127   ;;  %s16521_s16 = smov 126   ;;  %vm16581_vm4 = vcmask 1014784   ;;  %vm707_vm5 = vcmask 719872   ;;  %vm784_vm6 = vcmask 711680   ;;  %vm861_vm7 = vcmask 703488  }
   0xe   : > { %s17139_s10 = smov (!%p322_p3, %s9736_s10), 1  ;;  %s11798_s17 = smov 125   ;;  %vm938_vm8 = vcmask 695296   ;;  %vm1015_vm9 = vcmask 687104   ;;  %vm16662_vm10 = vcmask 392192   ;;  %vm1169_vm11 = vcmask 384000  }
   0xf   : > { %s11725_s11 = smul.u32 104, %s17139_s10  ;;  %s16523_s18 = smov 124   ;;  %vm16649_vm12 = vcmask 375808   ;;  %vm1323_vm13 = vcmask 367616   ;;  %vm1400_vm14 = vcmask 359424   ;;  %vm16525_vm15 = vcmask 64512  }
  0x10   : > { %s16628_s19 = smov 88   ;;  %s11801_s20 = smov 87  }
  0x11   : > { %s11802_s21 = smov 86   ;;  %s11803_s22 = smov 85  }
  0x12   : > { %s11907_s14 = scalar_lea.vmem %s16787_s0, %s11725_s11  ;;  %s16519_s23 = smov 84  }
  0x13   : > { %v11910_v0 = vld [vmem:[%s11907_s14 + $0x20] sm:$0xff]  ;;  %v11913_v1 = vld [vmem:[%s11907_s14 + $0x10] sm:$0xff]  ;;  %v11922_v3 = vld [vmem:[%s11907_s14 + $0x28] sm:$0xff]  ;;  %s16616_s24 = smov 48   ;;  %s11806_s25 = smov 47  }
  0x14   : > { %v11916_v2 = vld [vmem:[%s11907_s14] sm:$0xff]  ;;  %385 = vrot.lane.b32.xlu2 %v11910_v0, %s11796_s15  ;;  %381 = vrot.lane.b32.xlu1 %v11913_v1, %s11796_s15  ;;  %v11925_v4 = vld [vmem:[%s11907_s14 + $0x18] sm:$0xff]  ;;  %s16666_s26 = smov 46   ;;  %s11808_s27 = smov 45  }
  0x15   : > { %377 = vrot.lane.b32.xlu0 %v11916_v2, %s11796_s15  ;;  %v11928_v5 = vld [vmem:[%s11907_s14 + $0x8] sm:$0xff]  ;;  %v11934_v6 = vld [vmem:[%s11907_s14 + $0x40] sm:$0xff]  ;;  %v11937_v7 = vld [vmem:[%s11907_s14 + $0x38] sm:$0xff]  ;;  %s16659_s28 = smov 44   ;;  %s16610_s29 = smov 8  }
  0x16   : > { %v11940_v8 = vld [vmem:[%s11907_s14 + $0x30] sm:$0xff]  ;;  %v11949_v10 = vld [vmem:[%s11907_s14 + $0x48] sm:$0xff]  ;;  %s11811_s11 = smov 7   ;;  %s11812_s12 = smov 93  }
  0x17   : > { %v11946_v9 = vld [vmem:[%s11907_s14 + $0x50] sm:$0xff]  ;;  %s16575_s13 = smov 92   ;;  %s16944_s0 = smov 46  }
  0x1c   : > { %387 = vrot.lane.b32.xlu2 %v11922_v3, %s11796_s15  ;;  %383 = vrot.lane.b32.xlu1 %v11925_v4, %s11796_s15 }
  0x1d   : > { %379 = vrot.lane.b32.xlu0 %v11928_v5, %s11796_s15 }
  0x24   : > { %393 = vrot.lane.b32.xlu2 %v11934_v6, %s11796_s15  ;;  %391 = vrot.lane.b32.xlu1 %v11937_v7, %s11796_s15 }
  0x25   : > { %389 = vrot.lane.b32.xlu0 %v11940_v8, %s11796_s15 }
  0x2c   : > { %454 = vrot.lane.b32.xlu2 %v11916_v2, %s16521_s16  ;;  %397 = vrot.lane.b32.xlu1 %v11946_v9, %s11796_s15 }
  0x2d   : > { %395 = vrot.lane.b32.xlu0 %v11949_v10, %s11796_s15  ;;  %s16532_s15 = smov 94  }
  0x34   : > { %460 = vrot.lane.b32.xlu2 %v11925_v4, %s16521_s16  ;;  %458 = vrot.lane.b32.xlu1 %v11913_v1, %s16521_s16 }
  0x35   : > { %456 = vrot.lane.b32.xlu0 %v11928_v5, %s16521_s16 }
  0x3c   : > { %466 = vrot.lane.b32.xlu2 %v11940_v8, %s16521_s16  ;;  %464 = vrot.lane.b32.xlu1 %v11922_v3, %s16521_s16 }
  0x3d   : > { %462 = vrot.lane.b32.xlu0 %v11910_v0, %s16521_s16 }
  0x44   : > { %472 = vrot.lane.b32.xlu2 %v11949_v10, %s16521_s16  ;;  %470 = vrot.lane.b32.xlu1 %v11934_v6, %s16521_s16 }
  0x45   : > { %468 = vrot.lane.b32.xlu0 %v11937_v7, %s16521_s16 }
  0x4c   : > { %533 = vrot.lane.b32.xlu2 %v11928_v5, %s11798_s17  ;;  %531 = vrot.lane.b32.xlu1 %v11916_v2, %s11798_s17 }
  0x4d   : > { %474 = vrot.lane.b32.xlu0 %v11946_v9, %s16521_s16  ;;  %s16668_s16 = smov 58  }
  0x54   : > { %539 = vrot.lane.b32.xlu2 %v11910_v0, %s11798_s17  ;;  %537 = vrot.lane.b32.xlu1 %v11925_v4, %s11798_s17 }
  0x55   : > { %535 = vrot.lane.b32.xlu0 %v11913_v1, %s11798_s17 }
  0x5c   : > { %545 = vrot.lane.b32.xlu2 %v11937_v7, %s11798_s17  ;;  %543 = vrot.lane.b32.xlu1 %v11940_v8, %s11798_s17 }
  0x5d   : > { %541 = vrot.lane.b32.xlu0 %v11922_v3, %s11798_s17 }
  0x64   : > { %551 = vrot.lane.b32.xlu2 %v11946_v9, %s11798_s17  ;;  %549 = vrot.lane.b32.xlu1 %v11949_v10, %s11798_s17 }
  0x65   : > { %547 = vrot.lane.b32.xlu0 %v11934_v6, %s11798_s17  ;;  %s16526_s17 = smov 96  }
  0x6c   : > { %612 = vrot.lane.b32.xlu2 %v11913_v1, %s16523_s18  ;;  %610 = vrot.lane.b32.xlu1 %v11928_v5, %s16523_s18 }
  0x6d   : > { %608 = vrot.lane.b32.xlu0 %v11916_v2, %s16523_s18 }
  0x6e   : > { %v386_v11 = vpop.permute.xlu2 %385 }
  0x74   : > { %618 = vrot.lane.b32.xlu2 %v11922_v3, %s16523_s18  ;;  %616 = vrot.lane.b32.xlu1 %v11910_v0, %s16523_s18 }
  0x75   : > { %614 = vrot.lane.b32.xlu0 %v11925_v4, %s16523_s18 }
  0x76   : > { %v388_v12 = vpop.permute.xlu2 %387 }
  0x77   : > { %v404_v13 = vsel %vm399_vm0, %v386_v11, %v388_v12 }
  0x78   : > { %425 = vst [vmem:[#allocation2 + $0x78] sm:$0xff] %v404_v13 }
  0x7c   : > { %624 = vrot.lane.b32.xlu2 %v11934_v6, %s16523_s18  ;;  %622 = vrot.lane.b32.xlu1 %v11937_v7, %s16523_s18 }
  0x7d   : > { %620 = vrot.lane.b32.xlu0 %v11940_v8, %s16523_s18 }
  0x7e   : > { %v394_v14 = vpop.permute.xlu2 %393 }
  0x84   : > { %685 = vrot.lane.b32.xlu2 %v11916_v2, %s16628_s19  ;;  %628 = vrot.lane.b32.xlu1 %v11946_v9, %s16523_s18 }
  0x85   : > { %626 = vrot.lane.b32.xlu0 %v11949_v10, %s16523_s18  ;;  %s16614_s18 = smov 90  }
  0x86   : > { %v455_v15 = vpop.permute.xlu2 %454  ;;  %v382_v16 = vpop.permute.xlu1 %381 }
  0x87   : > { %v378_v17 = vpop.permute.xlu0 %377 }
  0x8c   : > { %691 = vrot.lane.b32.xlu2 %v11925_v4, %s16628_s19  ;;  %689 = vrot.lane.b32.xlu1 %v11913_v1, %s16628_s19 }
  0x8d   : > { %687 = vrot.lane.b32.xlu0 %v11928_v5, %s16628_s19 }
  0x8e   : > { %v461_v18 = vpop.permute.xlu2 %460  ;;  %v384_v19 = vpop.permute.xlu1 %383 }
  0x8f   : > { %v402_v20 = vsel %vm399_vm0, %v382_v16, %v384_v19  ;;  %v403_v21 = vsel %vm399_vm0, %v384_v19, %v386_v11  ;;  %v380_v22 = vpop.permute.xlu0 %379 }
  0x90   : > { %423 = vst [vmem:[#allocation2 + $0x68] sm:$0xff] %v402_v20  ;;  %v400_v23 = vsel %vm399_vm0, %v378_v17, %v380_v22  ;;  %v401_v24 = vsel %vm399_vm0, %v380_v22, %v382_v16 }
  0x91   : > { %424 = vst [vmem:[#allocation2 + $0x70] sm:$0xff] %v403_v21 }
  0x92   : > { %421 = vst [vmem:[#allocation2 + $0x58] sm:$0xff] %v400_v23 }
  0x93   : > { %422 = vst [vmem:[#allocation2 + $0x60] sm:$0xff] %v401_v24 }
  0x94   : > { %697 = vrot.lane.b32.xlu2 %v11940_v8, %s16628_s19  ;;  %695 = vrot.lane.b32.xlu1 %v11922_v3, %s16628_s19 }
  0x95   : > { %693 = vrot.lane.b32.xlu0 %v11910_v0, %s16628_s19 }
  0x96   : > { %v467_v25 = vpop.permute.xlu2 %466  ;;  %v392_v26 = vpop.permute.xlu1 %391 }
  0x97   : > { %v407_v27 = vsel %vm399_vm0, %v392_v26, %v394_v14  ;;  %v390_v28 = vpop.permute.xlu0 %389 }
  0x98   : > { %428 = vst [vmem:[#allocation2 + $0x90] sm:$0xff] %v407_v27  ;;  %v405_v29 = vsel %vm399_vm0, %v388_v12, %v390_v28  ;;  %v406_v30 = vsel %vm399_vm0, %v390_v28, %v392_v26 }
  0x99   : > { %426 = vst [vmem:[#allocation2 + $0x80] sm:$0xff] %v405_v29 }
  0x9a   : > { %427 = vst [vmem:[#allocation2 + $0x88] sm:$0xff] %v406_v30 }
  0x9c   : > { %703 = vrot.lane.b32.xlu2 %v11949_v10, %s16628_s19  ;;  %701 = vrot.lane.b32.xlu1 %v11934_v6, %s16628_s19 }
  0x9d   : > { %699 = vrot.lane.b32.xlu0 %v11937_v7, %s16628_s19 }
  0x9e   : > { %v473_v31 = vpop.permute.xlu2 %472  ;;  %v398_v32 = vpop.permute.xlu1 %397 }
  0x9f   : > { %431 = vst.msk [vmem:[#allocation2 + $0xa8] sm:$0xff] %vm353_vm1, %v398_v32  ;;  %v396_v33 = vpop.permute.xlu0 %395 }
  0xa0   : > { %v408_v34 = vsel %vm399_vm0, %v394_v14, %v396_v33  ;;  %v409_v35 = vsel %vm399_vm0, %v396_v33, %v398_v32  ;;  %vm1563_vm0 = vcmask 56320  }
  0xa1   : > { %429 = vst [vmem:[#allocation2 + $0x98] sm:$0xff] %v408_v34 }
  0xa2   : > { %430 = vst [vmem:[#allocation2 + $0xa0] sm:$0xff] %v409_v35 }
  0xa4   : > { %764 = vrot.lane.b32.xlu2 %v11928_v5, %s11801_s20  ;;  %762 = vrot.lane.b32.xlu1 %v11916_v2, %s11801_s20 }
  0xa5   : > { %705 = vrot.lane.b32.xlu0 %v11946_v9, %s16628_s19 }
  0xa6   : > { %v534_v36 = vpop.permute.xlu2 %533  ;;  %v459_v37 = vpop.permute.xlu1 %458 }
  0xa7   : > { %v479_v38 = vsel %vm16518_vm2, %v459_v37, %v461_v18  ;;  %v457_v39 = vpop.permute.xlu0 %456 }
  0xa8   : > { %500 = vst [vmem:[#allocation2 + $0xc0] sm:$0xff] %v479_v38  ;;  %v477_v40 = vsel %vm16518_vm2, %v455_v15, %v457_v39  ;;  %v478_v41 = vsel %vm16518_vm2, %v457_v39, %v459_v37 }
  0xa9   : > { %498 = vst [vmem:[#allocation2 + $0xb0] sm:$0xff] %v477_v40 }
  0xaa   : > { %499 = vst [vmem:[#allocation2 + $0xb8] sm:$0xff] %v478_v41 }
  0xac   : > { %770 = vrot.lane.b32.xlu2 %v11910_v0, %s11801_s20  ;;  %768 = vrot.lane.b32.xlu1 %v11925_v4, %s11801_s20 }
  0xad   : > { %766 = vrot.lane.b32.xlu0 %v11913_v1, %s11801_s20 }
  0xae   : > { %v540_v42 = vpop.permute.xlu2 %539  ;;  %v465_v43 = vpop.permute.xlu1 %464 }
  0xaf   : > { %v482_v44 = vsel %vm16518_vm2, %v465_v43, %v467_v25  ;;  %v463_v45 = vpop.permute.xlu0 %462 }
  0xb0   : > { %503 = vst [vmem:[#allocation2 + $0xd8] sm:$0xff] %v482_v44  ;;  %v480_v46 = vsel %vm16518_vm2, %v461_v18, %v463_v45  ;;  %v481_v47 = vsel %vm16518_vm2, %v463_v45, %v465_v43 }
  0xb1   : > { %501 = vst [vmem:[#allocation2 + $0xc8] sm:$0xff] %v480_v46 }
  0xb2   : > { %502 = vst [vmem:[#allocation2 + $0xd0] sm:$0xff] %v481_v47 }
  0xb4   : > { %776 = vrot.lane.b32.xlu2 %v11937_v7, %s11801_s20  ;;  %774 = vrot.lane.b32.xlu1 %v11940_v8, %s11801_s20 }
  0xb5   : > { %772 = vrot.lane.b32.xlu0 %v11922_v3, %s11801_s20 }
  0xb6   : > { %v546_v48 = vpop.permute.xlu2 %545  ;;  %v471_v49 = vpop.permute.xlu1 %470 }
  0xb7   : > { %v485_v50 = vsel %vm16518_vm2, %v471_v49, %v473_v31  ;;  %v469_v51 = vpop.permute.xlu0 %468 }
  0xb8   : > { %506 = vst [vmem:[#allocation2 + $0xf0] sm:$0xff] %v485_v50  ;;  %v483_v52 = vsel %vm16518_vm2, %v467_v25, %v469_v51  ;;  %v484_v53 = vsel %vm16518_vm2, %v469_v51, %v471_v49 }
  0xb9   : > { %504 = vst [vmem:[#allocation2 + $0xe0] sm:$0xff] %v483_v52 }
  0xba   : > { %505 = vst [vmem:[#allocation2 + $0xe8] sm:$0xff] %v484_v53 }
  0xbc   : > { %782 = vrot.lane.b32.xlu2 %v11946_v9, %s11801_s20  ;;  %780 = vrot.lane.b32.xlu1 %v11949_v10, %s11801_s20 }
  0xbd   : > { %778 = vrot.lane.b32.xlu0 %v11934_v6, %s11801_s20  ;;  %s11816_s20 = smov 95  }
  0xbe   : > { %v552_v54 = vpop.permute.xlu2 %551  ;;  %v532_v55 = vpop.permute.xlu1 %531 }
  0xbf   : > { %585 = vst.msk [vmem:[#allocation2 + $0x158] sm:$0xff] %vm353_vm1, %v552_v54  ;;  %v554_v56 = vsel %vm553_vm3, %v532_v55, %v534_v36  ;;  %v475_v57 = vpop.permute.xlu0 %474 }
  0xc0   : > { %575 = vst [vmem:[#allocation2 + $0x108] sm:$0xff] %v554_v56  ;;  %v486_v58 = vsel %vm16518_vm2, %v473_v31, %v475_v57  ;;  %vm1645_vm2 = vcmask 48128  }
  0xc1   : > { %507 = vst [vmem:[#allocation2 + $0xf8] sm:$0xff] %v486_v58 }
  0xc2   : > { %508 = vst.msk [vmem:[#allocation2 + $0x100] sm:$0xff] %vm353_vm1, %v475_v57 }
  0xc4   : > { %843 = vrot.lane.b32.xlu2 %v11913_v1, %s11802_s21  ;;  %841 = vrot.lane.b32.xlu1 %v11928_v5, %s11802_s21 }
  0xc5   : > { %839 = vrot.lane.b32.xlu0 %v11916_v2, %s11802_s21 }
  0xc6   : > { %v613_v59 = vpop.permute.xlu2 %612  ;;  %v538_v60 = vpop.permute.xlu1 %537 }
  0xc7   : > { %v557_v61 = vsel %vm553_vm3, %v538_v60, %v540_v42  ;;  %v536_v62 = vpop.permute.xlu0 %535 }
  0xc8   : > { %578 = vst [vmem:[#allocation2 + $0x120] sm:$0xff] %v557_v61  ;;  %v555_v63 = vsel %vm553_vm3, %v534_v36, %v536_v62  ;;  %v556_v11 = vsel %vm553_vm3, %v536_v62, %v538_v60 }
  0xc9   : > { %576 = vst [vmem:[#allocation2 + $0x110] sm:$0xff] %v555_v63 }
  0xca   : > { %577 = vst [vmem:[#allocation2 + $0x118] sm:$0xff] %v556_v11 }
  0xcc   : > { %849 = vrot.lane.b32.xlu2 %v11922_v3, %s11802_s21  ;;  %847 = vrot.lane.b32.xlu1 %v11910_v0, %s11802_s21 }
  0xcd   : > { %845 = vrot.lane.b32.xlu0 %v11925_v4, %s11802_s21 }
  0xce   : > { %v619_v12 = vpop.permute.xlu2 %618  ;;  %v544_v13 = vpop.permute.xlu1 %543 }
  0xcf   : > { %v560_v14 = vsel %vm553_vm3, %v544_v13, %v546_v48  ;;  %v542_v15 = vpop.permute.xlu0 %541 }
  0xd0   : > { %581 = vst [vmem:[#allocation2 + $0x138] sm:$0xff] %v560_v14  ;;  %v558_v16 = vsel %vm553_vm3, %v540_v42, %v542_v15  ;;  %v559_v17 = vsel %vm553_vm3, %v542_v15, %v544_v13 }
  0xd1   : > { %579 = vst [vmem:[#allocation2 + $0x128] sm:$0xff] %v558_v16 }
  0xd2   : > { %580 = vst [vmem:[#allocation2 + $0x130] sm:$0xff] %v559_v17 }
  0xd4   : > { %855 = vrot.lane.b32.xlu2 %v11934_v6, %s11802_s21  ;;  %853 = vrot.lane.b32.xlu1 %v11937_v7, %s11802_s21 }
  0xd5   : > { %851 = vrot.lane.b32.xlu0 %v11940_v8, %s11802_s21 }
  0xd6   : > { %v625_v18 = vpop.permute.xlu2 %624  ;;  %v550_v19 = vpop.permute.xlu1 %549 }
  0xd7   : > { %v563_v20 = vsel %vm553_vm3, %v550_v19, %v552_v54  ;;  %v548_v21 = vpop.permute.xlu0 %547 }
  0xd8   : > { %584 = vst [vmem:[#allocation2 + $0x150] sm:$0xff] %v563_v20  ;;  %v561_v22 = vsel %vm553_vm3, %v546_v48, %v548_v21  ;;  %v562_v23 = vsel %vm553_vm3, %v548_v21, %v550_v19  ;;  %vm16538_vm3 = vcmask 752640  }
  0xd9   : > { %582 = vst [vmem:[#allocation2 + $0x140] sm:$0xff] %v561_v22 }
  0xda   : > { %583 = vst [vmem:[#allocation2 + $0x148] sm:$0xff] %v562_v23 }
  0xdc   : > { %916 = vrot.lane.b32.xlu2 %v11916_v2, %s11803_s22  ;;  %859 = vrot.lane.b32.xlu1 %v11946_v9, %s11802_s21 }
  0xdd   : > { %857 = vrot.lane.b32.xlu0 %v11949_v10, %s11802_s21  ;;  %s11817_s21 = smov 4  }
  0xde   : > { %v686_v24 = vpop.permute.xlu2 %685  ;;  %v611_v25 = vpop.permute.xlu1 %610 }
  0xdf   : > { %v632_v26 = vsel %vm16581_vm4, %v611_v25, %v613_v59  ;;  %v609_v27 = vpop.permute.xlu0 %608 }
  0xe0   : > { %653 = vst [vmem:[#allocation2 + $0x168] sm:$0xff] %v632_v26  ;;  %v631_v28 = vsel %vm16581_vm4, %v609_v27, %v611_v25 }
  0xe1   : > { %652 = vst [vmem:[#allocation2 + $0x160] sm:$0xff] %v631_v28 }
  0xe4   : > { %922 = vrot.lane.b32.xlu2 %v11925_v4, %s11803_s22  ;;  %920 = vrot.lane.b32.xlu1 %v11913_v1, %s11803_s22 }
  0xe5   : > { %918 = vrot.lane.b32.xlu0 %v11928_v5, %s11803_s22 }
  0xe6   : > { %v692_v29 = vpop.permute.xlu2 %691  ;;  %v617_v30 = vpop.permute.xlu1 %616 }
  0xe7   : > { %v635_v31 = vsel %vm16581_vm4, %v617_v30, %v619_v12  ;;  %v615_v32 = vpop.permute.xlu0 %614 }
  0xe8   : > { %656 = vst [vmem:[#allocation2 + $0x180] sm:$0xff] %v635_v31  ;;  %v633_v33 = vsel %vm16581_vm4, %v613_v59, %v615_v32  ;;  %v634_v34 = vsel %vm16581_vm4, %v615_v32, %v617_v30 }
  0xe9   : > { %654 = vst [vmem:[#allocation2 + $0x170] sm:$0xff] %v633_v33 }
  0xea   : > { %655 = vst [vmem:[#allocation2 + $0x178] sm:$0xff] %v634_v34 }
  0xec   : > { %928 = vrot.lane.b32.xlu2 %v11940_v8, %s11803_s22  ;;  %926 = vrot.lane.b32.xlu1 %v11922_v3, %s11803_s22 }
  0xed   : > { %924 = vrot.lane.b32.xlu0 %v11910_v0, %s11803_s22 }
  0xee   : > { %v698_v35 = vpop.permute.xlu2 %697  ;;  %v623_v36 = vpop.permute.xlu1 %622 }
  0xef   : > { %v638_v37 = vsel %vm16581_vm4, %v623_v36, %v625_v18  ;;  %v621_v38 = vpop.permute.xlu0 %620 }
  0xf0   : > { %659 = vst [vmem:[#allocation2 + $0x198] sm:$0xff] %v638_v37  ;;  %v636_v39 = vsel %vm16581_vm4, %v619_v12, %v621_v38  ;;  %v637_v40 = vsel %vm16581_vm4, %v621_v38, %v623_v36 }
  0xf1   : > { %657 = vst [vmem:[#allocation2 + $0x188] sm:$0xff] %v636_v39 }
  0xf2   : > { %658 = vst [vmem:[#allocation2 + $0x190] sm:$0xff] %v637_v40 }
  0xf4   : > { %934 = vrot.lane.b32.xlu2 %v11949_v10, %s11803_s22  ;;  %932 = vrot.lane.b32.xlu1 %v11934_v6, %s11803_s22 }
  0xf5   : > { %930 = vrot.lane.b32.xlu0 %v11937_v7, %s11803_s22 }
  0xf6   : > { %v704_v41 = vpop.permute.xlu2 %703  ;;  %v629_v42 = vpop.permute.xlu1 %628 }
  0xf7   : > { %662 = vst.msk [vmem:[#allocation2 + $0x1b0] sm:$0xff] %vm353_vm1, %v629_v42  ;;  %v627_v43 = vpop.permute.xlu0 %626 }
  0xf8   : > { %v639_v44 = vsel %vm16581_vm4, %v625_v18, %v627_v43  ;;  %v640_v45 = vsel %vm16581_vm4, %v627_v43, %v629_v42 }
  0xf9   : > { %660 = vst [vmem:[#allocation2 + $0x1a0] sm:$0xff] %v639_v44 }
  0xfa   : > { %661 = vst [vmem:[#allocation2 + $0x1a8] sm:$0xff] %v640_v45 }
  0xfc   : > { %995 = vrot.lane.b32.xlu2 %v11928_v5, %s16519_s23  ;;  %993 = vrot.lane.b32.xlu1 %v11916_v2, %s16519_s23 }
  0xfd   : > { %936 = vrot.lane.b32.xlu0 %v11946_v9, %s11803_s22  ;;  %s11818_s22 = smov 5  }
  0xfe   : > { %v765_v46 = vpop.permute.xlu2 %764  ;;  %v690_v47 = vpop.permute.xlu1 %689 }
  0xff   : > { %v710_v48 = vsel %vm707_vm5, %v690_v47, %v692_v29  ;;  %v688_v49 = vpop.permute.xlu0 %687 }
 0x100   : > { %731 = vst [vmem:[#allocation2 + $0x1c8] sm:$0xff] %v710_v48  ;;  %v708_v50 = vsel %vm707_vm5, %v686_v24, %v688_v49  ;;  %v709_v51 = vsel %vm707_vm5, %v688_v49, %v690_v47 }
 0x101   : > { %729 = vst [vmem:[#allocation2 + $0x1b8] sm:$0xff] %v708_v50 }
 0x102   : > { %730 = vst [vmem:[#allocation2 + $0x1c0] sm:$0xff] %v709_v51 }
 0x104   : > { %1001 = vrot.lane.b32.xlu2 %v11910_v0, %s16519_s23  ;;  %999 = vrot.lane.b32.xlu1 %v11925_v4, %s16519_s23 }
 0x105   : > { %997 = vrot.lane.b32.xlu0 %v11913_v1, %s16519_s23 }
 0x106   : > { %v771_v52 = vpop.permute.xlu2 %770  ;;  %v696_v53 = vpop.permute.xlu1 %695 }
 0x107   : > { %v713_v54 = vsel %vm707_vm5, %v696_v53, %v698_v35  ;;  %v694_v55 = vpop.permute.xlu0 %693 }
 0x108   : > { %734 = vst [vmem:[#allocation2 + $0x1e0] sm:$0xff] %v713_v54  ;;  %v711_v56 = vsel %vm707_vm5, %v692_v29, %v694_v55  ;;  %v712_v57 = vsel %vm707_vm5, %v694_v55, %v696_v53 }
 0x109   : > { %732 = vst [vmem:[#allocation2 + $0x1d0] sm:$0xff] %v711_v56 }
 0x10a   : > { %733 = vst [vmem:[#allocation2 + $0x1d8] sm:$0xff] %v712_v57 }
 0x10c   : > { %1007 = vrot.lane.b32.xlu2 %v11937_v7, %s16519_s23  ;;  %1005 = vrot.lane.b32.xlu1 %v11940_v8, %s16519_s23 }
 0x10d   : > { %1003 = vrot.lane.b32.xlu0 %v11922_v3, %s16519_s23 }
 0x10e   : > { %v777_v58 = vpop.permute.xlu2 %776  ;;  %v702_v59 = vpop.permute.xlu1 %701 }
 0x10f   : > { %v716_v60 = vsel %vm707_vm5, %v702_v59, %v704_v41  ;;  %v700_v61 = vpop.permute.xlu0 %699 }
 0x110   : > { %737 = vst [vmem:[#allocation2 + $0x1f8] sm:$0xff] %v716_v60  ;;  %v714_v62 = vsel %vm707_vm5, %v698_v35, %v700_v61  ;;  %v715_v63 = vsel %vm707_vm5, %v700_v61, %v702_v59 }
 0x111   : > { %735 = vst [vmem:[#allocation2 + $0x1e8] sm:$0xff] %v714_v62 }
 0x112   : > { %736 = vst [vmem:[#allocation2 + $0x1f0] sm:$0xff] %v715_v63 }
 0x114   : > { %1013 = vrot.lane.b32.xlu2 %v11946_v9, %s16519_s23  ;;  %1011 = vrot.lane.b32.xlu1 %v11949_v10, %s16519_s23 }
 0x115   : > { %1009 = vrot.lane.b32.xlu0 %v11934_v6, %s16519_s23  ;;  %s16791_s23 = smov 124  }
 0x116   : > { %v783_v11 = vpop.permute.xlu2 %782  ;;  %v763_v12 = vpop.permute.xlu1 %762 }
 0x117   : > { %816 = vst.msk [vmem:[#allocation2 + $0x260] sm:$0xff] %vm353_vm1, %v783_v11  ;;  %v785_v13 = vsel %vm784_vm6, %v763_v12, %v765_v46  ;;  %v706_v14 = vpop.permute.xlu0 %705 }
 0x118   : > { %806 = vst [vmem:[#allocation2 + $0x210] sm:$0xff] %v785_v13  ;;  %v717_v15 = vsel %vm707_vm5, %v704_v41, %v706_v14 }
 0x119   : > { %738 = vst [vmem:[#allocation2 + $0x200] sm:$0xff] %v717_v15 }
 0x11a   : > { %739 = vst.msk [vmem:[#allocation2 + $0x208] sm:$0xff] %vm353_vm1, %v706_v14 }
 0x11c   : > { %1074 = vrot.lane.b32.xlu2 %v11913_v1, %s16616_s24  ;;  %1072 = vrot.lane.b32.xlu1 %v11928_v5, %s16616_s24 }
 0x11d   : > { %1070 = vrot.lane.b32.xlu0 %v11916_v2, %s16616_s24 }
 0x11e   : > { %v844_v16 = vpop.permute.xlu2 %843  ;;  %v769_v17 = vpop.permute.xlu1 %768 }
 0x11f   : > { %v788_v18 = vsel %vm784_vm6, %v769_v17, %v771_v52  ;;  %v767_v19 = vpop.permute.xlu0 %766 }
 0x120   : > { %809 = vst [vmem:[#allocation2 + $0x228] sm:$0xff] %v788_v18  ;;  %v786_v20 = vsel %vm784_vm6, %v765_v46, %v767_v19  ;;  %v787_v21 = vsel %vm784_vm6, %v767_v19, %v769_v17 }
 0x121   : > { %807 = vst [vmem:[#allocation2 + $0x218] sm:$0xff] %v786_v20 }
 0x122   : > { %808 = vst [vmem:[#allocation2 + $0x220] sm:$0xff] %v787_v21 }
 0x124   : > { %1080 = vrot.lane.b32.xlu2 %v11922_v3, %s16616_s24  ;;  %1078 = vrot.lane.b32.xlu1 %v11910_v0, %s16616_s24 }
 0x125   : > { %1076 = vrot.lane.b32.xlu0 %v11925_v4, %s16616_s24 }
 0x126   : > { %v850_v22 = vpop.permute.xlu2 %849  ;;  %v775_v23 = vpop.permute.xlu1 %774 }
 0x127   : > { %v791_v24 = vsel %vm784_vm6, %v775_v23, %v777_v58  ;;  %v773_v25 = vpop.permute.xlu0 %772 }
 0x128   : > { %812 = vst [vmem:[#allocation2 + $0x240] sm:$0xff] %v791_v24  ;;  %v789_v26 = vsel %vm784_vm6, %v771_v52, %v773_v25  ;;  %v790_v27 = vsel %vm784_vm6, %v773_v25, %v775_v23 }
 0x129   : > { %810 = vst [vmem:[#allocation2 + $0x230] sm:$0xff] %v789_v26  ;;  %v12309_v26 = vld [vmem:[%s11907_s14 + $0x20] sm:$0xff] }
 0x12a   : > { %811 = vst [vmem:[#allocation2 + $0x238] sm:$0xff] %v790_v27  ;;  %v12312_v27 = vld [vmem:[%s11907_s14 + $0x18] sm:$0xff] }
 0x12c   : > { %1086 = vrot.lane.b32.xlu2 %v11934_v6, %s16616_s24  ;;  %1084 = vrot.lane.b32.xlu1 %v11937_v7, %s16616_s24 }
 0x12d   : > { %1082 = vrot.lane.b32.xlu0 %v11940_v8, %s16616_s24 }
 0x12e   : > { %v856_v28 = vpop.permute.xlu2 %855  ;;  %v781_v29 = vpop.permute.xlu1 %780 }
 0x12f   : > { %v794_v30 = vsel %vm784_vm6, %v781_v29, %v783_v11  ;;  %v779_v31 = vpop.permute.xlu0 %778 }
 0x130   : > { %815 = vst [vmem:[#allocation2 + $0x258] sm:$0xff] %v794_v30  ;;  %v792_v32 = vsel %vm784_vm6, %v777_v58, %v779_v31  ;;  %v793_v33 = vsel %vm784_vm6, %v779_v31, %v781_v29  ;;  %vm16543_vm6 = vcmask 769024  }
 0x131   : > { %813 = vst [vmem:[#allocation2 + $0x248] sm:$0xff] %v792_v32 }
 0x132   : > { %814 = vst [vmem:[#allocation2 + $0x250] sm:$0xff] %v793_v33 }
 0x134   : > { %1147 = vrot.lane.b32.xlu2 %v11916_v2, %s11806_s25  ;;  %1090 = vrot.lane.b32.xlu1 %v11946_v9, %s16616_s24 }
 0x135   : > { %1088 = vrot.lane.b32.xlu0 %v11949_v10, %s16616_s24 }
 0x136   : > { %v917_v34 = vpop.permute.xlu2 %916  ;;  %v842_v35 = vpop.permute.xlu1 %841 }
 0x137   : > { %v863_v36 = vsel %vm861_vm7, %v842_v35, %v844_v16  ;;  %v840_v37 = vpop.permute.xlu0 %839 }
 0x138   : > { %884 = vst [vmem:[#allocation2 + $0x270] sm:$0xff] %v863_v36  ;;  %v862_v38 = vsel %vm861_vm7, %v840_v37, %v842_v35  ;;  %v12327_v35 = vld [vmem:[%s11907_s14 + $0x30] sm:$0xff] }
 0x139   : > { %883 = vst [vmem:[#allocation2 + $0x268] sm:$0xff] %v862_v38 }
 0x13c   : > { %1153 = vrot.lane.b32.xlu2 %v11925_v4, %s11806_s25  ;;  %1151 = vrot.lane.b32.xlu1 %v11913_v1, %s11806_s25 }
 0x13d   : > { %1149 = vrot.lane.b32.xlu0 %v11928_v5, %s11806_s25 }
 0x13e   : > { %v923_v39 = vpop.permute.xlu2 %922  ;;  %v848_v40 = vpop.permute.xlu1 %847 }
 0x13f   : > { %v866_v41 = vsel %vm861_vm7, %v848_v40, %v850_v22  ;;  %v846_v42 = vpop.permute.xlu0 %845 }
 0x140   : > { %887 = vst [vmem:[#allocation2 + $0x288] sm:$0xff] %v866_v41  ;;  %v864_v43 = vsel %vm861_vm7, %v844_v16, %v846_v42  ;;  %v865_v44 = vsel %vm861_vm7, %v846_v42, %v848_v40  ;;  %v12339_v42 = vld [vmem:[%s11907_s14 + $0x50] sm:$0xff] }
 0x141   : > { %885 = vst [vmem:[#allocation2 + $0x278] sm:$0xff] %v864_v43  ;;  %v12342_v43 = vld [vmem:[%s11907_s14 + $0x48] sm:$0xff] }
 0x142   : > { %886 = vst [vmem:[#allocation2 + $0x280] sm:$0xff] %v865_v44 }
 0x144   : > { %1159 = vrot.lane.b32.xlu2 %v11940_v8, %s11806_s25  ;;  %1157 = vrot.lane.b32.xlu1 %v11922_v3, %s11806_s25 }
 0x145   : > { %1155 = vrot.lane.b32.xlu0 %v11910_v0, %s11806_s25 }
 0x146   : > { %v929_v45 = vpop.permute.xlu2 %928  ;;  %v854_v46 = vpop.permute.xlu1 %853 }
 0x147   : > { %v869_v47 = vsel %vm861_vm7, %v854_v46, %v856_v28  ;;  %v852_v48 = vpop.permute.xlu0 %851 }
 0x148   : > { %890 = vst [vmem:[#allocation2 + $0x2a0] sm:$0xff] %v869_v47  ;;  %v867_v49 = vsel %vm861_vm7, %v850_v22, %v852_v48  ;;  %v868_v50 = vsel %vm861_vm7, %v852_v48, %v854_v46 }
 0x149   : > { %888 = vst [vmem:[#allocation2 + $0x290] sm:$0xff] %v867_v49 }
 0x14a   : > { %889 = vst [vmem:[#allocation2 + $0x298] sm:$0xff] %v868_v50 }
 0x14c   : > { %1165 = vrot.lane.b32.xlu2 %v11949_v10, %s11806_s25  ;;  %1163 = vrot.lane.b32.xlu1 %v11934_v6, %s11806_s25  ;;  %v12242_v6 = vld [vmem:[%s11907_s14] sm:$0xff] }
 0x14d   : > { %1161 = vrot.lane.b32.xlu0 %v11937_v7, %s11806_s25 }
 0x14e   : > { %v935_v3 = vpop.permute.xlu2 %934  ;;  %v860_v51 = vpop.permute.xlu1 %859 }
 0x14f   : > { %893 = vst.msk [vmem:[#allocation2 + $0x2b8] sm:$0xff] %vm353_vm1, %v860_v51  ;;  %v858_v52 = vpop.permute.xlu0 %857 }
 0x150   : > { %v870_v53 = vsel %vm861_vm7, %v856_v28, %v858_v52  ;;  %v871_v54 = vsel %vm861_vm7, %v858_v52, %v860_v51  ;;  %vm2118_vm7 = vcmask 760832  }
 0x151   : > { %891 = vst [vmem:[#allocation2 + $0x2a8] sm:$0xff] %v870_v53 }
 0x152   : > { %892 = vst [vmem:[#allocation2 + $0x2b0] sm:$0xff] %v871_v54 }
 0x154   : > { %1226 = vrot.lane.b32.xlu2 %v11928_v5, %s16666_s26  ;;  %1224 = vrot.lane.b32.xlu1 %v11916_v2, %s16666_s26 }
 0x155   : > { %1167 = vrot.lane.b32.xlu0 %v11946_v9, %s11806_s25  ;;  %s11819_s25 = smov 6  }
 0x156   : > { %v996_v55 = vpop.permute.xlu2 %995  ;;  %v921_v56 = vpop.permute.xlu1 %920 }
 0x157   : > { %v941_v57 = vsel %vm938_vm8, %v921_v56, %v923_v39  ;;  %v919_v58 = vpop.permute.xlu0 %918 }
 0x158   : > { %962 = vst [vmem:[#allocation2 + $0x2d0] sm:$0xff] %v941_v57  ;;  %v12248_v59 = vsel %vm938_vm8, %v917_v34, %v919_v58  ;;  %v12251_v5 = vsel %vm938_vm8, %v919_v58, %v921_v56  ;;  %v12324_v34 = vld [vmem:[%s11907_s14 + $0x38] sm:$0xff] }
 0x15c   : > { %1232 = vrot.lane.b32.xlu2 %v11910_v0, %s16666_s26  ;;  %1230 = vrot.lane.b32.xlu1 %v11925_v4, %s16666_s26  ;;  %v12263_v0 = vld [vmem:[%s11907_s14 + $0x28] sm:$0xff] }
 0x15d   : > { %1228 = vrot.lane.b32.xlu0 %v11913_v1, %s16666_s26 }
 0x15e   : > { %v1002_v2 = vpop.permute.xlu2 %1001  ;;  %v927_v60 = vpop.permute.xlu1 %926 }
 0x15f   : > { %v944_v61 = vsel %vm938_vm8, %v927_v60, %v929_v45  ;;  %v925_v62 = vpop.permute.xlu0 %924 }
 0x160   : > { %965 = vst [vmem:[#allocation2 + $0x2e8] sm:$0xff] %v944_v61  ;;  %v942_v63 = vsel %vm938_vm8, %v923_v39, %v925_v62  ;;  %v943_v11 = vsel %vm938_vm8, %v925_v62, %v927_v60 }
 0x161   : > { %963 = vst [vmem:[#allocation2 + $0x2d8] sm:$0xff] %v942_v63 }
 0x162   : > { %964 = vst [vmem:[#allocation2 + $0x2e0] sm:$0xff] %v943_v11 }
 0x164   : > { %1238 = vrot.lane.b32.xlu2 %v11937_v7, %s16666_s26  ;;  %1236 = vrot.lane.b32.xlu1 %v11940_v8, %s16666_s26  ;;  %v12275_v7 = vld [vmem:[%s11907_s14 + $0x40] sm:$0xff] }
 0x165   : > { %1234 = vrot.lane.b32.xlu0 %v12263_v0, %s16666_s26 }
 0x166   : > { %v1008_v1 = vpop.permute.xlu2 %1007  ;;  %v933_v4 = vpop.permute.xlu1 %932 }
 0x167   : > { %v947_v12 = vsel %vm938_vm8, %v933_v4, %v935_v3  ;;  %v931_v13 = vpop.permute.xlu0 %930 }
 0x168   : > { %968 = vst [vmem:[#allocation2 + $0x300] sm:$0xff] %v947_v12  ;;  %v945_v14 = vsel %vm938_vm8, %v929_v45, %v931_v13  ;;  %v946_v15 = vsel %vm938_vm8, %v931_v13, %v933_v4 }
 0x169   : > { %966 = vst [vmem:[#allocation2 + $0x2f0] sm:$0xff] %v945_v14 }
 0x16a   : > { %967 = vst [vmem:[#allocation2 + $0x2f8] sm:$0xff] %v946_v15 }
 0x16c   : > { %1244 = vrot.lane.b32.xlu2 %v11946_v9, %s16666_s26  ;;  %1242 = vrot.lane.b32.xlu1 %v11949_v10, %s16666_s26  ;;  %v12289_v9 = vld [vmem:[%s11907_s14 + $0x10] sm:$0xff]  ;;  %v12292_v10 = vld [vmem:[%s11907_s14 + $0x8] sm:$0xff] }
 0x16d   : > { %1240 = vrot.lane.b32.xlu0 %v12275_v7, %s16666_s26 }
 0x16e   : > { %v1014_v8 = vpop.permute.xlu2 %1013  ;;  %v994_v16 = vpop.permute.xlu1 %993 }
 0x16f   : > { %1047 = vst.msk [vmem:[#allocation2 + $0x368] sm:$0xff] %vm353_vm1, %v1014_v8  ;;  %v12285_v17 = vsel %vm1015_vm9, %v994_v16, %v996_v55  ;;  %v937_v18 = vpop.permute.xlu0 %936 }
 0x170   : > { %v948_v19 = vsel %vm938_vm8, %v935_v3, %v937_v18  ;;  %970 = vst.msk [vmem:[#allocation2 + $0x310] sm:$0xff] %vm353_vm1, %v937_v18  ;;  %vm1964_vm8 = vcmask 777216  }
 0x171   : > { %969 = vst [vmem:[#allocation2 + $0x308] sm:$0xff] %v948_v19 }
 0x174   : > { %1305 = vrot.lane.b32.xlu2 %v12289_v9, %s11808_s27  ;;  %1303 = vrot.lane.b32.xlu1 %v12292_v10, %s11808_s27 }
 0x175   : > { %1301 = vrot.lane.b32.xlu0 %v12242_v6, %s11808_s27 }
 0x176   : > { %v1075_v20 = vpop.permute.xlu2 %1074  ;;  %v1000_v21 = vpop.permute.xlu1 %999 }
 0x177   : > { %v12302_v22 = vsel %vm1015_vm9, %v1000_v21, %v1002_v2  ;;  %v998_v23 = vpop.permute.xlu0 %997 }
 0x178   : > { %v12305_v24 = vsel %vm1015_vm9, %v996_v55, %v998_v23  ;;  %v1018_v25 = vsel %vm1015_vm9, %v998_v23, %v1000_v21 }
 0x179   : > { %1039 = vst [vmem:[#allocation2 + $0x328] sm:$0xff] %v1018_v25 }
 0x17c   : > { %1311 = vrot.lane.b32.xlu2 %v12263_v0, %s11808_s27  ;;  %1309 = vrot.lane.b32.xlu1 %v12309_v26, %s11808_s27 }
 0x17d   : > { %1307 = vrot.lane.b32.xlu0 %v12312_v27, %s11808_s27 }
 0x17e   : > { %v1081_v28 = vpop.permute.xlu2 %1080  ;;  %v1006_v29 = vpop.permute.xlu1 %1005 }
 0x17f   : > { %v1022_v30 = vsel %vm1015_vm9, %v1006_v29, %v1008_v1  ;;  %v1004_v31 = vpop.permute.xlu0 %1003 }
 0x180   : > { %1043 = vst [vmem:[#allocation2 + $0x348] sm:$0xff] %v1022_v30  ;;  %v1020_v32 = vsel %vm1015_vm9, %v1002_v2, %v1004_v31  ;;  %v1021_v33 = vsel %vm1015_vm9, %v1004_v31, %v1006_v29 }
 0x181   : > { %1041 = vst [vmem:[#allocation2 + $0x338] sm:$0xff] %v1020_v32 }
 0x182   : > { %1042 = vst [vmem:[#allocation2 + $0x340] sm:$0xff] %v1021_v33 }
 0x184   : > { %1317 = vrot.lane.b32.xlu2 %v12275_v7, %s11808_s27  ;;  %1315 = vrot.lane.b32.xlu1 %v12324_v34, %s11808_s27 }
 0x185   : > { %1313 = vrot.lane.b32.xlu0 %v12327_v35, %s11808_s27 }
 0x186   : > { %v1087_v36 = vpop.permute.xlu2 %1086  ;;  %v1012_v37 = vpop.permute.xlu1 %1011 }
 0x187   : > { %v1025_v38 = vsel %vm1015_vm9, %v1012_v37, %v1014_v8  ;;  %v1010_v39 = vpop.permute.xlu0 %1009 }
 0x188   : > { %1046 = vst [vmem:[#allocation2 + $0x360] sm:$0xff] %v1025_v38  ;;  %v1023_v40 = vsel %vm1015_vm9, %v1008_v1, %v1010_v39  ;;  %v1024_v41 = vsel %vm1015_vm9, %v1010_v39, %v1012_v37  ;;  %v1444_v39 = vld [vmem:[%s11907_s14 + $0x58] sm:$0xff]  ;;  %vm16556_vm9 = vcmask 785408  }
 0x189   : > { %1044 = vst [vmem:[#allocation2 + $0x350] sm:$0xff] %v1023_v40 }
 0x18a   : > { %1045 = vst [vmem:[#allocation2 + $0x358] sm:$0xff] %v1024_v41 }
 0x18c   : > { %1378 = vrot.lane.b32.xlu2 %v12242_v6, %s16659_s28  ;;  %1321 = vrot.lane.b32.xlu1 %v12339_v42, %s11808_s27 }
 0x18d   : > { %1319 = vrot.lane.b32.xlu0 %v12342_v43, %s11808_s27  ;;  %s16528_s27 = smov 40  }
 0x18e   : > { %v1148_v44 = vpop.permute.xlu2 %1147  ;;  %v1073_v45 = vpop.permute.xlu1 %1072 }
 0x18f   : > { %v12351_v46 = vsel %vm16662_vm10, %v1073_v45, %v1075_v20  ;;  %v1071_v47 = vpop.permute.xlu0 %1070 }
 0x190   : > { %v12354_v48 = vsel %vm16662_vm10, %v1071_v47, %v1073_v45 }
 0x194   : > { %1384 = vrot.lane.b32.xlu2 %v12312_v27, %s16659_s28  ;;  %1382 = vrot.lane.b32.xlu1 %v12289_v9, %s16659_s28 }
 0x195   : > { %1380 = vrot.lane.b32.xlu0 %v12292_v10, %s16659_s28 }
 0x196   : > { %v1154_v49 = vpop.permute.xlu2 %1153  ;;  %v1079_v50 = vpop.permute.xlu1 %1078 }
 0x197   : > { %v1097_v3 = vsel %vm16662_vm10, %v1079_v50, %v1081_v28  ;;  %v1077_v51 = vpop.permute.xlu0 %1076 }
 0x198   : > { %1118 = vst [vmem:[#allocation2 + $0x390] sm:$0xff] %v1097_v3  ;;  %v1095_v52 = vsel %vm16662_vm10, %v1075_v20, %v1077_v51  ;;  %v12365_v53 = vsel %vm16662_vm10, %v1077_v51, %v1079_v50 }
 0x199   : > { %1116 = vst [vmem:[#allocation2 + $0x380] sm:$0xff] %v1095_v52 }
 0x19c   : > { %1390 = vrot.lane.b32.xlu2 %v12327_v35, %s16659_s28  ;;  %1388 = vrot.lane.b32.xlu1 %v12263_v0, %s16659_s28 }
 0x19d   : > { %1386 = vrot.lane.b32.xlu0 %v12309_v26, %s16659_s28 }
 0x19e   : > { %v1160_v54 = vpop.permute.xlu2 %1159  ;;  %v1085_v55 = vpop.permute.xlu1 %1084 }
 0x19f   : > { %v1100_v56 = vsel %vm16662_vm10, %v1085_v55, %v1087_v36  ;;  %v1083_v57 = vpop.permute.xlu0 %1082 }
 0x1a0   : > { %1121 = vst [vmem:[#allocation2 + $0x3a8] sm:$0xff] %v1100_v56  ;;  %v1098_v58 = vsel %vm16662_vm10, %v1081_v28, %v1083_v57  ;;  %v1099_v2 = vsel %vm16662_vm10, %v1083_v57, %v1085_v55 }
 0x1a1   : > { %1119 = vst [vmem:[#allocation2 + $0x398] sm:$0xff] %v1098_v58 }
 0x1a2   : > { %1120 = vst [vmem:[#allocation2 + $0x3a0] sm:$0xff] %v1099_v2 }
 0x1a4   : > { %1396 = vrot.lane.b32.xlu2 %v12342_v43, %s16659_s28  ;;  %1394 = vrot.lane.b32.xlu1 %v12275_v7, %s16659_s28 }
 0x1a5   : > { %1392 = vrot.lane.b32.xlu0 %v12324_v34, %s16659_s28 }
 0x1a6   : > { %v1166_v60 = vpop.permute.xlu2 %1165  ;;  %v1091_v61 = vpop.permute.xlu1 %1090 }
 0x1a7   : > { %1124 = vst.msk [vmem:[#allocation2 + $0x3c0] sm:$0xff] %vm353_vm1, %v1091_v61  ;;  %v1089_v62 = vpop.permute.xlu0 %1088 }
 0x1a8   : > { %v1101_v63 = vsel %vm16662_vm10, %v1087_v36, %v1089_v62  ;;  %v1102_v11 = vsel %vm16662_vm10, %v1089_v62, %v1091_v61 }
 0x1a9   : > { %1122 = vst [vmem:[#allocation2 + $0x3b0] sm:$0xff] %v1101_v63 }
 0x1aa   : > { %1123 = vst [vmem:[#allocation2 + $0x3b8] sm:$0xff] %v1102_v11 }
 0x1ac   : > { %1459 = vrot.lane.b32.xlu2 %v12292_v10, %s16610_s29  ;;  %1457 = vrot.lane.b32.xlu1 %v12242_v6, %s16610_s29 }
 0x1ad   : > { %1398 = vrot.lane.b32.xlu0 %v12339_v42, %s16659_s28 }
 0x1ae   : > { %v1227_v1 = vpop.permute.xlu2 %1226  ;;  %v1152_v4 = vpop.permute.xlu1 %1151 }
 0x1af   : > { %v1172_v12 = vsel %vm1169_vm11, %v1152_v4, %v1154_v49  ;;  %v1150_v13 = vpop.permute.xlu0 %1149 }
 0x1b0   : > { %1193 = vst [vmem:[#allocation2 + $0x3d8] sm:$0xff] %v1172_v12  ;;  %v12393_v14 = vsel %vm1169_vm11, %v1148_v44, %v1150_v13  ;;  %v12396_v15 = vsel %vm1169_vm11, %v1150_v13, %v1152_v4 }
 0x1b4   : > { %1465 = vrot.lane.b32.xlu2 %v12309_v26, %s16610_s29  ;;  %1463 = vrot.lane.b32.xlu1 %v12312_v27, %s16610_s29 }
 0x1b5   : > { %1461 = vrot.lane.b32.xlu0 %v12289_v9, %s16610_s29 }
 0x1b6   : > { %v1233_v8 = vpop.permute.xlu2 %1232  ;;  %v1158_v16 = vpop.permute.xlu1 %1157 }
 0x1b7   : > { %v1175_v18 = vsel %vm1169_vm11, %v1158_v16, %v1160_v54  ;;  %v1156_v19 = vpop.permute.xlu0 %1155 }
 0x1b8   : > { %1196 = vst [vmem:[#allocation2 + $0x3f0] sm:$0xff] %v1175_v18  ;;  %v12406_v20 = vsel %vm1169_vm11, %v1154_v49, %v1156_v19  ;;  %v1174_v21 = vsel %vm1169_vm11, %v1156_v19, %v1158_v16 }
 0x1b9   : > { %1195 = vst [vmem:[#allocation2 + $0x3e8] sm:$0xff] %v1174_v21 }
 0x1bc   : > { %1471 = vrot.lane.b32.xlu2 %v12324_v34, %s16610_s29  ;;  %1469 = vrot.lane.b32.xlu1 %v12327_v35, %s16610_s29 }
 0x1bd   : > { %1467 = vrot.lane.b32.xlu0 %v12263_v0, %s16610_s29 }
 0x1be   : > { %v1239_v23 = vpop.permute.xlu2 %1238  ;;  %v1164_v25 = vpop.permute.xlu1 %1163 }
 0x1bf   : > { %v1178_v28 = vsel %vm1169_vm11, %v1164_v25, %v1166_v60  ;;  %v1162_v29 = vpop.permute.xlu0 %1161 }
 0x1c0   : > { %1199 = vst [vmem:[#allocation2 + $0x408] sm:$0xff] %v1178_v28  ;;  %v1176_v30 = vsel %vm1169_vm11, %v1160_v54, %v1162_v29  ;;  %v1177_v31 = vsel %vm1169_vm11, %v1162_v29, %v1164_v25 }
 0x1c1   : > { %1197 = vst [vmem:[#allocation2 + $0x3f8] sm:$0xff] %v1176_v30 }
 0x1c2   : > { %1198 = vst [vmem:[#allocation2 + $0x400] sm:$0xff] %v1177_v31 }
 0x1c4   : > { %1477 = vrot.lane.b32.xlu2 %v12339_v42, %s16610_s29  ;;  %1475 = vrot.lane.b32.xlu1 %v12342_v43, %s16610_s29 }
 0x1c5   : > { %1473 = vrot.lane.b32.xlu0 %v12275_v7, %s16610_s29 }
 0x1c6   : > { %v1245_v32 = vpop.permute.xlu2 %1244  ;;  %v1225_v33 = vpop.permute.xlu1 %1224 }
 0x1c7   : > { %1278 = vst.msk [vmem:[#allocation2 + $0x470] sm:$0xff] %vm353_vm1, %v1245_v32  ;;  %v12426_v36 = vsel %vm16649_vm12, %v1225_v33, %v1227_v1  ;;  %v1168_v37 = vpop.permute.xlu0 %1167 }
 0x1c8   : > { %v1179_v38 = vsel %vm1169_vm11, %v1166_v60, %v1168_v37  ;;  %1201 = vst.msk [vmem:[#allocation2 + $0x418] sm:$0xff] %vm353_vm1, %v1168_v37  ;;  %vm1809_vm11 = vcmask 31744  }
 0x1c9   : > { %1200 = vst [vmem:[#allocation2 + $0x410] sm:$0xff] %v1179_v38 }
 0x1cc   : > { %1541 = vrot.lane.b32.xlu2 %v12292_v10, %s11811_s11  ;;  %1539 = vrot.lane.b32.xlu1 %v12242_v6, %s11811_s11 }
 0x1cd   : > { %1479 = vrot.lane.b32.xlu0 %v1444_v39, %s16610_s29 }
 0x1ce   : > { %v1306_v40 = vpop.permute.xlu2 %1305  ;;  %v1231_v41 = vpop.permute.xlu1 %1230 }
 0x1cf   : > { %v12437_v44 = vsel %vm16649_vm12, %v1231_v41, %v1233_v8  ;;  %v1229_v45 = vpop.permute.xlu0 %1228 }
 0x1d0   : > { %v12440_v47 = vsel %vm16649_vm12, %v1227_v1, %v1229_v45  ;;  %v1249_v49 = vsel %vm16649_vm12, %v1229_v45, %v1231_v41 }
 0x1d1   : > { %1270 = vst [vmem:[#allocation2 + $0x430] sm:$0xff] %v1249_v49 }
 0x1d4   : > { %1547 = vrot.lane.b32.xlu2 %v12309_v26, %s11811_s11  ;;  %1545 = vrot.lane.b32.xlu1 %v12312_v27, %s11811_s11 }
 0x1d5   : > { %1543 = vrot.lane.b32.xlu0 %v12289_v9, %s11811_s11 }
 0x1d6   : > { %v1312_v50 = vpop.permute.xlu2 %1311  ;;  %v1237_v3 = vpop.permute.xlu1 %1236 }
 0x1d7   : > { %v1253_v51 = vsel %vm16649_vm12, %v1237_v3, %v1239_v23  ;;  %v1235_v52 = vpop.permute.xlu0 %1234 }
 0x1d8   : > { %1274 = vst [vmem:[#allocation2 + $0x450] sm:$0xff] %v1253_v51  ;;  %v1251_v54 = vsel %vm16649_vm12, %v1233_v8, %v1235_v52  ;;  %v1252_v55 = vsel %vm16649_vm12, %v1235_v52, %v1237_v3 }
 0x1d9   : > { %1272 = vst [vmem:[#allocation2 + $0x440] sm:$0xff] %v1251_v54 }
 0x1da   : > { %1273 = vst [vmem:[#allocation2 + $0x448] sm:$0xff] %v1252_v55 }
 0x1dc   : > { %1553 = vrot.lane.b32.xlu2 %v12324_v34, %s11811_s11  ;;  %1551 = vrot.lane.b32.xlu1 %v12327_v35, %s11811_s11 }
 0x1dd   : > { %1549 = vrot.lane.b32.xlu0 %v12263_v0, %s11811_s11 }
 0x1de   : > { %v1318_v56 = vpop.permute.xlu2 %1317  ;;  %v1243_v57 = vpop.permute.xlu1 %1242 }
 0x1df   : > { %v1256_v58 = vsel %vm16649_vm12, %v1243_v57, %v1245_v32  ;;  %v1241_v2 = vpop.permute.xlu0 %1240 }
 0x1e0   : > { %1277 = vst [vmem:[#allocation2 + $0x468] sm:$0xff] %v1256_v58  ;;  %v1254_v60 = vsel %vm16649_vm12, %v1239_v23, %v1241_v2  ;;  %v1255_v61 = vsel %vm16649_vm12, %v1241_v2, %v1243_v57 }
 0x1e1   : > { %1275 = vst [vmem:[#allocation2 + $0x458] sm:$0xff] %v1254_v60 }
 0x1e2   : > { %1276 = vst [vmem:[#allocation2 + $0x460] sm:$0xff] %v1255_v61 }
 0x1e4   : > { %1559 = vrot.lane.b32.xlu2 %v12339_v42, %s11811_s11  ;;  %1557 = vrot.lane.b32.xlu1 %v12342_v43, %s11811_s11 }
 0x1e5   : > { %1555 = vrot.lane.b32.xlu0 %v12275_v7, %s11811_s11 }
 0x1e6   : > { %v1379_v62 = vpop.permute.xlu2 %1378  ;;  %v1304_v63 = vpop.permute.xlu1 %1303 }
 0x1e7   : > { %v12468_v11 = vsel %vm1323_vm13, %v1304_v63, %v1306_v40  ;;  %v1302_v1 = vpop.permute.xlu0 %1301 }
 0x1e8   : > { %v12471_v4 = vsel %vm1323_vm13, %v1302_v1, %v1304_v63 }
 0x1ec   : > { %2098 = vrot.lane.b32.xlu2 %v12289_v9, %s11812_s12  ;;  %2177 = vrot.lane.b32.xlu1 %v12312_v27, %s16575_s13 }
 0x1ed   : > { %2175 = vrot.lane.b32.xlu0 %v12289_v9, %s16575_s13 }
 0x1ee   : > { %v1385_v7 = vpop.permute.xlu2 %1384  ;;  %v1310_v42 = vpop.permute.xlu1 %1309 }
 0x1ef   : > { %v1328_v43 = vsel %vm1323_vm13, %v1310_v42, %v1312_v50  ;;  %v1308_v12 = vpop.permute.xlu0 %1307 }
 0x1f0   : > { %1349 = vst [vmem:[#allocation2 + $0x498] sm:$0xff] %v1328_v43  ;;  %v12481_v13 = vsel %vm1323_vm13, %v1306_v40, %v1308_v12  ;;  %v12484_v8 = vsel %vm1323_vm13, %v1308_v12, %v1310_v42 }
 0x1f4   : > { %2023 = vrot.lane.b32.xlu2 %v12312_v27, %s16532_s15  ;;  %2021 = vrot.lane.b32.xlu1 %v12289_v9, %s16532_s15 }
 0x1f5   : > { %2100 = vrot.lane.b32.xlu0 %v12312_v27, %s11812_s12 }
 0x1f6   : > { %v1391_v16 = vpop.permute.xlu2 %1390  ;;  %v1316_v18 = vpop.permute.xlu1 %1315 }
 0x1f7   : > { %v1331_v19 = vsel %vm1323_vm13, %v1316_v18, %v1318_v56  ;;  %v1314_v21 = vpop.permute.xlu0 %1313 }
 0x1f8   : > { %1352 = vst [vmem:[#allocation2 + $0x4b0] sm:$0xff] %v1331_v19  ;;  %v1329_v23 = vsel %vm1323_vm13, %v1312_v50, %v1314_v21  ;;  %v1330_v25 = vsel %vm1323_vm13, %v1314_v21, %v1316_v18 }
 0x1f9   : > { %1350 = vst [vmem:[#allocation2 + $0x4a0] sm:$0xff] %v1329_v23  ;;  %v2276_v23 = vld [vmem:[#allocation2 + $0x160] sm:$0xff] }
 0x1fa   : > { %1351 = vst [vmem:[#allocation2 + $0x4a8] sm:$0xff] %v1330_v25 }
 0x1fc   : > { %1867 = vrot.lane.b32.xlu2 %v12289_v9, %s16526_s17  ;;  %1946 = vrot.lane.b32.xlu1 %v12312_v27, %s11816_s20 }
 0x1fd   : > { %1944 = vrot.lane.b32.xlu0 %v12289_v9, %s11816_s20 }
 0x1fe   : > { %v1397_v28 = vpop.permute.xlu2 %1396  ;;  %v1322_v29 = vpop.permute.xlu1 %1321 }
 0x1ff   : > { %1355 = vst.msk [vmem:[#allocation2 + $0x4c8] sm:$0xff] %vm353_vm1, %v1322_v29  ;;  %v1320_v30 = vpop.permute.xlu0 %1319 }
 0x200   : > { %v1332_v31 = vsel %vm1323_vm13, %v1318_v56, %v1320_v30  ;;  %v1333_v32 = vsel %vm1323_vm13, %v1320_v30, %v1322_v29  ;;  %v2310_v29 = vld [vmem:[#allocation2 + $0x270] sm:$0xff]  ;;  %v2299_v30 = vld [vmem:[#allocation2 + $0x218] sm:$0xff]  ;;  %vm1727_vm13 = vcmask 39936  }
 0x201   : > { %1353 = vst [vmem:[#allocation2 + $0x4b8] sm:$0xff] %v1332_v31 }
 0x202   : > { %1354 = vst [vmem:[#allocation2 + $0x4c0] sm:$0xff] %v1333_v32  ;;  %v2243_v32 = vld [vmem:[#allocation2 + $0x58] sm:$0xff] }
 0x204   : > { %1787 = vrot.lane.b32.xlu2 %v12292_v10, %s11817_s21  ;;  %2173 = vrot.lane.b32.xlu1 %v12292_v10, %s16575_s13 }
 0x205   : > { %1869 = vrot.lane.b32.xlu0 %v12312_v27, %s16526_s17 }
 0x206   : > { %v1460_v33 = vpop.permute.xlu2 %1459  ;;  %v1383_v37 = vpop.permute.xlu1 %1382 }
 0x207   : > { %v12511_v38 = vsel %vm1400_vm14, %v1383_v37, %v1385_v7  ;;  %v1381_v39 = vpop.permute.xlu0 %1380 }
 0x208   : > { %v1401_v40 = vsel %vm1400_vm14, %v1379_v62, %v1381_v39  ;;  %v1402_v41 = vsel %vm1400_vm14, %v1381_v39, %v1383_v37  ;;  %v2288_v39 = vld [vmem:[#allocation2 + $0x1c0] sm:$0xff] }
 0x20c   : > { %1705 = vrot.lane.b32.xlu2 %v12292_v10, %s11818_s22  ;;  %2096 = vrot.lane.b32.xlu1 %v12292_v10, %s11812_s12 }
 0x20d   : > { %1789 = vrot.lane.b32.xlu0 %v12289_v9, %s11817_s21 }
 0x20e   : > { %v1466_v45 = vpop.permute.xlu2 %1465  ;;  %v1389_v49 = vpop.permute.xlu1 %1388 }
 0x20f   : > { %v1406_v50 = vsel %vm1400_vm14, %v1389_v49, %v1391_v16  ;;  %v1387_v3 = vpop.permute.xlu0 %1386 }
 0x210   : > { %1427 = vst [vmem:[#allocation2 + $0x4f8] sm:$0xff] %v1406_v50  ;;  %v12523_v51 = vsel %vm1400_vm14, %v1385_v7, %v1387_v3  ;;  %v1405_v52 = vsel %vm1400_vm14, %v1387_v3, %v1389_v49 }
 0x211   : > { %1426 = vst [vmem:[#allocation2 + $0x4f0] sm:$0xff] %v1405_v52 }
 0x214   : > { %1623 = vrot.lane.b32.xlu2 %v12292_v10, %s11819_s25  ;;  %2019 = vrot.lane.b32.xlu1 %v12292_v10, %s16532_s15 }
 0x215   : > { %1707 = vrot.lane.b32.xlu0 %v12289_v9, %s11818_s22 }
 0x216   : > { %v12532_v54 = vpop.permute.xlu2 %1471  ;;  %v1395_v55 = vpop.permute.xlu1 %1394 }
 0x217   : > { %v1409_v56 = vsel %vm1400_vm14, %v1395_v55, %v1397_v28  ;;  %v1393_v57 = vpop.permute.xlu0 %1392 }
 0x218   : > { %1430 = vst [vmem:[#allocation2 + $0x510] sm:$0xff] %v1409_v56  ;;  %v1407_v58 = vsel %vm1400_vm14, %v1391_v16, %v1393_v57  ;;  %v1408_v2 = vsel %vm1400_vm14, %v1393_v57, %v1395_v55 }
 0x219   : > { %1428 = vst [vmem:[#allocation2 + $0x500] sm:$0xff] %v1407_v58 }
 0x21a   : > { %1429 = vst [vmem:[#allocation2 + $0x508] sm:$0xff] %v1408_v2 }
 0x21c   : > { %1865 = vrot.lane.b32.xlu2 %v12292_v10, %s16526_s17  ;;  %1942 = vrot.lane.b32.xlu1 %v12292_v10, %s11816_s20 }
 0x21d   : > { %1625 = vrot.lane.b32.xlu0 %v12289_v9, %s11819_s25 }
 0x21e   : > { %v12543_v60 = vpop.permute.xlu2 %1477  ;;  %v1458_v61 = vpop.permute.xlu1 %1457 }
 0x21f   : > { %v1482_v62 = vsel %vm16525_vm15, %v1458_v61, %v1460_v33  ;;  %v1399_v63 = vpop.permute.xlu0 %1398  ;;  %v2301_v61 = vld [vmem:[#allocation2 + $0x228] sm:$0xff] }
 0x220   : > { %v1410_v1 = vsel %vm1400_vm14, %v1397_v28, %v1399_v63  ;;  %2526 = vmatpush.msra.mxu0 %v1482_v62  ;;  %1432 = vst.msk [vmem:[#allocation2 + $0x520] sm:$0xff] %vm353_vm1, %v1399_v63 }
 0x221   : > { %1431 = vst [vmem:[#allocation2 + $0x518] sm:$0xff] %v1410_v1 }
 0x222   : > { %2527 = vmatpush.msra.mxu0 %v1401_v40 }
 0x224   : > { %1785 = vrot.lane.b32.xlu2 %v12242_v6, %s11817_s21  ;;  %2181 = vrot.lane.b32.xlu1 %v12263_v0, %s16575_s13 }
 0x225   : > { %2179 = vrot.lane.b32.xlu0 %v12309_v26, %s16575_s13  ;;  %2528 = vmatpush.msra.mxu0 %v12471_v4 }
 0x226   : > { %v12555_v9 = vpop.permute.xlu2 %1541  ;;  %v1464_v10 = vpop.permute.xlu1 %1463 }
 0x227   : > { %v12558_v7 = vsel %vm16525_vm15, %v1464_v10, %v1466_v45  ;;  %v1462_v42 = vpop.permute.xlu0 %1461  ;;  %2529 = vmatpush.msra.mxu0 %v12426_v36 }
 0x228   : > { %v1483_v43 = vsel %vm16525_vm15, %v1460_v33, %v1462_v42  ;;  %v12563_v12 = vsel %vm16525_vm15, %v1462_v42, %v1464_v10  ;;  %v2268_v10 = vld [vmem:[#allocation2 + $0x120] sm:$0xff] }
 0x229   : > { %2530 = vmatpush.msra.mxu0 %v12393_v14  ;;  %2572 = vmatpush.msra.mxu2 %v1483_v43  ;;  %v2257_v43 = vld [vmem:[#allocation2 + $0xc8] sm:$0xff] }
 0x22b   : > { %2531 = vmatpush.msra.mxu0 %v12354_v48  ;;  %2573 = vmatpush.msra.mxu2 %v1402_v41  ;;  %v2277_v41 = vld [vmem:[#allocation2 + $0x168] sm:$0xff] }
 0x22c   : > { %1703 = vrot.lane.b32.xlu2 %v12242_v6, %s11818_s22  ;;  %2104 = vrot.lane.b32.xlu1 %v12263_v0, %s11812_s12 }
 0x22d   : > { %2102 = vrot.lane.b32.xlu0 %v12309_v26, %s11812_s12  ;;  %2532 = vmatpush.msra.mxu0 %v12285_v17  ;;  %v2309_v17 = vld [vmem:[#allocation2 + $0x268] sm:$0xff] }
 0x22e   : > { %v12574_v36 = vpop.permute.xlu2 %1547  ;;  %v1470_v4 = vpop.permute.xlu1 %1469  ;;  %2574 = vmatpush.msra.mxu2 %v12468_v11  ;;  %v2298_v11 = vld [vmem:[#allocation2 + $0x210] sm:$0xff] }
 0x22f   : > { %v1488_v48 = vsel %vm16525_vm15, %v1470_v4, %v12532_v54  ;;  %v1468_v14 = vpop.permute.xlu0 %1467  ;;  %2533 = vmatpush.msra.mxu0 %v12248_v59  ;;  %v2287_v59 = vld [vmem:[#allocation2 + $0x1b8] sm:$0xff] }
 0x230   : > { %1510 = vst [vmem:[#allocation2 + $0x558] sm:$0xff] %v1488_v48  ;;  %v12581_v16 = vsel %vm16525_vm15, %v1466_v45, %v1468_v14  ;;  %v1487_v18 = vsel %vm16525_vm15, %v1468_v14, %v1470_v4  ;;  %2575 = vmatpush.msra.mxu2 %v12440_v47  ;;  %v2266_v45 = vld [vmem:[#allocation2 + $0x110] sm:$0xff]  ;;  %v12684_v14 = vld [vmem:[%s11907_s14 + $0x38] sm:$0xff] }
 0x231   : > { %2534 = vmatpush.msra.mxu0 %v2309_v17  ;;  %1509 = vst [vmem:[#allocation2 + $0x550] sm:$0xff] %v1487_v18  ;;  %v2246_v48 = vld [vmem:[#allocation2 + $0x70] sm:$0xff] }
 0x232   : > { %2576 = vmatpush.msra.mxu2 %v12396_v15 }
 0x233   : > { %2535 = vmatpush.msra.mxu0 %v2298_v11 }
 0x234   : > { %1621 = vrot.lane.b32.xlu2 %v12242_v6, %s11819_s25  ;;  %2027 = vrot.lane.b32.xlu1 %v12263_v0, %s16532_s15 }
 0x235   : > { %2025 = vrot.lane.b32.xlu0 %v12309_v26, %s16532_s15  ;;  %2577 = vmatpush.msra.mxu2 %v12351_v46  ;;  %v2265_v46 = vld [vmem:[#allocation2 + $0x108] sm:$0xff] }
 0x236   : > { %v12593_v47 = vpop.permute.xlu2 %1553  ;;  %v1476_v19 = vpop.permute.xlu1 %1475  ;;  %2536 = vmatpush.msra.mxu0 %v2287_v59 }
 0x237   : > { %v1491_v15 = vsel %vm16525_vm15, %v1476_v19, %v12543_v60  ;;  %v1474_v21 = vpop.permute.xlu0 %1473  ;;  %2578 = vmatpush.msra.mxu2 %v12305_v24  ;;  %v2254_v24 = vld [vmem:[#allocation2 + $0xb0] sm:$0xff] }
 0x238   : > { %1513 = vst [vmem:[#allocation2 + $0x570] sm:$0xff] %v1491_v15  ;;  %v1489_v25 = vsel %vm16525_vm15, %v12532_v54, %v1474_v21  ;;  %v1490_v28 = vsel %vm16525_vm15, %v1474_v21, %v1476_v19  ;;  %2537 = vmatpush.msra.mxu0 %v2276_v23 }
 0x239   : > { %1511 = vst [vmem:[#allocation2 + $0x560] sm:$0xff] %v1489_v25  ;;  %2579 = vmatpush.msra.mxu2 %v12251_v5 }
 0x23a   : > { %1512 = vst [vmem:[#allocation2 + $0x568] sm:$0xff] %v1490_v28  ;;  %2538 = vmatpush.msra.mxu0 %v2265_v46 }
 0x23b   : > { %2580 = vmatpush.msra.mxu2 %v2310_v29 }
 0x23c   : > { %1871 = vrot.lane.b32.xlu2 %v12309_v26, %s16526_s17  ;;  %1950 = vrot.lane.b32.xlu1 %v12263_v0, %s11816_s20 }
 0x23d   : > { %1948 = vrot.lane.b32.xlu0 %v12309_v26, %s11816_s20  ;;  %2539 = vmatpush.msra.mxu0 %v2254_v24 }
 0x23e   : > { %v12608_v31 = vpop.permute.xlu2 %1559  ;;  %v1540_v5 = vpop.permute.xlu1 %1539  ;;  %2581 = vmatpush.msra.mxu2 %v2299_v30  ;;  %v12718_v30 = vld [vmem:[%s11907_s14 + $0x40] sm:$0xff] }
 0x23f   : > { %v12612_v33 = vsel %vm1563_vm0, %v1540_v5, %v12555_v9  ;;  %v1480_v37 = vpop.permute.xlu0 %1479  ;;  %2540 = vmatpush.msra.mxu0 %v2243_v32  ;;  %v333_v5 = vld [vmem:[%s11907_s14 + $0x8] sm:$0xff] }
 0x240   : > { %v1492_v40 = vsel %vm16525_vm15, %v12543_v60, %v1480_v37  ;;  %2582 = vmatpush.msra.mxu2 %v2288_v39  ;;  %vm2519_vm15 = vcmask 588800  }
 0x241   : > { %1514 = vst.msk [vmem:[#allocation2 + $0x578] sm:$0xff] %vm353_vm1, %v1492_v40  ;;  %2541 = vmatpush.msra.mxu0 %v12242_v6  ;;  %v2255_v6 = vld [vmem:[#allocation2 + $0xb8] sm:$0xff] }
 0x242   : > { %2583 = vmatpush.msra.mxu2 %v2277_v41 }
 0x243   : > { %2664 = vmatpush.msrb.mxu0 %v12558_v7 }
 0x244   : > { %1793 = vrot.lane.b32.xlu2 %v12309_v26, %s11817_s21  ;;  %1791 = vrot.lane.b32.xlu1 %v12312_v27, %s11817_s21 }
 0x245   : > { %1873 = vrot.lane.b32.xlu0 %v12263_v0, %s16526_s17  ;;  %2584 = vmatpush.msra.mxu2 %v2266_v45  ;;  %v2244_v0 = vld [vmem:[#allocation2 + $0x60] sm:$0xff] }
 0x246   : > { %v12625_v49 = vpop.permute.xlu2 %2098  ;;  %v1546_v50 = vpop.permute.xlu1 %1545  ;;  %2665 = vmatpush.msrb.mxu0 %v12523_v51  ;;  %v12642_v51 = vld [vmem:[%s11907_s14 + $0x28] sm:$0xff] }
 0x247   : > { %v12630_v3 = vsel %vm1563_vm0, %v1546_v50, %v12574_v36  ;;  %v1544_v52 = vpop.permute.xlu0 %1543  ;;  %2585 = vmatpush.msra.mxu2 %v2255_v6 }
 0x248   : > { %v12634_v54 = vsel %vm1563_vm0, %v12555_v9, %v1544_v52  ;;  %v12637_v55 = vsel %vm1563_vm0, %v1544_v52, %v1546_v50  ;;  %2666 = vmatpush.msrb.mxu0 %v12484_v8  ;;  %v2290_v9 = vld [vmem:[#allocation2 + $0x1d0] sm:$0xff]  ;;  %v12734_v50 = vld [vmem:[%s11907_s14 + $0x48] sm:$0xff] }
 0x249   : > { %2586 = vmatpush.msra.mxu2 %v2244_v0 }
 0x24a   : > { %2667 = vmatpush.msrb.mxu0 %v12437_v44 }
 0x24b   : > { %2587 = vmatpush.msra.mxu2 %v333_v5  ;;  %v2278_v5 = vld [vmem:[#allocation2 + $0x170] sm:$0xff] }
 0x24c   : > { %1627 = vrot.lane.b32.xlu2 %v12312_v27, %s11819_s25  ;;  %1711 = vrot.lane.b32.xlu1 %v12309_v26, %s11818_s22 }
 0x24d   : > { %1709 = vrot.lane.b32.xlu0 %v12312_v27, %s11818_s22  ;;  %2668 = vmatpush.msrb.mxu0 %v12406_v20  ;;  %v2323_v27 = vld [vmem:[#allocation2 + $0x2d8] sm:$0xff]  ;;  %v2312_v20 = vld [vmem:[#allocation2 + $0x280] sm:$0xff] }
 0x24e   : > { %v12651_v56 = vpop.permute.xlu2 %2023  ;;  %v1552_v8 = vpop.permute.xlu1 %1551 }
 0x24f   : > { %v1570_v57 = vsel %vm1563_vm0, %v1552_v8, %v12593_v47  ;;  %v1550_v44 = vpop.permute.xlu0 %1549  ;;  %2669 = vmatpush.msrb.mxu0 %v12365_v53 }
 0x250   : > { %1592 = vst [vmem:[#allocation2 + $0x5b0] sm:$0xff] %v1570_v57  ;;  %v1568_v58 = vsel %vm1563_vm0, %v12574_v36, %v1550_v44  ;;  %v1569_v2 = vsel %vm1563_vm0, %v1550_v44, %v1552_v8 }
 0x251   : > { %1590 = vst [vmem:[#allocation2 + $0x5a0] sm:$0xff] %v1568_v58  ;;  %2670 = vmatpush.msrb.mxu0 %v12302_v22 }
 0x252   : > { %1591 = vst [vmem:[#allocation2 + $0x5a8] sm:$0xff] %v1569_v2 }
 0x253   : > { %2671 = vmatpush.msrb.mxu0 %v2323_v27 }
 0x254   : > { %2185 = vrot.lane.b32.xlu2 %v12324_v34, %s16575_s13  ;;  %2183 = vrot.lane.b32.xlu1 %v12327_v35, %s16575_s13 }
 0x255   : > { %1629 = vrot.lane.b32.xlu0 %v12309_v26, %s11819_s25  ;;  %2672 = vmatpush.msrb.mxu0 %v2312_v20  ;;  %v2279_v26 = vld [vmem:[#allocation2 + $0x178] sm:$0xff] }
 0x256   : > { %v12666_v53 = vpop.permute.xlu2 %1867  ;;  %v1558_v60 = vpop.permute.xlu1 %1557 }
 0x257   : > { %v1573_v22 = vsel %vm1563_vm0, %v1558_v60, %v12608_v31  ;;  %v1556_v62 = vpop.permute.xlu0 %1555  ;;  %2673 = vmatpush.msrb.mxu0 %v2301_v61 }
 0x258   : > { %1595 = vst [vmem:[#allocation2 + $0x5c8] sm:$0xff] %v1573_v22  ;;  %v1571_v63 = vsel %vm1563_vm0, %v12593_v47, %v1556_v62  ;;  %v1572_v1 = vsel %vm1563_vm0, %v1556_v62, %v1558_v60 }
 0x259   : > { %1593 = vst [vmem:[#allocation2 + $0x5b8] sm:$0xff] %v1571_v63  ;;  %2674 = vmatpush.msrb.mxu0 %v2290_v9 }
 0x25a   : > { %1594 = vst [vmem:[#allocation2 + $0x5c0] sm:$0xff] %v1572_v1 }
 0x25b   : > { %2675 = vmatpush.msrb.mxu0 %v2279_v26 }
 0x25c   : > { %2029 = vrot.lane.b32.xlu2 %v12327_v35, %s16532_s15  ;;  %2108 = vrot.lane.b32.xlu1 %v12324_v34, %s11812_s12  ;;  %v1925_v34 = vld [vmem:[%s11907_s14 + $0x30] sm:$0xff] }
 0x25d   : > { %2106 = vrot.lane.b32.xlu0 %v12327_v35, %s11812_s12  ;;  %2676 = vmatpush.msrb.mxu0 %v2268_v10 }
 0x25e   : > { %v1788_v7 = vpop.permute.xlu2 %1787  ;;  %v12679_v42 = vpop.permute.xlu1 %2177 }
 0x25f   : > { %v2176_v36 = vpop.permute.xlu0 %2175  ;;  %2677 = vmatpush.msrb.mxu0 %v2257_v43 }
 0x260   : > { %v2197_v4 = vsel %vm16538_vm3, %v2176_v36, %v12679_v42 }
 0x261   : > { %2678 = vmatpush.msrb.mxu0 %v2246_v48  ;;  %2602 = vmatpush.msra.mxu3 %v2197_v4 }
 0x264   : > { %1954 = vrot.lane.b32.xlu2 %v12684_v14, %s11816_s20  ;;  %1952 = vrot.lane.b32.xlu1 %v1925_v34, %s11816_s20 }
 0x265   : > { %2031 = vrot.lane.b32.xlu0 %v12684_v14, %s16532_s15 }
 0x266   : > { %v1706_v35 = vpop.permute.xlu2 %1705  ;;  %v2022_v18 = vpop.permute.xlu1 %2021 }
 0x267   : > { %v2043_v17 = vsel %vm16543_vm6, %v2022_v18, %v12651_v56  ;;  %v12694_v11 = vpop.permute.xlu0 %2100 }
 0x268   : > { %v2120_v59 = vsel %vm2118_vm7, %v12625_v49, %v12694_v11 }
 0x269   : > { %2603 = vmatpush.msra.mxu3 %v2120_v59  ;;  %v2322_v59 = vld [vmem:[#allocation2 + $0x2d0] sm:$0xff] }
 0x26b   : > { %2604 = vmatpush.msra.mxu3 %v2043_v17  ;;  %v12833_v17 = vld [vmem:[%s16509_s1 + $0x18] sm:$0xff] }
 0x26c   : > { %1795 = vrot.lane.b32.xlu2 %v12642_v51, %s11817_s21  ;;  %1877 = vrot.lane.b32.xlu1 %v12684_v14, %s16526_s17 }
 0x26d   : > { %1875 = vrot.lane.b32.xlu0 %v1925_v34, %s16526_s17 }
 0x26e   : > { %v1624_v47 = vpop.permute.xlu2 %1623  ;;  %v12704_v19 = vpop.permute.xlu1 %1946 }
 0x26f   : > { %v1945_v15 = vpop.permute.xlu0 %1944 }
 0x270   : > { %v1966_v21 = vsel %vm1964_vm8, %v1945_v15, %v12704_v19 }
 0x271   : > { %2605 = vmatpush.msra.mxu3 %v1966_v21  ;;  %v335_v21 = vld [vmem:[%s11907_s14 + $0x18] sm:$0xff] }
 0x272   : > { %2679 = vmatpush.msrb.mxu0 %v335_v21 }
 0x274   : > { %1715 = vrot.lane.b32.xlu2 %v1925_v34, %s11818_s22  ;;  %1713 = vrot.lane.b32.xlu1 %v12642_v51, %s11818_s22 }
 0x275   : > { %1797 = vrot.lane.b32.xlu0 %v1925_v34, %s11817_s21 }
 0x276   : > { %v1866_v23 = vpop.permute.xlu2 %1865  ;;  %v2174_v25 = vpop.permute.xlu1 %2173 }
 0x277   : > { %v1888_v28 = vsel %vm16556_vm9, %v1866_v23, %v12666_v53  ;;  %v2196_v46 = vsel %vm16538_vm3, %v2174_v25, %v2176_v36  ;;  %v1870_v29 = vpop.permute.xlu0 %1869  ;;  %v2344_v36 = vld [vmem:[#allocation2 + $0x380] sm:$0xff] }
 0x278   : > { %v1889_v24 = vsel %vm16556_vm9, %v12666_v53, %v1870_v29  ;;  %2556 = vmatpush.msra.mxu1 %v2196_v46 }
 0x279   : > { %2606 = vmatpush.msra.mxu3 %v1889_v24 }
 0x27c   : > { %2187 = vrot.lane.b32.xlu2 %v12718_v30, %s16575_s13  ;;  %1633 = vrot.lane.b32.xlu1 %v1925_v34, %s11819_s25 }
 0x27d   : > { %1631 = vrot.lane.b32.xlu0 %v12642_v51, %s11819_s25 }
 0x27e   : > { %v1786_v32 = vpop.permute.xlu2 %1785  ;;  %v2097_v37 = vpop.permute.xlu1 %2096 }
 0x27f   : > { %v1810_v39 = vsel %vm1809_vm11, %v1786_v32, %v1788_v7  ;;  %v2119_v40 = vsel %vm2118_vm7, %v2097_v37, %v12625_v49  ;;  %v12729_v41 = vpop.permute.xlu0 %1789  ;;  %v2267_v32 = vld [vmem:[#allocation2 + $0x118] sm:$0xff] }
 0x280   : > { %v1811_v45 = vsel %vm1809_vm11, %v1788_v7, %v12729_v41  ;;  %2557 = vmatpush.msra.mxu1 %v2119_v40  ;;  %v12796_v7 = vld [vmem:[%s16509_s1] sm:$0xff] }
 0x281   : > { %2607 = vmatpush.msra.mxu3 %v1811_v45  ;;  %2588 = vmatmul.f32.vlgmr.msra.gmra.mxu2 %v12796_v7 }
 0x282   : > { %2542 = vmatmul.f32.vlgmr.msra.gmra.mxu0 %v12796_v7 }
 0x284   : > { %2112 = vrot.lane.b32.xlu2 %v12734_v50, %s11812_s12  ;;  %2110 = vrot.lane.b32.xlu1 %v12718_v30, %s11812_s12 }
 0x285   : > { %2189 = vrot.lane.b32.xlu0 %v12734_v50, %s16575_s13 }
 0x286   : > { %v1704_v49 = vpop.permute.xlu2 %1703  ;;  %v2020_v6 = vpop.permute.xlu1 %2019 }
 0x287   : > { %v1728_v52 = vsel %vm1727_vm13, %v1704_v49, %v1706_v35  ;;  %v2042_v0 = vsel %vm16543_vm6, %v2020_v6, %v2022_v18  ;;  %v12744_v8 = vpop.permute.xlu0 %1707  ;;  %v12828_v18 = vld [vmem:[%s16509_s1 + $0x10] sm:$0xff] }
 0x288   : > { %v1729_v57 = vsel %vm1727_vm13, %v1706_v35, %v12744_v8  ;;  %2558 = vmatpush.msra.mxu1 %v2042_v0  ;;  %v2333_v35 = vld [vmem:[#allocation2 + $0x328] sm:$0xff] }
 0x289   : > { %2608 = vmatpush.msra.mxu3 %v1729_v57  ;;  %2591 = vmatmul.f32.gmra.mxu2 %v12828_v18  ;;  %v2245_v0 = vld [vmem:[#allocation2 + $0x68] sm:$0xff] }
 0x28a   : > { %2545 = vmatmul.f32.gmra.mxu0 %v12828_v18 }
 0x28c   : > { %1956 = vrot.lane.b32.xlu2 %v12718_v30, %s11816_s20  ;;  %2035 = vrot.lane.b32.xlu1 %v12734_v50, %s16532_s15 }
 0x28d   : > { %2033 = vrot.lane.b32.xlu0 %v12718_v30, %s16532_s15 }
 0x28e   : > { %v1622_v44 = vpop.permute.xlu2 %1621  ;;  %v1943_v58 = vpop.permute.xlu1 %1942 }
 0x28f   : > { %v1646_v2 = vsel %vm1645_vm2, %v1622_v44, %v1624_v47  ;;  %v1965_v27 = vsel %vm1964_vm8, %v1943_v58, %v1945_v15  ;;  %v1626_v20 = vpop.permute.xlu0 %1625  ;;  %v334_v15 = vld [vmem:[%s11907_s14 + $0x10] sm:$0xff] }
 0x290   : > { %v1647_v53 = vsel %vm1645_vm2, %v1624_v47, %v1626_v20  ;;  %2559 = vmatpush.msra.mxu1 %v1965_v27  ;;  %v2311_v47 = vld [vmem:[#allocation2 + $0x278] sm:$0xff] }
 0x291   : > { %2609 = vmatpush.msra.mxu3 %v1647_v53 }
 0x292   : > { %2560 = vmatpush.msra.mxu1 %v1888_v28  ;;  %v2300_v28 = vld [vmem:[#allocation2 + $0x220] sm:$0xff]  ;;  %2680 = vmatmul.f32.vlgmr.msrb.gmra.mxu0 %v12796_v7 }
 0x293   : > { %2610 = vmatpush.msra.mxu3 %v12634_v54 }
 0x294   : > { %1881 = vrot.lane.b32.xlu2 %v12734_v50, %s16526_s17  ;;  %1879 = vrot.lane.b32.xlu1 %v12718_v30, %s16526_s17 }
 0x295   : > { %1958 = vrot.lane.b32.xlu0 %v12734_v50, %s11816_s20  ;;  %2561 = vmatpush.msra.mxu1 %v1810_v39  ;;  %v2256_v39 = vld [vmem:[#allocation2 + $0xc0] sm:$0xff] }
 0x296   : > { %v12764_v60 = vpop.permute.xlu2 %1871  ;;  %v12766_v61 = vpop.permute.xlu1 %2181 }
 0x297   : > { %v12770_v22 = vsel %vm16556_vm9, %v1870_v29, %v12764_v60  ;;  %v2180_v62 = vpop.permute.xlu0 %2179  ;;  %2562 = vmatpush.msra.mxu1 %v1728_v52 }
 0x298   : > { %v2198_v54 = vsel %vm16538_vm3, %v12679_v42, %v2180_v62  ;;  %v2199_v63 = vsel %vm16538_vm3, %v2180_v62, %v12766_v61  ;;  %v2355_v42 = vld [vmem:[#allocation2 + $0x3d8] sm:$0xff]  ;;  %v2390_v62 = vld [vmem:[#allocation2 + $0x4f0] sm:$0xff] }
 0x299   : > { %2563 = vmatpush.msra.mxu1 %v1646_v2  ;;  %2648 = vmatpush.msrb.mxu3 %v2198_v54  ;;  %v2379_v54 = vld [vmem:[#allocation2 + $0x498] sm:$0xff] }
 0x29a   : > { %2694 = vmatpush.msrb.mxu2 %v2199_v63  ;;  %2683 = vmatmul.f32.gmra.mxu0 %v12828_v18  ;;  %v2368_v63 = vld [vmem:[#allocation2 + $0x440] sm:$0xff] }
 0x29b   : > { %2564 = vmatpush.msra.mxu1 %v12612_v33 }
 0x29c   : > { %1717 = vrot.lane.b32.xlu2 %v12684_v14, %s11818_s22  ;;  %1801 = vrot.lane.b32.xlu1 %v12718_v30, %s11817_s21 }
 0x29d   : > { %1799 = vrot.lane.b32.xlu0 %v12684_v14, %s11817_s21  ;;  %2618 = vmatpush.msrb.mxu1 %v12563_v12  ;;  %v12801_v12 = vld [vmem:[%s16509_s1 + $0x8] sm:$0xff] }
 0x29e   : > { %v12784_v1 = vpop.permute.xlu2 %1793  ;;  %v12786_v9 = vpop.permute.xlu1 %2104  ;;  %9745 = vmatmul.msk.f32.vlgmr.msra.gmra.mxu3 %vm2519_vm15, %v12801_v12  ;;  %9743 = vmatmul.msk.f32.vlgmr.msra.gmra.mxu1 %vm2519_vm15, %v12801_v12 }
 0x29f   : > { %v2103_v26 = vpop.permute.xlu0 %2102  ;;  %2619 = vmatpush.msrb.mxu1 %v12511_v38  ;;  %v2366_v38 = vld [vmem:[#allocation2 + $0x430] sm:$0xff] }
 0x2a0   : > { %v2121_v33 = vsel %vm2118_vm7, %v12694_v11, %v2103_v26  ;;  %v2122_v10 = vsel %vm2118_vm7, %v2103_v26, %v12786_v9  ;;  %v12836_v11 = vld [vmem:[%s11907_s14 + $0x58] sm:$0xff] }
 0x2a1   : > { %2620 = vmatpush.msrb.mxu1 %v12481_v13  ;;  %2649 = vmatpush.msrb.mxu3 %v2121_v33 }
 0x2a2   : > { %2695 = vmatpush.msrb.mxu2 %v2122_v10 }
 0x2a3   : > { %2621 = vmatpush.msrb.mxu1 %v2366_v38  ;;  %v2391_v38 = vld [vmem:[#allocation2 + $0x4f8] sm:$0xff] }
 0x2a4   : > { %1635 = vrot.lane.b32.xlu1 %v12684_v14, %s11819_s25  ;;  %1637 = vrot.lane.b32.xlu2 %v12718_v30, %s11819_s25 }
 0x2a5   : > { %1719 = vrot.lane.b32.xlu0 %v12718_v30, %s11818_s22  ;;  %2622 = vmatpush.msrb.mxu1 %v2355_v42  ;;  %v2289_v30 = vld [vmem:[#allocation2 + $0x1c8] sm:$0xff] }
 0x2a6   : > { %v12813_v13 = vpop.permute.xlu2 %1627  ;;  %v2028_v43 = vpop.permute.xlu1 %2027  ;;  %9746 = vmatmul.msk.f32.gmra.mxu3 %vm2519_vm15, %v12833_v17  ;;  %9744 = vmatmul.msk.f32.gmra.mxu1 %vm2519_vm15, %v12833_v17 }
 0x2a7   : > { %v12820_v4 = vsel %vm1645_vm2, %v1626_v20, %v12813_v13  ;;  %v2026_v48 = vpop.permute.xlu0 %2025  ;;  %2623 = vmatpush.msrb.mxu1 %v2344_v36  ;;  %v2380_v36 = vld [vmem:[#allocation2 + $0x4a0] sm:$0xff] }
 0x2a8   : > { %v2044_v14 = vsel %vm16543_vm6, %v12651_v56, %v2026_v48  ;;  %v2045_v34 = vsel %vm16543_vm6, %v2026_v48, %v2028_v43  ;;  %v12839_v56 = vld [vmem:[%s11907_s14 + $0x50] sm:$0xff]  ;;  %v2508_v48 = vld [vmem:[%s16510_s2 + $0x8] sm:$0xff] }
 0x2a9   : > { %2624 = vmatpush.msrb.mxu1 %v2333_v35  ;;  %2650 = vmatpush.msrb.mxu3 %v2044_v14  ;;  %v2324_v14 = vld [vmem:[#allocation2 + $0x2e0] sm:$0xff] }
 0x2aa   : > { %2696 = vmatpush.msrb.mxu2 %v2045_v34  ;;  %v2358_v34 = vld [vmem:[#allocation2 + $0x3f0] sm:$0xff] }
 0x2ab   : > { %2625 = vmatpush.msrb.mxu1 %v2322_v59 }
 0x2ac   : > { %2193 = vrot.lane.b32.xlu1 %v12836_v11, %s16575_s13  ;;  %2114 = vrot.lane.b32.xlu2 %v12839_v56, %s11812_s12 }
 0x2ad   : > { %2191 = vrot.lane.b32.xlu0 %v12839_v56, %s16575_s13  ;;  %2626 = vmatpush.msrb.mxu1 %v2311_v47 }
 0x2ae   : > { %v12852_v23 = vpop.permute.xlu2 %2185  ;;  %v12854_v25 = vpop.permute.xlu1 %1950 }
 0x2af   : > { %v1949_v46 = vpop.permute.xlu0 %1948  ;;  %2627 = vmatpush.msrb.mxu1 %v2300_v28  ;;  %v2313_v28 = vld [vmem:[#allocation2 + $0x288] sm:$0xff] }
 0x2b0   : > { %v1967_v29 = vsel %vm1964_vm8, %v12704_v19, %v1949_v46  ;;  %v1968_v24 = vsel %vm1964_vm8, %v1949_v46, %v12854_v25  ;;  %v2347_v46 = vld [vmem:[#allocation2 + $0x398] sm:$0xff] }
 0x2b1   : > { %2628 = vmatpush.msrb.mxu1 %v2289_v30  ;;  %2651 = vmatpush.msrb.mxu3 %v1967_v29  ;;  %v2336_v30 = vld [vmem:[#allocation2 + $0x340] sm:$0xff] }
 0x2b2   : > { %2697 = vmatpush.msrb.mxu2 %v1968_v24  ;;  %v2302_v24 = vld [vmem:[#allocation2 + $0x230] sm:$0xff] }
 0x2b3   : > { %2629 = vmatpush.msrb.mxu1 %v2278_v5  ;;  %2652 = vmatpush.msrb.mxu3 %v12770_v22  ;;  %v2280_v5 = vld [vmem:[#allocation2 + $0x180] sm:$0xff] }
 0x2b4   : > { %2037 = vrot.lane.b32.xlu1 %v12839_v56, %s16532_s15  ;;  %2039 = vrot.lane.b32.xlu2 %v12836_v11, %s16532_s15 }
 0x2b5   : > { %2116 = vrot.lane.b32.xlu0 %v12836_v11, %s11812_s12  ;;  %2630 = vmatpush.msrb.mxu1 %v2267_v32  ;;  %s16530_s12 = smov 10  }
 0x2b6   : > { %v12870_v19 = vpop.permute.xlu2 %2029  ;;  %v1792_v37 = vpop.permute.xlu1 %1791 }
 0x2b7   : > { %v12875_v40 = vsel %vm16543_vm6, %v2028_v43, %v12870_v19  ;;  %v1812_v45 = vsel %vm1809_vm11, %v12729_v41, %v1792_v37  ;;  %v1813_v49 = vsel %vm1809_vm11, %v1792_v37, %v12784_v1  ;;  %v12881_v6 = vpop.permute.xlu0 %1873  ;;  %2631 = vmatpush.msrb.mxu1 %v2256_v39  ;;  %v11820_v41 = vmov 0   ;;  %v2346_v43 = vld [vmem:[#allocation2 + $0x390] sm:$0xff] }
 0x2b8   : > { %v1891_v52 = vsel %vm16556_vm9, %v12764_v60, %v12881_v6  ;;  %2653 = vmatpush.msrb.mxu3 %v1812_v45  ;;  %11781 = vset.pattern.permute.xlu1 %v11820_v41  ;;  %v2314_v37 = vld [vmem:[#allocation2 + $0x290] sm:$0xff] }
 0x2b9   : > { %2632 = vmatpush.msrb.mxu1 %v2245_v0  ;;  %2698 = vmatpush.msrb.mxu2 %v1891_v52  ;;  %v2303_v52 = vld [vmem:[#allocation2 + $0x238] sm:$0xff]  ;;  %v2258_v0 = vld [vmem:[#allocation2 + $0xd0] sm:$0xff] }
 0x2ba   : > { %11782 = vset.pattern.permute.xlu2 %v11820_v41  ;;  %11783 = vset.pattern.permute.xlu0 %v11820_v41  ;;  %v2292_v41 = vld [vmem:[#allocation2 + $0x1e0] sm:$0xff] }
 0x2bb   : > { %2699 = vmatpush.msrb.mxu2 %v1813_v49  ;;  %2633 = vmatpush.msrb.mxu1 %v334_v15 }
 0x2bc   : > { %1962 = vrot.lane.b32.xlu1 %v12836_v11, %s11816_s20  ;;  %1883 = vrot.lane.b32.xlu2 %v12839_v56, %s16526_s17 }
 0x2bd   : > { %1960 = vrot.lane.b32.xlu0 %v12839_v56, %s11816_s20  ;;  %2634 = vmatmul.f32.vlgmr.msrb.gmra.mxu1 %v12796_v7  ;;  %s16655_s20 = smov 16  }
 0x2be   : > { %v12892_v57 = vpop.permute.xlu2 %1954  ;;  %v12894_v44 = vpop.permute.xlu1 %1711 }
 0x2bf   : > { %v1710_v58 = vpop.permute.xlu0 %1709 }
 0x2c0   : > { %v1730_v2 = vsel %vm1727_vm13, %v12744_v8, %v1710_v58  ;;  %v1731_v27 = vsel %vm1727_vm13, %v1710_v58, %v12894_v44  ;;  %v2247_v58 = vld [vmem:[#allocation2 + $0x78] sm:$0xff] }
 0x2c1   : > { %2654 = vmatpush.msrb.mxu3 %v1730_v2  ;;  %2700 = vmatpush.msrb.mxu2 %v1731_v27  ;;  %v2281_v2 = vld [vmem:[#allocation2 + $0x188] sm:$0xff] }
 0x2c3   : > { %2655 = vmatpush.msrb.mxu3 %v12820_v4  ;;  %v2335_v4 = vld [vmem:[#allocation2 + $0x338] sm:$0xff] }
 0x2c4   : > { %1803 = vrot.lane.b32.xlu1 %v12734_v50, %s11817_s21  ;;  %1805 = vrot.lane.b32.xlu2 %v12839_v56, %s11817_s21 }
 0x2c5   : > { %1885 = vrot.lane.b32.xlu0 %v12836_v11, %s16526_s17  ;;  %2656 = vmatpush.msrb.mxu3 %v12637_v55 }
 0x2c6   : > { %v12910_v20 = vpop.permute.xlu2 %1795  ;;  %v2184_v8 = vpop.permute.xlu1 %2183  ;;  %2637 = vmatmul.f32.gmra.mxu1 %v12828_v18  ;;  %9747 = vmatmul.msk.f32.vlgmr.msrb.gmra.mxu3 %vm2519_vm15, %v12801_v12 }
 0x2c7   : > { %2710 = vmatpush.msra.mxu3 %v12581_v16  ;;  %v12917_v53 = vsel %vm1809_vm11, %v12784_v1, %v12910_v20  ;;  %v2200_v60 = vsel %vm16538_vm3, %v12766_v61, %v2184_v8  ;;  %v2201_v22 = vsel %vm16538_vm3, %v2184_v8, %v12852_v23  ;;  %v12923_v55 = vpop.permute.xlu0 %1629  ;;  %v12932_v61 = vld [vmem:[%s11907_s14 + $0x20] sm:$0xff]  ;;  %v2402_v1 = vld [vmem:[#allocation2 + $0x550] sm:$0xff] }
 0x2c8   : > { %v1649_v16 = vsel %vm1645_vm2, %v12813_v13, %v12923_v55  ;;  %2740 = vmatpush.msra.mxu1 %v2200_v60  ;;  %2786 = vmatpush.msra.mxu0 %v2201_v22  ;;  %v2270_v8 = vld [vmem:[#allocation2 + $0x130] sm:$0xff] }
 0x2c9   : > { %2711 = vmatpush.msra.mxu3 %v2390_v62  ;;  %2701 = vmatpush.msrb.mxu2 %v1649_v16  ;;  %v2259_v16 = vld [vmem:[#allocation2 + $0xd8] sm:$0xff] }
 0x2cb   : > { %2712 = vmatpush.msra.mxu3 %v2379_v54  ;;  %2702 = vmatpush.msrb.mxu2 %v12630_v3  ;;  %v2357_v3 = vld [vmem:[#allocation2 + $0x3e8] sm:$0xff] }
 0x2cc   : > { %1723 = vrot.lane.b32.xlu1 %v12839_v56, %s11818_s22  ;;  %9749 = vmatmul.msk.f32.vlgmr.msrb.gmra.mxu2 %vm2519_vm15, %v12801_v12 }
 0x2cd   : > { %1721 = vrot.lane.b32.xlu0 %v12734_v50, %s11818_s22  ;;  %2713 = vmatpush.msra.mxu3 %v2368_v63 }
 0x2ce   : > { %v12940_v26 = vpop.permute.xlu2 %1715  ;;  %v12942_v33 = vpop.permute.xlu1 %2108  ;;  %2756 = vmatpush.msra.mxu2 %v2402_v1  ;;  %1639 = vrot.lane.b32.xlu2 %v12734_v50, %s11819_s25  ;;  %v2507_v50 = vld [vmem:[%s16510_s2] sm:$0xff] }
 0x2cf   : > { %v2107_v10 = vpop.permute.xlu0 %2106  ;;  %2714 = vmatpush.msra.mxu3 %v2357_v3  ;;  %v2412_v1 = vld [vmem:[#allocation2 + $0x5a0] sm:$0xff]  ;;  %v2403_v3 = vld [vmem:[#allocation2 + $0x558] sm:$0xff] }
 0x2d0   : > { %v2123_v42 = vsel %vm2118_vm7, %v12786_v9, %v2107_v10  ;;  %v2124_v13 = vsel %vm2118_vm7, %v2107_v10, %v12942_v33  ;;  %2757 = vmatpush.msra.mxu2 %v2391_v38  ;;  %9748 = vmatmul.msk.f32.gmra.mxu3 %vm2519_vm15, %v12833_v17  ;;  %v2369_v9 = vld [vmem:[#allocation2 + $0x448] sm:$0xff] }
 0x2d1   : > { %2715 = vmatpush.msra.mxu3 %v2346_v43  ;;  %2741 = vmatpush.msra.mxu1 %v2123_v42  ;;  %v2392_v42 = vld [vmem:[#allocation2 + $0x500] sm:$0xff]  ;;  %v13031_v43 = vld [vmem:[%s11907_s14 + $0x30] sm:$0xff] }
 0x2d2   : > { %2758 = vmatpush.msra.mxu2 %v2380_v36  ;;  %2787 = vmatpush.msra.mxu0 %v2124_v13  ;;  %v2393_v13 = vld [vmem:[#allocation2 + $0x508] sm:$0xff] }
 0x2d3   : > { %2716 = vmatpush.msra.mxu3 %v2335_v4  ;;  %2742 = vmatpush.msra.mxu1 %v12875_v40  ;;  %v2269_v40 = vld [vmem:[#allocation2 + $0x128] sm:$0xff] }
 0x2d4   : > { %2511 = vperm.xlu1 %11781, %v2507_v50   ;;  %2759 = vmatpush.msra.mxu2 %v2369_v9 }
 0x2d5   : > { %1641 = vrot.lane.b32.xlu0 %v12839_v56, %s11819_s25  ;;  %9750 = vmatmul.msk.f32.gmra.mxu2 %vm2519_vm15, %v12833_v17 }
 0x2d6   : > { %v12963_v35 = vpop.permute.xlu2 %2187  ;;  %v1953_v59 = vpop.permute.xlu1 %1952  ;;  %2717 = vmatpush.msra.mxu3 %v2324_v14  ;;  %2760 = vmatpush.msra.mxu2 %v2358_v34  ;;  %v2382_v14 = vld [vmem:[#allocation2 + $0x4b0] sm:$0xff] }
 0x2d7   : > { %v2202_v47 = vsel %vm16538_vm3, %v12852_v23, %v12963_v35  ;;  %v1969_v15 = vsel %vm1964_vm8, %v12854_v25, %v1953_v59  ;;  %v1970_v56 = vsel %vm1964_vm8, %v1953_v59, %v12892_v57  ;;  %v12972_v21 = vpop.permute.xlu0 %2031  ;;  %2516 = vperm.xlu2 %11782, %v2508_v48   ;;  %v2291_v23 = vld [vmem:[#allocation2 + $0x1d8] sm:$0xff]  ;;  %v2325_v25 = vld [vmem:[#allocation2 + $0x2e8] sm:$0xff] }
 0x2d8   : > { %v2047_v29 = vsel %vm16543_vm6, %v12870_v19, %v12972_v21  ;;  %2718 = vmatpush.msra.mxu3 %v2313_v28  ;;  %2761 = vmatpush.msra.mxu2 %v2347_v46  ;;  %v2381_v48 = vld [vmem:[#allocation2 + $0x4a8] sm:$0xff]  ;;  %v2371_v59 = vld [vmem:[#allocation2 + $0x458] sm:$0xff] }
 0x2d9   : > { %2743 = vmatpush.msra.mxu1 %v1969_v15  ;;  %2788 = vmatpush.msra.mxu0 %v2047_v29  ;;  %v2349_v28 = vld [vmem:[#allocation2 + $0x3a8] sm:$0xff] }
 0x2da   : > { %2719 = vmatpush.msra.mxu3 %v2302_v24  ;;  %2762 = vmatpush.msra.mxu2 %v2336_v30 }
 0x2db   : > { %2789 = vmatpush.msra.mxu0 %v1970_v56  ;;  %v2348_v56 = vld [vmem:[#allocation2 + $0x3a0] sm:$0xff] }
 0x2dc   : > { %1725 = vrot.lane.b32.xlu1 %v12836_v11, %s11818_s22  ;;  %2720 = vmatpush.msra.mxu3 %v2291_v23  ;;  %v2337_v23 = vld [vmem:[#allocation2 + $0x348] sm:$0xff]  ;;  %s16577_s22 = smov 120  }
 0x2dd   : > { %1807 = vrot.lane.b32.xlu0 %v12836_v11, %s11817_s21  ;;  %2763 = vmatpush.msra.mxu2 %v2325_v25  ;;  %v2338_v25 = vld [vmem:[#allocation2 + $0x350] sm:$0xff]  ;;  %s16626_s21 = smov 62  }
 0x2de   : > { %v12981_v32 = vpop.permute.xlu2 %2112  ;;  %v12983_v19 = vpop.permute.xlu1 %1877  ;;  %2721 = vmatpush.msra.mxu3 %v2280_v5  ;;  %v2326_v5 = vld [vmem:[#allocation2 + $0x2f0] sm:$0xff] }
 0x2df   : > { %v1876_v39 = vpop.permute.xlu0 %1875  ;;  %2764 = vmatpush.msra.mxu2 %v2314_v37  ;;  %1643 = vrot.lane.b32.xlu2 %v12836_v11, %s11819_s25  ;;  %v2327_v37 = vld [vmem:[#allocation2 + $0x2f8] sm:$0xff]  ;;  %s16612_s25 = smov 64  }
 0x2e0   : > { %v1892_v45 = vsel %vm16556_vm9, %v12881_v6, %v1876_v39  ;;  %v1893_v49 = vsel %vm16556_vm9, %v1876_v39, %v12983_v19  ;;  %2722 = vmatpush.msra.mxu3 %v2269_v40  ;;  %v2315_v39 = vld [vmem:[#allocation2 + $0x298] sm:$0xff]  ;;  %v2316_v40 = vld [vmem:[#allocation2 + $0x2a0] sm:$0xff] }
 0x2e1   : > { %2765 = vmatpush.msra.mxu2 %v2303_v52  ;;  %2744 = vmatpush.msra.mxu1 %v1892_v45  ;;  %v2304_v45 = vld [vmem:[#allocation2 + $0x240] sm:$0xff] }
 0x2e2   : > { %2723 = vmatpush.msra.mxu3 %v2258_v0  ;;  %2790 = vmatpush.msra.mxu0 %v1893_v49  ;;  %v2305_v49 = vld [vmem:[#allocation2 + $0x248] sm:$0xff] }
 0x2e3   : > { %2766 = vmatpush.msra.mxu2 %v2292_v41  ;;  %2745 = vmatpush.msra.mxu1 %v12917_v53 }
 0x2e4   : > { %2724 = vmatpush.msra.mxu3 %v2247_v58 }
 0x2e5   : > { %1561 = vrot.lane.b32.xlu0 %v12836_v11, %s11811_s11  ;;  %2767 = vmatpush.msra.mxu2 %v2281_v2  ;;  %s16657_s11 = smov 60  }
 0x2e6   : > { %v12994_v6 = vpop.permute.xlu2 %1956  ;;  %v1714_v27 = vpop.permute.xlu1 %1713  ;;  %2725 = vmatpush.msra.mxu3 %v12932_v61 }
 0x2e7   : > { %v13000_v60 = vsel %vm1964_vm8, %v12892_v57, %v12994_v6  ;;  %v1732_v53 = vsel %vm1727_vm13, %v12894_v44, %v1714_v27  ;;  %v1733_v22 = vsel %vm1727_vm13, %v1714_v27, %v12940_v26  ;;  %v13006_v62 = vpop.permute.xlu0 %1797  ;;  %2768 = vmatpush.msra.mxu2 %v2270_v8  ;;  %2726 = vmatmul.f32.vlgmr.msra.gmra.mxu3 %v12796_v7  ;;  %v2248_v57 = vld [vmem:[#allocation2 + $0x80] sm:$0xff]  ;;  %v2293_v27 = vld [vmem:[#allocation2 + $0x1e8] sm:$0xff]  ;;  %v2294_v8 = vld [vmem:[#allocation2 + $0x1f0] sm:$0xff] }
 0x2e8   : > { %2832 = vmatpush.msrb.mxu3 %v2202_v47  ;;  %v1815_v11 = vsel %vm1809_vm11, %v12910_v20, %v13006_v62  ;;  %2746 = vmatpush.msra.mxu1 %v1732_v53  ;;  %v2360_v47 = vld [vmem:[#allocation2 + $0x400] sm:$0xff]  ;;  %v2283_v53 = vld [vmem:[#allocation2 + $0x198] sm:$0xff] }
 0x2e9   : > { %2769 = vmatpush.msra.mxu2 %v2259_v16  ;;  %2791 = vmatpush.msra.mxu0 %v1815_v11  ;;  %v2272_v11 = vld [vmem:[#allocation2 + $0x140] sm:$0xff] }
 0x2ea   : > { %v2260_v16 = vld [vmem:[#allocation2 + $0xe0] sm:$0xff] }
 0x2eb   : > { %2770 = vmatpush.msra.mxu2 %v2248_v57  ;;  %2792 = vmatpush.msra.mxu0 %v1733_v22  ;;  %v2271_v22 = vld [vmem:[#allocation2 + $0x138] sm:$0xff]  ;;  %v2261_v57 = vld [vmem:[#allocation2 + $0xe8] sm:$0xff] }
 0x2ed   : > { %2771 = vmatpush.msra.mxu2 %v12642_v51  ;;  %v2413_v51 = vld [vmem:[#allocation2 + $0x5a8] sm:$0xff] }
 0x2ee   : > { %v13013_v44 = vpop.permute.xlu2 %1881  ;;  %v13015_v54 = vpop.permute.xlu1 %1633  ;;  %2772 = vmatmul.f32.vlgmr.msra.gmra.mxu2 %v12796_v7 }
 0x2ef   : > { %v1632_v61 = vpop.permute.xlu0 %1631  ;;  %2729 = vmatmul.f32.gmra.mxu3 %v12828_v18 }
 0x2f0   : > { %v1650_v20 = vsel %vm1645_vm2, %v12923_v55, %v1632_v61  ;;  %v1651_v63 = vsel %vm1645_vm2, %v1632_v61, %v13015_v54  ;;  %v2404_v55 = vld [vmem:[#allocation2 + $0x560] sm:$0xff] }
 0x2f1   : > { %2747 = vmatpush.msra.mxu1 %v1650_v20  ;;  %2793 = vmatpush.msra.mxu0 %v1651_v63 }
 0x2f3   : > { %2748 = vmatpush.msra.mxu1 %v2412_v1  ;;  %2794 = vmatpush.msra.mxu0 %v2413_v51  ;;  %v2249_v1 = vld [vmem:[#allocation2 + $0x88] sm:$0xff]  ;;  %v2250_v51 = vld [vmem:[#allocation2 + $0x90] sm:$0xff] }
 0x2f4   : > { %9751 = vmatmul.msk.f32.vlgmr.msra.gmra.mxu1 %vm2519_vm15, %v12801_v12  ;;  %9753 = vmatmul.msk.f32.vlgmr.msra.gmra.mxu0 %vm2519_vm15, %v12801_v12 }
 0x2f5   : > { %2802 = vmatpush.msrb.mxu1 %v2403_v3  ;;  %2848 = vmatpush.msrb.mxu0 %v2404_v55 }
 0x2f6   : > { %v13027_v10 = vpop.permute.xlu2 %1717  ;;  %v2111_v38 = vpop.permute.xlu1 %2110  ;;  %2775 = vmatmul.f32.gmra.mxu2 %v12828_v18 }
 0x2f7   : > { %v13036_v36 = vsel %vm1727_vm13, %v12940_v26, %v13027_v10  ;;  %v2125_v50 = vsel %vm2118_vm7, %v12942_v33, %v2111_v38  ;;  %v13040_v4 = vpop.permute.xlu0 %2189  ;;  %2803 = vmatpush.msrb.mxu1 %v2392_v42  ;;  %2849 = vmatpush.msrb.mxu0 %v2393_v13  ;;  %v2126_v34 = vsel %vm2118_vm7, %v2111_v38, %v12981_v32  ;;  %v2370_v26 = vld [vmem:[#allocation2 + $0x450] sm:$0xff]  ;;  %v13048_v33 = vld [vmem:[%s11907_s14 + $0x38] sm:$0xff] }
 0x2f8   : > { %v2203_v9 = vsel %vm16538_vm3, %v12963_v35, %v13040_v4  ;;  %2833 = vmatpush.msrb.mxu3 %v2125_v50  ;;  %v2359_v35 = vld [vmem:[#allocation2 + $0x3f8] sm:$0xff] }
 0x2f9   : > { %2804 = vmatpush.msrb.mxu1 %v2381_v48  ;;  %2850 = vmatpush.msrb.mxu0 %v2382_v14  ;;  %v2383_v14 = vld [vmem:[#allocation2 + $0x4b8] sm:$0xff] }
 0x2fa   : > { %2878 = vmatpush.msrb.mxu2 %v2203_v9 }
 0x2fb   : > { %2805 = vmatpush.msrb.mxu1 %v2370_v26  ;;  %2851 = vmatpush.msrb.mxu0 %v2371_v59  ;;  %v2395_v59 = vld [vmem:[#allocation2 + $0x518] sm:$0xff] }
 0x2fc   : > { %9752 = vmatmul.msk.f32.gmra.mxu1 %vm2519_vm15, %v12833_v17  ;;  %9754 = vmatmul.msk.f32.gmra.mxu0 %vm2519_vm15, %v12833_v17 }
 0x2fd   : > { %2806 = vmatpush.msrb.mxu1 %v2359_v35  ;;  %2852 = vmatpush.msrb.mxu0 %v2360_v47  ;;  %v13126_v35 = vld [vmem:[%s11907_s14 + $0x48] sm:$0xff] }
 0x2fe   : > { %v13054_v15 = vpop.permute.xlu1 %2035  ;;  %2879 = vmatpush.msrb.mxu2 %v2126_v34  ;;  %v13056_v46 = vpop.permute.xlu2 %1637  ;;  %v13120_v34 = vld [vmem:[%s11907_s14 + $0x40] sm:$0xff]  ;;  %v2361_v47 = vld [vmem:[#allocation2 + $0x408] sm:$0xff] }
 0x2ff   : > { %v2034_v29 = vpop.permute.xlu0 %2033  ;;  %2807 = vmatpush.msrb.mxu1 %v2348_v56  ;;  %2853 = vmatpush.msrb.mxu0 %v2349_v28  ;;  %v2373_v56 = vld [vmem:[#allocation2 + $0x468] sm:$0xff] }
 0x300   : > { %v2048_v24 = vsel %vm16543_vm6, %v12972_v21, %v2034_v29  ;;  %v2049_v30 = vsel %vm16543_vm6, %v2034_v29, %v13054_v15  ;;  %v2362_v29 = vld [vmem:[#allocation2 + $0x410] sm:$0xff] }
 0x301   : > { %2808 = vmatpush.msrb.mxu1 %v2337_v23  ;;  %2854 = vmatpush.msrb.mxu0 %v2338_v25  ;;  %v2339_v25 = vld [vmem:[#allocation2 + $0x358] sm:$0xff] }
 0x302   : > { %2834 = vmatpush.msrb.mxu3 %v2048_v24  ;;  %2880 = vmatpush.msrb.mxu2 %v2049_v30  ;;  %v13133_v24 = vpop.f32.mrf.mxu0 }
 0x303   : > { %2809 = vmatpush.msrb.mxu1 %v2326_v5  ;;  %2855 = vmatpush.msrb.mxu0 %v2327_v37 }
 0x304   : > { %2835 = vmatpush.msrb.mxu3 %v13000_v60  ;;  %v2282_v60 = vld [vmem:[#allocation2 + $0x190] sm:$0xff]  ;;  %v13137_v5 = vpop.f32.mrf.mxu2 }
 0x305   : > { %2810 = vmatpush.msrb.mxu1 %v2315_v39  ;;  %2856 = vmatpush.msrb.mxu0 %v2316_v40  ;;  %v2351_v39 = vld [vmem:[#allocation2 + $0x3b8] sm:$0xff] }
 0x306   : > { %v1880_v21 = vpop.permute.xlu1 %1879  ;;  %v13063_v52 = vpop.permute.xlu2 %2114 }
 0x307   : > { %v1894_v0 = vsel %vm16556_vm9, %v12983_v19, %v1880_v21  ;;  %v13067_v41 = vpop.permute.xlu0 %1958  ;;  %2811 = vmatpush.msrb.mxu1 %v2304_v45  ;;  %2857 = vmatpush.msrb.mxu0 %v2305_v49  ;;  %v1895_v58 = vsel %vm16556_vm9, %v1880_v21, %v13013_v44  ;;  %v13077_v19 = vsel %vm2118_vm7, %v12981_v32, %v13063_v52  ;;  %v2328_v21 = vld [vmem:[#allocation2 + $0x300] sm:$0xff] }
 0x308   : > { %v1972_v2 = vsel %vm1964_vm8, %v12994_v6, %v13067_v41  ;;  %2836 = vmatpush.msrb.mxu3 %v1894_v0  ;;  %v2340_v49 = vld [vmem:[#allocation2 + $0x360] sm:$0xff] }
 0x309   : > { %2812 = vmatpush.msrb.mxu1 %v2293_v27  ;;  %2858 = vmatpush.msrb.mxu0 %v2294_v8  ;;  %v2318_v8 = vld [vmem:[#allocation2 + $0x2b0] sm:$0xff] }
 0x30a   : > { %2881 = vmatpush.msrb.mxu2 %v1972_v2  ;;  %v2306_v2 = vld [vmem:[#allocation2 + $0x250] sm:$0xff] }
 0x30b   : > { %2813 = vmatpush.msrb.mxu1 %v2282_v60  ;;  %2859 = vmatpush.msrb.mxu0 %v2283_v53  ;;  %v2295_v53 = vld [vmem:[#allocation2 + $0x1f8] sm:$0xff] }
 0x30c   : > { %2882 = vmatpush.msrb.mxu2 %v1895_v58  ;;  %v2329_v58 = vld [vmem:[#allocation2 + $0x308] sm:$0xff] }
 0x30d   : > { %2814 = vmatpush.msrb.mxu1 %v2271_v22  ;;  %2860 = vmatpush.msrb.mxu0 %v2272_v11  ;;  %v2546_v11 = vpop.f32.mrf.mxu0 }
 0x30e   : > { %v13079_v6 = vpop.permute.xlu1 %1801  ;;  %v13081_v61 = vpop.permute.xlu2 %2039 }
 0x30f   : > { %v1800_v20 = vpop.permute.xlu0 %1799  ;;  %2815 = vmatpush.msrb.mxu1 %v2260_v16  ;;  %2861 = vmatpush.msrb.mxu0 %v2261_v57  ;;  %2073 = vst.msk [vmem:[#allocation2 + $0x7e0] sm:$0xff] %vm353_vm1, %v13081_v61  ;;  %v2284_v16 = vld [vmem:[#allocation2 + $0x1a0] sm:$0xff] }
 0x310   : > { %v1816_v32 = vsel %vm1809_vm11, %v13006_v62, %v1800_v20  ;;  %v1817_v63 = vsel %vm1809_vm11, %v1800_v20, %v13079_v6  ;;  %v2296_v20 = vld [vmem:[#allocation2 + $0x200] sm:$0xff] }
 0x311   : > { %2816 = vmatpush.msrb.mxu1 %v2249_v1  ;;  %2862 = vmatpush.msrb.mxu0 %v2250_v51 }
 0x312   : > { %2837 = vmatpush.msrb.mxu3 %v1816_v32  ;;  %2883 = vmatpush.msrb.mxu2 %v1817_v63 }
 0x313   : > { %2817 = vmatpush.msrb.mxu1 %v13031_v43  ;;  %2863 = vmatpush.msrb.mxu0 %v13048_v33  ;;  %v2414_v43 = vld [vmem:[#allocation2 + $0x5b0] sm:$0xff]  ;;  %v2384_v33 = vld [vmem:[#allocation2 + $0x4c0] sm:$0xff] }
 0x314   : > { %2818 = vmatmul.f32.vlgmr.msrb.gmra.mxu1 %v12796_v7  ;;  %2838 = vmatpush.msrb.mxu3 %v13036_v36  ;;  %v2394_v36 = vld [vmem:[#allocation2 + $0x510] sm:$0xff] }
 0x315   : > { %2864 = vmatmul.f32.vlgmr.msrb.gmra.mxu0 %v12796_v7 }
 0x316   : > { %v1636_v62 = vpop.permute.xlu1 %1635  ;;  %v13094_v3 = vpop.permute.xlu2 %1883 }
 0x317   : > { %v1652_v55 = vsel %vm1645_vm2, %v13015_v54, %v1636_v62  ;;  %v13098_v38 = vpop.permute.xlu0 %1719  ;;  %v1653_v13 = vsel %vm1645_vm2, %v1636_v62, %v13056_v46  ;;  %v13108_v7 = vsel %vm16556_vm9, %v13013_v44, %v13094_v3  ;;  %v2405_v54 = vld [vmem:[#allocation2 + $0x568] sm:$0xff]  ;;  %v2406_v44 = vld [vmem:[#allocation2 + $0x570] sm:$0xff] }
 0x318   : > { %v1735_v42 = vsel %vm1727_vm13, %v13027_v10, %v13098_v38  ;;  %2839 = vmatpush.msrb.mxu3 %v1652_v55  ;;  %v2415_v10 = vld [vmem:[#allocation2 + $0x5b8] sm:$0xff]  ;;  %v2285_v62 = vld [vmem:[#allocation2 + $0x1a8] sm:$0xff] }
 0x319   : > { %2884 = vmatpush.msrb.mxu2 %v1735_v42 }
 0x31a   : > { %2840 = vmatpush.msrb.mxu3 %v2414_v43 }
 0x31b   : > { %2885 = vmatpush.msrb.mxu2 %v1653_v13  ;;  %9755 = vmatmul.msk.f32.vlgmr.msrb.gmra.mxu3 %vm2519_vm15, %v12801_v12  ;;  %v2262_v13 = vld [vmem:[#allocation2 + $0xf0] sm:$0xff] }
 0x31c   : > { %2821 = vmatmul.f32.gmra.mxu1 %v12828_v18  ;;  %2894 = vmatpush.msra.mxu3 %v2405_v54  ;;  %v2274_v54 = vld [vmem:[#allocation2 + $0x150] sm:$0xff] }
 0x31d   : > { %2867 = vmatmul.f32.gmra.mxu0 %v12828_v18  ;;  %2886 = vmatpush.msrb.mxu2 %v2415_v10 }
 0x31e   : > { %v2194_v50 = vpop.permute.xlu1 %2193  ;;  %9757 = vmatmul.msk.f32.vlgmr.msrb.gmra.mxu2 %vm2519_vm15, %v12801_v12  ;;  %2895 = vmatpush.msra.mxu3 %v2394_v36  ;;  %v13116_v9 = vpop.permute.xlu2 %1805  ;;  %v2372_v12 = vld [vmem:[#allocation2 + $0x460] sm:$0xff] }
 0x31f   : > { %v2192_v48 = vpop.permute.xlu0 %2191  ;;  %2227 = vst.msk [vmem:[#allocation2 + $0x890] sm:$0xff] %vm353_vm1, %v2194_v50  ;;  %2940 = vmatpush.msra.mxu2 %v2406_v44 }
 0x320   : > { %v2204_v18 = vsel %vm16538_vm3, %v13040_v4, %v2192_v48  ;;  %v2205_v26 = vsel %vm16538_vm3, %v2192_v48, %v2194_v50  ;;  %2896 = vmatpush.msra.mxu3 %v2383_v14  ;;  %v2350_v4 = vld [vmem:[#allocation2 + $0x3b0] sm:$0xff]  ;;  %v2251_v48 = vld [vmem:[#allocation2 + $0x98] sm:$0xff] }
 0x321   : > { %2941 = vmatpush.msra.mxu2 %v2395_v59  ;;  %2924 = vmatpush.msra.mxu1 %v2204_v18  ;;  %v13148_v45 = vpop.f32.mrf.mxu3  ;;  %v2263_v14 = vld [vmem:[#allocation2 + $0xf8] sm:$0xff] }
 0x322   : > { %2897 = vmatpush.msra.mxu3 %v2372_v12  ;;  %2970 = vmatpush.msra.mxu0 %v2205_v26 }
 0x323   : > { %2942 = vmatpush.msra.mxu2 %v2384_v33  ;;  %9756 = vmatmul.msk.f32.gmra.mxu3 %vm2519_vm15, %v12833_v17  ;;  %v2484_v33 = vld [vmem:[#allocation2 + $0x7e0] sm:$0xff] }
 0x324   : > { %2898 = vmatpush.msra.mxu3 %v2361_v47  ;;  %2925 = vmatpush.msra.mxu1 %v13077_v19 }
 0x325   : > { %2943 = vmatpush.msra.mxu2 %v2373_v56 }
 0x326   : > { %v2038_v28 = vpop.permute.xlu1 %2037  ;;  %9758 = vmatmul.msk.f32.gmra.mxu2 %vm2519_vm15, %v12833_v17  ;;  %2899 = vmatpush.msra.mxu3 %v2350_v4  ;;  %v2506_v59 = vld [vmem:[#allocation2 + $0x890] sm:$0xff] }
 0x327   : > { %v2117_v30 = vpop.permute.xlu0 %2116  ;;  %v2050_v23 = vsel %vm16543_vm6, %v13054_v15, %v2038_v28  ;;  %2944 = vmatpush.msra.mxu2 %v2362_v29  ;;  %v2051_v17 = vsel %vm16543_vm6, %v2038_v28, %v13081_v61  ;;  %v13146_v15 = vpop.f32.mrf.mxu1  ;;  %v342_v29 = vld [vmem:[%s11907_s14 + $0x50] sm:$0xff]  ;;  %s16592_s14 = smov 122  }
 0x328   : > { %v2128_v37 = vsel %vm2118_vm7, %v13063_v52, %v2117_v30  ;;  %2150 = vst.msk [vmem:[#allocation2 + $0x838] sm:$0xff] %vm353_vm1, %v2117_v30  ;;  %2900 = vmatpush.msra.mxu3 %v2339_v25  ;;  %2926 = vmatpush.msra.mxu1 %v2050_v23  ;;  %v13144_v40 = vpop.permute.xlu2 %1639  ;;  %v2317_v52 = vld [vmem:[#allocation2 + $0x2a8] sm:$0xff]  ;;  %v2592_v61 = vpop.f32.mrf.mxu2  ;;  %v2416_v23 = vld [vmem:[#allocation2 + $0x5c0] sm:$0xff]  ;;  %vm4879_vm7 = vcmask 474112  }
 0x329   : > { %2945 = vmatpush.msra.mxu2 %v2351_v39  ;;  %2971 = vmatpush.msra.mxu0 %v2128_v37  ;;  %v13153_v0 = vsel %vm1645_vm2, %v13056_v46, %v13144_v40  ;;  %v2307_v46 = vld [vmem:[#allocation2 + $0x258] sm:$0xff]  ;;  %v2615_v51 = vpop.f32.mrf.mxu3  ;;  %354 = vst.msk [vmem:[#allocation2 + $0x50] sm:$0xff] %vm353_vm1, %v342_v29  ;;  %v13207_v39 = vld [vmem:[%s16509_s1 + $0x8] sm:$0xff] }
 0x32a   : > { %2901 = vmatpush.msra.mxu3 %v2328_v21  ;;  %v2407_v21 = vld [vmem:[#allocation2 + $0x578] sm:$0xff]  ;;  %v2297_v29 = vld [vmem:[#allocation2 + $0x208] sm:$0xff] }
 0x32b   : > { %2946 = vmatpush.msra.mxu2 %v2340_v49  ;;  %2972 = vmatpush.msra.mxu0 %v2051_v17 }
 0x32c   : > { %2902 = vmatpush.msra.mxu3 %v2317_v52 }
 0x32d   : > { %2947 = vmatpush.msra.mxu2 %v2329_v58 }
 0x32e   : > { %v1963_v27 = vpop.permute.xlu1 %1962  ;;  %2903 = vmatpush.msra.mxu3 %v2306_v2  ;;  %v2396_v2 = vld [vmem:[#allocation2 + $0x520] sm:$0xff] }
 0x32f   : > { %v1961_v60 = vpop.permute.xlu0 %1960  ;;  %1996 = vst.msk [vmem:[#allocation2 + $0x788] sm:$0xff] %vm353_vm1, %v1963_v27  ;;  %2948 = vmatpush.msra.mxu2 %v2318_v8  ;;  %v2569_v1 = vpop.f32.mrf.mxu1  ;;  %v2495_v12 = vld [vmem:[#allocation2 + $0x838] sm:$0xff] }
 0x330   : > { %v1973_v19 = vsel %vm1964_vm8, %v13067_v41, %v1961_v60  ;;  %v1974_v22 = vsel %vm1964_vm8, %v1961_v60, %v1963_v27  ;;  %2904 = vmatpush.msra.mxu3 %v2295_v53  ;;  %v2273_v41 = vld [vmem:[#allocation2 + $0x148] sm:$0xff]  ;;  %v2681_v60 = vpop.f32.mrf.mxu0  ;;  %vm4051_vm8 = vcmask 736256  }
 0x331   : > { %2949 = vmatpush.msra.mxu2 %v2307_v46  ;;  %2927 = vmatpush.msra.mxu1 %v1973_v19  ;;  %v13159_v57 = vpop.permute.xlu2 %2516 }
 0x332   : > { %2905 = vmatpush.msra.mxu3 %v2284_v16  ;;  %2973 = vmatpush.msra.mxu0 %v1974_v22  ;;  %v2547_v32 = vadd.f32 %v2546_v11, %v13159_v57  ;;  %v2593_v63 = vadd.f32 %v2592_v61, %v13159_v57  ;;  %v2385_v22 = vld [vmem:[#allocation2 + $0x4c8] sm:$0xff]  ;;  %v2374_v11 = vld [vmem:[#allocation2 + $0x470] sm:$0xff] }
 0x333   : > { %2950 = vmatpush.msra.mxu2 %v2296_v20  ;;  %2928 = vmatpush.msra.mxu1 %v13108_v7  ;;  %v13230_v20 = vld [vmem:[%s16509_s1 + $0x18] sm:$0xff] }
 0x334   : > { %2906 = vmatpush.msra.mxu3 %v2273_v41  ;;  %v2570_v55 = vadd.f32 %v2569_v1, %v2547_v32  ;;  %v2616_v42 = vadd.f32 %v2615_v51, %v2593_v63  ;;  %v2363_v32 = vld [vmem:[#allocation2 + $0x418] sm:$0xff] }
 0x335   : > { %2951 = vmatpush.msra.mxu2 %v2285_v62 }
 0x336   : > { %v1804_v43 = vpop.permute.xlu1 %1803  ;;  %2907 = vmatpush.msra.mxu3 %v2262_v13  ;;  %v3043_v10 = vmax.f32 %v2570_v55, 0.0  ;;  %v3044_v36 = vmax.f32 %v2616_v42, 0.0  ;;  %v2473_v56 = vld [vmem:[#allocation2 + $0x788] sm:$0xff]  ;;  %v2352_v13 = vld [vmem:[#allocation2 + $0x3c0] sm:$0xff] }
 0x337   : > { %v1886_v50 = vpop.permute.xlu0 %1885  ;;  %v1818_v44 = vsel %vm1809_vm11, %v13079_v6, %v1804_v43  ;;  %2952 = vmatpush.msra.mxu2 %v2274_v54  ;;  %v1819_v26 = vsel %vm1809_vm11, %v1804_v43, %v13116_v9  ;;  %v2252_v6 = vld [vmem:[#allocation2 + $0xa0] sm:$0xff] }
 0x338   : > { %v1897_v7 = vsel %vm16556_vm9, %v13094_v3, %v1886_v50  ;;  %1919 = vst.msk [vmem:[#allocation2 + $0x730] sm:$0xff] %vm353_vm1, %v1886_v50  ;;  %2908 = vmatpush.msra.mxu3 %v2251_v48  ;;  %2929 = vmatpush.msra.mxu1 %v1818_v44  ;;  %v13169_v18 = vpack.c.bf16 %v3044_v36, %v3043_v10  ;;  %v13177_v3 = vld [vmem:[%s16509_s1] sm:$0xff]  ;;  %v2341_v10 = vld [vmem:[#allocation2 + $0x368] sm:$0xff]  ;;  %v2684_v36 = vpop.f32.mrf.mxu0 }
 0x339   : > { %2953 = vmatpush.msra.mxu2 %v2263_v14  ;;  %2974 = vmatpush.msra.mxu0 %v1897_v7  ;;  %v1644_v37 = vpop.permute.xlu2 %1643  ;;  %v2685_v48 = vadd.f32 %v2684_v36, %v13159_v57  ;;  %v2319_v14 = vld [vmem:[#allocation2 + $0x2b8] sm:$0xff] }
 0x33a   : > { %2909 = vmatpush.msra.mxu3 %v13120_v34  ;;  %3072 = vst [vmem:[#allocation4 + $0x2c] sm:$0xff] %v13169_v18  ;;  %v2635_v25 = vpop.f32.mrf.mxu1 }
 0x33b   : > { %2954 = vmatpush.msra.mxu2 %v2252_v6  ;;  %2910 = vmatmul.f32.vlgmr.msra.gmra.mxu3 %v13177_v3 }
 0x33c   : > { %2975 = vmatpush.msra.mxu0 %v1819_v26  ;;  %3016 = vmatpush.msrb.mxu3 %v2506_v59 }
 0x33d   : > { %2955 = vmatpush.msra.mxu2 %v13126_v35  ;;  %v13193_v35 = vld [vmem:[%s16509_s1 + $0x10] sm:$0xff] }
 0x33e   : > { %v13182_v47 = vpop.permute.xlu1 %1723  ;;  %2956 = vmatmul.f32.vlgmr.msra.gmra.mxu2 %v13177_v3  ;;  %3017 = vmatpush.msrb.mxu3 %v2495_v12 }
 0x33f   : > { %v1722_v34 = vpop.permute.xlu0 %1721  ;;  %v2462_v30 = vld [vmem:[#allocation2 + $0x730] sm:$0xff] }
 0x340   : > { %v1736_v4 = vsel %vm1727_vm13, %v13098_v38, %v1722_v34  ;;  %v1737_v28 = vsel %vm1727_vm13, %v1722_v34, %v13182_v47  ;;  %3018 = vmatpush.msrb.mxu3 %v2484_v33  ;;  %v2308_v34 = vld [vmem:[#allocation2 + $0x260] sm:$0xff] }
 0x341   : > { %2930 = vmatpush.msra.mxu1 %v1736_v4  ;;  %2976 = vmatpush.msra.mxu0 %v1737_v28  ;;  %v13198_v38 = vld [vmem:[#allocation4 + $0x2c] sm:$0xff] }
 0x342   : > { %3019 = vmatpush.msrb.mxu3 %v2473_v56  ;;  %3093 = vst [vmem:[#allocation3 + $0x20] sm:$0xff] %v13198_v38 }
 0x343   : > { %2913 = vmatmul.f32.gmra.mxu3 %v13193_v35  ;;  %2931 = vmatpush.msra.mxu1 %v13153_v0  ;;  %v2638_v63 = vpop.f32.mrf.mxu1 }
 0x344   : > { %3020 = vmatpush.msrb.mxu3 %v2462_v30  ;;  %v2639_v43 = vadd.f32 %v2638_v63, %v13159_v57 }
 0x345   : > { %2932 = vmatpush.msra.mxu1 %v2416_v23  ;;  %v2286_v23 = vld [vmem:[#allocation2 + $0x1b0] sm:$0xff] }
 0x346   : > { %v13201_v17 = vpop.permute.xlu1 %2511  ;;  %2959 = vmatmul.f32.gmra.mxu2 %v13193_v35  ;;  %9759 = vmatmul.msk.f32.vlgmr.msra.gmra.mxu1 %vm2519_vm15, %v13207_v39 }
 0x347   : > { %v1642_v49 = vpop.permute.xlu0 %1641  ;;  %2986 = vmatpush.msrb.mxu1 %v2407_v21  ;;  %v2544_v52 = vadd.f32 %v13133_v24, %v13201_v17  ;;  %v2590_v0 = vadd.f32 %v13137_v5, %v13201_v17  ;;  %v2636_v8 = vadd.f32 %v2635_v25, %v13201_v17  ;;  %v2417_v24 = vld [vmem:[#allocation2 + $0x5c8] sm:$0xff]  ;;  %v2682_v16 = vadd.f32 %v2681_v60, %v13201_v17  ;;  %v2275_v21 = vld [vmem:[#allocation2 + $0x158] sm:$0xff] }
 0x348   : > { %v1655_v58 = vsel %vm1645_vm2, %v13144_v40, %v1642_v49  ;;  %v1656_v27 = vsel %vm1645_vm2, %v1642_v49, %v1644_v37  ;;  %vm3090_vm2 = vcmask 728068  }
 0x349   : > { %2987 = vmatpush.msrb.mxu1 %v2396_v2  ;;  %2977 = vmatpush.msra.mxu0 %v1655_v58  ;;  %v2567_v53 = vadd.f32 %v13146_v15, %v2544_v52  ;;  %v2613_v19 = vadd.f32 %v13148_v45, %v2590_v0  ;;  %1678 = vst.msk [vmem:[#allocation2 + $0x628] sm:$0xff] %vm353_vm1, %v1656_v27  ;;  %v2658_v5 = vpop.f32.mrf.mxu3  ;;  %v2264_v52 = vld [vmem:[#allocation2 + $0x100] sm:$0xff]  ;;  %v2253_v0 = vld [vmem:[#allocation2 + $0xa8] sm:$0xff]  ;;  %v2242_v58 = vld [vmem:[#allocation2 + $0x50] sm:$0xff] }
 0x34a   : > { %v2659_v61 = vadd.f32 %v2658_v5, %v2636_v8 }
 0x34b   : > { %2988 = vmatpush.msrb.mxu1 %v2385_v22  ;;  %2978 = vmatpush.msra.mxu0 %v2417_v24  ;;  %v3032_v40 = vmax.f32 %v2567_v53, 0.0  ;;  %v3033_v46 = vmax.f32 %v2613_v19, 0.0 }
 0x34c   : > { %9761 = vmatmul.msk.f32.vlgmr.msra.gmra.mxu0 %vm2519_vm15, %v13207_v39  ;;  %v3034_v55 = vmax.f32 %v2659_v61, 0.0 }
 0x34d   : > { %2989 = vmatpush.msrb.mxu1 %v2374_v11  ;;  %v13225_v15 = vpack.c.bf16 %v3033_v46, %v3032_v40 }
 0x34e   : > { %v1726_v45 = vpop.permute.xlu1 %1725  ;;  %9760 = vmatmul.msk.f32.gmra.mxu1 %vm2519_vm15, %v13230_v20 }
 0x34f   : > { %v1808_v41 = vpop.permute.xlu0 %1807  ;;  %v1738_v1 = vsel %vm1727_vm13, %v13182_v47, %v1726_v45  ;;  %2990 = vmatpush.msrb.mxu1 %v2363_v32  ;;  %v2704_v51 = vpop.f32.mrf.mxu2  ;;  %3066 = vst [vmem:[#allocation4] sm:$0xff] %v13225_v15  ;;  %vm16661_vm13 = vcmask 982016  }
 0x350   : > { %v1820_v62 = vsel %vm1809_vm11, %v13116_v9, %v1808_v41  ;;  %1760 = vst.msk [vmem:[#allocation2 + $0x680] sm:$0xff] %vm353_vm1, %v1738_v1  ;;  %v2705_v42 = vadd.f32 %v2704_v51, %v2682_v16  ;;  %v2330_v9 = vld [vmem:[#allocation2 + $0x310] sm:$0xff]  ;;  %v2429_v28 = vld [vmem:[#allocation2 + $0x628] sm:$0xff]  ;;  %vm4796_vm11 = vcmask 490496  }
 0x351   : > { %1842 = vst.msk [vmem:[#allocation2 + $0x6d8] sm:$0xff] %vm353_vm1, %v1820_v62  ;;  %2991 = vmatpush.msrb.mxu1 %v2352_v13 }
 0x352   : > { %v3035_v54 = vmax.f32 %v2705_v42, 0.0 }
 0x353   : > { %2992 = vmatpush.msrb.mxu1 %v2341_v10  ;;  %v2661_v50 = vpop.f32.mrf.mxu3 }
 0x354   : > { %v13242_v44 = vpack.c.bf16 %v3035_v54, %v3034_v55  ;;  %9762 = vmatmul.msk.f32.gmra.mxu0 %vm2519_vm15, %v13230_v20  ;;  %v2662_v7 = vadd.f32 %v2661_v50, %v2639_v43 }
 0x355   : > { %2993 = vmatpush.msrb.mxu1 %v2330_v9 }
 0x356   : > { %3067 = vst [vmem:[#allocation4 + $0x8] sm:$0xff] %v13242_v44  ;;  %v3078_v26 = vld [vmem:[#allocation4] sm:$0xff]  ;;  %v3045_v56 = vmax.f32 %v2662_v7, 0.0 }
 0x357   : > { %v1562_v59 = vpop.permute.xlu0 %1561  ;;  %2994 = vmatpush.msrb.mxu1 %v2319_v14  ;;  %3086 = vst [vmem:[#allocation3] sm:$0xff] %v3078_v26  ;;  %v2440_v33 = vld [vmem:[#allocation2 + $0x680] sm:$0xff] }
 0x358   : > { %v1574_v6 = vsel %vm1563_vm0, %v12608_v31, %v1562_v59  ;;  %v2451_v12 = vld [vmem:[#allocation2 + $0x6d8] sm:$0xff]  ;;  %v2707_v47 = vpop.f32.mrf.mxu2  ;;  %vm4215_vm0 = vcmask 130048  }
 0x359   : > { %1596 = vst.msk [vmem:[#allocation2 + $0x5d0] sm:$0xff] %vm353_vm1, %v1574_v6  ;;  %3021 = vmatpush.msrb.mxu3 %v2451_v12  ;;  %v2708_v4 = vadd.f32 %v2707_v47, %v2685_v48  ;;  %2995 = vmatpush.msrb.mxu1 %v2308_v34  ;;  %vm3089_vm1 = vcmask 1043456  }
 0x35b   : > { %3022 = vmatpush.msrb.mxu3 %v2440_v33  ;;  %v3046_v30 = vmax.f32 %v2708_v4, 0.0  ;;  %2996 = vmatpush.msrb.mxu1 %v2297_v29 }
 0x35d   : > { %v13251_v25 = vpack.c.bf16 %v3046_v30, %v3045_v56  ;;  %3023 = vmatpush.msrb.mxu3 %v2429_v28  ;;  %2997 = vmatpush.msrb.mxu1 %v2286_v23  ;;  %v13253_v31 = vld [vmem:[#allocation4 + $0x4] sm:$0xff] }
 0x35e   : > { %v3079_v37 = vld [vmem:[#allocation4 + $0x8] sm:$0xff]  ;;  %4184 = vrot.lane.b32.xlu1 %v13253_v31, %s16655_s20 }
 0x35f   : > { %3087 = vst [vmem:[#allocation3 + $0x8] sm:$0xff] %v3079_v37  ;;  %2998 = vmatpush.msrb.mxu1 %v2275_v21  ;;  %v16788_v37 = vmov 0 }
 0x360   : > { %3073 = vst [vmem:[#allocation4 + $0x34] sm:$0xff] %v13251_v25  ;;  %v2418_v49 = vld [vmem:[#allocation2 + $0x5d0] sm:$0xff] }
 0x361   : > { %3024 = vmatpush.msrb.mxu3 %v2418_v49  ;;  %2999 = vmatpush.msrb.mxu1 %v2264_v52 }
 0x362   : > { %9763 = vmatmul.msk.f32.vlgmr.msrb.gmra.mxu3 %vm2519_vm15, %v13207_v39 }
 0x363   : > { %3000 = vmatpush.msrb.mxu1 %v2253_v0 }
 0x365   : > { %3001 = vmatpush.msrb.mxu1 %v2242_v58 }
 0x366   : > { %3002 = vmatmul.f32.vlgmr.msrb.gmra.mxu1 %v13177_v3 }
 0x367   : > { %v13261_v2 = vld [vmem:[#allocation4 + $0x30] sm:$0xff] }
 0x368   : > { %v3083_v27 = vld [vmem:[#allocation4 + $0x34] sm:$0xff]  ;;  %4194 = vrot.lane.b32.xlu0 %v13261_v2, %s16655_s20 }
 0x369   : > { %3094 = vst [vmem:[#allocation3 + $0x28] sm:$0xff] %v3083_v27 }
 0x36a   : > { %9764 = vmatmul.msk.f32.gmra.mxu3 %vm2519_vm15, %v13230_v20  ;;  %v2727_v8 = vpop.f32.mrf.mxu3  ;;  %vm13328_vm15 = vmor %vm3090_vm2, %vm3089_vm1  ;;  %vm4713_vm2 = vcmask 506880  }
 0x36b   : > { %v2728_v39 = vadd.f32 %v2727_v8, %v13201_v17  ;;  %v16789_v37 = vsel %vm13328_vm15, 4294967295, %v16788_v37 }
 0x36c   : > { %16790 = vst [vmem:[#allocation7_spill] sm:$0xff] %v16789_v37 }
 0x36e   : > { %3005 = vmatmul.f32.gmra.mxu1 %v13193_v35 }
 0x370   : > { %3570 = vrot.lane.b32.xlu0 %v13242_v44, %s16659_s28 }
 0x371   : > { %v2773_v60 = vpop.f32.mrf.mxu2  ;;  %v2750_v3 = vpop.f32.mrf.mxu1 }
 0x372   : > { %v2774_v53 = vadd.f32 %v2773_v60, %v13201_v17  ;;  %v2751_v19 = vadd.f32 %v2750_v3, %v2728_v39  ;;  %v2796_v22 = vpop.f32.mrf.mxu0  ;;  %v2730_v24 = vpop.f32.mrf.mxu3 }
 0x373   : > { %v2731_v11 = vadd.f32 %v2730_v24, %v13159_v57 }
 0x374   : > { %v3036_v5 = vmax.f32 %v2751_v19, 0.0  ;;  %v2797_v40 = vadd.f32 %v2796_v22, %v2774_v53 }
 0x376   : > { %v3037_v46 = vmax.f32 %v2797_v40, 0.0 }
 0x378   : > { %4101 = vrot.lane.b32.xlu0 %v13253_v31, %s16628_s19  ;;  %v13275_v35 = vpack.c.bf16 %v3037_v46, %v3036_v5 }
 0x379   : > { %v2776_v16 = vpop.f32.mrf.mxu2  ;;  %v2753_v61 = vpop.f32.mrf.mxu1 }
 0x37a   : > { %3068 = vst [vmem:[#allocation4 + $0x10] sm:$0xff] %v13275_v35  ;;  %v2777_v45 = vadd.f32 %v2776_v16, %v13159_v57  ;;  %v2754_v20 = vadd.f32 %v2753_v61, %v2731_v11  ;;  %v2799_v32 = vpop.f32.mrf.mxu0 }
 0x37c   : > { %v3047_v63 = vmax.f32 %v2754_v20, 0.0  ;;  %v2800_v41 = vadd.f32 %v2799_v32, %v2777_v45 }
 0x37e   : > { %v3048_v1 = vmax.f32 %v2800_v41, 0.0 }
 0x380   : > { %v13279_v51 = vpack.c.bf16 %v3048_v1, %v3047_v63 }
 0x381   : > { %v13281_v62 = vld [vmem:[#allocation4 + $0xc] sm:$0xff] }
 0x382   : > { %v3080_v55 = vld [vmem:[#allocation4 + $0x10] sm:$0xff]  ;;  %3074 = vst [vmem:[#allocation4 + $0x3c] sm:$0xff] %v13279_v51  ;;  %4186 = vrot.lane.b32.xlu2 %v13281_v62, %s16655_s20 }
 0x383   : > { %3088 = vst [vmem:[#allocation3 + $0x10] sm:$0xff] %v3080_v55 }
 0x389   : > { %v13286_v42 = vld [vmem:[#allocation4 + $0x38] sm:$0xff] }
 0x38a   : > { %v3084_v13 = vld [vmem:[#allocation4 + $0x3c] sm:$0xff]  ;;  %4196 = vrot.lane.b32.xlu1 %v13286_v42, %s16655_s20  ;;  %4113 = vrot.lane.b32.xlu0 %v13286_v42, %s16628_s19 }
 0x38b   : > { %3095 = vst [vmem:[#allocation3 + $0x30] sm:$0xff] %v3084_v13  ;;  %3568 = vrot.lane.b32.xlu2 %v13225_v15, %s16659_s28 }
 0x391   : > { %v2819_v43 = vpop.f32.mrf.mxu1 }
 0x392   : > { %3578 = vrot.lane.b32.xlu1 %v13169_v18, %s16659_s28  ;;  %4858 = vrot.lane.b32.xlu0 %v13251_v25, %s16668_s16  ;;  %v2865_v54 = vpop.f32.mrf.mxu0  ;;  %v2820_v10 = vadd.f32 %v2819_v43, %v13201_v17 }
 0x393   : > { %3580 = vrot.lane.b32.xlu2 %v13251_v25, %s16659_s28  ;;  %v2866_v50 = vadd.f32 %v2865_v54, %v13201_v17 }
 0x399   : > { %v2822_v14 = vpop.f32.mrf.mxu1 }
 0x39a   : > { %4103 = vrot.lane.b32.xlu1 %v13281_v62, %s16628_s19  ;;  %3487 = vrot.lane.b32.xlu0 %v13242_v44, %s16666_s26  ;;  %v2868_v6 = vpop.f32.mrf.mxu0  ;;  %v2823_v12 = vadd.f32 %v2822_v14, %v13159_v57 }
 0x39b   : > { %4111 = vrot.lane.b32.xlu2 %v13261_v2, %s16628_s19  ;;  %v2869_v34 = vadd.f32 %v2868_v6, %v13159_v57 }
 0x39e   : > { %v2842_v36 = vpop.f32.mrf.mxu3 }
 0x39f   : > { %v2843_v9 = vadd.f32 %v2842_v36, %v2820_v10 }
 0x3a1   : > { %v2888_v48 = vpop.f32.mrf.mxu2  ;;  %v3038_v26 = vmax.f32 %v2843_v9, 0.0 }
 0x3a2   : > { %4848 = vrot.lane.b32.xlu1 %v13242_v44, %s16668_s16  ;;  %4026 = vrot.lane.b32.xlu0 %v13253_v31, %s16614_s18  ;;  %v2889_v7 = vadd.f32 %v2888_v48, %v2866_v50 }
 0x3a3   : > { %4850 = vrot.lane.b32.xlu2 %v13275_v35, %s16668_s16 }
 0x3a4   : > { %v3039_v59 = vmax.f32 %v2889_v7, 0.0 }
 0x3a6   : > { %v13315_v33 = vpack.c.bf16 %v3039_v59, %v3038_v26  ;;  %v2845_v47 = vpop.f32.mrf.mxu3 }
 0x3a7   : > { %v2846_v56 = vadd.f32 %v2845_v47, %v2823_v12 }
 0x3a8   : > { %3069 = vst [vmem:[#allocation4 + $0x18] sm:$0xff] %v13315_v33 }
 0x3a9   : > { %v2891_v4 = vpop.f32.mrf.mxu2  ;;  %v3049_v29 = vmax.f32 %v2846_v56, 0.0 }
 0x3aa   : > { %4860 = vrot.lane.b32.xlu1 %v13279_v51, %s16668_s16  ;;  %4036 = vrot.lane.b32.xlu0 %v13286_v42, %s16614_s18  ;;  %v2892_v28 = vadd.f32 %v2891_v4, %v2869_v34 }
 0x3ab   : > { %3485 = vrot.lane.b32.xlu2 %v13225_v15, %s16666_s26 }
 0x3ac   : > { %v3050_v30 = vmax.f32 %v2892_v28, 0.0 }
 0x3ae   : > { %v13325_v23 = vpack.c.bf16 %v3050_v30, %v3049_v29 }
 0x3af   : > { %v3081_v21 = vld [vmem:[#allocation4 + $0x18] sm:$0xff] }
 0x3b0   : > { %3075 = vst [vmem:[#allocation4 + $0x44] sm:$0xff] %v13325_v23 }
 0x3b1   : > { %3092 = vst.msk [vmem:[#allocation3 + $0x18] sm:$0xff] %vm13328_vm15, %v3081_v21 }
 0x3b2   : > { %3495 = vrot.lane.b32.xlu1 %v13169_v18, %s16666_s26  ;;  %4775 = vrot.lane.b32.xlu0 %v13251_v25, %s16657_s11 }
 0x3b3   : > { %3497 = vrot.lane.b32.xlu2 %v13251_v25, %s16666_s26 }
 0x3b7   : > { %v3085_v49 = vld [vmem:[#allocation4 + $0x44] sm:$0xff] }
 0x3b8   : > { %3096 = vst.msk [vmem:[#allocation3 + $0x38] sm:$0xff] %vm13328_vm15, %v3085_v49 }
 0x3ba   : > { %4028 = vrot.lane.b32.xlu1 %v13281_v62, %s16614_s18  ;;  %3404 = vrot.lane.b32.xlu0 %v13242_v44, %s16616_s24 }
 0x3bb   : > { %4034 = vrot.lane.b32.xlu2 %v13261_v2, %s16614_s18 }
 0x3be   : > { %v2911_v52 = vpop.f32.mrf.mxu3 }
 0x3bf   : > { %v2912_v27 = vadd.f32 %v2911_v52, %v13201_v17 }
 0x3c1   : > { %v2957_v0 = vpop.f32.mrf.mxu2 }
 0x3c2   : > { %4765 = vrot.lane.b32.xlu1 %v13242_v44, %s16657_s11  ;;  %3955 = vrot.lane.b32.xlu0 %v13253_v31, %s16575_s13  ;;  %v2958_v8 = vadd.f32 %v2957_v0, %v13201_v17 }
 0x3c3   : > { %4767 = vrot.lane.b32.xlu2 %v13275_v35, %s16657_s11  ;;  %v2934_v58 = vpop.f32.mrf.mxu1 }
 0x3c4   : > { %v2935_v39 = vadd.f32 %v2934_v58, %v2912_v27 }
 0x3c6   : > { %v2914_v53 = vpop.f32.mrf.mxu3  ;;  %v3040_v19 = vmax.f32 %v2935_v39, 0.0 }
 0x3c7   : > { %v2915_v40 = vadd.f32 %v2914_v53, %v13159_v57 }
 0x3c9   : > { %v2980_v60 = vpop.f32.mrf.mxu0  ;;  %v2960_v24 = vpop.f32.mrf.mxu2 }
 0x3ca   : > { %4777 = vrot.lane.b32.xlu1 %v13279_v51, %s16657_s11  ;;  %3965 = vrot.lane.b32.xlu0 %v13286_v42, %s16575_s13  ;;  %v2981_v3 = vadd.f32 %v2980_v60, %v2958_v8  ;;  %v2961_v11 = vadd.f32 %v2960_v24, %v13159_v57 }
 0x3cb   : > { %3402 = vrot.lane.b32.xlu2 %v13225_v15, %s16616_s24  ;;  %v2937_v5 = vpop.f32.mrf.mxu1 }
 0x3cc   : > { %v3041_v22 = vmax.f32 %v2981_v3, 0.0  ;;  %v2938_v16 = vadd.f32 %v2937_v5, %v2915_v40 }
 0x3ce   : > { %v3058_v46 = vpack.c.bf16 %v3041_v22, %v3040_v19  ;;  %v3051_v20 = vmax.f32 %v2938_v16, 0.0 }
 0x3d0   : > { %3070 = vst [vmem:[#allocation4 + $0x20] sm:$0xff] %v3058_v46  ;;  %v4185_v1 = vpop.permute.xlu1 %4184 }
 0x3d1   : > { %v2983_v61 = vpop.f32.mrf.mxu0  ;;  %v4204_v13 = vrot.slane %v4185_v1, 4 }
 0x3d2   : > { %3412 = vrot.lane.b32.xlu1 %v13169_v18, %s16616_s24  ;;  %4692 = vrot.lane.b32.xlu0 %v13251_v25, %s16626_s21  ;;  %v2984_v45 = vadd.f32 %v2983_v61, %v2961_v11 }
 0x3d3   : > { %3414 = vrot.lane.b32.xlu2 %v13251_v25, %s16616_s24 }
 0x3d4   : > { %v3052_v32 = vmax.f32 %v2984_v45, 0.0 }
 0x3d6   : > { %v3064_v63 = vpack.c.bf16 %v3052_v32, %v3051_v20 }
 0x3d8   : > { %3076 = vst [vmem:[#allocation4 + $0x4c] sm:$0xff] %v3064_v63 }
 0x3da   : > { %v4195_v41 = vpop.permute.xlu0 %4194  ;;  %3957 = vrot.lane.b32.xlu1 %v13281_v62, %s16575_s13  ;;  %3329 = vrot.lane.b32.xlu0 %v13242_v44, %s16577_s22 }
 0x3db   : > { %3963 = vrot.lane.b32.xlu2 %v13261_v2, %s16575_s13  ;;  %v4209_v58 = vrot.slane %v4195_v41, 4 }
 0x3dc   : > { %v13377_v55 = vpop.permute.xlu2 %4186 }
 0x3dd   : > { %v16569_v43 = vrot.slane %v13377_v55, 4 }
 0x3df   : > { %v4214_v54 = vsel %vm3089_vm1, %v4204_v13, %v16569_v43 }
 0x3e0   : > { %v4216_v10 = vsel %vm4215_vm0, %v4185_v1, %v4214_v54 }
 0x3e1   : > { %4239 = vst [vmem:[#allocation3 + $0x3c0] sm:$0xff] %v4216_v10 }
 0x3e2   : > { %4682 = vrot.lane.b32.xlu1 %v13242_v44, %s16626_s21  ;;  %3884 = vrot.lane.b32.xlu0 %v13253_v31, %s16532_s15  ;;  %v13388_v36 = vpop.permute.xlu0 %3570 }
 0x3e3   : > { %4684 = vrot.lane.b32.xlu2 %v13275_v35, %s16626_s21  ;;  %v3003_v50 = vpop.f32.mrf.mxu1  ;;  %v16585_v14 = vrot.slane %v13388_v36, 4 }
 0x3e4   : > { %v3004_v9 = vadd.f32 %v3003_v50, %v13201_v17 }
 0x3e5   : > { %v3569_v48 = vpop.permute.xlu2 %3568  ;;  %v3026_v7 = vpop.f32.mrf.mxu3 }
 0x3e6   : > { %v3588_v26 = vrot.slane %v3569_v48, 4  ;;  %v3027_v59 = vadd.f32 %v3026_v7, %v3004_v9 }
 0x3e8   : > { %v3598_v6 = vsel %vm3089_vm1, %v3588_v26, %v16585_v14  ;;  %v3042_v12 = vmax.f32 %v3027_v59, 0.0  ;;  %v10279_v45 = vld [vmem:[#allocation3 + $0x3c0] sm:$0xf] }
 0x3e9   : > { %v3600_v47 = vsel %vm1400_vm14, %v3569_v48, %v3598_v6 }
 0x3ea   : > { %3623 = vst [vmem:[#allocation3 + $0x1c0] sm:$0xff] %v3600_v47  ;;  %v3059_v34 = vpack.c.bf16 %v3042_v12, %v3042_v12  ;;  %4694 = vrot.lane.b32.xlu1 %v13279_v51, %s16626_s21  ;;  %3894 = vrot.lane.b32.xlu0 %v13286_v42, %s16532_s15  ;;  %v4102_v49 = vpop.permute.xlu0 %4101 }
 0x3eb   : > { %3327 = vrot.lane.b32.xlu2 %v13225_v15, %s16577_s22  ;;  %v3006_v17 = vpop.f32.mrf.mxu1 }
 0x3ec   : > { %3071 = vst [vmem:[#allocation4 + $0x28] sm:$0xf] %v3059_v34  ;;  %v3007_v56 = vadd.f32 %v3006_v17, %v13159_v57 }
 0x3ed   : > { %v13405_v4 = vpop.permute.xlu2 %3580  ;;  %v3029_v28 = vpop.f32.mrf.mxu3 }
 0x3ee   : > { %v3030_v29 = vadd.f32 %v3029_v28, %v3007_v56  ;;  %v16582_v40 = vrot.slane %v13405_v4, 4 }
 0x3f0   : > { %v3053_v30 = vmax.f32 %v3030_v29, 0.0 }
 0x3f1   : > { %v10023_v26 = vld [vmem:[#allocation3 + $0x1c0] sm:$0xf] }
 0x3f2   : > { %v3065_v21 = vpack.c.bf16 %v3053_v30, %v3053_v30  ;;  %3335 = vrot.lane.b32.xlu1 %v13169_v18, %s16577_s22  ;;  %4609 = vrot.lane.b32.xlu0 %v13251_v25, %s16612_s25 }
 0x3f3   : > { %3337 = vrot.lane.b32.xlu2 %v13251_v25, %s16577_s22 }
 0x3f4   : > { %3077 = vst [vmem:[#allocation4 + $0x54] sm:$0xf] %v3065_v21 }
 0x3f5   : > { %v4112_v52 = vpop.permute.xlu2 %4111 }
 0x3f6   : > { %v4126_v27 = vrot.slane %v4112_v52, 4 }
 0x3fa   : > { %3886 = vrot.lane.b32.xlu1 %v13281_v62, %s16532_s15  ;;  %3258 = vrot.lane.b32.xlu0 %v13242_v44, %s16592_s14 }
 0x3fb   : > { %3892 = vrot.lane.b32.xlu2 %v13261_v2, %s16532_s15  ;;  %s16679_s15 = smov 14  }
 0x3fc   : > { %v13419_v57 = vpop.permute.xlu1 %4196  ;;  %v13421_v0 = vpop.permute.xlu0 %4113 }
 0x3fd   : > { %v16587_v8 = vrot.slane %v13419_v57, 4  ;;  %v16570_v39 = vrot.slane %v13421_v0, 4  ;;  %v13425_v60 = vpop.permute.xlu2 %4850 }
 0x3fe   : > { %v16586_v34 = vrot.slane %v13425_v60, 4 }
 0x3ff   : > { %v4223_v3 = vsel %vm3089_vm1, %v4209_v58, %v16587_v8  ;;  %v4140_v53 = vsel %vm3089_vm1, %v4126_v27, %v16570_v39 }
 0x400   : > { %v4224_v19 = vsel %vm4215_vm0, %v4195_v41, %v4223_v3  ;;  %v4141_v22 = vsel %vm707_vm5, %v4112_v52, %v4140_v53  ;;  %v4121_v41 = vrot.slane %v4102_v49, 4 }
 0x401   : > { %4243 = vst [vmem:[#allocation3 + $0x3e0] sm:$0xff] %v4224_v19 }
 0x402   : > { %4160 = vst [vmem:[#allocation3 + $0x3a0] sm:$0xff] %v4141_v22  ;;  %4599 = vrot.lane.b32.xlu1 %v13242_v44, %s16612_s25  ;;  %3813 = vrot.lane.b32.xlu0 %v13253_v31, %s16526_s17 }
 0x403   : > { %4601 = vrot.lane.b32.xlu2 %v13275_v35, %s16612_s25 }
 0x404   : > { %v3579_v24 = vpop.permute.xlu1 %3578  ;;  %v4859_v5 = vpop.permute.xlu0 %4858 }
 0x405   : > { %v3593_v46 = vrot.slane %v3579_v24, 4  ;;  %v3486_v11 = vpop.permute.xlu2 %3485  ;;  %v4873_v27 = vrot.slane %v4859_v5, 4 }
 0x406   : > { %v3505_v1 = vrot.slane %v3486_v11, 4 }
 0x407   : > { %v3607_v16 = vsel %vm3089_vm1, %v3593_v46, %v16582_v40 }
 0x408   : > { %v3608_v61 = vsel %vm1400_vm14, %v3579_v24, %v3607_v16  ;;  %v11519_v20 = vld [vmem:[#allocation3 + $0x3dc] sm:$0xf0] }
 0x409   : > { %3627 = vst [vmem:[#allocation3 + $0x1e0] sm:$0xff] %v3608_v61  ;;  %v10280_v32 = vor.u32 %v11519_v20, %v10279_v45  ;;  %v11511_v21 = vld [vmem:[#allocation3 + $0x39c] sm:$0xf0] }
 0x40a   : > { %4611 = vrot.lane.b32.xlu1 %v13279_v51, %s16612_s25  ;;  %3823 = vrot.lane.b32.xlu0 %v13286_v42, %s16526_s17 }
 0x40b   : > { %3256 = vrot.lane.b32.xlu2 %v13225_v15, %s16592_s14  ;;  %6290 = vmatpush.bf16.msrb.mxu2 %v10280_v32 }
 0x40c   : > { %v13452_v35 = vpop.permute.xlu1 %4103  ;;  %v13454_v63 = vpop.permute.xlu0 %3487 }
 0x40d   : > { %v16555_v13 = vrot.slane %v13452_v35, 4  ;;  %v16567_v54 = vrot.slane %v13454_v63, 4  ;;  %v13458_v10 = vpop.permute.xlu2 %3497 }
 0x40e   : > { %v16564_v20 = vrot.slane %v13458_v10, 4 }
 0x40f   : > { %v4131_v50 = vsel %vm3089_vm1, %v4121_v41, %v16555_v13  ;;  %v3515_v9 = vsel %vm3089_vm1, %v3505_v1, %v16567_v54 }
 0x410   : > { %v4133_v48 = vsel %vm707_vm5, %v4102_v49, %v4131_v50  ;;  %v3517_v7 = vsel %vm16649_vm12, %v3486_v11, %v3515_v9  ;;  %v11455_v59 = vld [vmem:[#allocation3 + $0x1dc] sm:$0xf0] }
 0x411   : > { %4156 = vst [vmem:[#allocation3 + $0x380] sm:$0xff] %v4133_v48  ;;  %v10024_v6 = vor.u32 %v11455_v59, %v10023_v26 }
 0x412   : > { %3540 = vst [vmem:[#allocation3 + $0x180] sm:$0xff] %v3517_v7  ;;  %3264 = vrot.lane.b32.xlu1 %v13169_v18, %s16592_s14  ;;  %4526 = vrot.lane.b32.xlu0 %v13261_v2, %s16610_s29 }
 0x413   : > { %3266 = vrot.lane.b32.xlu2 %v13251_v25, %s16592_s14  ;;  %6271 = vmatpush.bf16.msrb.mxu0 %v10024_v6 }
 0x414   : > { %v4849_v12 = vpop.permute.xlu1 %4848  ;;  %v4027_v47 = vpop.permute.xlu0 %4026 }
 0x415   : > { %v4868_v17 = vrot.slane %v4849_v12, 4  ;;  %v4035_v56 = vpop.permute.xlu2 %4034  ;;  %v4042_v59 = vrot.slane %v4027_v47, 4 }
 0x416   : > { %v4046_v3 = vrot.slane %v4035_v56, 4 }
 0x417   : > { %v4878_v28 = vsel %vm3089_vm1, %v4868_v17, %v16586_v34 }
 0x418   : > { %v4880_v29 = vsel %vm4879_vm7, %v4849_v12, %v4878_v28  ;;  %v10247_v30 = vld [vmem:[#allocation3 + $0x380] sm:$0xf] }
 0x419   : > { %4903 = vst [vmem:[#allocation3 + $0x5c0] sm:$0xff] %v4880_v29  ;;  %v10248_v49 = vor.u32 %v11511_v21, %v10247_v30 }
 0x41a   : > { %3815 = vrot.lane.b32.xlu1 %v13281_v62, %s16526_s17  ;;  %3187 = vrot.lane.b32.xlu0 %v13242_v44, %s16791_s23 }
 0x41b   : > { %3821 = vrot.lane.b32.xlu2 %v13261_v2, %s16526_s17  ;;  %6291 = vmatpush.bf16.msrb.mxu2 %v10248_v49  ;;  %v9991_v49 = vld [vmem:[#allocation3 + $0x180] sm:$0xf]  ;;  %s16792_s17 = smov 126  }
 0x41c   : > { %v13485_v52 = vpop.permute.xlu1 %4860  ;;  %v13487_v58 = vpop.permute.xlu0 %4036 }
 0x41d   : > { %v16565_v53 = vrot.slane %v13485_v52, 4  ;;  %v16561_v19 = vrot.slane %v13487_v58, 4  ;;  %v13491_v22 = vpop.permute.xlu2 %4767 }
 0x41f   : > { %v4887_v24 = vsel %vm3089_vm1, %v4873_v27, %v16565_v53  ;;  %v4058_v46 = vsel %vm3089_vm1, %v4046_v3, %v16561_v19 }
 0x420   : > { %v4888_v11 = vsel %vm4879_vm7, %v4859_v5, %v4887_v24  ;;  %v4059_v16 = vsel %vm4051_vm8, %v4035_v56, %v4058_v46  ;;  %v10535_v50 = vld [vmem:[#allocation3 + $0x5c0] sm:$0xf]  ;;  %v16568_v46 = vrot.slane %v13491_v22, 4 }
 0x421   : > { %4907 = vst [vmem:[#allocation3 + $0x5e0] sm:$0xff] %v4888_v11 }
 0x422   : > { %4077 = vst [vmem:[#allocation3 + $0x360] sm:$0xff] %v4059_v16  ;;  %4516 = vrot.lane.b32.xlu1 %v13253_v31, %s16610_s29  ;;  %3734 = vrot.lane.b32.xlu0 %v13225_v15, %s16528_s27 }
 0x423   : > { %4518 = vrot.lane.b32.xlu2 %v13281_v62, %s16610_s29 }
 0x424   : > { %v3496_v61 = vpop.permute.xlu1 %3495  ;;  %v4776_v45 = vpop.permute.xlu0 %4775 }
 0x425   : > { %v3510_v32 = vrot.slane %v3496_v61, 4  ;;  %v3403_v5 = vpop.permute.xlu2 %3402 }
 0x426   : > { %v3422_v6 = vrot.slane %v3403_v5, 4 }
 0x427   : > { %v3524_v41 = vsel %vm3089_vm1, %v3510_v32, %v16564_v20 }
 0x428   : > { %v3525_v1 = vsel %vm16649_vm12, %v3496_v61, %v3524_v41  ;;  %v11583_v9 = vld [vmem:[#allocation3 + $0x5dc] sm:$0xf0] }
 0x429   : > { %3544 = vst [vmem:[#allocation3 + $0x1a0] sm:$0xff] %v3525_v1  ;;  %v10536_v48 = vor.u32 %v11583_v9, %v10535_v50  ;;  %v11503_v41 = vld [vmem:[#allocation3 + $0x35c] sm:$0xf0] }
 0x42a   : > { %4528 = vrot.lane.b32.xlu1 %v13286_v42, %s16610_s29  ;;  %3746 = vrot.lane.b32.xlu0 %v13251_v25, %s16528_s27 }
 0x42b   : > { %3185 = vrot.lane.b32.xlu2 %v13225_v15, %s16791_s23  ;;  %6309 = vmatpush.bf16.msra.mxu3 %v10536_v48  ;;  %v4790_v48 = vrot.slane %v4776_v45, 4 }
 0x42c   : > { %v13518_v7 = vpop.permute.xlu1 %4028  ;;  %v13520_v26 = vpop.permute.xlu0 %3404 }
 0x42d   : > { %v16542_v12 = vrot.slane %v13518_v7, 4  ;;  %v16553_v17 = vrot.slane %v13520_v26, 4  ;;  %v13524_v56 = vpop.permute.xlu2 %3414 }
 0x42f   : > { %v4050_v28 = vsel %vm3089_vm1, %v4042_v59, %v16542_v12  ;;  %v3432_v29 = vsel %vm3089_vm1, %v3422_v6, %v16553_v17 }
 0x430   : > { %v4052_v30 = vsel %vm4051_vm8, %v4027_v47, %v4050_v28  ;;  %v3434_v21 = vsel %vm16662_vm10, %v3403_v5, %v3432_v29  ;;  %v11447_v27 = vld [vmem:[#allocation3 + $0x19c] sm:$0xf0] }
 0x431   : > { %4073 = vst [vmem:[#allocation3 + $0x340] sm:$0xff] %v4052_v30  ;;  %v9992_v3 = vor.u32 %v11447_v27, %v9991_v49 }
 0x432   : > { %3457 = vst [vmem:[#allocation3 + $0x140] sm:$0xff] %v3434_v21  ;;  %3193 = vrot.lane.b32.xlu1 %v13169_v18, %s16791_s23  ;;  %4443 = vrot.lane.b32.xlu0 %v13261_v2, %s16530_s12 }
 0x433   : > { %3195 = vrot.lane.b32.xlu2 %v13251_v25, %s16791_s23  ;;  %6272 = vmatpush.bf16.msrb.mxu0 %v9992_v3  ;;  %v16551_v3 = vrot.slane %v13524_v56, 4 }
 0x434   : > { %v4766_v24 = vpop.permute.xlu1 %4765  ;;  %v3956_v47 = vpop.permute.xlu0 %3955 }
 0x435   : > { %v4785_v11 = vrot.slane %v4766_v24, 4  ;;  %v3964_v16 = vpop.permute.xlu2 %3963 }
 0x436   : > { %v3975_v59 = vrot.slane %v3964_v16, 4 }
 0x437   : > { %v4795_v61 = vsel %vm3089_vm1, %v4785_v11, %v16568_v46 }
 0x438   : > { %v4797_v32 = vsel %vm4796_vm11, %v4766_v24, %v4795_v61  ;;  %v10215_v5 = vld [vmem:[#allocation3 + $0x340] sm:$0xf] }
 0x439   : > { %4820 = vst [vmem:[#allocation3 + $0x580] sm:$0xff] %v4797_v32  ;;  %v10216_v1 = vor.u32 %v11503_v41, %v10215_v5 }
 0x43a   : > { %3736 = vrot.lane.b32.xlu1 %v13242_v44, %s16528_s27  ;;  %3115 = vrot.lane.b32.xlu0 %v13242_v44, %s16792_s17 }
 0x43b   : > { %3744 = vrot.lane.b32.xlu2 %v13169_v18, %s16528_s27  ;;  %6292 = vmatpush.bf16.msrb.mxu2 %v10216_v1  ;;  %s16534_s27 = smov 42  }
 0x43c   : > { %v13551_v50 = vpop.permute.xlu1 %4777  ;;  %v13553_v9 = vpop.permute.xlu0 %3965 }
 0x43d   : > { %v16552_v6 = vrot.slane %v13551_v50, 4  ;;  %v16549_v28 = vrot.slane %v13553_v9, 4  ;;  %v13557_v29 = vpop.permute.xlu2 %4684 }
 0x43f   : > { %v4804_v44 = vsel %vm3089_vm1, %v4790_v48, %v16552_v6  ;;  %v3987_v18 = vsel %vm3089_vm1, %v3975_v59, %v16549_v28  ;;  %v3971_v48 = vrot.slane %v3956_v47, 4 }
 0x440   : > { %v4805_v30 = vsel %vm4796_vm11, %v4776_v45, %v4804_v44  ;;  %v3988_v21 = vsel %vm16538_vm3, %v3964_v16, %v3987_v18  ;;  %v10503_v61 = vld [vmem:[#allocation3 + $0x580] sm:$0xf] }
 0x441   : > { %4824 = vst [vmem:[#allocation3 + $0x5a0] sm:$0xff] %v4805_v30 }
 0x442   : > { %4006 = vst [vmem:[#allocation3 + $0x320] sm:$0xff] %v3988_v21  ;;  %4433 = vrot.lane.b32.xlu1 %v13253_v31, %s16530_s12  ;;  %3651 = vrot.lane.b32.xlu0 %v13225_v15, %s16534_s27 }
 0x443   : > { %4435 = vrot.lane.b32.xlu2 %v13281_v62, %s16530_s12 }
 0x444   : > { %v3413_v49 = vpop.permute.xlu1 %3412  ;;  %v13573_v27 = vpop.permute.xlu0 %4692 }
 0x445   : > { %v3427_v45 = vrot.slane %v3413_v49, 4  ;;  %v3328_v24 = vpop.permute.xlu2 %3327 }
 0x446   : > { %v3343_v59 = vrot.slane %v3328_v24, 4 }
 0x447   : > { %v3441_v11 = vsel %vm3089_vm1, %v3427_v45, %v16551_v3 }
 0x448   : > { %v3442_v16 = vsel %vm16662_vm10, %v3413_v49, %v3441_v11  ;;  %v11575_v32 = vld [vmem:[#allocation3 + $0x59c] sm:$0xf0] }
 0x449   : > { %3461 = vst [vmem:[#allocation3 + $0x160] sm:$0xff] %v3442_v16  ;;  %v10504_v5 = vor.u32 %v11575_v32, %v10503_v61  ;;  %v9959_v11 = vld [vmem:[#allocation3 + $0x140] sm:$0xf] }
 0x44a   : > { %4445 = vrot.lane.b32.xlu1 %v13286_v42, %s16530_s12  ;;  %3663 = vrot.lane.b32.xlu0 %v13251_v25, %s16534_s27  ;;  %s16683_s12 = smov 12  }
 0x44b   : > { %3113 = vrot.lane.b32.xlu2 %v13225_v15, %s16792_s17  ;;  %6310 = vmatpush.bf16.msra.mxu3 %v10504_v5 }
 0x44c   : > { %v13586_v41 = vpop.permute.xlu1 %3957  ;;  %v13588_v1 = vpop.permute.xlu0 %3329 }
 0x44d   : > { %v16536_v44 = vrot.slane %v13586_v41, 4  ;;  %v16541_v18 = vrot.slane %v13588_v1, 4  ;;  %v13592_v30 = vpop.permute.xlu2 %3337 }
 0x44f   : > { %v3979_v21 = vsel %vm3089_vm1, %v3971_v48, %v16536_v44  ;;  %v3351_v15 = vsel %vm3089_vm1, %v3343_v59, %v16541_v18 }
 0x450   : > { %v3981_v49 = vsel %vm16538_vm3, %v3956_v47, %v3979_v21  ;;  %v3353_v45 = vsel %vm16661_vm13, %v3328_v24, %v3351_v15  ;;  %v11439_v16 = vld [vmem:[#allocation3 + $0x15c] sm:$0xf0]  ;;  %v16554_v24 = vrot.slane %v13557_v29, 4  ;;  %vm16558_vm3 = vcmask 998400  }
 0x451   : > { %4002 = vst [vmem:[#allocation3 + $0x300] sm:$0xff] %v3981_v49  ;;  %v9960_v61 = vor.u32 %v11439_v16, %v9959_v11  ;;  %v11495_v49 = vld [vmem:[#allocation3 + $0x31c] sm:$0xf0] }
 0x452   : > { %3374 = vst [vmem:[#allocation3 + $0x100] sm:$0xff] %v3353_v45  ;;  %3121 = vrot.lane.b32.xlu1 %v13198_v38, %s16792_s17  ;;  %4360 = vrot.lane.b32.xlu0 %v13261_v2, %s16683_s12  ;;  %v3632_v45 = vld [vmem:[#allocation4 + $0x8] sm:$0xff] }
 0x453   : > { %3123 = vrot.lane.b32.xlu2 %v13251_v25, %s16792_s17  ;;  %6273 = vmatpush.bf16.msrb.mxu0 %v9960_v61  ;;  %v4707_v61 = vrot.slane %v13573_v27, 4 }
 0x454   : > { %v4683_v32 = vpop.permute.xlu1 %4682  ;;  %v3885_v47 = vpop.permute.xlu0 %3884 }
 0x455   : > { %v4702_v5 = vrot.slane %v4683_v32, 4  ;;  %v3893_v48 = vpop.permute.xlu2 %3892 }
 0x457   : > { %v4712_v59 = vsel %vm3089_vm1, %v4702_v5, %v16554_v24  ;;  %v13747_v24 = vld [vmem:[#allocation4 + $0x18] sm:$0xff] }
 0x458   : > { %v4714_v21 = vsel %vm4713_vm2, %v4683_v32, %v4712_v59  ;;  %v10183_v15 = vld [vmem:[#allocation3 + $0x300] sm:$0xf]  ;;  %v3904_v32 = vrot.slane %v3893_v48, 4 }
 0x459   : > { %4737 = vst [vmem:[#allocation3 + $0x540] sm:$0xff] %v4714_v21  ;;  %v10184_v11 = vor.u32 %v11495_v49, %v10183_v15 }
 0x45a   : > { %3653 = vrot.lane.b32.xlu1 %v3632_v45, %s16534_s27  ;;  %4269 = vrot.lane.b32.xlu0 %v13281_v62, %s16679_s15 }
 0x45b   : > { %3661 = vrot.lane.b32.xlu2 %v13198_v38, %s16534_s27  ;;  %6293 = vmatpush.bf16.msrb.mxu2 %v10184_v11  ;;  %s16681_s27 = smov 56  }
 0x45c   : > { %v13618_v25 = vpop.permute.xlu1 %4694  ;;  %v13620_v16 = vpop.permute.xlu0 %3894 }
 0x45d   : > { %v16540_v5 = vrot.slane %v13618_v25, 4  ;;  %v16537_v59 = vrot.slane %v13620_v16, 4  ;;  %v13625_v21 = vpop.permute.xlu2 %4601 }
 0x45f   : > { %v4721_v15 = vsel %vm3089_vm1, %v4707_v61, %v16540_v5  ;;  %v3916_v38 = vsel %vm3089_vm1, %v3904_v32, %v16537_v59  ;;  %v16539_v32 = vrot.slane %v13592_v30, 4  ;;  %v9927_v5 = vld [vmem:[#allocation3 + $0x100] sm:$0xf] }
 0x460   : > { %v4722_v49 = vsel %vm4713_vm2, %v13573_v27, %v4721_v15  ;;  %v3917_v11 = vsel %vm16543_vm6, %v3893_v48, %v3916_v38  ;;  %v10471_v38 = vld [vmem:[#allocation3 + $0x540] sm:$0xf] }
 0x461   : > { %4741 = vst [vmem:[#allocation3 + $0x560] sm:$0xff] %v4722_v49 }
 0x462   : > { %3935 = vst [vmem:[#allocation3 + $0x2e0] sm:$0xff] %v3917_v11  ;;  %4350 = vrot.lane.b32.xlu1 %v13253_v31, %s16683_s12  ;;  %4931 = vrot.lane.b32.xlu0 %v3632_v45, %s16681_s27  ;;  %v3900_v11 = vrot.slane %v3885_v47, 4 }
 0x463   : > { %4352 = vrot.lane.b32.xlu2 %v13281_v62, %s16683_s12 }
 0x464   : > { %v3336_v61 = vpop.permute.xlu1 %3335  ;;  %v13641_v44 = vpop.permute.xlu0 %4609 }
 0x465   : > { %v3347_v59 = vrot.slane %v3336_v61, 4  ;;  %v3257_v27 = vpop.permute.xlu2 %3256 }
 0x467   : > { %v3359_v48 = vsel %vm3089_vm1, %v3347_v59, %v16539_v32 }
 0x468   : > { %v3360_v15 = vsel %vm16661_vm13, %v3336_v61, %v3359_v48  ;;  %v11567_v49 = vld [vmem:[#allocation3 + $0x55c] sm:$0xf0]  ;;  %v3272_v61 = vrot.slane %v3257_v27, 4 }
 0x469   : > { %3378 = vst [vmem:[#allocation3 + $0x120] sm:$0xff] %v3360_v15  ;;  %v10472_v45 = vor.u32 %v11567_v49, %v10471_v38 }
 0x46a   : > { %4362 = vrot.lane.b32.xlu1 %v13286_v42, %s16683_s12  ;;  %4943 = vrot.lane.b32.xlu0 %v13279_v51, %s16681_s27 }
 0x46b   : > { %4267 = vrot.lane.b32.xlu2 %v13253_v31, %s16679_s15  ;;  %6311 = vmatpush.bf16.msra.mxu3 %v10472_v45 }
 0x46c   : > { %v13654_v62 = vpop.permute.xlu1 %3886  ;;  %v13656_v59 = vpop.permute.xlu0 %3258 }
 0x46d   : > { %v16544_v48 = vrot.slane %v13654_v62, 4  ;;  %v16545_v15 = vrot.slane %v13656_v59, 4  ;;  %v13660_v38 = vpop.permute.xlu2 %3266 }
 0x46f   : > { %v3908_v49 = vsel %vm3089_vm1, %v3900_v11, %v16544_v48  ;;  %v3280_v31 = vsel %vm3089_vm1, %v3272_v61, %v16545_v15  ;;  %v13706_v15 = vld [vmem:[#allocation4 + $0x14] sm:$0xff] }
 0x470   : > { %v3910_v45 = vsel %vm16543_vm6, %v3885_v47, %v3908_v49  ;;  %v3282_v32 = vsel %vm16558_vm3, %v3257_v27, %v3280_v31  ;;  %v11431_v18 = vld [vmem:[#allocation3 + $0x11c] sm:$0xf0]  ;;  %v16548_v47 = vrot.slane %v13625_v21, 4  ;;  %vm4630_vm6 = vcmask 523264   ;;  %v13681_v31 = vld [vmem:[#allocation4 + $0x10] sm:$0xff] }
 0x471   : > { %3931 = vst [vmem:[#allocation3 + $0x2c0] sm:$0xff] %v3910_v45  ;;  %v9928_v12 = vor.u32 %v11431_v18, %v9927_v5 }
 0x472   : > { %3303 = vst [vmem:[#allocation3 + $0xc0] sm:$0xff] %v3282_v32  ;;  %4277 = vrot.lane.b32.xlu1 %v13261_v2, %s16679_s15  ;;  %4852 = vrot.lane.b32.xlu0 %v13315_v33, %s16668_s16  ;;  %v11487_v32 = vld [vmem:[#allocation3 + $0x2dc] sm:$0xf0] }
 0x473   : > { %4279 = vrot.lane.b32.xlu2 %v13286_v42, %s16679_s15  ;;  %6274 = vmatpush.bf16.msrb.mxu0 %v9928_v12  ;;  %v4916_v12 = vld [vmem:[#allocation4 + $0x34] sm:$0xff] }
 0x474   : > { %v4600_v11 = vpop.permute.xlu1 %4599  ;;  %v3814_v61 = vpop.permute.xlu0 %3813 }
 0x475   : > { %v4619_v27 = vrot.slane %v4600_v11, 4  ;;  %v3822_v49 = vpop.permute.xlu2 %3821 }
 0x477   : > { %v4629_v18 = vsel %vm3089_vm1, %v4619_v27, %v16548_v47 }
 0x478   : > { %v4631_v2 = vsel %vm4630_vm6, %v4600_v11, %v4629_v18  ;;  %v10151_v5 = vld [vmem:[#allocation3 + $0x2c0] sm:$0xf]  ;;  %v4624_v11 = vrot.slane %v13641_v44, 4  ;;  %v3833_v18 = vrot.slane %v3822_v49, 4 }
 0x479   : > { %4654 = vst [vmem:[#allocation3 + $0x500] sm:$0xff] %v4631_v2  ;;  %v10152_v42 = vor.u32 %v11487_v32, %v10151_v5  ;;  %v9895_v6 = vld [vmem:[#allocation3 + $0xc0] sm:$0xf] }
 0x47a   : > { %4933 = vrot.lane.b32.xlu1 %v13681_v31, %s16681_s27  ;;  %3582 = vrot.lane.b32.xlu0 %v13279_v51, %s16659_s28 }
 0x47b   : > { %4941 = vrot.lane.b32.xlu2 %v4916_v12, %s16681_s27  ;;  %6294 = vmatpush.bf16.msrb.mxu2 %v10152_v42 }
 0x47c   : > { %v13688_v45 = vpop.permute.xlu1 %4611  ;;  %v13690_v27 = vpop.permute.xlu0 %3823 }
 0x47d   : > { %v16547_v2 = vrot.slane %v13688_v45, 4  ;;  %v16546_v5 = vrot.slane %v13690_v27, 4  ;;  %v13695_v32 = vpop.permute.xlu2 %4518 }
 0x47f   : > { %v4638_v51 = vsel %vm3089_vm1, %v4624_v11, %v16547_v2  ;;  %v3845_v42 = vsel %vm3089_vm1, %v3833_v18, %v16546_v5  ;;  %v13712_v11 = vld [vmem:[#allocation4 + $0x40] sm:$0xff] }
 0x480   : > { %v4639_v12 = vsel %vm4630_vm6, %v13641_v44, %v4638_v51  ;;  %v3846_v48 = vsel %vm16556_vm9, %v3822_v49, %v3845_v42  ;;  %v16550_v44 = vrot.slane %v13660_v38, 4  ;;  %v13723_v2 = vld [vmem:[#allocation4 + $0x3c] sm:$0xff] }
 0x481   : > { %4658 = vst [vmem:[#allocation3 + $0x520] sm:$0xff] %v4639_v12  ;;  %v10439_v12 = vld [vmem:[#allocation3 + $0x500] sm:$0xf] }
 0x482   : > { %3864 = vst [vmem:[#allocation3 + $0x2a0] sm:$0xff] %v3846_v48  ;;  %4188 = vrot.lane.b32.xlu1 %v13706_v15, %s16655_s20  ;;  %4769 = vrot.lane.b32.xlu0 %v13315_v33, %s16657_s11 }
 0x483   : > { %4198 = vrot.lane.b32.xlu2 %v13712_v11, %s16655_s20 }
 0x484   : > { %v3265_v18 = vpop.permute.xlu1 %3264  ;;  %v13716_v5 = vpop.permute.xlu0 %4526 }
 0x485   : > { %v3276_v49 = vrot.slane %v3265_v18, 4  ;;  %v3186_v51 = vpop.permute.xlu2 %3185 }
 0x487   : > { %v3288_v48 = vsel %vm3089_vm1, %v3276_v49, %v16550_v44 }
 0x488   : > { %v3289_v42 = vsel %vm16558_vm3, %v3265_v18, %v3288_v48  ;;  %v11559_v33 = vld [vmem:[#allocation3 + $0x51c] sm:$0xf0]  ;;  %v3829_v18 = vrot.slane %v3814_v61, 4  ;;  %v3201_v48 = vrot.slane %v3186_v51, 4  ;;  %vm16571_vm3 = vcmask 326656  }
 0x489   : > { %3307 = vst [vmem:[#allocation3 + $0xe0] sm:$0xff] %v3289_v42  ;;  %v10440_v47 = vor.u32 %v11559_v33, %v10439_v12 }
 0x48a   : > { %4862 = vrot.lane.b32.xlu1 %v13325_v23, %s16668_s16  ;;  %3499 = vrot.lane.b32.xlu0 %v13723_v2, %s16666_s26 }
 0x48b   : > { %3572 = vrot.lane.b32.xlu2 %v13681_v31, %s16659_s28  ;;  %6312 = vmatpush.bf16.msra.mxu3 %v10440_v47 }
 0x48c   : > { %v13731_v28 = vpop.permute.xlu1 %3815  ;;  %v13733_v49 = vpop.permute.xlu0 %3187 }
 0x48d   : > { %16793 = vst [vmem:[#allocation8_spill] sm:$0xff] %v13731_v28  ;;  %v16557_v42 = vrot.slane %v13731_v28, 4  ;;  %v16559_v12 = vrot.slane %v13733_v49, 4  ;;  %v13737_v33 = vpop.permute.xlu2 %3195  ;;  %v11443_v28 = vld [vmem:[#allocation3 + $0x184] sm:$0xf] }
 0x48e   : > { %16794 = vst [vmem:[#allocation9_spill] sm:$0xff] %v13737_v33 }
 0x48f   : > { %v3837_v23 = vsel %vm3089_vm1, %v3829_v18, %v16557_v42  ;;  %v3209_v47 = vsel %vm3089_vm1, %v3201_v48, %v16559_v12 }
 0x490   : > { %v3839_v44 = vsel %vm16556_vm9, %v3814_v61, %v3837_v23  ;;  %v3211_v3 = vsel %vm16581_vm4, %v3186_v51, %v3209_v47  ;;  %v11423_v17 = vld [vmem:[#allocation3 + $0xdc] sm:$0xf0]  ;;  %v16560_v51 = vrot.slane %v13695_v32, 4  ;;  %vm16795_vm9 = vcmask 64512   ;;  %v13760_v47 = vld [vmem:[#allocation4 + $0x44] sm:$0xff] }
 0x491   : > { %3860 = vst [vmem:[#allocation3 + $0x280] sm:$0xff] %v3839_v44  ;;  %v9896_v13 = vor.u32 %v11423_v17, %v9895_v6  ;;  %v11479_v23 = vld [vmem:[#allocation3 + $0x29c] sm:$0xf0] }
 0x492   : > { %3232 = vst [vmem:[#allocation3 + $0x80] sm:$0xff] %v3211_v3  ;;  %4105 = vrot.lane.b32.xlu1 %v13706_v15, %s16628_s19  ;;  %4686 = vrot.lane.b32.xlu0 %v13747_v24, %s16626_s21 }
 0x493   : > { %4115 = vrot.lane.b32.xlu2 %v13712_v11, %s16628_s19  ;;  %6275 = vmatpush.bf16.msrb.mxu0 %v9896_v13  ;;  %s16830_s19 = smov 88  }
 0x494   : > { %v4517_v61 = vpop.permute.xlu1 %4516  ;;  %v3735_v18 = vpop.permute.xlu0 %3734 }
 0x495   : > { %v4536_v48 = vrot.slane %v4517_v61, 4  ;;  %v3745_v44 = vpop.permute.xlu2 %3744 }
 0x497   : > { %v4546_v17 = vsel %vm3089_vm1, %v4536_v48, %v16560_v51  ;;  %v4541_v48 = vrot.slane %v13716_v5, 4 }
 0x498   : > { %v4548_v6 = vsel %vm16795_vm9, %v4517_v61, %v4546_v17  ;;  %v10119_v3 = vld [vmem:[#allocation3 + $0x280] sm:$0xf]  ;;  %v3759_v17 = vrot.slane %v3745_v44, 4 }
 0x499   : > { %4571 = vst [vmem:[#allocation3 + $0x4c0] sm:$0xff] %v4548_v6  ;;  %v10120_v42 = vor.u32 %v11479_v23, %v10119_v3  ;;  %v9863_v46 = vld [vmem:[#allocation3 + $0x80] sm:$0xf] }
 0x49a   : > { %4779 = vrot.lane.b32.xlu1 %v13760_v47, %s16657_s11  ;;  %3416 = vrot.lane.b32.xlu0 %v13723_v2, %s16616_s24 }
 0x49b   : > { %3489 = vrot.lane.b32.xlu2 %v13681_v31, %s16666_s26  ;;  %6295 = vmatpush.bf16.msrb.mxu2 %v10120_v42 }
 0x49c   : > { %v13768_v13 = vpop.permute.xlu1 %4528  ;;  %v13770_v61 = vpop.permute.xlu0 %3746 }
 0x49d   : > { %16796 = vst [vmem:[#allocation10_spill] sm:$0xff] %v13770_v61  ;;  %v16562_v6 = vrot.slane %v13768_v13, 4  ;;  %v16563_v3 = vrot.slane %v13770_v61, 4  ;;  %v13775_v23 = vpop.permute.xlu2 %4435 }
 0x49f   : > { %v4555_v12 = vsel %vm3089_vm1, %v4541_v48, %v16562_v6  ;;  %v3773_v42 = vsel %vm3089_vm1, %v3759_v17, %v16563_v3  ;;  %v16566_v17 = vrot.slane %v13737_v33, 4 }
 0x4a0   : > { %v4556_v51 = vsel %vm16795_vm9, %v13716_v5, %v4555_v12  ;;  %v3774_v19 = vsel %vm16571_vm3, %v3745_v44, %v3773_v42  ;;  %v10407_v12 = vld [vmem:[#allocation3 + $0x4c0] sm:$0xf]  ;;  %vm16800_vm9 = vcmask 1031168  }
 0x4a1   : > { %4575 = vst [vmem:[#allocation3 + $0x4e0] sm:$0xff] %v4556_v51 }
 0x4a2   : > { %3793 = vst [vmem:[#allocation3 + $0x260] sm:$0xff] %v3774_v19  ;;  %4030 = vrot.lane.b32.xlu1 %v13706_v15, %s16614_s18  ;;  %4603 = vrot.lane.b32.xlu0 %v13747_v24, %s16612_s25 }
 0x4a3   : > { %4038 = vrot.lane.b32.xlu2 %v13712_v11, %s16614_s18  ;;  %s16836_s18 = smov 48  }
 0x4a4   : > { %v3194_v48 = vpop.permute.xlu1 %3193  ;;  %v4444_v6 = vpop.permute.xlu0 %4443 }
 0x4a5   : > { %v3205_v3 = vrot.slane %v3194_v48, 4  ;;  %v3114_v20 = vpop.permute.xlu2 %3113 }
 0x4a7   : > { %v3217_v5 = vsel %vm3089_vm1, %v3205_v3, %v16566_v17  ;;  %v3754_v3 = vrot.slane %v3735_v18, 4 }
 0x4a8   : > { %v3218_v19 = vsel %vm16581_vm4, %v3194_v48, %v3217_v5  ;;  %v11551_v51 = vld [vmem:[#allocation3 + $0x4dc] sm:$0xf0]  ;;  %v3129_v48 = vrot.slane %v3114_v20, 4  ;;  %vm16806_vm4 = vcmask 1031168  }
 0x4a9   : > { %3236 = vst [vmem:[#allocation3 + $0xa0] sm:$0xff] %v3218_v19  ;;  %v10408_v44 = vor.u32 %v11551_v51, %v10407_v12 }
 0x4aa   : > { %4696 = vrot.lane.b32.xlu1 %v13760_v47, %s16626_s21  ;;  %3339 = vrot.lane.b32.xlu0 %v13723_v2, %s16577_s22  ;;  %s16831_s21 = smov 62  }
 0x4ab   : > { %3406 = vrot.lane.b32.xlu2 %v13681_v31, %s16616_s24  ;;  %6313 = vmatpush.bf16.msra.mxu3 %v10408_v44  ;;  %s16811_s24 = smov 40  }
 0x4ac   : > { %v13803_v42 = vpop.permute.xlu1 %3736  ;;  %v13805_v53 = vpop.permute.xlu0 %3115 }
 0x4ad   : > { %16797 = vst [vmem:[#allocation11_spill] sm:$0xff] %v13803_v42  ;;  %v16573_v5 = vrot.slane %v13803_v42, 4  ;;  %v16572_v19 = vrot.slane %v13805_v53, 4  ;;  %v13809_v12 = vpop.permute.xlu2 %3123 }
 0x4ae   : > { %16798 = vst [vmem:[#allocation12_spill] sm:$0xff] %v13805_v53  ;;  %v10281_v53 = vld [vmem:[#allocation3 + $0x3e0] sm:$0xf0] }
 0x4af   : > { %16799 = vst [vmem:[#allocation13_spill] sm:$0xff] %v13809_v12  ;;  %v3764_v51 = vsel %vm3089_vm1, %v3754_v3, %v16573_v5  ;;  %v3138_v44 = vsel %vm3089_vm1, %v3129_v48, %v16572_v19 }
 0x4b0   : > { %v3766_v17 = vsel %vm16571_vm3, %v3735_v18, %v3764_v51  ;;  %v3140_v54 = vsel %vm16800_vm9, %v3114_v20, %v3138_v44  ;;  %v11415_v43 = vld [vmem:[#allocation3 + $0x9c] sm:$0xf0]  ;;  %v16574_v18 = vrot.slane %v13775_v23, 4  ;;  %vm16583_vm9 = vcmask 80896  }
 0x4b1   : > { %3789 = vst [vmem:[#allocation3 + $0x240] sm:$0xff] %v3766_v17  ;;  %v9864_v39 = vor.u32 %v11415_v43, %v9863_v46  ;;  %v11471_v17 = vld [vmem:[#allocation3 + $0x25c] sm:$0xf0]  ;;  %vm16618_vm3 = vcmask 343040  }
 0x4b2   : > { %3161 = vst [vmem:[#allocation3 + $0x40] sm:$0xff] %v3140_v54  ;;  %3959 = vrot.lane.b32.xlu1 %v13706_v15, %s16575_s13  ;;  %4520 = vrot.lane.b32.xlu0 %v13706_v15, %s16610_s29 }
 0x4b3   : > { %3967 = vrot.lane.b32.xlu2 %v13712_v11, %s16575_s13  ;;  %6276 = vmatpush.bf16.msrb.mxu0 %v9864_v39  ;;  %s16804_s13 = smov 94  }
 0x4b4   : > { %v4434_v3 = vpop.permute.xlu1 %4433  ;;  %v3652_v48 = vpop.permute.xlu0 %3651 }
 0x4b5   : > { %v4453_v20 = vrot.slane %v4434_v3, 4  ;;  %v3662_v51 = vpop.permute.xlu2 %3661 }
 0x4b7   : > { %v4463_v43 = vsel %vm3089_vm1, %v4453_v20, %v16574_v18 }
 0x4b8   : > { %v4465_v54 = vsel %vm16583_vm9, %v4434_v3, %v4463_v43  ;;  %v10087_v46 = vld [vmem:[#allocation3 + $0x240] sm:$0xf]  ;;  %v4458_v3 = vrot.slane %v4444_v6, 4  ;;  %v3676_v43 = vrot.slane %v3662_v51, 4 }
 0x4b9   : > { %4488 = vst [vmem:[#allocation3 + $0x480] sm:$0xff] %v4465_v54  ;;  %v10088_v44 = vor.u32 %v11471_v17, %v10087_v46  ;;  %v9831_v8 = vld [vmem:[#allocation3 + $0x40] sm:$0xf] }
 0x4ba   : > { %4613 = vrot.lane.b32.xlu1 %v13760_v47, %s16612_s25  ;;  %3268 = vrot.lane.b32.xlu0 %v13723_v2, %s16592_s14  ;;  %s16864_s25 = smov 122  }
 0x4bb   : > { %3331 = vrot.lane.b32.xlu2 %v13681_v31, %s16577_s22  ;;  %6296 = vmatpush.bf16.msrb.mxu2 %v10088_v44  ;;  %s16805_s22 = smov 10  }
 0x4bc   : > { %v13836_v39 = vpop.permute.xlu1 %4445  ;;  %v13838_v20 = vpop.permute.xlu0 %3663 }
 0x4bd   : > { %16801 = vst [vmem:[#allocation14_spill] sm:$0xff] %v13836_v39  ;;  %v16579_v54 = vrot.slane %v13836_v39, 4  ;;  %v16580_v46 = vrot.slane %v13838_v20, 4  ;;  %v13842_v17 = vpop.permute.xlu2 %4352  ;;  %v11515_v39 = vld [vmem:[#allocation3 + $0x3c4] sm:$0xf] }
 0x4be   : > { %16802 = vst [vmem:[#allocation15_spill] sm:$0xff] %v13838_v20 }
 0x4bf   : > { %16803 = vst [vmem:[#allocation16_spill] sm:$0xff] %v13842_v17  ;;  %v4472_v19 = vsel %vm3089_vm1, %v4458_v3, %v16579_v54  ;;  %v3690_v44 = vsel %vm3089_vm1, %v3676_v43, %v16580_v46  ;;  %v16584_v43 = vrot.slane %v13809_v12, 4 }
 0x4c0   : > { %v4473_v5 = vsel %vm16583_vm9, %v4444_v6, %v4472_v19  ;;  %v3691_v18 = vsel %vm16618_vm3, %v3662_v51, %v3690_v44  ;;  %vm4298_vm9 = vcmask 113664  }
 0x4c1   : > { %4492 = vst [vmem:[#allocation3 + $0x4a0] sm:$0xff] %v4473_v5 }
 0x4c2   : > { %3710 = vst [vmem:[#allocation3 + $0x220] sm:$0xff] %v3691_v18  ;;  %3888 = vrot.lane.b32.xlu1 %v13706_v15, %s16804_s13  ;;  %4437 = vrot.lane.b32.xlu0 %v13706_v15, %s16805_s22  ;;  %v10375_v18 = vld [vmem:[#allocation3 + $0x480] sm:$0xf] }
 0x4c3   : > { %3896 = vrot.lane.b32.xlu2 %v13712_v11, %s16804_s13 }
 0x4c4   : > { %v3122_v3 = vpop.permute.xlu1 %3121  ;;  %v13858_v54 = vpop.permute.xlu0 %4360 }
 0x4c5   : > { %v3133_v46 = vrot.slane %v3122_v3, 4  ;;  %v4268_v6 = vpop.permute.xlu2 %4267 }
 0x4c7   : > { %v3146_v5 = vsel %vm3089_vm1, %v3133_v46, %v16584_v43 }
 0x4c8   : > { %v3147_v19 = vsel %vm16806_vm4, %v3122_v3, %v3146_v5  ;;  %v11543_v51 = vld [vmem:[#allocation3 + $0x49c] sm:$0xf0]  ;;  %v3671_v3 = vrot.slane %v3652_v48, 4  ;;  %v4287_v5 = vrot.slane %v4268_v6, 4  ;;  %vm4381_vm4 = vcmask 97280  }
 0x4c9   : > { %3165 = vst [vmem:[#allocation3 + $0x60] sm:$0xff] %v3147_v19  ;;  %v10376_v44 = vor.u32 %v11543_v51, %v10375_v18  ;;  %v11463_v42 = vld [vmem:[#allocation3 + $0x21c] sm:$0xf0] }
 0x4ca   : > { %4530 = vrot.lane.b32.xlu1 %v13712_v11, %s16610_s29  ;;  %3197 = vrot.lane.b32.xlu0 %v13723_v2, %s16791_s23  ;;  %s16812_s29 = smov 42  }
 0x4cb   : > { %3260 = vrot.lane.b32.xlu2 %v13681_v31, %s16592_s14  ;;  %6314 = vmatpush.bf16.msra.mxu3 %v10376_v44  ;;  %s16809_s14 = smov 96  }
 0x4cc   : > { %v13871_v40 = vpop.permute.xlu1 %3653  ;;  %v13873_v46 = vpop.permute.xlu0 %4269 }
 0x4cd   : > { %16807 = vst [vmem:[#allocation17_spill] sm:$0xff] %v13871_v40  ;;  %v16594_v19 = vrot.slane %v13871_v40, 4  ;;  %v16595_v18 = vrot.slane %v13873_v46, 4  ;;  %v13877_v51 = vpop.permute.xlu2 %4279 }
 0x4ce   : > { %16808 = vst [vmem:[#allocation18_spill] sm:$0xff] %v13873_v46  ;;  %v9993_v46 = vld [vmem:[#allocation3 + $0x1a0] sm:$0xf0] }
 0x4cf   : > { %v3681_v43 = vsel %vm3089_vm1, %v3671_v3, %v16594_v19  ;;  %v4297_v44 = vsel %vm3089_vm1, %v4287_v5, %v16595_v18  ;;  %v9799_v3 = vld [vmem:[#allocation3] sm:$0xf]  ;;  %v11451_v5 = vld [vmem:[#allocation3 + $0x1c4] sm:$0xf] }
 0x4d0   : > { %v3683_v14 = vsel %vm16618_vm3, %v3652_v48, %v3681_v43  ;;  %v4299_v34 = vsel %vm4298_vm9, %v4268_v6, %v4297_v44  ;;  %v11407_v37 = vld [vmem:[#allocation3 + $0x5c] sm:$0xf0]  ;;  %v10025_v48 = vld [vmem:[#allocation3 + $0x1e0] sm:$0xf0]  ;;  %vm4962_vm3 = vcmask 457728  }
 0x4d1   : > { %3706 = vst [vmem:[#allocation3 + $0x200] sm:$0xff] %v3683_v14  ;;  %v9832_v20 = vor.u32 %v11407_v37, %v9831_v8  ;;  %v11399_v19 = vld [vmem:[#allocation3 + $0x1c] sm:$0xf0]  ;;  %v16619_v14 = vrot.slane %v13842_v17, 4  ;;  %v10028_v44 = vor.u32 %v11451_v5, %v10025_v48  ;;  %v11507_v48 = vld [vmem:[#allocation3 + $0x384] sm:$0xf] }
 0x4d2   : > { %4322 = vst [vmem:[#allocation3 + $0x400] sm:$0xff] %v4299_v34  ;;  %3817 = vrot.lane.b32.xlu1 %v13706_v15, %s16809_s14  ;;  %4354 = vrot.lane.b32.xlu0 %v13706_v15, %s16683_s12  ;;  %v9800_v34 = vor.u32 %v11399_v19, %v9799_v3  ;;  %v10284_v19 = vor.u32 %v11515_v39, %v10281_v53  ;;  %v10249_v53 = vld [vmem:[#allocation3 + $0x3a0] sm:$0xf0] }
 0x4d3   : > { %3825 = vrot.lane.b32.xlu2 %v13712_v11, %s16809_s14  ;;  %6277 = vmatpush.bf16.msrb.mxu0 %v9832_v20  ;;  %v9996_v3 = vor.u32 %v11443_v28, %v9993_v46  ;;  %v10252_v17 = vor.u32 %v11507_v48, %v10249_v53  ;;  %v16810_v48 = vrot.slane %v13419_v57, 4 }
 0x4d4   : > { %v4351_v43 = vpop.permute.xlu1 %4350  ;;  %v13893_v6 = vpop.permute.xlu0 %4931 }
 0x4d5   : > { %v4370_v37 = vrot.slane %v4351_v43, 4  ;;  %v4942_v8 = vpop.permute.xlu2 %4941 }
 0x4d6   : > { %v4956_v39 = vrot.slane %v4942_v8, 4 }
 0x4d7   : > { %v4380_v18 = vsel %vm3089_vm1, %v4370_v37, %v16619_v14  ;;  %6278 = vmatpush.bf16.msrb.mxu0 %v9800_v34 }
 0x4d8   : > { %v4382_v20 = vsel %vm4381_vm4, %v4351_v43, %v4380_v18  ;;  %v10055_v40 = vld [vmem:[#allocation3 + $0x200] sm:$0xf]  ;;  %v9961_v18 = vld [vmem:[#allocation3 + $0x160] sm:$0xf0] }
 0x4d9   : > { %4405 = vst [vmem:[#allocation3 + $0x440] sm:$0xff] %v4382_v20  ;;  %v10056_v12 = vor.u32 %v11463_v42, %v10055_v40  ;;  %v9767_v40 = vld [vmem:[%s16511_s3] sm:$0xf]  ;;  %v11389_v42 = vld [vmem:[%s16511_s3 + $0xc] sm:$0xf0] }
 0x4da   : > { %4447 = vrot.lane.b32.xlu1 %v13712_v11, %s16805_s22  ;;  %4945 = vrot.lane.b32.xlu0 %v13760_v47, %s16681_s27  ;;  %v13916_v28 = vor.u32 %v11389_v42, %v9767_v40  ;;  %v11499_v40 = vld [vmem:[#allocation3 + $0x344] sm:$0xf] }
 0x4db   : > { %6347 = vmatpush.bf16.msra.mxu0 %v10028_v44  ;;  %3189 = vrot.lane.b32.xlu2 %v13681_v31, %s16791_s23  ;;  %v11435_v44 = vld [vmem:[#allocation3 + $0x144] sm:$0xf] }
 0x4dc   : > { %6297 = vmatpush.bf16.msrb.mxu2 %v10056_v12  ;;  %v13912_v43 = vpop.permute.xlu1 %4362  ;;  %v13914_v37 = vpop.permute.xlu0 %4943  ;;  %v4375_v12 = vrot.slane %v13858_v54, 4  ;;  %v9964_v14 = vor.u32 %v11435_v44, %v9961_v18  ;;  %6279 = vmatmul.bf16.vlgmr.msrb.gmra.mxu0 %v13916_v28  ;;  %v9929_v42 = vld [vmem:[#allocation3 + $0x120] sm:$0xf0] }
 0x4dd   : > { %v16631_v46 = vrot.slane %v13912_v43, 4  ;;  %v16632_v34 = vrot.slane %v13914_v37, 4  ;;  %v13921_v5 = vpop.permute.xlu2 %4198  ;;  %v9897_v44 = vld [vmem:[#allocation3 + $0xe0] sm:$0xf0] }
 0x4de   : > { %v16630_v20 = vrot.slane %v13921_v5, 4 }
 0x4df   : > { %6348 = vmatpush.bf16.msra.mxu0 %v9996_v3  ;;  %v4970_v3 = vsel %vm3089_vm1, %v4956_v39, %v16632_v34  ;;  %v11427_v39 = vld [vmem:[#allocation3 + $0x104] sm:$0xf] }
 0x4e0   : > { %6366 = vmatpush.bf16.msra.mxu2 %v10284_v19  ;;  %v4389_v19 = vsel %vm3089_vm1, %v4375_v12, %v16631_v46  ;;  %v4971_v33 = vsel %vm4962_vm3, %v4942_v8, %v4970_v3  ;;  %v4225_v18 = vsel %vm3089_vm1, %v16810_v48, %v16630_v20  ;;  %v10217_v12 = vld [vmem:[#allocation3 + $0x360] sm:$0xf0]  ;;  %v9932_v8 = vor.u32 %v11427_v39, %v9929_v42 }
 0x4e1   : > { %v4390_v61 = vsel %vm4381_vm4, %v13858_v54, %v4389_v19  ;;  %v4226_v53 = vsel %vm4215_vm0, %v13419_v57, %v4225_v18  ;;  %4990 = vst [vmem:[#allocation3 + $0x620] sm:$0xff] %v4971_v33  ;;  %v10220_v54 = vor.u32 %v11499_v40, %v10217_v12  ;;  %v11491_v19 = vld [vmem:[#allocation3 + $0x304] sm:$0xf]  ;;  %v11387_v57 = vld [vmem:[%s16511_s3 + $0x4] sm:$0xf]  ;;  %v16634_v40 = vrot.slane %v13877_v51, 4 }
 0x4e2   : > { %4409 = vst [vmem:[#allocation3 + $0x460] sm:$0xff] %v4390_v61  ;;  %3738 = vrot.lane.b32.xlu1 %v13681_v31, %s16811_s24  ;;  %3655 = vrot.lane.b32.xlu0 %v13681_v31, %s16812_s29  ;;  %v9769_v33 = vld [vmem:[%s16511_s3 + $0x10] sm:$0xf0]  ;;  %v9865_v46 = vld [vmem:[#allocation3 + $0xa0] sm:$0xf0] }
 0x4e3   : > { %6349 = vmatpush.bf16.msra.mxu0 %v9964_v14  ;;  %4244 = vst [vmem:[#allocation3 + $0x3e8] sm:$0xff] %v4226_v53  ;;  %3748 = vrot.lane.b32.xlu2 %v13723_v2, %s16811_s24  ;;  %v10185_v14 = vld [vmem:[#allocation3 + $0x320] sm:$0xf0]  ;;  %v13955_v3 = vor.u32 %v11387_v57, %v9769_v33 }
 0x4e4   : > { %6367 = vmatpush.bf16.msra.mxu2 %v10252_v17  ;;  %v4278_v61 = vpop.permute.xlu1 %4277  ;;  %v13953_v17 = vpop.permute.xlu0 %4852  ;;  %v11419_v53 = vld [vmem:[#allocation3 + $0xc4] sm:$0xf]  ;;  %v10188_v20 = vor.u32 %v11491_v19, %v10185_v14  ;;  %v16814_v19 = vrot.slane %v13388_v36, 4 }
 0x4e5   : > { %v4292_v42 = vrot.slane %v4278_v61, 4  ;;  %v16633_v48 = vrot.slane %v13953_v17, 4  ;;  %v13959_v18 = vpop.permute.xlu2 %3572  ;;  %v9900_v39 = vor.u32 %v11419_v53, %v9897_v44  ;;  %6298 = vmatmul.bf16.vlgmr.msrb.gmra.mxu2 %v13955_v3  ;;  %v11483_v33 = vld [vmem:[#allocation3 + $0x2c4] sm:$0xf] }
 0x4e6   : > { %v16635_v12 = vrot.slane %v13959_v18, 4 }
 0x4e7   : > { %6350 = vmatpush.bf16.msra.mxu0 %v9932_v8  ;;  %v16813_v8 = vrot.slane %v13425_v60, 4 }
 0x4e8   : > { %6368 = vmatpush.bf16.msra.mxu2 %v10220_v54  ;;  %v4306_v54 = vsel %vm3089_vm1, %v4292_v42, %v16634_v40  ;;  %v3601_v14 = vsel %vm3089_vm1, %v16814_v19, %v16635_v12  ;;  %v10343_v42 = vld [vmem:[#allocation3 + $0x440] sm:$0xf]  ;;  %v10153_v40 = vld [vmem:[#allocation3 + $0x2e0] sm:$0xf0] }
 0x4e9   : > { %v4881_v57 = vsel %vm3089_vm1, %v16813_v8, %v16633_v48  ;;  %v4307_v34 = vsel %vm4298_vm9, %v4278_v61, %v4306_v54  ;;  %v11535_v53 = vld [vmem:[#allocation3 + $0x45c] sm:$0xf0]  ;;  %v3602_v8 = vsel %vm1400_vm14, %v13388_v36, %v3601_v14  ;;  %v11411_v61 = vld [vmem:[#allocation3 + $0x84] sm:$0xf] }
 0x4ea   : > { %v4882_v44 = vsel %vm4879_vm7, %v13425_v60, %v4881_v57  ;;  %4326 = vst [vmem:[#allocation3 + $0x420] sm:$0xff] %v4307_v34  ;;  %v10344_v48 = vor.u32 %v11535_v53, %v10343_v42  ;;  %4364 = vrot.lane.b32.xlu1 %v13712_v11, %s16683_s12  ;;  %4281 = vrot.lane.b32.xlu0 %v13712_v11, %s16679_s15  ;;  %v9833_v34 = vld [vmem:[#allocation3 + $0x60] sm:$0xf0]  ;;  %v16815_v53 = vrot.slane %v13405_v4, 4  ;;  %s16938_s12 = smov 60  }
 0x4eb   : > { %6351 = vmatpush.bf16.msra.mxu0 %v9900_v39  ;;  %4904 = vst [vmem:[#allocation3 + $0x5c8] sm:$0xff] %v4882_v44  ;;  %v10156_v60 = vor.u32 %v11483_v33, %v10153_v40  ;;  %v9868_v54 = vor.u32 %v11411_v61, %v9865_v46  ;;  %4935 = vrot.lane.b32.xlu2 %v13747_v24, %s16681_s27  ;;  %v10121_v57 = vld [vmem:[#allocation3 + $0x2a0] sm:$0xf0]  ;;  %v4951_v44 = vrot.slane %v13893_v6, 4  ;;  %s16937_s27 = smov 16  }
 0x4ec   : > { %6369 = vmatpush.bf16.msra.mxu2 %v10188_v20  ;;  %3624 = vst [vmem:[#allocation3 + $0x1c8] sm:$0xff] %v3602_v8  ;;  %6315 = vmatpush.bf16.msra.mxu3 %v10344_v48  ;;  %v11475_v20 = vld [vmem:[#allocation3 + $0x284] sm:$0xf]  ;;  %v13987_v36 = vpop.permute.xlu1 %4933  ;;  %v13989_v39 = vpop.permute.xlu0 %3582 }
 0x4ed   : > { %v16640_v11 = vrot.slane %v13987_v36, 4  ;;  %v16636_v46 = vrot.slane %v13989_v39, 4  ;;  %v13994_v40 = vpop.permute.xlu2 %4115  ;;  %v11403_v33 = vld [vmem:[#allocation3 + $0x44] sm:$0xf]  ;;  %v10124_v14 = vor.u32 %v11475_v20, %v10121_v57  ;;  %v16816_v20 = vrot.slane %v13421_v0, 4 }
 0x4ee   : > { %v16638_v48 = vrot.slane %v13994_v40, 4  ;;  %v9836_v19 = vor.u32 %v11403_v33, %v9833_v34  ;;  %v11467_v61 = vld [vmem:[#allocation3 + $0x244] sm:$0xf] }
 0x4ef   : > { %6352 = vmatpush.bf16.msra.mxu0 %v9868_v54  ;;  %v4961_v42 = vsel %vm3089_vm1, %v4951_v44, %v16640_v11  ;;  %v3609_v8 = vsel %vm3089_vm1, %v16815_v53, %v16636_v46  ;;  %v9801_v54 = vld [vmem:[#allocation3 + $0x20] sm:$0xf0]  ;;  %v10311_v44 = vld [vmem:[#allocation3 + $0x400] sm:$0xf] }
 0x4f0   : > { %6370 = vmatpush.bf16.msra.mxu2 %v10156_v60  ;;  %v11395_v60 = vld [vmem:[#allocation3 + $0x4] sm:$0xf]  ;;  %v4963_v12 = vsel %vm4962_vm3, %v13893_v6, %v4961_v42  ;;  %v3610_v34 = vsel %vm1400_vm14, %v13405_v4, %v3609_v8  ;;  %v4142_v57 = vsel %vm3089_vm1, %v16816_v20, %v16638_v48  ;;  %v16817_v20 = vrot.slane %v13377_v55, 4 }
 0x4f1   : > { %v11527_v33 = vld [vmem:[#allocation3 + $0x41c] sm:$0xf0]  ;;  %4986 = vst [vmem:[#allocation3 + $0x600] sm:$0xff] %v4963_v12  ;;  %v4143_v53 = vsel %vm707_vm5, %v13421_v0, %v4142_v57  ;;  %v10089_v42 = vld [vmem:[#allocation3 + $0x260] sm:$0xf0] }
 0x4f2   : > { %v14016_v46 = vld [vmem:[#allocation4 + $0x20] sm:$0xff]  ;;  %v10312_v6 = vor.u32 %v11527_v33, %v10311_v44  ;;  %3628 = vst [vmem:[#allocation3 + $0x1e8] sm:$0xff] %v3610_v34  ;;  %3117 = vrot.lane.b32.xlu1 %v13681_v31, %s16792_s17  ;;  %v10092_v4 = vor.u32 %v11467_v61, %v10089_v42  ;;  %v16818_v44 = vrot.slane %v13491_v22, 4 }
 0x4f3   : > { %6353 = vmatpush.bf16.msra.mxu0 %v9836_v19  ;;  %4854 = vrot.lane.b32.xlu0 %v14016_v46, %s16668_s16  ;;  %v9804_v19 = vor.u32 %v11395_v60, %v9801_v54  ;;  %4161 = vst [vmem:[#allocation3 + $0x3a8] sm:$0xff] %v4143_v53  ;;  %v11459_v12 = vld [vmem:[#allocation3 + $0x204] sm:$0xf]  ;;  %v11591_v53 = vld [vmem:[#allocation3 + $0x61c] sm:$0xf0] }
 0x4f4   : > { %6371 = vmatpush.bf16.msra.mxu2 %v10124_v14  ;;  %3125 = vrot.lane.b32.xlu2 %v13723_v2, %s16792_s17  ;;  %v14024_v0 = vpop.permute.xlu1 %4188  ;;  %v14026_v14 = vpop.permute.xlu0 %4769  ;;  %v10057_v61 = vld [vmem:[#allocation3 + $0x220] sm:$0xf0]  ;;  %v10031_v48 = vld [vmem:[#allocation3 + $0x1c8] sm:$0xf] }
 0x4f5   : > { %6316 = vmatpush.bf16.msra.mxu3 %v10312_v6  ;;  %v16637_v8 = vrot.slane %v14024_v0, 4  ;;  %v16639_v31 = vrot.slane %v14026_v14, 4  ;;  %v14030_v34 = vpop.permute.xlu2 %3489  ;;  %v10060_v54 = vor.u32 %v11459_v12, %v10057_v61  ;;  %v10569_v6 = vld [vmem:[#allocation3 + $0x620] sm:$0xf0]  ;;  %v16819_v12 = vrot.slane %v13454_v63, 4 }
 0x4f6   : > { %v16648_v60 = vrot.slane %v14030_v34, 4  ;;  %v10537_v42 = vld [vmem:[#allocation3 + $0x5e0] sm:$0xf0] }
 0x4f7   : > { %6354 = vmatpush.bf16.msra.mxu0 %v9804_v19  ;;  %v4217_v57 = vsel %vm3089_vm1, %v16817_v20, %v16637_v8  ;;  %v4798_v33 = vsel %vm3089_vm1, %v16818_v44, %v16639_v31 }
 0x4f8   : > { %6372 = vmatpush.bf16.msra.mxu2 %v10092_v4  ;;  %v4218_v4 = vsel %vm4215_vm0, %v13377_v55, %v4217_v57  ;;  %v4799_v19 = vsel %vm4796_vm11, %v13491_v22, %v4798_v33  ;;  %v3518_v61 = vsel %vm3089_vm1, %v16819_v12, %v16648_v60  ;;  %v10567_v20 = vld [vmem:[#allocation3 + $0x600] sm:$0xf]  ;;  %v11587_v8 = vld [vmem:[#allocation3 + $0x604] sm:$0xf]  ;;  %v11388_v22 = vld [vmem:[%s16511_s3 + $0xc] sm:$0xf] }
 0x4f9   : > { %4240 = vst [vmem:[#allocation3 + $0x3c8] sm:$0xff] %v4218_v4  ;;  %v3519_v44 = vsel %vm16649_vm12, %v13454_v63, %v3518_v61  ;;  %v10568_v31 = vor.u32 %v11591_v53, %v10567_v20  ;;  %v10572_v11 = vor.u32 %v11587_v8, %v10569_v6  ;;  %v11456_v55 = vld [vmem:[#allocation3 + $0x1e4] sm:$0xf0]  ;;  %v11579_v57 = vld [vmem:[#allocation3 + $0x5c4] sm:$0xf]  ;;  %v16821_v12 = vrot.slane %v13458_v10, 4 }
 0x4fa   : > { %4821 = vst [vmem:[#allocation3 + $0x588] sm:$0xff] %v4799_v19  ;;  %3665 = vrot.lane.b32.xlu1 %v13723_v2, %s16812_s29  ;;  %v9777_v63 = vld [vmem:[%s16511_s3 + $0x18] sm:$0xf0]  ;;  %v10540_v8 = vor.u32 %v11579_v57, %v10537_v42 }
 0x4fb   : > { %3584 = vrot.lane.b32.xlu0 %v13760_v47, %s16659_s28  ;;  %3541 = vst [vmem:[#allocation3 + $0x188] sm:$0xff] %v3519_v44  ;;  %6335 = vmatpush.bf16.msra.mxu1 %v10568_v31  ;;  %v14066_v33 = vor.u32 %v11388_v22, %v9777_v63  ;;  %v11571_v31 = vld [vmem:[#allocation3 + $0x584] sm:$0xf]  ;;  %v16822_v22 = vrot.slane %v13487_v58, 4  ;;  %v11520_v63 = vld [vmem:[#allocation3 + $0x3e4] sm:$0xf0] }
 0x4fc   : > { %6373 = vmatpush.bf16.msra.mxu2 %v10060_v54  ;;  %v10032_v54 = vor.u32 %v11456_v55, %v10031_v48  ;;  %4271 = vrot.lane.b32.xlu2 %v13706_v15, %s16679_s15  ;;  %v14068_v2 = vpop.permute.xlu1 %4862  ;;  %v14070_v53 = vpop.permute.xlu0 %3499  ;;  %v10505_v48 = vld [vmem:[#allocation3 + $0x5a0] sm:$0xf0]  ;;  %s16925_s15 = smov 58  }
 0x4fd   : > { %6411 = vmatpush.bf16.msrb.mxu3 %v10572_v11  ;;  %v16646_v6 = vrot.slane %v14068_v2, 4  ;;  %v16642_v4 = vrot.slane %v14070_v53, 4  ;;  %v14074_v19 = vpop.permute.xlu2 %4038  ;;  %v16820_v11 = vrot.slane %v13485_v52, 4  ;;  %v10508_v20 = vor.u32 %v11571_v31, %v10505_v48  ;;  %v14100_v48 = vld [vmem:[#allocation4 + $0x1c] sm:$0xff]  ;;  %v11563_v31 = vld [vmem:[#allocation3 + $0x544] sm:$0xf] }
 0x4fe   : > { %6423 = vmatpush.bf16.msrb.mxu0 %v10032_v54  ;;  %v16641_v15 = vrot.slane %v14074_v19, 4  ;;  %10597 = vmatmul.msk.bf16.vlgmr.msra.gmra.mxu1 %vm4215_vm0, %v14066_v33  ;;  %v10345_v60 = vld [vmem:[#allocation3 + $0x460] sm:$0xf0] }
 0x4ff   : > { %6385 = vmatpush.bf16.msrb.mxu1 %v10540_v8  ;;  %v4889_v42 = vsel %vm3089_vm1, %v16820_v11, %v16646_v6  ;;  %v3526_v61 = vsel %vm3089_vm1, %v16821_v12, %v16642_v4  ;;  %v10473_v8 = vld [vmem:[#allocation3 + $0x560] sm:$0xf0] }
 0x500   : > { %v4890_v44 = vsel %vm4879_vm7, %v13485_v52, %v4889_v42  ;;  %v3527_v55 = vsel %vm16649_vm12, %v13458_v10, %v3526_v61  ;;  %v4060_v54 = vsel %vm3089_vm1, %v16822_v22, %v16641_v15  ;;  %v10287_v57 = vld [vmem:[#allocation3 + $0x3c8] sm:$0xf]  ;;  %v10441_v61 = vld [vmem:[#allocation3 + $0x520] sm:$0xf0]  ;;  %v16825_v15 = vrot.slane %v13520_v26, 4 }
 0x501   : > { %4908 = vst [vmem:[#allocation3 + $0x5e8] sm:$0xff] %v4890_v44  ;;  %v4061_v11 = vsel %vm4051_vm8, %v13487_v58, %v4060_v54  ;;  %v10288_v52 = vor.u32 %v11520_v63, %v10287_v57  ;;  %v14106_v10 = vld [vmem:[#allocation4 + $0x48] sm:$0xff]  ;;  %v10476_v58 = vor.u32 %v11563_v31, %v10473_v8  ;;  %v11555_v54 = vld [vmem:[#allocation3 + $0x504] sm:$0xf]  ;;  %v16823_v57 = vrot.slane %v13452_v35, 4 }
 0x502   : > { %3545 = vst [vmem:[#allocation3 + $0x1a8] sm:$0xff] %v3527_v55  ;;  %4190 = vrot.lane.b32.xlu1 %v14100_v48, %s16655_s20  ;;  %v16824_v8 = vrot.slane %v13557_v29, 4  ;;  %vm16829_vm12 = vcmask 752640  }
 0x503   : > { %6386 = vmatpush.bf16.msrb.mxu1 %v10508_v20  ;;  %4771 = vrot.lane.b32.xlu0 %v14016_v46, %s16657_s11  ;;  %4078 = vst [vmem:[#allocation3 + $0x368] sm:$0xff] %v4061_v11 }
 0x504   : > { %4200 = vrot.lane.b32.xlu2 %v14106_v10, %s16655_s20  ;;  %6442 = vmatpush.bf16.msrb.mxu2 %v10288_v52  ;;  %v14110_v42 = vpop.permute.xlu1 %4105  ;;  %v14112_v12 = vpop.permute.xlu0 %4686  ;;  %v10444_v52 = vor.u32 %v11555_v54, %v10441_v61  ;;  %v9999_v61 = vld [vmem:[#allocation3 + $0x188] sm:$0xf]  ;;  %s16842_s20 = smov 64  }
 0x505   : > { %v16643_v20 = vrot.slane %v14110_v42, 4  ;;  %v16645_v44 = vrot.slane %v14112_v12, 4  ;;  %v14116_v55 = vpop.permute.xlu2 %3406 }
 0x506   : > { %v16644_v22 = vrot.slane %v14116_v55, 4 }
 0x507   : > { %6387 = vmatpush.bf16.msrb.mxu1 %v10476_v58  ;;  %v4134_v63 = vsel %vm3089_vm1, %v16823_v57, %v16643_v20  ;;  %v4715_v11 = vsel %vm3089_vm1, %v16824_v8, %v16645_v44  ;;  %v10409_v57 = vld [vmem:[#allocation3 + $0x4e0] sm:$0xf0]  ;;  %v14140_v8 = vld [vmem:[#allocation4 + $0x4c] sm:$0xff]  ;;  %v16828_v44 = vrot.slane %v13553_v9, 4 }
 0x508   : > { %v4135_v31 = vsel %vm707_vm5, %v13452_v35, %v4134_v63  ;;  %v4716_v58 = vsel %vm4713_vm2, %v13557_v29, %v4715_v11  ;;  %v3435_v4 = vsel %vm3089_vm1, %v16825_v15, %v16644_v22  ;;  %v11547_v29 = vld [vmem:[#allocation3 + $0x4c4] sm:$0xf] }
 0x509   : > { %4157 = vst [vmem:[#allocation3 + $0x388] sm:$0xff] %v4135_v31  ;;  %v3436_v20 = vsel %vm16662_vm10, %v13520_v26, %v3435_v4  ;;  %v11448_v54 = vld [vmem:[#allocation3 + $0x1a4] sm:$0xf0]  ;;  %v10412_v15 = vor.u32 %v11547_v29, %v10409_v57  ;;  %v10377_v63 = vld [vmem:[#allocation3 + $0x4a0] sm:$0xf0]  ;;  %v16826_v57 = vrot.slane %v13551_v50, 4 }
 0x50a   : > { %4738 = vst [vmem:[#allocation3 + $0x548] sm:$0xff] %v4716_v58  ;;  %4864 = vrot.lane.b32.xlu1 %v14140_v8, %s16668_s16  ;;  %v10000_v35 = vor.u32 %v11448_v54, %v9999_v61  ;;  %v16827_v54 = vrot.slane %v13524_v56, 4  ;;  %s16856_s16 = smov 8  }
 0x50b   : > { %6388 = vmatpush.bf16.msrb.mxu1 %v10444_v52  ;;  %3501 = vrot.lane.b32.xlu0 %v13760_v47, %s16666_s26  ;;  %3458 = vst [vmem:[#allocation3 + $0x148] sm:$0xff] %v3436_v20  ;;  %v11539_v20 = vld [vmem:[#allocation3 + $0x484] sm:$0xf] }
 0x50c   : > { %3574 = vrot.lane.b32.xlu2 %v13747_v24, %s16659_s28  ;;  %6424 = vmatpush.bf16.msrb.mxu0 %v10000_v35  ;;  %v14148_v26 = vpop.permute.xlu1 %4779  ;;  %v14150_v4 = vpop.permute.xlu0 %3416  ;;  %v10380_v29 = vor.u32 %v11539_v20, %v10377_v63  ;;  %s16841_s28 = smov 90  }
 0x50d   : > { %v16647_v11 = vrot.slane %v14148_v26, 4  ;;  %v16651_v52 = vrot.slane %v14150_v4, 4  ;;  %v14154_v31 = vpop.permute.xlu2 %3967 }
 0x50e   : > { %v16650_v58 = vrot.slane %v14154_v31, 4 }
 0x50f   : > { %6389 = vmatpush.bf16.msrb.mxu1 %v10412_v15  ;;  %v4806_v61 = vsel %vm3089_vm1, %v16826_v57, %v16647_v11  ;;  %v3443_v35 = vsel %vm3089_vm1, %v16827_v54, %v16651_v52  ;;  %v11512_v11 = vld [vmem:[#allocation3 + $0x3a4] sm:$0xf0]  ;;  %v16835_v52 = vrot.slane %v13588_v1, 4 }
 0x510   : > { %v4807_v15 = vsel %vm4796_vm11, %v13551_v50, %v4806_v61  ;;  %v3444_v22 = vsel %vm16662_vm10, %v13524_v56, %v3443_v35  ;;  %v3989_v6 = vsel %vm3089_vm1, %v16828_v44, %v16650_v58  ;;  %v10255_v57 = vld [vmem:[#allocation3 + $0x388] sm:$0xf]  ;;  %v11531_v56 = vld [vmem:[#allocation3 + $0x444] sm:$0xf]  ;;  %vm16848_vm10 = vcmask 998400  }
 0x511   : > { %4825 = vst [vmem:[#allocation3 + $0x5a8] sm:$0xff] %v4807_v15  ;;  %v3990_v54 = vsel %vm16829_vm12, %v13553_v9, %v3989_v6  ;;  %v10256_v63 = vor.u32 %v11512_v11, %v10255_v57  ;;  %v10348_v50 = vor.u32 %v11531_v56, %v10345_v60  ;;  %v10313_v9 = vld [vmem:[#allocation3 + $0x420] sm:$0xf0]  ;;  %v11584_v61 = vld [vmem:[#allocation3 + $0x5e4] sm:$0xf0]  ;;  %v16833_v60 = vrot.slane %v13518_v7, 4 }
 0x512   : > { %3462 = vst [vmem:[#allocation3 + $0x168] sm:$0xff] %v3444_v22  ;;  %4107 = vrot.lane.b32.xlu1 %v14100_v48, %s16830_s19  ;;  %v16834_v57 = vrot.slane %v13625_v21, 4  ;;  %v10543_v56 = vld [vmem:[#allocation3 + $0x5c8] sm:$0xf]  ;;  %vm16840_vm12 = vcmask 769024  }
 0x513   : > { %6390 = vmatpush.bf16.msrb.mxu1 %v10380_v29  ;;  %4688 = vrot.lane.b32.xlu0 %v14016_v46, %s16831_s21  ;;  %4007 = vst [vmem:[#allocation3 + $0x328] sm:$0xff] %v3990_v54  ;;  %v11523_v29 = vld [vmem:[#allocation3 + $0x404] sm:$0xf] }
 0x514   : > { %4117 = vrot.lane.b32.xlu2 %v14106_v10, %s16830_s19  ;;  %6443 = vmatpush.bf16.msrb.mxu2 %v10256_v63  ;;  %v14184_v44 = vpop.permute.xlu1 %4030  ;;  %v14186_v20 = vpop.permute.xlu0 %4603  ;;  %v10316_v63 = vor.u32 %v11523_v29, %v10313_v9 }
 0x515   : > { %16832 = vst [vmem:[#allocation19_spill] sm:$0xff] %v14186_v20  ;;  %v16652_v6 = vrot.slane %v14184_v44, 4  ;;  %v16687_v22 = vrot.slane %v14186_v20, 4  ;;  %v14190_v11 = vpop.permute.xlu2 %3331  ;;  %v9967_v20 = vld [vmem:[#allocation3 + $0x148] sm:$0xf] }
 0x516   : > { %v16677_v35 = vrot.slane %v14190_v11, 4 }
 0x517   : > { %6391 = vmatpush.bf16.msrb.mxu1 %v10348_v50  ;;  %v4053_v15 = vsel %vm3089_vm1, %v16833_v60, %v16652_v6  ;;  %v4632_v54 = vsel %vm3089_vm1, %v16834_v57, %v16687_v22  ;;  %v10544_v6 = vor.u32 %v11584_v61, %v10543_v56 }
 0x518   : > { %v4054_v50 = vsel %vm4051_vm8, %v13518_v7, %v4053_v15  ;;  %v4633_v58 = vsel %vm4630_vm6, %v13625_v21, %v4632_v54  ;;  %v3354_v60 = vsel %vm3089_vm1, %v16835_v52, %v16677_v35  ;;  %v11576_v29 = vld [vmem:[#allocation3 + $0x5a4] sm:$0xf0] }
 0x519   : > { %4074 = vst [vmem:[#allocation3 + $0x348] sm:$0xff] %v4054_v50  ;;  %v3355_v57 = vsel %vm16661_vm13, %v13588_v1, %v3354_v60  ;;  %v11440_v9 = vld [vmem:[#allocation3 + $0x164] sm:$0xf0]  ;;  %v16838_v50 = vrot.slane %v13592_v30, 4 }
 0x51a   : > { %4655 = vst [vmem:[#allocation3 + $0x508] sm:$0xff] %v4633_v58  ;;  %4781 = vrot.lane.b32.xlu1 %v14140_v8, %s16657_s11  ;;  %v9968_v7 = vor.u32 %v11440_v9, %v9967_v20  ;;  %v10511_v21 = vld [vmem:[#allocation3 + $0x588] sm:$0xf]  ;;  %v9775_v58 = vld [vmem:[%s16511_s3 + $0x8] sm:$0xf]  ;;  %s16849_s11 = smov 120  }
 0x51b   : > { %6392 = vmatpush.bf16.msrb.mxu1 %v10316_v63  ;;  %3375 = vst [vmem:[#allocation3 + $0x108] sm:$0xff] %v3355_v57  ;;  %3418 = vrot.lane.b32.xlu0 %v13760_v47, %s16836_s18  ;;  %v10512_v61 = vor.u32 %v11576_v29, %v10511_v21  ;;  %v11390_v20 = vld [vmem:[%s16511_s3 + $0x14] sm:$0xf0]  ;;  %v16837_v63 = vrot.slane %v13618_v25, 4  ;;  %v16839_v29 = vrot.slane %v13620_v16, 4 }
 0x51c   : > { %3491 = vrot.lane.b32.xlu2 %v13747_v24, %s16666_s26  ;;  %6425 = vmatpush.bf16.msrb.mxu0 %v9968_v7  ;;  %v14220_v52 = vpop.permute.xlu1 %4696  ;;  %v14222_v1 = vpop.permute.xlu0 %3339  ;;  %v14234_v15 = vor.u32 %v11390_v20, %v9775_v58  ;;  %s16855_s26 = smov 92  }
 0x51d   : > { %v16675_v47 = vrot.slane %v14220_v52, 4  ;;  %v14232_v24 = vpop.permute.xlu2 %3896 }
 0x51e   : > { %v16664_v54 = vrot.slane %v14232_v24, 4  ;;  %6317 = vmatmul.bf16.vlgmr.msra.gmra.mxu3 %v14234_v15 }
 0x51f   : > { %6461 = vmatpush.bf16.msra.mxu1 %v10544_v6  ;;  %v16672_v6 = vrot.slane %v14222_v1, 4  ;;  %v4723_v56 = vsel %vm3089_vm1, %v16837_v63, %v16675_v47 }
 0x520   : > { %v4724_v57 = vsel %vm4713_vm2, %v13618_v25, %v4723_v56  ;;  %v3918_v7 = vsel %vm3089_vm1, %v16839_v29, %v16664_v54  ;;  %v10223_v21 = vld [vmem:[#allocation3 + $0x348] sm:$0xf] }
 0x521   : > { %v3361_v60 = vsel %vm3089_vm1, %v16838_v50, %v16672_v6  ;;  %4742 = vst [vmem:[#allocation3 + $0x568] sm:$0xff] %v4724_v57  ;;  %v3919_v58 = vsel %vm16840_vm12, %v13620_v16, %v3918_v7  ;;  %vm16845_vm12 = vcmask 752640   ;;  %v11496_v6 = vld [vmem:[#allocation3 + $0x324] sm:$0xf0] }
 0x522   : > { %v3362_v9 = vsel %vm16661_vm13, %v13592_v30, %v3361_v60  ;;  %4032 = vrot.lane.b32.xlu1 %v14100_v48, %s16841_s28  ;;  %3936 = vst [vmem:[#allocation3 + $0x2e8] sm:$0xff] %v3919_v58  ;;  %v16843_v60 = vrot.slane %v13586_v41, 4  ;;  %vm16846_vm13 = vcmask 64512   ;;  %v9935_v54 = vld [vmem:[#allocation3 + $0x108] sm:$0xf] }
 0x523   : > { %6462 = vmatpush.bf16.msra.mxu1 %v10512_v61  ;;  %v11504_v61 = vld [vmem:[#allocation3 + $0x364] sm:$0xf0]  ;;  %3379 = vst [vmem:[#allocation3 + $0x128] sm:$0xff] %v3362_v9  ;;  %4605 = vrot.lane.b32.xlu0 %v14016_v46, %s16842_s20  ;;  %v16844_v9 = vrot.slane %v13695_v32, 4 }
 0x524   : > { %v10224_v20 = vor.u32 %v11504_v61, %v10223_v21  ;;  %4040 = vrot.lane.b32.xlu2 %v14106_v10, %s16841_s28  ;;  %v14265_v30 = vpop.permute.xlu1 %3959  ;;  %v14267_v25 = vpop.permute.xlu0 %4520  ;;  %v16847_v61 = vrot.slane %v13656_v59, 4  ;;  %v10447_v47 = vld [vmem:[#allocation3 + $0x508] sm:$0xf]  ;;  %s16908_s28 = smov 56  }
 0x525   : > { %v16663_v63 = vrot.slane %v14265_v30, 4  ;;  %v16665_v16 = vrot.slane %v14267_v25, 4  ;;  %v14271_v56 = vpop.permute.xlu2 %3260 }
 0x526   : > { %6444 = vmatpush.bf16.msrb.mxu2 %v10224_v20  ;;  %v16670_v50 = vrot.slane %v14271_v56, 4  ;;  %v10479_v20 = vld [vmem:[#allocation3 + $0x548] sm:$0xf] }
 0x527   : > { %v3982_v57 = vsel %vm3089_vm1, %v16843_v60, %v16663_v63  ;;  %v4549_v29 = vsel %vm3089_vm1, %v16844_v9, %v16665_v16 }
 0x528   : > { %v3983_v7 = vsel %vm16845_vm12, %v13586_v41, %v3982_v57  ;;  %v4550_v21 = vsel %vm16846_vm13, %v13695_v32, %v4549_v29  ;;  %v3283_v58 = vsel %vm3089_vm1, %v16847_v61, %v16670_v50  ;;  %v11568_v60 = vld [vmem:[#allocation3 + $0x564] sm:$0xf0]  ;;  %v14299_v32 = vld [vmem:[#allocation4 + $0x18] sm:$0xff]  ;;  %v16853_v50 = vrot.slane %v13690_v27, 4 }
 0x529   : > { %4003 = vst [vmem:[#allocation3 + $0x308] sm:$0xff] %v3983_v7  ;;  %v3284_v63 = vsel %vm16848_vm10, %v13656_v59, %v3283_v58  ;;  %v10480_v16 = vor.u32 %v11568_v60, %v10479_v20  ;;  %v14297_v41 = vld [vmem:[#allocation4 + $0x44] sm:$0xff]  ;;  %v9791_v7 = vld [vmem:[%s16511_s3 + $0x28] sm:$0xf]  ;;  %v16851_v20 = vrot.slane %v13688_v45, 4  ;;  %vm16854_vm13 = vcmask 785408  }
 0x52a   : > { %v11432_v9 = vld [vmem:[#allocation3 + $0x124] sm:$0xf0]  ;;  %4572 = vst [vmem:[#allocation3 + $0x4c8] sm:$0xff] %v4550_v21  ;;  %4698 = vrot.lane.b32.xlu1 %v14140_v8, %s16831_s21  ;;  %vm16860_vm12 = vcmask 769024  }
 0x52b   : > { %v9936_v57 = vor.u32 %v11432_v9, %v9935_v54  ;;  %3304 = vst [vmem:[#allocation3 + $0xc8] sm:$0xff] %v3284_v63  ;;  %3341 = vrot.lane.b32.xlu0 %v14297_v41, %s16849_s11  ;;  %6463 = vmatpush.bf16.msra.mxu1 %v10480_v16  ;;  %v11394_v54 = vld [vmem:[%s16511_s3 + $0x34] sm:$0xf0]  ;;  %v16852_v9 = vrot.slane %v13660_v38, 4  ;;  %v11488_v22 = vld [vmem:[#allocation3 + $0x2e4] sm:$0xf0] }
 0x52c   : > { %3408 = vrot.lane.b32.xlu2 %v14299_v32, %s16836_s18  ;;  %v14305_v59 = vpop.permute.xlu1 %4613  ;;  %v14307_v29 = vpop.permute.xlu0 %3268  ;;  %v14319_v58 = vor.u32 %v11394_v54, %v9791_v7 }
 0x52d   : > { %6426 = vmatpush.bf16.msrb.mxu0 %v9936_v57  ;;  %v16671_v63 = vrot.slane %v14305_v59, 4  ;;  %v16673_v21 = vrot.slane %v14307_v29, 4  ;;  %v14317_v61 = vpop.permute.xlu2 %3825 }
 0x52e   : > { %16850 = vst [vmem:[#allocation20_spill] sm:$0xff] %v14319_v58  ;;  %v16674_v16 = vrot.slane %v14317_v61, 4  ;;  %6322 = vmatmul.bf16.gmra.mxu3 %v14319_v58 }
 0x52f   : > { %v4640_v60 = vsel %vm3089_vm1, %v16851_v20, %v16671_v63  ;;  %v3290_v57 = vsel %vm3089_vm1, %v16852_v9, %v16673_v21 }
 0x530   : > { %v4641_v7 = vsel %vm4630_vm6, %v13688_v45, %v4640_v60  ;;  %v3291_v54 = vsel %vm16848_vm10, %v13660_v38, %v3290_v57  ;;  %v3847_v20 = vsel %vm3089_vm1, %v16853_v50, %v16674_v16  ;;  %v10191_v63 = vld [vmem:[#allocation3 + $0x308] sm:$0xf]  ;;  %v16858_v60 = vrot.slane %v13654_v62, 4 }
 0x531   : > { %4659 = vst [vmem:[#allocation3 + $0x528] sm:$0xff] %v4641_v7  ;;  %v3848_v9 = vsel %vm16854_vm13, %v13690_v27, %v3847_v20  ;;  %v10192_v21 = vor.u32 %v11496_v6, %v10191_v63  ;;  %vm16861_vm10 = vcmask 80896   ;;  %vm16863_vm13 = vcmask 1014784  }
 0x532   : > { %3308 = vst [vmem:[#allocation3 + $0xe8] sm:$0xff] %v3291_v54  ;;  %3961 = vrot.lane.b32.xlu1 %v14100_v48, %s16855_s26  ;;  %v9903_v35 = vld [vmem:[#allocation3 + $0xc8] sm:$0xf] }
 0x533   : > { %3865 = vst [vmem:[#allocation3 + $0x2a8] sm:$0xff] %v3848_v9  ;;  %4522 = vrot.lane.b32.xlu0 %v14100_v48, %s16856_s16  ;;  %6445 = vmatpush.bf16.msrb.mxu2 %v10192_v21  ;;  %v16859_v21 = vrot.slane %v13775_v23, 4  ;;  %v16862_v9 = vrot.slane %v13733_v49, 4 }
 0x534   : > { %3969 = vrot.lane.b32.xlu2 %v14106_v10, %s16855_s26  ;;  %v14350_v38 = vpop.permute.xlu1 %3888  ;;  %v14352_v45 = vpop.permute.xlu0 %4437 }
 0x535   : > { %v16676_v50 = vrot.slane %v14350_v38, 4  ;;  %v16678_v27 = vrot.slane %v14352_v45, 4  ;;  %v14356_v6 = vpop.permute.xlu2 %3189 }
 0x536   : > { %16857 = vst [vmem:[#allocation21_spill] sm:$0xff] %v14356_v6  ;;  %v16685_v63 = vrot.slane %v14356_v6, 4  ;;  %v10415_v6 = vld [vmem:[#allocation3 + $0x4c8] sm:$0xf] }
 0x537   : > { %v3911_v57 = vsel %vm3089_vm1, %v16858_v60, %v16676_v50  ;;  %v4466_v7 = vsel %vm3089_vm1, %v16859_v21, %v16678_v27 }
 0x538   : > { %v3912_v54 = vsel %vm16860_vm12, %v13654_v62, %v3911_v57  ;;  %v4467_v20 = vsel %vm16861_vm10, %v13775_v23, %v4466_v7  ;;  %v3212_v16 = vsel %vm3089_vm1, %v16862_v9, %v16685_v63  ;;  %v11560_v60 = vld [vmem:[#allocation3 + $0x524] sm:$0xf0]  ;;  %vm16872_vm12 = vcmask 64512   ;;  %vm16873_vm10 = vmmov %vm16863_vm13 }
 0x539   : > { %3932 = vst [vmem:[#allocation3 + $0x2c8] sm:$0xff] %v3912_v54  ;;  %v3213_v50 = vsel %vm16863_vm13, %v13733_v49, %v3212_v16  ;;  %v11424_v21 = vld [vmem:[#allocation3 + $0xe4] sm:$0xf0]  ;;  %v10448_v27 = vor.u32 %v11560_v60, %v10447_v47  ;;  %v16869_v54 = vrot.slane %v13768_v13, 4  ;;  %vm16876_vm13 = vcmask 326656  }
 0x53a   : > { %4489 = vst [vmem:[#allocation3 + $0x488] sm:$0xff] %v4467_v20  ;;  %4615 = vrot.lane.b32.xlu1 %v14140_v8, %s16842_s20  ;;  %v9904_v62 = vor.u32 %v11424_v21, %v9903_v35  ;;  %v11392_v35 = vld [vmem:[%s16511_s3 + $0x2c] sm:$0xf]  ;;  %v16870_v9 = vld [vmem:[#allocation9_spill] sm:$0xff] }
 0x53b   : > { %3233 = vst [vmem:[#allocation3 + $0x88] sm:$0xff] %v3213_v50  ;;  %3270 = vrot.lane.b32.xlu0 %v14297_v41, %s16864_s25  ;;  %6464 = vmatpush.bf16.msra.mxu1 %v10448_v27  ;;  %v9793_v50 = vld [vmem:[%s16511_s3 + $0x38] sm:$0xf0]  ;;  %v16871_v60 = vrot.slane %v16870_v9, 4 }
 0x53c   : > { %3333 = vrot.lane.b32.xlu2 %v14299_v32, %s16849_s11  ;;  %6427 = vmatpush.bf16.msrb.mxu0 %v9904_v62  ;;  %v14386_v23 = vpop.permute.xlu1 %4530  ;;  %v14388_v49 = vpop.permute.xlu0 %3197  ;;  %v14401_v7 = vor.u32 %v11392_v35, %v9793_v50  ;;  %v16874_v50 = vld [vmem:[#allocation10_spill] sm:$0xff] }
 0x53d   : > { %16865 = vst [vmem:[#allocation22_spill] sm:$0xff] %v14386_v23  ;;  %v16686_v47 = vrot.slane %v14386_v23, 4  ;;  %v16688_v16 = vrot.slane %v14388_v49, 4  ;;  %v14392_v57 = vpop.permute.xlu2 %3748  ;;  %v16875_v63 = vrot.slane %v16874_v50, 4 }
 0x53e   : > { %16866 = vst [vmem:[#allocation23_spill] sm:$0xff] %v14388_v49  ;;  %v16689_v27 = vrot.slane %v14392_v57, 4  ;;  %10599 = vmatmul.msk.bf16.vlgmr.msrb.gmra.mxu3 %vm4215_vm0, %v14066_v33  ;;  %10598 = vmatmul.msk.bf16.gmra.mxu1 %vm4215_vm0, %v14401_v7 }
 0x53f   : > { %16867 = vst [vmem:[#allocation24_spill] sm:$0xff] %v14392_v57  ;;  %v4557_v20 = vsel %vm3089_vm1, %v16869_v54, %v16686_v47  ;;  %v3219_v21 = vsel %vm3089_vm1, %v16871_v60, %v16688_v16 }
 0x540   : > { %16868 = vst [vmem:[#allocation25_spill] sm:$0xff] %v14401_v7  ;;  %v4558_v62 = vsel %vm16872_vm12, %v13768_v13, %v4557_v20  ;;  %v3220_v35 = vsel %vm16873_vm10, %v16870_v9, %v3219_v21  ;;  %v3775_v54 = vsel %vm3089_vm1, %v16875_v63, %v16689_v27  ;;  %v10159_v47 = vld [vmem:[#allocation3 + $0x2c8] sm:$0xf]  ;;  %v11391_v13 = vld [vmem:[%s16511_s3 + $0x24] sm:$0xf]  ;;  %v16881_v27 = vld [vmem:[#allocation16_spill] sm:$0xff] }
 0x541   : > { %4576 = vst [vmem:[#allocation3 + $0x4e8] sm:$0xff] %v4558_v62  ;;  %v3776_v60 = vsel %vm16876_vm13, %v16874_v50, %v3775_v54  ;;  %v10160_v16 = vor.u32 %v11488_v22, %v10159_v47  ;;  %v9785_v63 = vld [vmem:[%s16511_s3 + $0x30] sm:$0xf0]  ;;  %v16882_v57 = vrot.slane %v16881_v27, 4  ;;  %vm16883_vm12 = vcmask 785408  }
 0x542   : > { %3237 = vst [vmem:[#allocation3 + $0xa8] sm:$0xff] %v3220_v35  ;;  %3890 = vrot.lane.b32.xlu1 %v14100_v48, %s16804_s13  ;;  %v14444_v20 = vor.u32 %v11391_v13, %v9785_v63  ;;  %v9783_v35 = vld [vmem:[%s16511_s3 + $0x20] sm:$0xf]  ;;  %vm16892_vm10 = vcmask 80896   ;;  %vm16895_vm13 = vcmask 1031168  }
 0x543   : > { %3794 = vst [vmem:[#allocation3 + $0x268] sm:$0xff] %v3776_v60  ;;  %4439 = vrot.lane.b32.xlu0 %v14100_v48, %s16805_s22  ;;  %6446 = vmatpush.bf16.msrb.mxu2 %v10160_v16  ;;  %v11393_v16 = vld [vmem:[%s16511_s3 + $0x2c] sm:$0xf0]  ;;  %v16879_v60 = vld [vmem:[#allocation8_spill] sm:$0xff] }
 0x544   : > { %3898 = vrot.lane.b32.xlu2 %v14106_v10, %s16804_s13  ;;  %v14440_v22 = vpop.permute.xlu1 %3817  ;;  %v14442_v47 = vpop.permute.xlu0 %4354  ;;  %6303 = vmatmul.bf16.gmra.mxu2 %v14444_v20  ;;  %v14458_v54 = vor.u32 %v11393_v16, %v9783_v35  ;;  %v16880_v13 = vrot.slane %v16879_v60, 4  ;;  %v16885_v16 = vrot.slane %v13987_v36, 4  ;;  %s16916_s13 = smov 14  }
 0x545   : > { %16877 = vst [vmem:[#allocation9_spill] sm:$0xff] %v14440_v22  ;;  %v16701_v9 = vrot.slane %v14440_v22, 4  ;;  %v16700_v21 = vrot.slane %v14442_v47, 4  ;;  %v14448_v62 = vpop.permute.xlu2 %4935 }
 0x546   : > { %16878 = vst [vmem:[#allocation10_spill] sm:$0xff] %v14448_v62  ;;  %v16884_v35 = vrot.slane %v14448_v62, 4  ;;  %6284 = vmatmul.bf16.gmra.mxu0 %v14458_v54 }
 0x547   : > { %v3840_v63 = vsel %vm3089_vm1, %v16880_v13, %v16701_v9  ;;  %v4383_v49 = vsel %vm3089_vm1, %v16882_v57, %v16700_v21  ;;  %v9871_v21 = vld [vmem:[#allocation3 + $0x88] sm:$0xf] }
 0x548   : > { %v3841_v23 = vsel %vm16883_vm12, %v16879_v60, %v3840_v63  ;;  %v4384_v50 = vsel %vm4381_vm4, %v16881_v27, %v4383_v49  ;;  %v4964_v22 = vsel %vm3089_vm1, %v16885_v16, %v16884_v35  ;;  %v11552_v13 = vld [vmem:[#allocation3 + $0x4e4] sm:$0xf0]  ;;  %v16891_v35 = vrot.slane %v13914_v37, 4 }
 0x549   : > { %3861 = vst [vmem:[#allocation3 + $0x288] sm:$0xff] %v3841_v23  ;;  %v4965_v57 = vsel %vm4962_vm3, %v13987_v36, %v4964_v22  ;;  %v11416_v9 = vld [vmem:[#allocation3 + $0xa4] sm:$0xf0]  ;;  %v10416_v60 = vor.u32 %v11552_v13, %v10415_v6  ;;  %vm16903_vm12 = vcmask 326656  }
 0x54a   : > { %4406 = vst [vmem:[#allocation3 + $0x448] sm:$0xff] %v4384_v50  ;;  %4532 = vrot.lane.b32.xlu1 %v14106_v10, %s16856_s16  ;;  %v9872_v49 = vor.u32 %v11416_v9, %v9871_v21  ;;  %v16889_v21 = vld [vmem:[#allocation14_spill] sm:$0xff] }
 0x54b   : > { %4987 = vst [vmem:[#allocation3 + $0x608] sm:$0xff] %v4965_v57  ;;  %3199 = vrot.lane.b32.xlu0 %v14297_v41, %s16791_s23  ;;  %6465 = vmatpush.bf16.msra.mxu1 %v10416_v60  ;;  %v16890_v50 = vrot.slane %v16889_v21, 4  ;;  %v16893_v60 = vld [vmem:[#allocation13_spill] sm:$0xff] }
 0x54c   : > { %3262 = vrot.lane.b32.xlu2 %v14299_v32, %s16864_s25  ;;  %6428 = vmatpush.bf16.msrb.mxu0 %v9872_v49  ;;  %v14488_v23 = vpop.permute.xlu1 %4447  ;;  %v14490_v36 = vpop.permute.xlu0 %4945  ;;  %v16894_v49 = vrot.slane %v16893_v60, 4  ;;  %s16896_s25 = smov 12  }
 0x54d   : > { %16886 = vst [vmem:[#allocation8_spill] sm:$0xff] %v14488_v23  ;;  %v16702_v6 = vrot.slane %v14488_v23, 4  ;;  %v16705_v27 = vrot.slane %v14490_v36, 4 }
 0x54e   : > { %16887 = vst [vmem:[#allocation16_spill] sm:$0xff] %v14490_v36  ;;  %v14494_v22 = vpop.permute.xlu2 %3125  ;;  %10600 = vmatmul.msk.bf16.gmra.mxu3 %vm4215_vm0, %v14401_v7  ;;  %v11480_v36 = vld [vmem:[#allocation3 + $0x2a4] sm:$0xf0]  ;;  %6393 = vmatmul.bf16.vlgmr.msrb.gmra.mxu1 %v14234_v15 }
 0x54f   : > { %16888 = vst [vmem:[#allocation26_spill] sm:$0xff] %v14494_v22  ;;  %v16706_v9 = vrot.slane %v14494_v22, 4  ;;  %v4474_v63 = vsel %vm3089_vm1, %v16890_v50, %v16702_v6  ;;  %v4972_v16 = vsel %vm3089_vm1, %v16891_v35, %v16705_v27 }
 0x550   : > { %v4475_v13 = vsel %vm16892_vm10, %v16889_v21, %v4474_v63  ;;  %v4973_v57 = vsel %vm4962_vm3, %v13914_v37, %v4972_v16  ;;  %v10127_v6 = vld [vmem:[#allocation3 + $0x288] sm:$0xf]  ;;  %vm16904_vm10 = vcmask 343040  }
 0x551   : > { %v3148_v50 = vsel %vm3089_vm1, %v16894_v49, %v16706_v9  ;;  %4493 = vst [vmem:[#allocation3 + $0x4a8] sm:$0xff] %v4475_v13  ;;  %v10128_v27 = vor.u32 %v11480_v36, %v10127_v6  ;;  %v16899_v13 = vld [vmem:[#allocation11_spill] sm:$0xff] }
 0x552   : > { %v3149_v35 = vsel %vm16895_vm13, %v16893_v60, %v3148_v50  ;;  %4991 = vst [vmem:[#allocation3 + $0x628] sm:$0xff] %v4973_v57  ;;  %3819 = vrot.lane.b32.xlu1 %v14100_v48, %s16809_s14  ;;  %v16900_v57 = vrot.slane %v16899_v13, 4  ;;  %v16901_v60 = vld [vmem:[#allocation17_spill] sm:$0xff] }
 0x553   : > { %3166 = vst [vmem:[#allocation3 + $0x68] sm:$0xff] %v3149_v35  ;;  %4356 = vrot.lane.b32.xlu0 %v14100_v48, %s16896_s25  ;;  %6447 = vmatpush.bf16.msrb.mxu2 %v10128_v27  ;;  %v16902_v49 = vrot.slane %v16901_v60, 4  ;;  %v10383_v35 = vld [vmem:[#allocation3 + $0x488] sm:$0xf] }
 0x554   : > { %3827 = vrot.lane.b32.xlu2 %v14106_v10, %s16809_s14  ;;  %v14527_v37 = vpop.permute.xlu1 %3738  ;;  %v14529_v21 = vpop.permute.xlu0 %3655  ;;  %6374 = vmatmul.bf16.vlgmr.msra.gmra.mxu2 %v13955_v3 }
 0x555   : > { %16897 = vst [vmem:[#allocation14_spill] sm:$0xff] %v14527_v37  ;;  %v16715_v63 = vrot.slane %v14527_v37, 4  ;;  %v16718_v36 = vrot.slane %v14529_v21, 4  ;;  %v16906_v37 = vld [vmem:[#allocation18_spill] sm:$0xff] }
 0x556   : > { %16898 = vst [vmem:[#allocation13_spill] sm:$0xff] %v14529_v21  ;;  %v14533_v6 = vpop.permute.xlu2 %4271  ;;  %v16907_v23 = vrot.slane %v16906_v37, 4  ;;  %v11588_v21 = vld [vmem:[#allocation3 + $0x60c] sm:$0xf]  ;;  %6355 = vmatmul.bf16.vlgmr.msra.gmra.mxu0 %v13916_v28 }
 0x557   : > { %v3767_v27 = vsel %vm3089_vm1, %v16900_v57, %v16715_v63  ;;  %v3684_v50 = vsel %vm3089_vm1, %v16902_v49, %v16718_v36  ;;  %v16905_v22 = vrot.slane %v14533_v6, 4  ;;  %v10575_v63 = vld [vmem:[#allocation3 + $0x608] sm:$0xf] }
 0x558   : > { %v3768_v9 = vsel %vm16903_vm12, %v16899_v13, %v3767_v27  ;;  %v3685_v16 = vsel %vm16904_vm10, %v16901_v60, %v3684_v50  ;;  %v11544_v57 = vld [vmem:[#allocation3 + $0x4a4] sm:$0xf0]  ;;  %vm16923_vm12 = vmmov %vm16904_vm10  ;;  %vm16931_vm10 = vcmask 375808  }
 0x559   : > { %v4300_v62 = vsel %vm3089_vm1, %v16907_v23, %v16905_v22  ;;  %3790 = vst [vmem:[#allocation3 + $0x248] sm:$0xff] %v3768_v9  ;;  %v10384_v36 = vor.u32 %v11544_v57, %v10383_v35  ;;  %v11592_v13 = vld [vmem:[#allocation3 + $0x624] sm:$0xf0]  ;;  %v10577_v27 = vld [vmem:[#allocation3 + $0x628] sm:$0xf0] }
 0x55a   : > { %v4301_v49 = vsel %vm4298_vm9, %v16906_v37, %v4300_v62  ;;  %3707 = vst [vmem:[#allocation3 + $0x208] sm:$0xff] %v3685_v16  ;;  %4449 = vrot.lane.b32.xlu1 %v14106_v10, %s16805_s22  ;;  %v10576_v60 = vor.u32 %v11592_v13, %v10575_v63  ;;  %v10580_v50 = vor.u32 %v11588_v21, %v10577_v27 }
 0x55b   : > { %4323 = vst [vmem:[#allocation3 + $0x408] sm:$0xff] %v4301_v49  ;;  %4947 = vrot.lane.b32.xlu0 %v14140_v8, %s16908_s28  ;;  %6466 = vmatpush.bf16.msra.mxu1 %v10384_v36  ;;  %v16909_v8 = vrot.slane %v13912_v43, 4  ;;  %v16910_v36 = vrot.slane %v13877_v51, 4  ;;  %v16911_v49 = vrot.slane %v13921_v5, 4 }
 0x55c   : > { %3191 = vrot.lane.b32.xlu2 %v14299_v32, %s16791_s23  ;;  %6487 = vmatpush.bf16.msra.mxu3 %v10576_v60  ;;  %v14565_v23 = vpop.permute.xlu1 %4364  ;;  %v14567_v62 = vpop.permute.xlu0 %4281  ;;  %v11472_v60 = vld [vmem:[#allocation3 + $0x264] sm:$0xf0] }
 0x55d   : > { %v16725_v22 = vrot.slane %v14565_v23, 4  ;;  %v16720_v9 = vrot.slane %v14567_v62, 4 }
 0x55e   : > { %v14571_v37 = vpop.permute.xlu2 %4200  ;;  %6398 = vmatmul.bf16.gmra.mxu1 %v14319_v58 }
 0x55f   : > { %v16719_v21 = vrot.slane %v14571_v37, 4  ;;  %v4391_v63 = vsel %vm3089_vm1, %v16909_v8, %v16725_v22  ;;  %v4308_v16 = vsel %vm3089_vm1, %v16910_v36, %v16720_v9  ;;  %10601 = vmatmul.msk.bf16.vlgmr.msra.gmra.mxu3 %vm4215_vm0, %v14066_v33  ;;  %v10351_v9 = vld [vmem:[#allocation3 + $0x448] sm:$0xf] }
 0x560   : > { %6563 = vmatpush.bf16.msrb.mxu3 %v10580_v50  ;;  %v4392_v35 = vsel %vm4381_vm4, %v13912_v43, %v4391_v63  ;;  %v4309_v57 = vsel %vm4298_vm9, %v13877_v51, %v4308_v16  ;;  %v10095_v27 = vld [vmem:[#allocation3 + $0x248] sm:$0xf] }
 0x561   : > { %v4227_v13 = vsel %vm3089_vm1, %v16911_v49, %v16719_v21  ;;  %4410 = vst [vmem:[#allocation3 + $0x468] sm:$0xff] %v4392_v35  ;;  %v10096_v8 = vor.u32 %v11472_v60, %v10095_v27  ;;  %v16912_v35 = vld [vmem:[#allocation12_spill] sm:$0xff] }
 0x562   : > { %v4228_v50 = vsel %vm4215_vm0, %v13921_v5, %v4227_v13  ;;  %4327 = vst [vmem:[#allocation3 + $0x428] sm:$0xff] %v4309_v57  ;;  %3740 = vrot.lane.b32.xlu1 %v14299_v32, %s16811_s24  ;;  %v16913_v57 = vrot.slane %v16912_v35, 4  ;;  %v16914_v13 = vrot.slane %v13953_v17, 4 }
 0x563   : > { %4245 = vst [vmem:[#allocation3 + $0x3f0] sm:$0xff] %v4228_v50  ;;  %3657 = vrot.lane.b32.xlu0 %v14299_v32, %s16812_s29  ;;  %6448 = vmatpush.bf16.msrb.mxu2 %v10096_v8  ;;  %v16915_v8 = vrot.slane %v13959_v18, 4 }
 0x564   : > { %3750 = vrot.lane.b32.xlu2 %v14297_v41, %s16811_s24  ;;  %v14604_v51 = vpop.permute.xlu1 %3117  ;;  %6379 = vmatmul.bf16.gmra.mxu2 %v14444_v20 }
 0x565   : > { %v14606_v43 = vpop.permute.xlu0 %4854  ;;  %v16723_v63 = vrot.slane %v14604_v51, 4 }
 0x566   : > { %v16721_v5 = vrot.slane %v14606_v43, 4  ;;  %v14610_v36 = vpop.permute.xlu2 %3574  ;;  %6360 = vmatmul.bf16.gmra.mxu0 %v14458_v54 }
 0x567   : > { %v16722_v16 = vrot.slane %v14610_v36, 4  ;;  %v3141_v49 = vsel %vm3089_vm1, %v16913_v57, %v16723_v63 }
 0x568   : > { %v4883_v27 = vsel %vm3089_vm1, %v16914_v13, %v16721_v5  ;;  %v3142_v60 = vsel %vm16895_vm13, %v16912_v35, %v3141_v49  ;;  %v11536_v57 = vld [vmem:[#allocation3 + $0x464] sm:$0xf0]  ;;  %vm16935_vm13 = vmmov %vm16931_vm10 }
 0x569   : > { %v4884_v50 = vsel %vm4879_vm7, %v13953_v17, %v4883_v27  ;;  %v3603_v21 = vsel %vm3089_vm1, %v16915_v8, %v16722_v16  ;;  %3162 = vst [vmem:[#allocation3 + $0x48] sm:$0xff] %v3142_v60  ;;  %v10352_v5 = vor.u32 %v11536_v57, %v10351_v9  ;;  %v11528_v17 = vld [vmem:[#allocation3 + $0x424] sm:$0xf0]  ;;  %v10545_v27 = vld [vmem:[#allocation3 + $0x5e8] sm:$0xf0] }
 0x56a   : > { %v3604_v13 = vsel %vm1400_vm14, %v13959_v18, %v3603_v21  ;;  %4905 = vst [vmem:[#allocation3 + $0x5d0] sm:$0xff] %v4884_v50  ;;  %4366 = vrot.lane.b32.xlu1 %v14106_v10, %s16896_s25  ;;  %v10319_v60 = vld [vmem:[#allocation3 + $0x408] sm:$0xf]  ;;  %v11580_v8 = vld [vmem:[#allocation3 + $0x5cc] sm:$0xf] }
 0x56b   : > { %3625 = vst [vmem:[#allocation3 + $0x1d0] sm:$0xff] %v3604_v13  ;;  %4283 = vrot.lane.b32.xlu0 %v14106_v10, %s16916_s13  ;;  %6467 = vmatpush.bf16.msra.mxu1 %v10352_v5  ;;  %v10320_v10 = vor.u32 %v11528_v17, %v10319_v60  ;;  %v16922_v13 = vrot.slane %v13989_v39, 4  ;;  %v10548_v63 = vor.u32 %v11580_v8, %v10545_v27 }
 0x56c   : > { %4937 = vrot.lane.b32.xlu2 %v14016_v46, %s16908_s28  ;;  %v14642_v35 = vpop.permute.xlu1 %3665  ;;  %v16920_v46 = vld [vmem:[#allocation15_spill] sm:$0xff] }
 0x56d   : > { %16917 = vst [vmem:[#allocation11_spill] sm:$0xff] %v14642_v35  ;;  %v14644_v49 = vpop.permute.xlu0 %3584  ;;  %v16724_v18 = vrot.slane %v14642_v35, 4  ;;  %v16921_v5 = vrot.slane %v16920_v46, 4  ;;  %v10449_v35 = vld [vmem:[#allocation3 + $0x528] sm:$0xf0] }
 0x56e   : > { %16918 = vst [vmem:[#allocation17_spill] sm:$0xff] %v14644_v49  ;;  %v16729_v9 = vrot.slane %v14644_v49, 4  ;;  %v14648_v21 = vpop.permute.xlu2 %4117  ;;  %v11408_v49 = vld [vmem:[#allocation3 + $0x64] sm:$0xf0] }
 0x56f   : > { %16919 = vst [vmem:[#allocation18_spill] sm:$0xff] %v14648_v21  ;;  %v16728_v50 = vrot.slane %v14648_v21, 4  ;;  %v3692_v57 = vsel %vm3089_vm1, %v16921_v5, %v16724_v18  ;;  %10602 = vmatmul.msk.bf16.gmra.mxu3 %vm4215_vm0, %v14401_v7  ;;  %v16924_v5 = vrot.slane %v13994_v40, 4  ;;  %6468 = vmatpush.bf16.msra.mxu1 %v10320_v10  ;;  %v11516_v21 = vld [vmem:[#allocation3 + $0x3cc] sm:$0xf] }
 0x570   : > { %v3611_v16 = vsel %vm3089_vm1, %v16922_v13, %v16729_v9  ;;  %v3693_v17 = vsel %vm16923_vm12, %v16920_v46, %v3692_v57  ;;  %v9839_v22 = vld [vmem:[#allocation3 + $0x48] sm:$0xf]  ;;  %v10513_v13 = vld [vmem:[#allocation3 + $0x5a8] sm:$0xf0]  ;;  %vm16943_vm12 = vcmask 392192  }
 0x571   : > { %v3612_v60 = vsel %vm1400_vm14, %v13989_v39, %v3611_v16  ;;  %v4144_v18 = vsel %vm3089_vm1, %v16924_v5, %v16728_v50  ;;  %3711 = vst [vmem:[#allocation3 + $0x228] sm:$0xff] %v3693_v17  ;;  %v9840_v8 = vor.u32 %v11408_v49, %v9839_v22  ;;  %v4832_v39 = vld [vmem:[#allocation4 + $0x28] sm:$0xf]  ;;  %v11572_v16 = vld [vmem:[#allocation3 + $0x58c] sm:$0xf] }
 0x572   : > { %v4145_v27 = vsel %vm707_vm5, %v13994_v40, %v4144_v18  ;;  %3629 = vst [vmem:[#allocation3 + $0x1f0] sm:$0xff] %v3612_v60  ;;  %3119 = vrot.lane.b32.xlu1 %v14299_v32, %s16792_s17  ;;  %v10516_v10 = vor.u32 %v11572_v16, %v10513_v13  ;;  %v9807_v46 = vld [vmem:[#allocation3 + $0x8] sm:$0xf]  ;;  %v10033_v22 = vld [vmem:[#allocation3 + $0x1e8] sm:$0xf0]  ;;  %6469 = vmatmul.bf16.vlgmr.msra.gmra.mxu1 %v14234_v15  ;;  %v16929_v16 = vrot.slane %v14026_v14, 4 }
 0x573   : > { %6537 = vmatpush.bf16.msrb.mxu1 %v10548_v63  ;;  %4162 = vst [vmem:[#allocation3 + $0x3b0] sm:$0xff] %v4145_v27  ;;  %4856 = vrot.lane.b32.xlu0 %v4832_v39, %s16925_s15  ;;  %v11400_v57 = vld [vmem:[#allocation3 + $0x24] sm:$0xf0]  ;;  %v10481_v63 = vld [vmem:[#allocation3 + $0x568] sm:$0xf0] }
 0x574   : > { %3127 = vrot.lane.b32.xlu2 %v14297_v41, %s16792_s17  ;;  %6429 = vmatpush.bf16.msrb.mxu0 %v9840_v8  ;;  %v14679_v17 = vpop.permute.xlu1 %4190  ;;  %v9808_v5 = vor.u32 %v11400_v57, %v9807_v46  ;;  %v11452_v13 = vld [vmem:[#allocation3 + $0x1cc] sm:$0xf]  ;;  %v16928_v8 = vrot.slane %v14024_v0, 4  ;;  %s16932_s17 = smov 44  }
 0x575   : > { %16926 = vst [vmem:[#allocation12_spill] sm:$0xff] %v14679_v17  ;;  %v14681_v40 = vpop.permute.xlu0 %4771  ;;  %v16734_v32 = vrot.slane %v14679_v17, 4  ;;  %v11564_v27 = vld [vmem:[#allocation3 + $0x54c] sm:$0xf]  ;;  %v16930_v17 = vrot.slane %v14030_v34, 4 }
 0x576   : > { %16927 = vst [vmem:[#allocation15_spill] sm:$0xff] %v14681_v40  ;;  %v16756_v49 = vrot.slane %v14681_v40, 4  ;;  %v14686_v18 = vpop.permute.xlu2 %3491  ;;  %v10484_v9 = vor.u32 %v11564_v27, %v10481_v63  ;;  %v11508_v27 = vld [vmem:[#allocation3 + $0x38c] sm:$0xf] }
 0x577   : > { %6538 = vmatpush.bf16.msrb.mxu1 %v10516_v10  ;;  %v16742_v60 = vrot.slane %v14686_v18, 4  ;;  %v4219_v39 = vsel %vm3089_vm1, %v16928_v8, %v16734_v32  ;;  %v10036_v10 = vor.u32 %v11452_v13, %v10033_v22  ;;  %v10063_v32 = vld [vmem:[#allocation3 + $0x208] sm:$0xf]  ;;  %v10001_v13 = vld [vmem:[#allocation3 + $0x1a8] sm:$0xf0] }
 0x578   : > { %v4800_v50 = vsel %vm3089_vm1, %v16929_v16, %v16756_v49  ;;  %v4220_v46 = vsel %vm4215_vm0, %v14024_v0, %v4219_v39  ;;  %6430 = vmatpush.bf16.msrb.mxu0 %v9808_v5  ;;  %v11464_v40 = vld [vmem:[#allocation3 + $0x224] sm:$0xf0]  ;;  %v3557_v0 = vld [vmem:[#allocation4 + $0x4c] sm:$0xf] }
 0x579   : > { %v4801_v57 = vsel %vm4796_vm11, %v14026_v14, %v4800_v50  ;;  %v3520_v8 = vsel %vm3089_vm1, %v16930_v17, %v16742_v60  ;;  %4241 = vst [vmem:[#allocation3 + $0x3d0] sm:$0xff] %v4220_v46  ;;  %v10064_v63 = vor.u32 %v11464_v40, %v10063_v32  ;;  %v10289_v14 = vld [vmem:[#allocation3 + $0x3e8] sm:$0xf0]  ;;  %v3552_v60 = vld [vmem:[#allocation4 + $0x20] sm:$0xf] }
 0x57a   : > { %v3521_v22 = vsel %vm16931_vm10, %v14030_v34, %v3520_v8  ;;  %4822 = vst [vmem:[#allocation3 + $0x590] sm:$0xff] %v4801_v57  ;;  %3667 = vrot.lane.b32.xlu1 %v14297_v41, %s16812_s29  ;;  %v11556_v50 = vld [vmem:[#allocation3 + $0x50c] sm:$0xf]  ;;  %v10292_v17 = vor.u32 %v11516_v21, %v10289_v14  ;;  %v16933_v8 = vrot.slane %v14068_v2, 4  ;;  %vm16948_vm10 = vmmov %vm16943_vm12 }
 0x57b   : > { %6539 = vmatpush.bf16.msrb.mxu1 %v10484_v9  ;;  %3542 = vst [vmem:[#allocation3 + $0x190] sm:$0xff] %v3521_v22  ;;  %3586 = vrot.lane.b32.xlu0 %v3557_v0, %s16932_s17  ;;  %v10452_v5 = vor.u32 %v11556_v50, %v10449_v35  ;;  %v11444_v34 = vld [vmem:[#allocation3 + $0x18c] sm:$0xf]  ;;  %v16934_v0 = vrot.slane %v14070_v53, 4  ;;  %v4168_v50 = vld [vmem:[#allocation4 + $0x24] sm:$0xf] }
 0x57c   : > { %6499 = vmatpush.bf16.msra.mxu0 %v10036_v10  ;;  %4273 = vrot.lane.b32.xlu2 %v14100_v48, %s16916_s13  ;;  %v14715_v9 = vpop.permute.xlu1 %4864  ;;  %v10004_v32 = vor.u32 %v11444_v34, %v10001_v13  ;;  %v10417_v39 = vld [vmem:[#allocation3 + $0x4e8] sm:$0xf0]  ;;  %v16936_v34 = vrot.slane %v14074_v19, 4 }
 0x57d   : > { %6449 = vmatpush.bf16.msrb.mxu2 %v10064_v63  ;;  %v14717_v40 = vpop.permute.xlu0 %3501  ;;  %6431 = vmatmul.bf16.vlgmr.msrb.gmra.mxu0 %v13916_v28  ;;  %v16741_v41 = vrot.slane %v14715_v9, 4  ;;  %v9969_v21 = vld [vmem:[#allocation3 + $0x168] sm:$0xf0] }
 0x57e   : > { %v16740_v16 = vrot.slane %v14717_v40, 4  ;;  %v4041_v48 = vpop.permute.xlu2 %4040  ;;  %v10257_v35 = vld [vmem:[#allocation3 + $0x3a8] sm:$0xf0] }
 0x57f   : > { %6540 = vmatpush.bf16.msrb.mxu1 %v10452_v5  ;;  %v4049_v10 = vrot.slane %v4041_v48, 4  ;;  %v10260_v46 = vor.u32 %v11508_v27, %v10257_v35  ;;  %v11548_v57 = vld [vmem:[#allocation3 + $0x4cc] sm:$0xf]  ;;  %v4891_v22 = vsel %vm3089_vm1, %v16933_v8, %v16741_v41  ;;  %10603 = vmatmul.msk.bf16.vlgmr.msrb.gmra.mxu3 %vm4215_vm0, %v14066_v33  ;;  %v4173_v35 = vld [vmem:[#allocation4 + $0x50] sm:$0xf] }
 0x580   : > { %6500 = vmatpush.bf16.msra.mxu0 %v10004_v32  ;;  %v3528_v63 = vsel %vm3089_vm1, %v16934_v0, %v16740_v16  ;;  %v11436_v13 = vld [vmem:[#allocation3 + $0x14c] sm:$0xf]  ;;  %v10420_v14 = vor.u32 %v11548_v57, %v10417_v39  ;;  %6450 = vmatmul.bf16.vlgmr.msrb.gmra.mxu2 %v13955_v3  ;;  %v4837_v16 = vld [vmem:[#allocation4 + $0x54] sm:$0xf] }
 0x581   : > { %6518 = vmatpush.bf16.msra.mxu2 %v10292_v17  ;;  %v4892_v17 = vsel %vm4879_vm7, %v14068_v2, %v4891_v22  ;;  %v3529_v5 = vsel %vm16935_vm13, %v14070_v53, %v3528_v63  ;;  %v4062_v27 = vsel %vm3089_vm1, %v16936_v34, %v4049_v10  ;;  %v9972_v32 = vor.u32 %v11436_v13, %v9969_v21  ;;  %v11500_v8 = vld [vmem:[#allocation3 + $0x34c] sm:$0xf]  ;;  %v4749_v2 = vld [vmem:[#allocation4 + $0x28] sm:$0xf] }
 0x582   : > { %v10385_v39 = vld [vmem:[#allocation3 + $0x4a8] sm:$0xf0]  ;;  %4909 = vst [vmem:[#allocation3 + $0x5f0] sm:$0xff] %v4892_v17  ;;  %v4063_v57 = vsel %vm4051_vm8, %v14074_v19, %v4062_v27  ;;  %v4064_v0 = vsel %vm4051_vm8, %v4041_v48, %v4049_v10  ;;  %4192 = vrot.lane.b32.xlu1 %v4168_v50, %s16937_s27  ;;  %6474 = vmatmul.bf16.gmra.mxu1 %v14319_v58  ;;  %vm16949_vm13 = vcmask 752640  }
 0x583   : > { %6541 = vmatpush.bf16.msrb.mxu1 %v10420_v14  ;;  %v9937_v22 = vld [vmem:[#allocation3 + $0x128] sm:$0xf0]  ;;  %3546 = vst [vmem:[#allocation3 + $0x1b0] sm:$0xff] %v3529_v5  ;;  %4773 = vrot.lane.b32.xlu0 %v4749_v2, %s16938_s12  ;;  %v16941_v2 = vrot.slane %v14112_v12, 4 }
 0x584   : > { %6501 = vmatpush.bf16.msra.mxu0 %v9972_v32  ;;  %v10225_v53 = vld [vmem:[#allocation3 + $0x368] sm:$0xf0]  ;;  %4079 = vst [vmem:[#allocation3 + $0x370] sm:$0xff] %v4063_v57  ;;  %4202 = vrot.lane.b32.xlu2 %v4173_v35, %s16937_s27  ;;  %v14750_v48 = vpop.permute.xlu1 %4107  ;;  %v16940_v57 = vrot.slane %v14110_v42, 4 }
 0x585   : > { %6519 = vmatpush.bf16.msra.mxu2 %v10260_v46  ;;  %v11540_v63 = vld [vmem:[#allocation3 + $0x48c] sm:$0xf]  ;;  %v10228_v21 = vor.u32 %v11500_v8, %v10225_v53  ;;  %4080 = vst.msk [vmem:[#allocation3 + $0x378] sm:$0xff] %vm13328_vm15, %v4064_v0  ;;  %v14752_v10 = vpop.permute.xlu0 %4688  ;;  %v16739_v5 = vrot.slane %v14750_v48, 4 }
 0x586   : > { %v10388_v13 = vor.u32 %v11540_v63, %v10385_v39  ;;  %v11428_v19 = vld [vmem:[#allocation3 + $0x10c] sm:$0xf]  ;;  %v16743_v34 = vrot.slane %v14752_v10, 4  ;;  %v14757_v27 = vpop.permute.xlu2 %3408 }
 0x587   : > { %v9940_v46 = vor.u32 %v11428_v19, %v9937_v22  ;;  %v11492_v14 = vld [vmem:[#allocation3 + $0x30c] sm:$0xf]  ;;  %v16754_v35 = vrot.slane %v14757_v27, 4  ;;  %v4136_v0 = vsel %vm3089_vm1, %v16940_v57, %v16739_v5 }
 0x588   : > { %v10353_v50 = vld [vmem:[#allocation3 + $0x468] sm:$0xf0]  ;;  %6542 = vmatpush.bf16.msrb.mxu1 %v10388_v13  ;;  %v4717_v22 = vsel %vm3089_vm1, %v16941_v2, %v16743_v34  ;;  %v4137_v13 = vsel %vm707_vm5, %v14110_v42, %v4136_v0 }
 0x589   : > { %6520 = vmatpush.bf16.msra.mxu2 %v10228_v21  ;;  %v9905_v32 = vld [vmem:[#allocation3 + $0xe8] sm:$0xf0]  ;;  %6502 = vmatpush.bf16.msra.mxu0 %v9940_v46  ;;  %v4718_v19 = vsel %vm4713_vm2, %v14112_v12, %v4717_v22  ;;  %v16942_v46 = vrot.slane %v14116_v55, 4  ;;  %4158 = vst [vmem:[#allocation3 + $0x390] sm:$0xff] %v4137_v13  ;;  %v11585_v12 = vld [vmem:[#allocation3 + $0x5ec] sm:$0xf0] }
 0x58a   : > { %v10193_v8 = vld [vmem:[#allocation3 + $0x328] sm:$0xf0]  ;;  %4739 = vst [vmem:[#allocation3 + $0x550] sm:$0xff] %v4718_v19  ;;  %4866 = vrot.lane.b32.xlu1 %v4837_v16, %s16925_s15  ;;  %v10551_v22 = vld [vmem:[#allocation3 + $0x5d0] sm:$0xf]  ;;  %s16778_s15 = smov 116  }
 0x58b   : > { %v11532_v39 = vld [vmem:[#allocation3 + $0x44c] sm:$0xf]  ;;  %v10196_v63 = vor.u32 %v11492_v14, %v10193_v8  ;;  %v3437_v57 = vsel %vm3089_vm1, %v16942_v46, %v16754_v35  ;;  %v16945_v46 = vrot.slane %v14148_v26, 4 }
 0x58c   : > { %v11420_v53 = vld [vmem:[#allocation3 + $0xcc] sm:$0xf]  ;;  %v10356_v21 = vor.u32 %v11532_v39, %v10353_v50  ;;  %v3438_v14 = vsel %vm16943_vm12, %v14116_v55, %v3437_v57  ;;  %3576 = vrot.lane.b32.xlu2 %v3552_v60, %s16932_s17  ;;  %v14784_v55 = vpop.permute.xlu1 %4781  ;;  %vm16950_vm12 = vmmov %vm16949_vm13  ;;  %s16782_s17 = smov 112  }
 0x58d   : > { %v9908_v5 = vor.u32 %v11420_v53, %v9905_v32  ;;  %v3474_v41 = vld [vmem:[#allocation4 + $0x4c] sm:$0xf]  ;;  %6521 = vmatpush.bf16.msra.mxu2 %v10196_v63  ;;  %3459 = vst [vmem:[#allocation3 + $0x150] sm:$0xff] %v3438_v14  ;;  %v10552_v63 = vor.u32 %v11585_v12, %v10551_v22  ;;  %6436 = vmatmul.bf16.gmra.mxu0 %v14458_v54  ;;  %v16752_v16 = vrot.slane %v14784_v55, 4  ;;  %v4085_v22 = vld [vmem:[#allocation4 + $0x24] sm:$0xf] }
 0x58e   : > { %v11484_v2 = vld [vmem:[#allocation3 + $0x2cc] sm:$0xf]  ;;  %6543 = vmatpush.bf16.msrb.mxu1 %v10356_v21  ;;  %3503 = vrot.lane.b32.xlu0 %v3474_v41, %s16944_s0  ;;  %v3970_v41 = vpop.permute.xlu2 %3969 }
 0x58f   : > { %v10321_v34 = vld [vmem:[#allocation3 + $0x428] sm:$0xf0]  ;;  %6503 = vmatpush.bf16.msra.mxu0 %v9908_v5  ;;  %v14788_v5 = vpop.permute.xlu0 %3418  ;;  %v4808_v57 = vsel %vm3089_vm1, %v16945_v46, %v16752_v16  ;;  %10604 = vmatmul.msk.bf16.gmra.mxu3 %vm4215_vm0, %v14401_v7  ;;  %v3386_v46 = vld [vmem:[#allocation4 + $0x20] sm:$0xf] }
 0x590   : > { %v9873_v42 = vld [vmem:[#allocation3 + $0xa8] sm:$0xf0]  ;;  %v16744_v60 = vrot.slane %v14788_v5, 4  ;;  %6455 = vmatmul.bf16.gmra.mxu2 %v14444_v20  ;;  %v4809_v12 = vsel %vm4796_vm11, %v14148_v26, %v4808_v57  ;;  %v4090_v57 = vld [vmem:[#allocation4 + $0x50] sm:$0xf] }
 0x591   : > { %v10161_v50 = vld [vmem:[#allocation3 + $0x2e8] sm:$0xf0]  ;;  %4826 = vst [vmem:[#allocation3 + $0x5b0] sm:$0xff] %v4809_v12  ;;  %v10039_v12 = vld [vmem:[#allocation3 + $0x1d0] sm:$0xf] }
 0x592   : > { %v11524_v8 = vld [vmem:[#allocation3 + $0x40c] sm:$0xf]  ;;  %v10164_v32 = vor.u32 %v11484_v2, %v10161_v50  ;;  %v16946_v50 = vrot.slane %v14150_v4, 4  ;;  %4109 = vrot.lane.b32.xlu1 %v4085_v22, %s16830_s19 }
 0x593   : > { %v10324_v39 = vor.u32 %v11524_v8, %v10321_v34  ;;  %v11412_v0 = vld [vmem:[#allocation3 + $0x8c] sm:$0xf]  ;;  %v3978_v34 = vrot.slane %v3970_v41, 4 }
 0x594   : > { %v9876_v53 = vor.u32 %v11412_v0, %v9873_v42  ;;  %v11476_v21 = vld [vmem:[#allocation3 + $0x28c] sm:$0xf]  ;;  %6522 = vmatpush.bf16.msra.mxu2 %v10164_v32  ;;  %v3445_v8 = vsel %vm3089_vm1, %v16946_v50, %v16744_v60  ;;  %v16947_v32 = vrot.slane %v14154_v31, 4  ;;  %4119 = vrot.lane.b32.xlu2 %v4090_v57, %s16830_s19 }
 0x595   : > { %6544 = vmatpush.bf16.msrb.mxu1 %v10324_v39  ;;  %v11404_v13 = vld [vmem:[#allocation3 + $0x4c] sm:$0xf] }
 0x596   : > { %6504 = vmatpush.bf16.msra.mxu0 %v9876_v53  ;;  %v10129_v19 = vld [vmem:[#allocation3 + $0x2a8] sm:$0xf0]  ;;  %v3991_v39 = vsel %vm3089_vm1, %v16947_v32, %v3978_v34  ;;  %3410 = vrot.lane.b32.xlu0 %v3386_v46, %s16836_s18  ;;  %v10007_v46 = vld [vmem:[#allocation3 + $0x190] sm:$0xf] }
 0x597   : > { %v9841_v2 = vld [vmem:[#allocation3 + $0x68] sm:$0xf0]  ;;  %v10132_v14 = vor.u32 %v11476_v21, %v10129_v19  ;;  %v3446_v21 = vsel %vm16948_vm10, %v14150_v4, %v3445_v8  ;;  %v3992_v26 = vsel %vm16949_vm13, %v14154_v31, %v3991_v39  ;;  %v3993_v19 = vsel %vm16950_vm12, %v3970_v41, %v3978_v34  ;;  %v4033_v31 = vpop.permute.xlu1 %4032  ;;  %v11449_v34 = vld [vmem:[#allocation3 + $0x1ac] sm:$0xf0]  ;;  %v14820_v32 = vpop.permute.xlu0 %4605 }
 0x598   : > { %v11396_v42 = vld [vmem:[#allocation3 + $0xc] sm:$0xf]  ;;  %v9844_v0 = vor.u32 %v11404_v13, %v9841_v2  ;;  %3463 = vst [vmem:[#allocation3 + $0x170] sm:$0xff] %v3446_v21  ;;  %v11457_v2 = vld [vmem:[#allocation3 + $0x1ec] sm:$0xf0]  ;;  %6545 = vmatmul.bf16.vlgmr.msrb.gmra.mxu1 %v14234_v15  ;;  %v4045_v8 = vrot.slane %v4033_v31, 4  ;;  %v3334_v39 = vpop.permute.xlu2 %3333 }
 0x599   : > { %6613 = vmatpush.bf16.msra.mxu1 %v10552_v63  ;;  %v11468_v53 = vld [vmem:[#allocation3 + $0x24c] sm:$0xf]  ;;  %6523 = vmatpush.bf16.msra.mxu2 %v10132_v14  ;;  %4008 = vst [vmem:[#allocation3 + $0x330] sm:$0xff] %v3992_v26  ;;  %v10295_v14 = vld [vmem:[#allocation3 + $0x3d0] sm:$0xf]  ;;  %v3346_v21 = vrot.slane %v3334_v39, 4 }
 0x59a   : > { %v9809_v63 = vld [vmem:[#allocation3 + $0x28] sm:$0xf0]  ;;  %6505 = vmatpush.bf16.msra.mxu0 %v9844_v0  ;;  %4009 = vst.msk [vmem:[#allocation3 + $0x338] sm:$0xff] %vm13328_vm15, %v3993_v19  ;;  %v10040_v0 = vor.u32 %v11457_v2, %v10039_v12  ;;  %v11521_v19 = vld [vmem:[#allocation3 + $0x3ec] sm:$0xf0]  ;;  %v4057_v57 = vsel %vm4051_vm8, %v4033_v31, %v4045_v8  ;;  %vm16955_vm10 = vcmask 982016  }
 0x59b   : > { %v10097_v13 = vld [vmem:[#allocation3 + $0x268] sm:$0xf0]  ;;  %v9812_v41 = vor.u32 %v11396_v42, %v9809_v63  ;;  %v16951_v42 = vrot.slane %v14184_v44, 4  ;;  %v10296_v60 = vor.u32 %v11521_v19, %v10295_v14  ;;  %4076 = vst.msk [vmem:[#allocation3 + $0x358] sm:$0xff] %vm13328_vm15, %v4057_v57  ;;  %v3358_v31 = vsel %vm16955_vm10, %v3334_v39, %v3346_v21  ;;  %v11577_v14 = vld [vmem:[#allocation3 + $0x5ac] sm:$0xf0] }
 0x59c   : > { %v10100_v4 = vor.u32 %v11468_v53, %v10097_v13  ;;  %v10065_v50 = vld [vmem:[#allocation3 + $0x228] sm:$0xf0]  ;;  %v16753_v53 = vrot.slane %v14820_v32, 4  ;;  %v10008_v13 = vor.u32 %v11449_v34, %v10007_v46  ;;  %v10519_v34 = vld [vmem:[#allocation3 + $0x590] sm:$0xf]  ;;  %3377 = vst.msk [vmem:[#allocation3 + $0x118] sm:$0xff] %vm13328_vm15, %v3358_v31 }
 0x59d   : > { %v11460_v22 = vld [vmem:[#allocation3 + $0x20c] sm:$0xf]  ;;  %v4055_v63 = vsel %vm3089_vm1, %v16951_v42, %v4045_v8  ;;  %v10520_v46 = vor.u32 %v11577_v14, %v10519_v34  ;;  %v10263_v19 = vld [vmem:[#allocation3 + $0x390] sm:$0xf]  ;;  %v4588_v42 = vld [vmem:[#allocation4 + $0x54] sm:$0xf] }
 0x59e   : > { %6524 = vmatpush.bf16.msra.mxu2 %v10100_v4  ;;  %6506 = vmatpush.bf16.msra.mxu0 %v9812_v41  ;;  %v10068_v26 = vor.u32 %v11460_v22, %v10065_v50  ;;  %v4056_v2 = vsel %vm4051_vm8, %v14184_v44, %v4055_v63  ;;  %v16952_v4 = vld [vmem:[#allocation19_spill] sm:$0xff]  ;;  %v16954_v41 = vrot.slane %v14190_v11, 4  ;;  %vm16956_vm8 = vmmov %vm16955_vm10  ;;  %v3469_v39 = vld [vmem:[#allocation4 + $0x20] sm:$0xf]  ;;  %v16958_v34 = vrot.slane %v14222_v1, 4 }
 0x59f   : > { %v16953_v12 = vrot.slane %v16952_v4, 4  ;;  %4075 = vst [vmem:[#allocation3 + $0x350] sm:$0xff] %v4056_v2  ;;  %v11441_v63 = vld [vmem:[#allocation3 + $0x16c] sm:$0xf0]  ;;  %4617 = vrot.lane.b32.xlu0 %v4588_v42, %s16842_s20  ;;  %3493 = vrot.lane.b32.xlu2 %v3469_v39, %s16944_s0  ;;  %v3342_v2 = vpop.permute.xlu0 %3341  ;;  %vm16959_vm13 = vmmov %vm16956_vm8  ;;  %vm16962_vm10 = vcmask 769024   ;;  %s17130_s0 = smov 84  }
 0x5a0   : > { %v3356_v22 = vsel %vm3089_vm1, %v16954_v41, %v3346_v21  ;;  %v11513_v21 = vld [vmem:[#allocation3 + $0x3ac] sm:$0xf0]  ;;  %6614 = vmatpush.bf16.msra.mxu1 %v10520_v46  ;;  %v16957_v41 = vrot.slane %v14220_v52, 4  ;;  %vm16961_vm12 = vmmov %vm16956_vm8 }
 0x5a1   : > { %v4634_v50 = vsel %vm3089_vm1, %v16953_v12, %v16753_v53  ;;  %v3357_v8 = vsel %vm16956_vm8, %v14190_v11, %v3356_v22  ;;  %v14849_v11 = vpop.permute.xlu1 %4698  ;;  %6507 = vmatmul.bf16.vlgmr.msra.gmra.mxu0 %v13916_v28  ;;  %vm16963_vm8 = vmmov %vm16962_vm10 }
 0x5a2   : > { %6575 = vmatpush.bf16.msrb.mxu0 %v10040_v0  ;;  %v4635_v44 = vsel %vm4630_vm6, %v16952_v4, %v4634_v50  ;;  %6525 = vmatpush.bf16.msra.mxu2 %v10068_v26  ;;  %v4754_v0 = vld [vmem:[#allocation4 + $0x54] sm:$0xf]  ;;  %3376 = vst [vmem:[#allocation3 + $0x110] sm:$0xff] %v3357_v8  ;;  %v9975_v26 = vld [vmem:[#allocation3 + $0x150] sm:$0xf]  ;;  %v16755_v57 = vrot.slane %v14849_v11, 4  ;;  %v3899_v4 = vpop.permute.xlu2 %3898 }
 0x5a3   : > { %4656 = vst [vmem:[#allocation3 + $0x510] sm:$0xff] %v4635_v44  ;;  %4783 = vrot.lane.b32.xlu1 %v4754_v0, %s16938_s12  ;;  %v9976_v12 = vor.u32 %v11441_v63, %v9975_v26  ;;  %v3907_v50 = vrot.slane %v3899_v4, 4  ;;  %v16960_v8 = vrot.slane %v14232_v24, 4  ;;  %v4417_v26 = vld [vmem:[#allocation4 + $0x24] sm:$0xf] }
 0x5a4   : > { %v4725_v22 = vsel %vm3089_vm1, %v16957_v41, %v16755_v57 }
 0x5a5   : > { %6526 = vmatmul.bf16.vlgmr.msra.gmra.mxu2 %v13955_v3  ;;  %v4726_v31 = vsel %vm4713_vm2, %v14220_v52, %v4725_v22  ;;  %v3920_v0 = vsel %vm3089_vm1, %v16960_v8, %v3907_v50  ;;  %v4666_v52 = vld [vmem:[#allocation4 + $0x28] sm:$0xf]  ;;  %v16968_v8 = vrot.slane %v14271_v56, 4 }
 0x5a6   : > { %6594 = vmatpush.bf16.msrb.mxu2 %v10296_v60  ;;  %6576 = vmatpush.bf16.msrb.mxu0 %v10008_v13  ;;  %v10264_v60 = vor.u32 %v11513_v21, %v10263_v19  ;;  %v3350_v13 = vrot.slane %v3342_v2, 4  ;;  %v10231_v46 = vld [vmem:[#allocation3 + $0x350] sm:$0xf]  ;;  %4743 = vst [vmem:[#allocation3 + $0x570] sm:$0xff] %v4726_v31  ;;  %v3921_v63 = vsel %vm16962_vm10, %v14232_v24, %v3920_v0  ;;  %v3391_v31 = vld [vmem:[#allocation4 + $0x4c] sm:$0xf] }
 0x5a7   : > { %v11505_v19 = vld [vmem:[#allocation3 + $0x36c] sm:$0xf0]  ;;  %v3922_v21 = vsel %vm16963_vm8, %v3899_v4, %v3907_v50  ;;  %4441 = vrot.lane.b32.xlu0 %v4417_v26, %s16805_s22  ;;  %3937 = vst [vmem:[#allocation3 + $0x2f0] sm:$0xff] %v3921_v63  ;;  %v16964_v50 = vrot.slane %v14265_v30, 4  ;;  %vm16969_vm10 = vcmask 64512   ;;  %vm16970_vm8 = vcmask 998400  }
 0x5a8   : > { %v3363_v14 = vsel %vm3089_vm1, %v16958_v34, %v3350_v13  ;;  %v3365_v44 = vsel %vm16959_vm13, %v3342_v2, %v3350_v13  ;;  %v10232_v39 = vor.u32 %v11505_v19, %v10231_v46  ;;  %6550 = vmatmul.bf16.gmra.mxu1 %v14319_v58  ;;  %3938 = vst.msk [vmem:[#allocation3 + $0x2f8] sm:$0xff] %vm13328_vm15, %v3922_v21  ;;  %v14881_v2 = vpop.permute.xlu0 %4522  ;;  %vm16965_vm13 = vcmask 752640   ;;  %v10487_v46 = vld [vmem:[#allocation3 + $0x550] sm:$0xf]  ;;  %v3723_v26 = vld [vmem:[#allocation4 + $0x4c] sm:$0xf] }
 0x5a9   : > { %v3364_v42 = vsel %vm16961_vm12, %v14222_v1, %v3363_v14  ;;  %3381 = vst.msk [vmem:[#allocation3 + $0x138] sm:$0xff] %vm13328_vm15, %v3365_v44  ;;  %v3962_v1 = vpop.permute.xlu1 %3961  ;;  %vm16966_vm12 = vmmov %vm16965_vm13  ;;  %v16967_v14 = vrot.slane %v14267_v25, 4 }
 0x5aa   : > { %6595 = vmatpush.bf16.msrb.mxu2 %v10264_v60  ;;  %6577 = vmatpush.bf16.msrb.mxu0 %v9976_v12  ;;  %3380 = vst [vmem:[#allocation3 + $0x130] sm:$0xff] %v3364_v42  ;;  %v4671_v60 = vld [vmem:[#allocation4 + $0x54] sm:$0xf]  ;;  %v3974_v24 = vrot.slane %v3962_v1, 4  ;;  %v3263_v4 = vpop.permute.xlu2 %3262  ;;  %v16745_v12 = vrot.slane %v14881_v2, 4 }
 0x5ab   : > { %4690 = vrot.lane.b32.xlu1 %v4666_v52, %s16831_s21  ;;  %4700 = vrot.lane.b32.xlu2 %v4671_v60, %s16831_s21  ;;  %v3275_v13 = vrot.slane %v3263_v4, 4  ;;  %v9943_v52 = vld [vmem:[#allocation3 + $0x110] sm:$0xf]  ;;  %s16780_s21 = smov 24  }
 0x5ac   : > { %v3984_v41 = vsel %vm3089_vm1, %v16964_v50, %v3974_v24  ;;  %v3986_v22 = vsel %vm16965_vm13, %v3962_v1, %v3974_v24  ;;  %v4551_v44 = vsel %vm3089_vm1, %v16967_v14, %v16745_v12  ;;  %vm16971_vm13 = vmmov %vm16970_vm8  ;;  %v4583_v1 = vld [vmem:[#allocation4 + $0x28] sm:$0xf]  ;;  %v17009_v12 = vld [vmem:[#allocation10_spill] sm:$0xff] }
 0x5ad   : > { %v3985_v34 = vsel %vm16966_vm12, %v14265_v30, %v3984_v41  ;;  %4005 = vst.msk [vmem:[#allocation3 + $0x318] sm:$0xff] %vm13328_vm15, %v3986_v22  ;;  %v3285_v0 = vsel %vm3089_vm1, %v16968_v8, %v3275_v13  ;;  %v11569_v19 = vld [vmem:[#allocation3 + $0x56c] sm:$0xf0]  ;;  %v4552_v42 = vsel %vm16969_vm10, %v14267_v25, %v4551_v44  ;;  %v3287_v63 = vsel %vm16971_vm13, %v3263_v4, %v3275_v13  ;;  %vm16974_vm12 = vmmov %vm16970_vm8 }
 0x5ae   : > { %6596 = vmatpush.bf16.msrb.mxu2 %v10232_v39  ;;  %4004 = vst [vmem:[#allocation3 + $0x310] sm:$0xff] %v3985_v34  ;;  %v3286_v30 = vsel %vm16970_vm8, %v14271_v56, %v3285_v0  ;;  %v10488_v21 = vor.u32 %v11569_v19, %v10487_v46  ;;  %v16972_v41 = vrot.slane %v14305_v59, 4  ;;  %v16973_v34 = vrot.slane %v14307_v29, 4  ;;  %v11497_v19 = vld [vmem:[#allocation3 + $0x32c] sm:$0xf0]  ;;  %vm16976_vm10 = vmmov %vm16970_vm8 }
 0x5af   : > { %4573 = vst [vmem:[#allocation3 + $0x4d0] sm:$0xff] %v4552_v42  ;;  %3752 = vrot.lane.b32.xlu0 %v3723_v26, %s16811_s24  ;;  %v16975_v8 = vrot.slane %v14317_v61, 4  ;;  %vm16977_vm8 = vcmask 785408  }
 0x5b0   : > { %3305 = vst [vmem:[#allocation3 + $0xd0] sm:$0xff] %v3286_v30  ;;  %6615 = vmatpush.bf16.msra.mxu1 %v10488_v21  ;;  %v3271_v24 = vpop.permute.xlu0 %3270  ;;  %vm16978_vm13 = vmmov %vm16977_vm8  ;;  %v4505_v21 = vld [vmem:[#allocation4 + $0x50] sm:$0xf] }
 0x5b1   : > { %v11433_v39 = vld [vmem:[#allocation3 + $0x12c] sm:$0xf0]  ;;  %3306 = vst.msk [vmem:[#allocation3 + $0xd8] sm:$0xff] %vm13328_vm15, %v3287_v63  ;;  %v14910_v25 = vpop.permute.xlu1 %4615  ;;  %6512 = vmatmul.bf16.gmra.mxu0 %v14458_v54  ;;  %v3279_v13 = vrot.slane %v3271_v24, 4 }
 0x5b2   : > { %v9944_v60 = vor.u32 %v11433_v39, %v9943_v52  ;;  %v16749_v56 = vrot.slane %v14910_v25, 4  ;;  %v3828_v4 = vpop.permute.xlu2 %3827  ;;  %v4915_v39 = vld [vmem:[#allocation4 + $0x28] sm:$0xf] }
 0x5b3   : > { %3420 = vrot.lane.b32.xlu1 %v3391_v31, %s16836_s18  ;;  %4607 = vrot.lane.b32.xlu2 %v4583_v1, %s16842_s20  ;;  %v3836_v50 = vrot.slane %v3828_v4, 4  ;;  %v3292_v14 = vsel %vm3089_vm1, %v16973_v34, %v3279_v13  ;;  %v3294_v44 = vsel %vm16974_vm12, %v3271_v24, %v3279_v13  ;;  %vm16980_vm12 = vcmask 769024  }
 0x5b4   : > { %6578 = vmatpush.bf16.msrb.mxu0 %v9944_v60  ;;  %v4642_v22 = vsel %vm3089_vm1, %v16972_v41, %v16749_v56  ;;  %v3293_v42 = vsel %vm16976_vm10, %v14307_v29, %v3292_v14  ;;  %3310 = vst.msk [vmem:[#allocation3 + $0xf8] sm:$0xff] %vm13328_vm15, %v3294_v44  ;;  %v4422_v41 = vld [vmem:[#allocation4 + $0x50] sm:$0xf]  ;;  %vm16981_vm10 = vmmov %vm16980_vm12  ;;  %v16983_v14 = vld [vmem:[#allocation21_spill] sm:$0xff] }
 0x5b5   : > { %6531 = vmatmul.bf16.gmra.mxu2 %v14444_v20  ;;  %v4643_v31 = vsel %vm4630_vm6, %v14305_v59, %v4642_v22  ;;  %v3849_v0 = vsel %vm3089_vm1, %v16975_v8, %v3836_v50  ;;  %v10199_v46 = vld [vmem:[#allocation3 + $0x310] sm:$0xf]  ;;  %v4500_v59 = vld [vmem:[#allocation4 + $0x24] sm:$0xf]  ;;  %3309 = vst [vmem:[#allocation3 + $0xf0] sm:$0xff] %v3293_v42  ;;  %v3851_v52 = vsel %vm16978_vm13, %v3828_v4, %v3836_v50  ;;  %v16979_v4 = vrot.slane %v14350_v38, 4 }
 0x5b6   : > { %4660 = vst [vmem:[#allocation3 + $0x530] sm:$0xff] %v4643_v31  ;;  %v3850_v30 = vsel %vm16977_vm8, %v14317_v61, %v3849_v0  ;;  %v10200_v63 = vor.u32 %v11497_v19, %v10199_v46  ;;  %v16982_v31 = vrot.slane %v14352_v45, 4  ;;  %v16984_v44 = vrot.slane %v16983_v14, 4  ;;  %v10455_v0 = vld [vmem:[#allocation3 + $0x510] sm:$0xf] }
 0x5b7   : > { %4939 = vrot.lane.b32.xlu0 %v4915_v39, %s16908_s28  ;;  %3866 = vst [vmem:[#allocation3 + $0x2b0] sm:$0xff] %v3850_v30  ;;  %vm16985_vm8 = vcmask 80896   ;;  %vm16986_vm13 = vcmask 1014784   ;;  %v9911_v30 = vld [vmem:[#allocation3 + $0xd0] sm:$0xf] }
 0x5b8   : > { %6597 = vmatpush.bf16.msrb.mxu2 %v10200_v63  ;;  %3867 = vst.msk [vmem:[#allocation3 + $0x2b8] sm:$0xff] %vm13328_vm15, %v3851_v52  ;;  %v14941_v26 = vpop.permute.xlu0 %4439  ;;  %v14965_v52 = vpop.f32.mrf.mxu0  ;;  %v3640_v39 = vld [vmem:[#allocation4 + $0x4c] sm:$0xf] }
 0x5b9   : > { %v3891_v29 = vpop.permute.xlu1 %3890  ;;  %v16747_v1 = vrot.slane %v14941_v26, 4 }
 0x5ba   : > { %v3903_v61 = vrot.slane %v3891_v29, 4  ;;  %v3192_v60 = vpop.permute.xlu2 %3191 }
 0x5bb   : > { %4524 = vrot.lane.b32.xlu1 %v4500_v59, %s16856_s16  ;;  %4534 = vrot.lane.b32.xlu2 %v4505_v21, %s16856_s16  ;;  %v3204_v24 = vrot.slane %v3192_v60, 4  ;;  %v4468_v34 = vsel %vm3089_vm1, %v16982_v31, %v16747_v1  ;;  %v16990_v31 = vld [vmem:[#allocation22_spill] sm:$0xff]  ;;  %s17133_s16 = smov 52  }
 0x5bc   : > { %v3913_v13 = vsel %vm3089_vm1, %v16979_v4, %v3903_v61  ;;  %v3915_v50 = vsel %vm16980_vm12, %v3891_v29, %v3903_v61  ;;  %v4469_v19 = vsel %vm16985_vm8, %v14352_v45, %v4468_v34  ;;  %vm16987_vm12 = vmmov %vm16986_vm13  ;;  %v11425_v59 = vld [vmem:[#allocation3 + $0xec] sm:$0xf0]  ;;  %v3718_v29 = vld [vmem:[#allocation4 + $0x20] sm:$0xf]  ;;  %v14969_v45 = vpop.f32.mrf.mxu2  ;;  %v14971_v61 = vpop.f32.mrf.mxu1  ;;  %v16991_v34 = vrot.slane %v16990_v31, 4 }
 0x5bd   : > { %v3914_v22 = vsel %vm16981_vm10, %v14350_v38, %v3913_v13  ;;  %3934 = vst.msk [vmem:[#allocation3 + $0x2d8] sm:$0xff] %vm13328_vm15, %v3915_v50  ;;  %v3214_v8 = vsel %vm3089_vm1, %v16984_v44, %v3204_v24  ;;  %v11561_v46 = vld [vmem:[#allocation3 + $0x52c] sm:$0xf0]  ;;  %v3216_v42 = vsel %vm16987_vm12, %v3192_v60, %v3204_v24  ;;  %v9912_v21 = vor.u32 %v11425_v59, %v9911_v30  ;;  %v14978_v24 = vpop.f32.mrf.mxu3  ;;  %vm16995_vm8 = vmmov %vm16987_vm12  ;;  %v5204_v59 = vld [vmem:[%s16512_s4 + $0x10] sm:$0xff] }
 0x5be   : > { %3933 = vst [vmem:[#allocation3 + $0x2d0] sm:$0xff] %v3914_v22  ;;  %v3215_v38 = vsel %vm16986_vm13, %v16983_v14, %v3214_v8  ;;  %v10456_v63 = vor.u32 %v11561_v46, %v10455_v0  ;;  %vm16992_vm10 = vcmask 64512   ;;  %v16993_v8 = vld [vmem:[#allocation23_spill] sm:$0xff]  ;;  %vm16998_vm13 = vmmov %vm16995_vm8  ;;  %vm16999_vm12 = vcmask 326656   ;;  %v11481_v57 = vld [vmem:[#allocation3 + $0x2ac] sm:$0xf0] }
 0x5bf   : > { %4490 = vst [vmem:[#allocation3 + $0x490] sm:$0xff] %v4469_v19  ;;  %3669 = vrot.lane.b32.xlu0 %v3640_v39, %s16812_s29  ;;  %6579 = vmatpush.bf16.msrb.mxu0 %v9912_v21  ;;  %v16994_v0 = vrot.slane %v16993_v8, 4  ;;  %v11489_v39 = vld [vmem:[#allocation3 + $0x2ec] sm:$0xf0] }
 0x5c0   : > { %3234 = vst [vmem:[#allocation3 + $0x90] sm:$0xff] %v3215_v38  ;;  %6616 = vmatpush.bf16.msra.mxu1 %v10456_v63  ;;  %v3200_v13 = vpop.permute.xlu0 %3199  ;;  %v16996_v38 = vld [vmem:[#allocation24_spill] sm:$0xff] }
 0x5c1   : > { %16988 = vst [vmem:[#allocation7_spill] sm:$0xff] %v14971_v61  ;;  %v14976_v60 = vpop.permute.xlu1 %4532 }
 0x5c2   : > { %3235 = vst.msk [vmem:[#allocation3 + $0x98] sm:$0xff] %vm13328_vm15, %v3216_v42  ;;  %v16748_v4 = vrot.slane %v14976_v60, 4  ;;  %v14981_v50 = vpop.permute.xlu2 %3750  ;;  %v16997_v42 = vrot.slane %v16996_v38, 4 }
 0x5c3   : > { %4451 = vrot.lane.b32.xlu1 %v4422_v41, %s16805_s22  ;;  %3742 = vrot.lane.b32.xlu2 %v3718_v29, %s16811_s24  ;;  %16989 = vst [vmem:[#allocation19_spill] sm:$0xff] %v14978_v24  ;;  %v3208_v41 = vrot.slane %v3200_v13, 4  ;;  %v16746_v22 = vrot.slane %v14981_v50, 4  ;;  %s16776_s22 = smov 80   ;;  %s16784_s24 = smov 52  }
 0x5c4   : > { %v4559_v14 = vsel %vm3089_vm1, %v16991_v34, %v16748_v4  ;;  %v4339_v34 = vld [vmem:[#allocation4 + $0x50] sm:$0xf] }
 0x5c5   : > { %v4560_v44 = vsel %vm16992_vm10, %v16990_v31, %v4559_v14  ;;  %v3221_v46 = vsel %vm3089_vm1, %v16994_v0, %v3208_v41  ;;  %v3223_v19 = vsel %vm16995_vm8, %v3200_v13, %v3208_v41  ;;  %v3777_v30 = vsel %vm3089_vm1, %v16997_v42, %v16746_v22  ;;  %v10167_v63 = vld [vmem:[#allocation3 + $0x2d0] sm:$0xf]  ;;  %v4334_v13 = vld [vmem:[#allocation4 + $0x24] sm:$0xf]  ;;  %v15007_v31 = vpop.f32.mrf.mxu0  ;;  %v15012_v14 = vpop.f32.mrf.mxu2 }
 0x5c6   : > { %4577 = vst [vmem:[#allocation3 + $0x4f0] sm:$0xff] %v4560_v44  ;;  %v3222_v21 = vsel %vm16998_vm13, %v16993_v8, %v3221_v46  ;;  %v3778_v29 = vsel %vm16999_vm12, %v16996_v38, %v3777_v30  ;;  %v10168_v41 = vor.u32 %v11489_v39, %v10167_v63  ;;  %v15014_v44 = vpop.f32.mrf.mxu1  ;;  %v15017_v0 = vpop.f32.mrf.mxu3  ;;  %vm17006_vm10 = vcmask 785408  }
 0x5c7   : > { %17000 = vst [vmem:[#allocation21_spill] sm:$0xff] %v15007_v31  ;;  %5218 = vperm.xlu0 %11783, %v5204_v59   ;;  %v17004_v59 = vld [vmem:[#allocation9_spill] sm:$0xff]  ;;  %vm17007_vm8 = vmmov %vm17006_vm10  ;;  %v17010_v22 = vrot.slane %v17009_v12, 4  ;;  %vm17015_vm13 = vcmask 80896   ;;  %vm17020_vm12 = vcmask 1031168  }
 0x5c8   : > { %3238 = vst [vmem:[#allocation3 + $0xb0] sm:$0xff] %v3222_v21  ;;  %6598 = vmatpush.bf16.msrb.mxu2 %v10168_v41  ;;  %v15019_v38 = vpop.permute.xlu0 %4356  ;;  %v17005_v63 = vrot.slane %v17004_v59, 4  ;;  %v17008_v41 = vrot.slane %v14442_v47, 4 }
 0x5c9   : > { %3239 = vst.msk [vmem:[#allocation3 + $0xb8] sm:$0xff] %vm13328_vm15, %v3223_v19  ;;  %v3820_v8 = vpop.permute.xlu1 %3819  ;;  %v16750_v19 = vrot.slane %v15019_v38, 4 }
 0x5ca   : > { %17001 = vst [vmem:[#allocation22_spill] sm:$0xff] %v15012_v14  ;;  %v3832_v46 = vrot.slane %v3820_v8, 4  ;;  %v15021_v42 = vpop.permute.xlu2 %4937  ;;  %v17033_v14 = vrot.slane %v14533_v6, 4 }
 0x5cb   : > { %4358 = vrot.lane.b32.xlu1 %v4334_v13, %s16896_s25  ;;  %17002 = vst [vmem:[#allocation23_spill] sm:$0xff] %v15014_v44  ;;  %4368 = vrot.lane.b32.xlu2 %v4339_v34, %s16896_s25  ;;  %v16751_v30 = vrot.slane %v15021_v42, 4  ;;  %v4385_v34 = vsel %vm3089_vm1, %v17008_v41, %v16750_v19 }
 0x5cc   : > { %3795 = vst [vmem:[#allocation3 + $0x270] sm:$0xff] %v3778_v29  ;;  %v3842_v39 = vsel %vm3089_vm1, %v17005_v63, %v3832_v46  ;;  %v3844_v21 = vsel %vm17006_vm10, %v3820_v8, %v3832_v46  ;;  %v4920_v29 = vld [vmem:[#allocation4 + $0x54] sm:$0xf]  ;;  %v10423_v8 = vld [vmem:[#allocation3 + $0x4d0] sm:$0xf]  ;;  %vm17021_vm10 = vmmov %vm17020_vm12 }
 0x5cd   : > { %17003 = vst [vmem:[#allocation24_spill] sm:$0xff] %v15017_v0  ;;  %v3843_v13 = vsel %vm17007_vm8, %v17004_v59, %v3842_v39  ;;  %v4966_v63 = vsel %vm3089_vm1, %v17010_v22, %v16751_v30  ;;  %v11553_v46 = vld [vmem:[#allocation3 + $0x4ec] sm:$0xf0]  ;;  %v4386_v59 = vsel %vm4381_vm4, %v14442_v47, %v4385_v34  ;;  %v15047_v56 = vpop.f32.mrf.mxu0  ;;  %v3635_v22 = vld [vmem:[#allocation4 + $0x20] sm:$0xf]  ;;  %v15050_v19 = vpop.f32.mrf.mxu2  ;;  %vm17029_vm8 = vcmask 326656  }
 0x5ce   : > { %3863 = vst.msk [vmem:[#allocation3 + $0x298] sm:$0xff] %vm13328_vm15, %v3844_v21  ;;  %v4967_v39 = vsel %vm4962_vm3, %v17009_v12, %v4966_v63  ;;  %v9879_v21 = vld [vmem:[#allocation3 + $0x90] sm:$0xf]  ;;  %v10424_v4 = vor.u32 %v11553_v46, %v10423_v8  ;;  %v15057_v12 = vpop.f32.mrf.mxu3 }
 0x5cf   : > { %3862 = vst [vmem:[#allocation3 + $0x290] sm:$0xff] %v3843_v13  ;;  %v11417_v1 = vld [vmem:[#allocation3 + $0xac] sm:$0xf0]  ;;  %v15052_v13 = vpop.f32.mrf.mxu1 }
 0x5d0   : > { %4407 = vst [vmem:[#allocation3 + $0x450] sm:$0xff] %v4386_v59  ;;  %v9880_v41 = vor.u32 %v11417_v1, %v9879_v21  ;;  %6617 = vmatpush.bf16.msra.mxu1 %v10424_v4  ;;  %v15060_v63 = vpop.permute.xlu0 %4947  ;;  %v17013_v4 = vld [vmem:[#allocation8_spill] sm:$0xff]  ;;  %v17018_v30 = vld [vmem:[#allocation26_spill] sm:$0xff] }
 0x5d1   : > { %4988 = vst [vmem:[#allocation3 + $0x610] sm:$0xff] %v4967_v39  ;;  %v15055_v47 = vpop.permute.xlu1 %4449  ;;  %v16758_v1 = vrot.slane %v15060_v63, 4  ;;  %v17014_v46 = vrot.slane %v17013_v4, 4  ;;  %v17016_v21 = vld [vmem:[#allocation16_spill] sm:$0xff]  ;;  %v17019_v16 = vrot.slane %v17018_v30, 4 }
 0x5d2   : > { %17011 = vst [vmem:[#allocation9_spill] sm:$0xff] %v15052_v13  ;;  %6580 = vmatpush.bf16.msrb.mxu0 %v9880_v41  ;;  %v16757_v34 = vrot.slane %v15055_v47, 4  ;;  %v17017_v41 = vrot.slane %v17016_v21, 4 }
 0x5d3   : > { %4949 = vrot.lane.b32.xlu1 %v4920_v29, %s16908_s28  ;;  %3659 = vrot.lane.b32.xlu2 %v3635_v22, %s16812_s29  ;;  %17012 = vst [vmem:[#allocation10_spill] sm:$0xff] %v15060_v63  ;;  %v3128_v29 = vpop.permute.xlu2 %3127  ;;  %s11839_s29 = smov 32  }
 0x5d4   : > { %v3136_v8 = vrot.slane %v3128_v29, 4  ;;  %v4476_v59 = vsel %vm3089_vm1, %v17014_v46, %v16757_v34  ;;  %v4974_v22 = vsel %vm3089_vm1, %v17017_v41, %v16758_v1 }
 0x5d5   : > { %v4477_v39 = vsel %vm17015_vm13, %v17013_v4, %v4476_v59  ;;  %v4975_v49 = vsel %vm4962_vm3, %v17016_v21, %v4974_v22  ;;  %v4251_v59 = vld [vmem:[#allocation4 + $0x24] sm:$0xf]  ;;  %v15083_v44 = vpop.f32.mrf.mxu0  ;;  %v15086_v41 = vpop.f32.mrf.mxu2  ;;  %vm17034_vm13 = vcmask 343040   ;;  %v11478_v17 = vld [vmem:[#allocation3 + $0x29c] sm:$0xf] }
 0x5d6   : > { %v3150_v53 = vsel %vm3089_vm1, %v17019_v16, %v3136_v8  ;;  %v10135_v35 = vld [vmem:[#allocation3 + $0x290] sm:$0xf]  ;;  %4494 = vst [vmem:[#allocation3 + $0x4b0] sm:$0xff] %v4477_v39  ;;  %v3152_v4 = vsel %vm17021_vm10, %v3128_v29, %v3136_v8 }
 0x5d7   : > { %v3151_v46 = vsel %vm17020_vm12, %v17018_v30, %v3150_v53  ;;  %v10136_v34 = vor.u32 %v11481_v57, %v10135_v35  ;;  %17022 = vst [vmem:[#allocation8_spill] sm:$0xff] %v15083_v44  ;;  %v4256_v16 = vld [vmem:[#allocation4 + $0x50] sm:$0xf]  ;;  %v15088_v39 = vpop.f32.mrf.mxu1  ;;  %v15095_v35 = vpop.f32.mrf.mxu3  ;;  %vm17045_vm12 = vmmov %vm17021_vm10 }
 0x5d8   : > { %4992 = vst [vmem:[#allocation3 + $0x630] sm:$0xff] %v4975_v49  ;;  %v15098_v57 = vpop.permute.xlu0 %3657  ;;  %v17027_v8 = vld [vmem:[#allocation14_spill] sm:$0xff] }
 0x5d9   : > { %3167 = vst [vmem:[#allocation3 + $0x70] sm:$0xff] %v3151_v46  ;;  %6599 = vmatpush.bf16.msrb.mxu2 %v10136_v34  ;;  %v15093_v53 = vpop.permute.xlu1 %3740  ;;  %v16760_v34 = vrot.slane %v15098_v57, 4  ;;  %v17028_v21 = vrot.slane %v17027_v8, 4  ;;  %v5205_v46 = vld [vmem:[%s16512_s4 + $0x18] sm:$0xff]  ;;  %v10583_v31 = vld [vmem:[#allocation3 + $0x610] sm:$0xf] }
 0x5da   : > { %17023 = vst [vmem:[#allocation16_spill] sm:$0xff] %v15086_v41  ;;  %v16759_v49 = vrot.slane %v15093_v53, 4 }
 0x5db   : > { %4275 = vrot.lane.b32.xlu1 %v4251_v59, %s16916_s13  ;;  %17024 = vst [vmem:[#allocation26_spill] sm:$0xff] %v15088_v39  ;;  %4285 = vrot.lane.b32.xlu2 %v4256_v16, %s16916_s13  ;;  %v15100_v30 = vpop.permute.xlu2 %4273  ;;  %v17030_v16 = vld [vmem:[#allocation13_spill] sm:$0xff]  ;;  %v11589_v39 = vld [vmem:[#allocation3 + $0x614] sm:$0xf]  ;;  %s11841_s13 = smov 20  }
 0x5dc   : > { %3168 = vst.msk [vmem:[#allocation3 + $0x78] sm:$0xff] %vm13328_vm15, %v3152_v4  ;;  %v3769_v22 = vsel %vm3089_vm1, %v17028_v21, %v16759_v49  ;;  %v10391_v4 = vld [vmem:[#allocation3 + $0x490] sm:$0xf]  ;;  %v17031_v1 = vrot.slane %v17030_v16, 4  ;;  %v17032_v0 = vrot.slane %v15100_v30, 4 }
 0x5dd   : > { %17025 = vst [vmem:[#allocation27_spill] sm:$0xff] %v15095_v35  ;;  %v3770_v59 = vsel %vm17029_vm8, %v17027_v8, %v3769_v22  ;;  %v11545_v49 = vld [vmem:[#allocation3 + $0x4ac] sm:$0xf0]  ;;  %v15131_v44 = vpop.f32.mrf.mxu0  ;;  %vm17050_vm8 = vmmov %vm17034_vm13 }
 0x5de   : > { %17026 = vst [vmem:[#allocation28_spill] sm:$0xff] %v15100_v30  ;;  %v3686_v29 = vsel %vm3089_vm1, %v17031_v1, %v16760_v34  ;;  %v4302_v21 = vsel %vm3089_vm1, %v17033_v14, %v17032_v0  ;;  %v5202_v1 = vld [vmem:[%s16512_s4] sm:$0xff]  ;;  %v10392_v22 = vor.u32 %v11545_v49, %v10391_v4 }
 0x5df   : > { %3791 = vst [vmem:[#allocation3 + $0x250] sm:$0xff] %v3770_v59  ;;  %v3687_v35 = vsel %vm17034_vm13, %v17030_v16, %v3686_v29  ;;  %v4303_v8 = vsel %vm4298_vm9, %v14533_v6, %v4302_v21  ;;  %v11593_v34 = vld [vmem:[#allocation3 + $0x62c] sm:$0xf0]  ;;  %v10585_v41 = vld [vmem:[#allocation3 + $0x630] sm:$0xf0]  ;;  %v15133_v59 = vpop.f32.mrf.mxu2  ;;  %v15135_v29 = vpop.f32.mrf.mxu1 }
 0x5e0   : > { %3708 = vst [vmem:[#allocation3 + $0x210] sm:$0xff] %v3687_v35  ;;  %v10584_v14 = vor.u32 %v11593_v34, %v10583_v31  ;;  %v10588_v0 = vor.u32 %v11589_v39, %v10585_v41  ;;  %6618 = vmatpush.bf16.msra.mxu1 %v10392_v22  ;;  %v15139_v16 = vpop.f32.mrf.mxu3  ;;  %v15142_v4 = vpop.permute.xlu0 %4283  ;;  %v17037_v39 = vrot.slane %v14565_v23, 4  ;;  %v17039_v22 = vrot.slane %v14571_v37, 4 }
 0x5e1   : > { %4324 = vst [vmem:[#allocation3 + $0x410] sm:$0xff] %v4303_v8  ;;  %v15137_v6 = vpop.permute.xlu1 %4366  ;;  %v16762_v31 = vrot.slane %v15142_v4, 4  ;;  %v17038_v8 = vrot.slane %v14567_v62, 4 }
 0x5e2   : > { %17035 = vst [vmem:[#allocation14_spill] sm:$0xff] %v15135_v29  ;;  %6639 = vmatpush.bf16.msra.mxu3 %v10584_v14  ;;  %v16761_v49 = vrot.slane %v15137_v6, 4  ;;  %v10457_v29 = vld [vmem:[#allocation3 + $0x530] sm:$0xf0] }
 0x5e3   : > { %5223 = vperm.xlu1 %11781, %v5205_v46   ;;  %5208 = vperm.xlu2 %11782, %v5202_v1   ;;  %17036 = vst [vmem:[#allocation13_spill] sm:$0xff] %v15139_v16  ;;  %v4203_v35 = vpop.permute.xlu2 %4202  ;;  %v5203_v46 = vld [vmem:[%s16512_s4 + $0x8] sm:$0xff]  ;;  %v4310_v1 = vsel %vm3089_vm1, %v17038_v8, %v16762_v31 }
 0x5e4   : > { %v4213_v41 = vrot.slane %v4203_v35, 4  ;;  %v4393_v34 = vsel %vm3089_vm1, %v17037_v39, %v16761_v49  ;;  %v11473_v35 = vld [vmem:[#allocation3 + $0x26c] sm:$0xf0]  ;;  %v4311_v39 = vsel %vm4298_vm9, %v14567_v62, %v4310_v1 }
 0x5e5   : > { %10605 = vmatmul.msk.bf16.vlgmr.msra.gmra.mxu3 %vm4215_vm0, %v14066_v33  ;;  %v4394_v21 = vsel %vm4381_vm4, %v14565_v23, %v4393_v34  ;;  %v15169_v34 = vpop.f32.mrf.mxu0  ;;  %4328 = vst [vmem:[#allocation3 + $0x430] sm:$0xff] %v4311_v39  ;;  %v11409_v16 = vld [vmem:[#allocation3 + $0x6c] sm:$0xf0] }
 0x5e6   : > { %6715 = vmatpush.bf16.msrb.mxu3 %v10588_v0  ;;  %v4229_v14 = vsel %vm3089_vm1, %v17039_v22, %v4213_v41  ;;  %v10103_v0 = vld [vmem:[#allocation3 + $0x250] sm:$0xf]  ;;  %4411 = vst [vmem:[#allocation3 + $0x470] sm:$0xff] %v4394_v21 }
 0x5e7   : > { %v4230_v49 = vsel %vm4215_vm0, %v14571_v37, %v4229_v14  ;;  %v10104_v23 = vor.u32 %v11473_v35, %v10103_v0  ;;  %17040 = vst [vmem:[#allocation29_spill] sm:$0xff] %v15169_v34  ;;  %v15173_v8 = vpop.f32.mrf.mxu1  ;;  %v15175_v22 = vpop.f32.mrf.mxu2  ;;  %v17044_v14 = vrot.slane %v14604_v51, 4  ;;  %v17046_v35 = vrot.slane %v14606_v43, 4 }
 0x5e8   : > { %4246 = vst.msk [vmem:[#allocation3 + $0x3f8] sm:$0xff] %vm13328_vm15, %v4230_v49  ;;  %v4857_v31 = vpop.permute.xlu0 %4856  ;;  %v15177_v37 = vpop.f32.mrf.mxu3 }
 0x5e9   : > { %6600 = vmatpush.bf16.msrb.mxu2 %v10104_v23  ;;  %17041 = vst [vmem:[#allocation30_spill] sm:$0xff] %v15173_v8  ;;  %v3120_v41 = vpop.permute.xlu1 %3119  ;;  %v4872_v1 = vrot.slane %v4857_v31, 4  ;;  %v17047_v31 = vrot.slane %v14610_v36, 4 }
 0x5ea   : > { %17042 = vst [vmem:[#allocation31_spill] sm:$0xff] %v15175_v22  ;;  %v3132_v21 = vrot.slane %v3120_v41, 4  ;;  %v10521_v22 = vld [vmem:[#allocation3 + $0x5b0] sm:$0xf0] }
 0x5eb   : > { %5213 = vperm.xlu1 %11781, %v5203_v46   ;;  %v3577_v62 = vpop.permute.xlu2 %3576  ;;  %17043 = vst [vmem:[#allocation32_spill] sm:$0xff] %v15177_v37  ;;  %v4885_v39 = vsel %vm3089_vm1, %v17046_v35, %v4872_v1 }
 0x5ec   : > { %v3592_v30 = vrot.slane %v3577_v62, 4  ;;  %v3143_v46 = vsel %vm3089_vm1, %v17044_v14, %v3132_v21  ;;  %v3145_v0 = vsel %vm17045_vm12, %v3120_v41, %v3132_v21  ;;  %v10359_v62 = vld [vmem:[#allocation3 + $0x450] sm:$0xf]  ;;  %v4886_v41 = vsel %vm4879_vm7, %v14606_v43, %v4885_v39  ;;  %v11581_v39 = vld [vmem:[#allocation3 + $0x5d4] sm:$0xf] }
 0x5ed   : > { %v3144_v49 = vsel %vm17021_vm10, %v14604_v51, %v3143_v46  ;;  %3164 = vst.msk [vmem:[#allocation3 + $0x58] sm:$0xff] %vm13328_vm15, %v3145_v0  ;;  %v11537_v37 = vld [vmem:[#allocation3 + $0x46c] sm:$0xf0]  ;;  %v15197_v14 = vpop.f32.mrf.mxu0 }
 0x5ee   : > { %v3605_v23 = vsel %vm3089_vm1, %v17047_v31, %v3592_v30  ;;  %3163 = vst [vmem:[#allocation3 + $0x50] sm:$0xff] %v3144_v49  ;;  %v10360_v21 = vor.u32 %v11537_v37, %v10359_v62  ;;  %v11529_v1 = vld [vmem:[#allocation3 + $0x42c] sm:$0xf0]  ;;  %v10553_v30 = vld [vmem:[#allocation3 + $0x5f0] sm:$0xf0] }
 0x5ef   : > { %v3606_v51 = vsel %vm1400_vm14, %v14610_v36, %v3605_v23  ;;  %4906 = vst.msk [vmem:[#allocation3 + $0x5d8] sm:$0xff] %vm13328_vm15, %v4886_v41  ;;  %v10327_v0 = vld [vmem:[#allocation3 + $0x410] sm:$0xf]  ;;  %v15205_v49 = vpop.f32.mrf.mxu1  ;;  %v10556_v62 = vor.u32 %v11581_v39, %v10553_v30  ;;  %v15208_v41 = vpop.f32.mrf.mxu2 }
 0x5f0   : > { %3626 = vst.msk [vmem:[#allocation3 + $0x1d8] sm:$0xff] %vm13328_vm15, %v3606_v51  ;;  %6619 = vmatpush.bf16.msra.mxu1 %v10360_v21  ;;  %v3587_v36 = vpop.permute.xlu0 %3586  ;;  %v10328_v35 = vor.u32 %v11529_v1, %v10327_v0  ;;  %v17048_v51 = vld [vmem:[#allocation11_spill] sm:$0xff]  ;;  %v17051_v0 = vld [vmem:[#allocation17_spill] sm:$0xff] }
 0x5f1   : > { %v15203_v46 = vpop.permute.xlu1 %3667  ;;  %v3597_v31 = vrot.slane %v3587_v36, 4  ;;  %v17049_v21 = vrot.slane %v17048_v51, 4  ;;  %v17052_v36 = vrot.slane %v17051_v0, 4 }
 0x5f2   : > { %v16767_v43 = vrot.slane %v15203_v46, 4 }
 0x5f3   : > { %v4120_v37 = vpop.permute.xlu2 %4119  ;;  %v3613_v30 = vsel %vm3089_vm1, %v17052_v36, %v3597_v31 }
 0x5f4   : > { %v4130_v23 = vrot.slane %v4120_v37, 4  ;;  %v3694_v8 = vsel %vm3089_vm1, %v17049_v21, %v16767_v43  ;;  %6620 = vmatpush.bf16.msra.mxu1 %v10328_v35  ;;  %v17053_v37 = vld [vmem:[#allocation18_spill] sm:$0xff]  ;;  %v15225_v21 = vpop.f32.mrf.mxu3  ;;  %v3614_v35 = vsel %vm1400_vm14, %v17051_v0, %v3613_v30  ;;  %vm17063_vm14 = vcmask 375808  }
 0x5f5   : > { %10606 = vmatmul.msk.bf16.gmra.mxu3 %vm4215_vm0, %v14401_v7  ;;  %v3695_v1 = vsel %vm17050_vm8, %v17048_v51, %v3694_v8  ;;  %v17054_v39 = vrot.slane %v17053_v37, 4  ;;  %v9847_v63 = vld [vmem:[#allocation3 + $0x50] sm:$0xf]  ;;  %17055 = vst [vmem:[#allocation11_spill] sm:$0xff] %v15225_v21  ;;  %v11573_v43 = vld [vmem:[#allocation3 + $0x594] sm:$0xf]  ;;  %v15231_v61 = vpop.f32.mrf.mxu0  ;;  %vm17067_vm13 = vmmov %vm17063_vm14 }
 0x5f6   : > { %3712 = vst [vmem:[#allocation3 + $0x230] sm:$0xff] %v3695_v1  ;;  %v9848_v51 = vor.u32 %v11409_v16, %v9847_v63  ;;  %v10524_v31 = vor.u32 %v11573_v43, %v10521_v22  ;;  %v10489_v1 = vld [vmem:[#allocation3 + $0x570] sm:$0xf0] }
 0x5f7   : > { %v4146_v34 = vsel %vm3089_vm1, %v17054_v39, %v4130_v23  ;;  %17056 = vst [vmem:[#allocation17_spill] sm:$0xff] %v15231_v61  ;;  %v11401_v23 = vld [vmem:[#allocation3 + $0x2c] sm:$0xf0]  ;;  %6621 = vmatmul.bf16.vlgmr.msra.gmra.mxu1 %v14234_v15  ;;  %v11453_v30 = vld [vmem:[#allocation3 + $0x1d4] sm:$0xf]  ;;  %v17057_v61 = vld [vmem:[#allocation12_spill] sm:$0xff]  ;;  %v15241_v24 = vpop.f32.mrf.mxu1 }
 0x5f8   : > { %6689 = vmatpush.bf16.msrb.mxu1 %v10556_v62  ;;  %v4147_v8 = vsel %vm707_vm5, %v17053_v37, %v4146_v34  ;;  %3630 = vst.msk [vmem:[#allocation3 + $0x1f8] sm:$0xff] %vm13328_vm15, %v3614_v35  ;;  %6581 = vmatpush.bf16.msrb.mxu0 %v9848_v51  ;;  %v10041_v62 = vld [vmem:[#allocation3 + $0x1f0] sm:$0xf0]  ;;  %v9815_v34 = vld [vmem:[#allocation3 + $0x10] sm:$0xf]  ;;  %v4774_v16 = vpop.permute.xlu0 %4773  ;;  %v17058_v21 = vrot.slane %v17057_v61, 4 }
 0x5f9   : > { %4163 = vst.msk [vmem:[#allocation3 + $0x3b8] sm:$0xff] %vm13328_vm15, %v4147_v8  ;;  %v4193_v0 = vpop.permute.xlu1 %4192  ;;  %v9816_v36 = vor.u32 %v11401_v23, %v9815_v34  ;;  %v11565_v37 = vld [vmem:[#allocation3 + $0x554] sm:$0xf]  ;;  %v4789_v39 = vrot.slane %v4774_v16, 4  ;;  %v10044_v22 = vor.u32 %v11453_v30, %v10041_v62  ;;  %v17060_v23 = vld [vmem:[#allocation15_spill] sm:$0xff]  ;;  %v15248_v30 = vpop.f32.mrf.mxu2 }
 0x5fa   : > { %v4208_v63 = vrot.slane %v4193_v0, 4  ;;  %v10492_v43 = vor.u32 %v11565_v37, %v10489_v1  ;;  %v11517_v51 = vld [vmem:[#allocation3 + $0x3d4] sm:$0xf]  ;;  %17059 = vst [vmem:[#allocation18_spill] sm:$0xff] %v15241_v24  ;;  %v17061_v0 = vrot.slane %v17060_v23, 4 }
 0x5fb   : > { %v3494_v35 = vpop.permute.xlu2 %3493  ;;  %v10071_v62 = vld [vmem:[#allocation3 + $0x210] sm:$0xf]  ;;  %v10009_v16 = vld [vmem:[#allocation3 + $0x1b0] sm:$0xf0] }
 0x5fc   : > { %6690 = vmatpush.bf16.msrb.mxu1 %v10524_v31  ;;  %v4221_v13 = vsel %vm3089_vm1, %v17058_v21, %v4208_v63  ;;  %v3509_v8 = vrot.slane %v3494_v35, 4  ;;  %6582 = vmatpush.bf16.msrb.mxu0 %v9816_v36  ;;  %v4802_v34 = vsel %vm3089_vm1, %v17061_v0, %v4789_v39  ;;  %v17062_v63 = vrot.slane %v14686_v18, 4  ;;  %v10297_v36 = vld [vmem:[#allocation3 + $0x3f0] sm:$0xf0] }
 0x5fd   : > { %v4222_v31 = vsel %vm4215_vm0, %v17057_v61, %v4221_v13  ;;  %v11465_v1 = vld [vmem:[#allocation3 + $0x22c] sm:$0xf0]  ;;  %v4803_v21 = vsel %vm4796_vm11, %v17060_v23, %v4802_v34  ;;  %v11557_v37 = vld [vmem:[#allocation3 + $0x514] sm:$0xf]  ;;  %v15257_v39 = vpop.f32.mrf.mxu0  ;;  %v15264_v23 = vpop.f32.mrf.mxu3 }
 0x5fe   : > { %4242 = vst.msk [vmem:[#allocation3 + $0x3d8] sm:$0xff] %vm13328_vm15, %v4222_v31  ;;  %v3522_v61 = vsel %vm3089_vm1, %v17062_v63, %v3509_v8  ;;  %v10072_v13 = vor.u32 %v11465_v1, %v10071_v62  ;;  %v11445_v31 = vld [vmem:[#allocation3 + $0x194] sm:$0xf] }
 0x5ff   : > { %4823 = vst.msk [vmem:[#allocation3 + $0x598] sm:$0xff] %vm13328_vm15, %v4803_v21  ;;  %v3523_v35 = vsel %vm17063_vm14, %v14686_v18, %v3522_v61  ;;  %6583 = vmatmul.bf16.vlgmr.msrb.gmra.mxu0 %v13916_v28  ;;  %v10012_v8 = vor.u32 %v11445_v31, %v10009_v16  ;;  %v11509_v0 = vld [vmem:[#allocation3 + $0x394] sm:$0xf]  ;;  %v17065_v16 = vrot.slane %v14715_v9, 4 }
 0x600   : > { %6651 = vmatpush.bf16.msra.mxu0 %v10044_v22  ;;  %6691 = vmatpush.bf16.msrb.mxu1 %v10492_v43  ;;  %v10300_v22 = vor.u32 %v11517_v51, %v10297_v36  ;;  %v10460_v43 = vor.u32 %v11557_v37, %v10457_v29  ;;  %17064 = vst [vmem:[#allocation12_spill] sm:$0xff] %v15264_v23  ;;  %v10425_v34 = vld [vmem:[#allocation3 + $0x4f0] sm:$0xf0]  ;;  %v3504_v18 = vpop.permute.xlu0 %3503 }
 0x601   : > { %3543 = vst.msk [vmem:[#allocation3 + $0x198] sm:$0xff] %vm13328_vm15, %v3523_v35  ;;  %6601 = vmatpush.bf16.msrb.mxu2 %v10072_v13  ;;  %v4867_v62 = vpop.permute.xlu1 %4866  ;;  %v9977_v1 = vld [vmem:[#allocation3 + $0x170] sm:$0xf0]  ;;  %v3514_v29 = vrot.slane %v3504_v18, 4 }
 0x602   : > { %v4877_v21 = vrot.slane %v4867_v62, 4  ;;  %v10265_v63 = vld [vmem:[#allocation3 + $0x3b0] sm:$0xf0]  ;;  %v17066_v62 = vrot.slane %v14717_v40, 4 }
 0x603   : > { %v11549_v51 = vld [vmem:[#allocation3 + $0x4d4] sm:$0xf]  ;;  %v10268_v37 = vor.u32 %v11509_v0, %v10265_v63 }
 0x604   : > { %6692 = vmatpush.bf16.msrb.mxu1 %v10460_v43  ;;  %6652 = vmatpush.bf16.msra.mxu0 %v10012_v8  ;;  %v11437_v36 = vld [vmem:[#allocation3 + $0x154] sm:$0xf]  ;;  %v10428_v35 = vor.u32 %v11549_v51, %v10425_v34  ;;  %v4893_v13 = vsel %vm3089_vm1, %v17065_v16, %v4877_v21  ;;  %v3530_v18 = vsel %vm3089_vm1, %v17066_v62, %v3514_v29  ;;  %v15286_v51 = vpop.f32.mrf.mxu1 }
 0x605   : > { %6670 = vmatpush.bf16.msra.mxu2 %v10300_v22  ;;  %v4701_v61 = vpop.permute.xlu2 %4700  ;;  %v9980_v22 = vor.u32 %v11437_v36, %v9977_v1  ;;  %v11501_v43 = vld [vmem:[#allocation3 + $0x354] sm:$0xf]  ;;  %10607 = vmatmul.msk.bf16.vlgmr.msrb.gmra.mxu3 %vm4215_vm0, %v14066_v33  ;;  %v4894_v8 = vsel %vm4879_vm7, %v14715_v9, %v4893_v13  ;;  %v3531_v34 = vsel %vm17067_vm13, %v14717_v40, %v3530_v18  ;;  %v17068_v1 = vrot.slane %v14849_v11, 4  ;;  %vm17095_vm13 = vmmov %vm17050_vm8 }
 0x606   : > { %6602 = vmatmul.bf16.vlgmr.msrb.gmra.mxu2 %v13955_v3  ;;  %v4711_v31 = vrot.slane %v4701_v61, 4  ;;  %v10393_v23 = vld [vmem:[#allocation3 + $0x4b0] sm:$0xf0]  ;;  %4910 = vst.msk [vmem:[#allocation3 + $0x5f8] sm:$0xff] %vm13328_vm15, %v4894_v8  ;;  %vm17072_vm7 = vcmask 392192  }
 0x607   : > { %v9945_v0 = vld [vmem:[#allocation3 + $0x130] sm:$0xf0]  ;;  %3547 = vst.msk [vmem:[#allocation3 + $0x1b8] sm:$0xff] %vm13328_vm15, %v3531_v34  ;;  %6626 = vmatmul.bf16.gmra.mxu1 %v14319_v58 }
 0x608   : > { %6693 = vmatpush.bf16.msrb.mxu1 %v10428_v35  ;;  %v4727_v21 = vsel %vm3089_vm1, %v17068_v1, %v4711_v31  ;;  %6653 = vmatpush.bf16.msra.mxu0 %v9980_v22  ;;  %v10233_v63 = vld [vmem:[#allocation3 + $0x370] sm:$0xf0]  ;;  %v15292_v35 = vpop.f32.mrf.mxu2  ;;  %v15297_v31 = vpop.f32.mrf.mxu0 }
 0x609   : > { %6671 = vmatpush.bf16.msra.mxu2 %v10268_v37  ;;  %v11541_v9 = vld [vmem:[#allocation3 + $0x494] sm:$0xf]  ;;  %v4728_v29 = vsel %vm4713_vm2, %v14849_v11, %v4727_v21  ;;  %v10236_v61 = vor.u32 %v11501_v43, %v10233_v63  ;;  %17069 = vst [vmem:[#allocation15_spill] sm:$0xff] %v15297_v31  ;;  %v4110_v22 = vpop.permute.xlu1 %4109  ;;  %v15299_v11 = vpop.f32.mrf.mxu3 }
 0x60a   : > { %v10396_v36 = vor.u32 %v11541_v9, %v10393_v23  ;;  %v11429_v37 = vld [vmem:[#allocation3 + $0x114] sm:$0xf]  ;;  %4744 = vst.msk [vmem:[#allocation3 + $0x578] sm:$0xff] %vm13328_vm15, %v4728_v29  ;;  %v4125_v23 = vrot.slane %v4110_v22, 4  ;;  %v3411_v43 = vpop.permute.xlu0 %3410  ;;  %v17070_v9 = vrot.slane %v14750_v48, 4 }
 0x60b   : > { %v9948_v40 = vor.u32 %v11429_v37, %v9945_v0  ;;  %v11493_v16 = vld [vmem:[#allocation3 + $0x314] sm:$0xf]  ;;  %v3426_v34 = vrot.slane %v3411_v43, 4 }
 0x60c   : > { %v10361_v13 = vld [vmem:[#allocation3 + $0x470] sm:$0xf0]  ;;  %6694 = vmatpush.bf16.msrb.mxu1 %v10396_v36  ;;  %v4138_v29 = vsel %vm3089_vm1, %v17070_v9, %v4125_v23 }
 0x60d   : > { %6672 = vmatpush.bf16.msra.mxu2 %v10236_v61  ;;  %v9913_v8 = vld [vmem:[#allocation3 + $0xf0] sm:$0xf0]  ;;  %6654 = vmatpush.bf16.msra.mxu0 %v9948_v40  ;;  %v4608_v1 = vpop.permute.xlu2 %4607  ;;  %v4139_v22 = vsel %vm707_vm5, %v14750_v48, %v4138_v29  ;;  %v17071_v40 = vrot.slane %v14757_v27, 4  ;;  %v15325_v29 = vpop.f32.mrf.mxu1  ;;  %vm17077_vm5 = vcmask 64512  }
 0x60e   : > { %v10201_v62 = vld [vmem:[#allocation3 + $0x330] sm:$0xf0]  ;;  %v4623_v37 = vrot.slane %v4608_v1, 4  ;;  %4159 = vst.msk [vmem:[#allocation3 + $0x398] sm:$0xff] %vm13328_vm15, %v4139_v22  ;;  %vm17089_vm10 = vmmov %vm17077_vm5 }
 0x60f   : > { %v11533_v18 = vld [vmem:[#allocation3 + $0x454] sm:$0xf]  ;;  %v10204_v63 = vor.u32 %v11493_v16, %v10201_v62  ;;  %v3439_v24 = vsel %vm3089_vm1, %v17071_v40, %v3426_v34  ;;  %v11586_v16 = vld [vmem:[#allocation3 + $0x5f4] sm:$0xf0]  ;;  %6588 = vmatmul.bf16.gmra.mxu0 %v14458_v54 }
 0x610   : > { %v11421_v21 = vld [vmem:[#allocation3 + $0xd4] sm:$0xf]  ;;  %v10364_v0 = vor.u32 %v11533_v18, %v10361_v13  ;;  %v3440_v13 = vsel %vm17072_vm7, %v14757_v27, %v3439_v24  ;;  %v15321_v27 = vpop.f32.mrf.mxu2 }
 0x611   : > { %v9916_v61 = vor.u32 %v11421_v21, %v9913_v8  ;;  %v11485_v36 = vld [vmem:[#allocation3 + $0x2d4] sm:$0xf]  ;;  %6673 = vmatpush.bf16.msra.mxu2 %v10204_v63  ;;  %v17073_v8 = vrot.slane %v14820_v32, 4  ;;  %3460 = vst.msk [vmem:[#allocation3 + $0x158] sm:$0xff] %vm13328_vm15, %v3440_v13  ;;  %v10559_v63 = vld [vmem:[#allocation3 + $0x5d8] sm:$0xf] }
 0x612   : > { %v10329_v31 = vld [vmem:[#allocation3 + $0x430] sm:$0xf0]  ;;  %6695 = vmatpush.bf16.msrb.mxu1 %v10364_v0  ;;  %v10560_v0 = vor.u32 %v11586_v16, %v10559_v63  ;;  %v4618_v22 = vpop.permute.xlu0 %4617 }
 0x613   : > { %v9881_v43 = vld [vmem:[#allocation3 + $0xb0] sm:$0xf0]  ;;  %v4636_v23 = vsel %vm3089_vm1, %v17073_v8, %v4623_v37  ;;  %6655 = vmatpush.bf16.msra.mxu0 %v9916_v61  ;;  %v4628_v40 = vrot.slane %v4618_v22, 4  ;;  %v15330_v8 = vpop.f32.mrf.mxu3 }
 0x614   : > { %v10169_v48 = vld [vmem:[#allocation3 + $0x2f0] sm:$0xf0]  ;;  %v4637_v18 = vsel %vm4630_vm6, %v14820_v32, %v4636_v23  ;;  %v17074_v23 = vrot.slane %v14784_v55, 4 }
 0x615   : > { %v11525_v62 = vld [vmem:[#allocation3 + $0x414] sm:$0xf]  ;;  %v10172_v34 = vor.u32 %v11485_v36, %v10169_v48  ;;  %4657 = vst.msk [vmem:[#allocation3 + $0x518] sm:$0xff] %vm13328_vm15, %v4637_v18  ;;  %v4784_v37 = vpop.permute.xlu1 %4783  ;;  %v15327_v36 = vpop.f32.mrf.mxu0  ;;  %10608 = vmatmul.msk.bf16.gmra.mxu3 %vm4215_vm0, %v14401_v7 }
 0x616   : > { %v10332_v1 = vor.u32 %v11525_v62, %v10329_v31  ;;  %v11413_v21 = vld [vmem:[#allocation3 + $0x94] sm:$0xf]  ;;  %v4794_v61 = vrot.slane %v4784_v37, 4  ;;  %v4535_v13 = vpop.permute.xlu2 %4534  ;;  %6607 = vmatmul.bf16.gmra.mxu2 %v14444_v20 }
 0x617   : > { %v9884_v24 = vor.u32 %v11413_v21, %v9881_v43  ;;  %v11477_v9 = vld [vmem:[#allocation3 + $0x294] sm:$0xf]  ;;  %6674 = vmatpush.bf16.msra.mxu2 %v10172_v34  ;;  %v4545_v62 = vrot.slane %v4535_v13, 4  ;;  %v17075_v21 = vrot.slane %v14910_v25, 4  ;;  %v10047_v13 = vld [vmem:[#allocation3 + $0x1d8] sm:$0xf] }
 0x618   : > { %6696 = vmatpush.bf16.msrb.mxu1 %v10332_v1  ;;  %v11405_v32 = vld [vmem:[#allocation3 + $0x54] sm:$0xf]  ;;  %v4810_v48 = vsel %vm3089_vm1, %v17074_v23, %v4794_v61  ;;  %v11458_v61 = vld [vmem:[#allocation3 + $0x1f4] sm:$0xf0] }
 0x619   : > { %6656 = vmatpush.bf16.msra.mxu0 %v9884_v24  ;;  %v10137_v31 = vld [vmem:[#allocation3 + $0x2b0] sm:$0xf0]  ;;  %v4811_v1 = vsel %vm4796_vm11, %v14784_v55, %v4810_v48  ;;  %v4644_v63 = vsel %vm3089_vm1, %v17075_v21, %v4628_v40  ;;  %v15353_v40 = vpop.f32.mrf.mxu2  ;;  %v10048_v23 = vor.u32 %v11458_v61, %v10047_v13  ;;  %v10303_v48 = vld [vmem:[#allocation3 + $0x3d8] sm:$0xf]  ;;  %vm17082_vm11 = vcmask 326656  }
 0x61a   : > { %v9849_v43 = vld [vmem:[#allocation3 + $0x70] sm:$0xf0]  ;;  %v10140_v16 = vor.u32 %v11477_v9, %v10137_v31  ;;  %4827 = vst.msk [vmem:[#allocation3 + $0x5b8] sm:$0xff] %vm13328_vm15, %v4811_v1  ;;  %v17076_v9 = vrot.slane %v14976_v60, 4  ;;  %v15358_v1 = vpop.f32.mrf.mxu1  ;;  %vm17086_vm12 = vmmov %vm17082_vm11 }
 0x61b   : > { %v9852_v18 = vor.u32 %v11405_v32, %v9849_v43  ;;  %v11469_v34 = vld [vmem:[#allocation3 + $0x254] sm:$0xf]  ;;  %6697 = vmatmul.bf16.vlgmr.msrb.gmra.mxu1 %v14234_v15 }
 0x61c   : > { %6765 = vmatpush.bf16.msra.mxu1 %v10560_v0  ;;  %6675 = vmatpush.bf16.msra.mxu2 %v10140_v16  ;;  %v9817_v24 = vld [vmem:[#allocation3 + $0x30] sm:$0xf0]  ;;  %v4645_v0 = vsel %vm4630_vm6, %v14910_v25, %v4644_v63  ;;  %v4561_v37 = vsel %vm3089_vm1, %v17076_v9, %v4545_v62  ;;  %v11522_v9 = vld [vmem:[#allocation3 + $0x3f4] sm:$0xf0]  ;;  %vm17080_vm6 = vcmask 80896  }
 0x61d   : > { %6657 = vmatpush.bf16.msra.mxu0 %v9852_v18  ;;  %v10105_v32 = vld [vmem:[#allocation3 + $0x270] sm:$0xf0]  ;;  %4661 = vst.msk [vmem:[#allocation3 + $0x538] sm:$0xff] %vm13328_vm15, %v4645_v0  ;;  %v4562_v55 = vsel %vm17077_vm5, %v14976_v60, %v4561_v37  ;;  %v4691_v16 = vpop.permute.xlu1 %4690  ;;  %v4442_v18 = vpop.permute.xlu0 %4441  ;;  %v10304_v61 = vor.u32 %v11522_v9, %v10303_v48  ;;  %v10239_v9 = vld [vmem:[#allocation3 + $0x358] sm:$0xf]  ;;  %vm17093_vm14 = vmmov %vm17080_vm6 }
 0x61e   : > { %v10108_v22 = vor.u32 %v11469_v34, %v10105_v32  ;;  %v11397_v31 = vld [vmem:[#allocation3 + $0x14] sm:$0xf]  ;;  %4578 = vst.msk [vmem:[#allocation3 + $0x4f8] sm:$0xff] %vm13328_vm15, %v4562_v55  ;;  %v4706_v62 = vrot.slane %v4691_v16, 4  ;;  %v11450_v34 = vld [vmem:[#allocation3 + $0x1b4] sm:$0xf0]  ;;  %v3743_v63 = vpop.permute.xlu2 %3742 }
 0x61f   : > { %v9820_v25 = vor.u32 %v11397_v31, %v9817_v24  ;;  %v10073_v43 = vld [vmem:[#allocation3 + $0x230] sm:$0xf0]  ;;  %v4457_v21 = vrot.slane %v4442_v18, 4  ;;  %v17078_v24 = vrot.slane %v14752_v10, 4  ;;  %v3758_v32 = vrot.slane %v3743_v63, 4 }
 0x620   : > { %6676 = vmatpush.bf16.msra.mxu2 %v10108_v22  ;;  %v11461_v60 = vld [vmem:[#allocation3 + $0x214] sm:$0xf]  ;;  %v10015_v55 = vld [vmem:[#allocation3 + $0x198] sm:$0xf]  ;;  %v15363_v22 = vpop.f32.mrf.mxu0 }
 0x621   : > { %6658 = vmatpush.bf16.msra.mxu0 %v9820_v25  ;;  %v10076_v0 = vor.u32 %v11461_v60, %v10073_v43  ;;  %v4719_v37 = vsel %vm3089_vm1, %v17078_v24, %v4706_v62  ;;  %v17079_v25 = vrot.slane %v14941_v26, 4  ;;  %v10016_v16 = vor.u32 %v11450_v34, %v10015_v55  ;;  %v10527_v43 = vld [vmem:[#allocation3 + $0x598] sm:$0xf]  ;;  %v15370_v60 = vpop.f32.mrf.mxu3  ;;  %v15386_v24 = vpop.f32.mrf.mxu2 }
 0x622   : > { %v4720_v31 = vsel %vm4713_vm2, %v14752_v10, %v4719_v37  ;;  %v10271_v18 = vld [vmem:[#allocation3 + $0x398] sm:$0xf]  ;;  %v17081_v62 = vrot.slane %v15093_v53, 4  ;;  %vm17084_vm2 = vmmov %vm17072_vm7 }
 0x623   : > { %v4470_v13 = vsel %vm3089_vm1, %v17079_v25, %v4457_v21  ;;  %4740 = vst.msk [vmem:[#allocation3 + $0x558] sm:$0xff] %vm13328_vm15, %v4720_v31  ;;  %v11514_v21 = vld [vmem:[#allocation3 + $0x3b4] sm:$0xf0]  ;;  %v17083_v31 = vrot.slane %v14788_v5, 4 }
 0x624   : > { %6677 = vmatpush.bf16.msra.mxu2 %v10076_v0  ;;  %v4471_v48 = vsel %vm17080_vm6, %v14941_v26, %v4470_v13  ;;  %v3771_v10 = vsel %vm3089_vm1, %v17081_v62, %v3758_v32  ;;  %6659 = vmatmul.bf16.vlgmr.msra.gmra.mxu0 %v13916_v28  ;;  %v10272_v26 = vor.u32 %v11514_v21, %v10271_v18  ;;  %v17085_v18 = vrot.slane %v14981_v50, 4 }
 0x625   : > { %6727 = vmatpush.bf16.msrb.mxu0 %v10048_v23  ;;  %v11578_v23 = vld [vmem:[#allocation3 + $0x5b4] sm:$0xf0]  ;;  %4491 = vst.msk [vmem:[#allocation3 + $0x498] sm:$0xff] %vm13328_vm15, %v4471_v48  ;;  %v3772_v34 = vsel %vm17082_vm11, %v15093_v53, %v3771_v10  ;;  %v3421_v0 = vpop.permute.xlu1 %3420  ;;  %v3753_v32 = vpop.permute.xlu0 %3752  ;;  %v17087_v21 = vrot.slane %v15137_v6, 4 }
 0x626   : > { %v10528_v63 = vor.u32 %v11578_v23, %v10527_v43  ;;  %3792 = vst.msk [vmem:[#allocation3 + $0x258] sm:$0xff] %vm13328_vm15, %v3772_v34  ;;  %v3431_v37 = vrot.slane %v3421_v0, 4  ;;  %v3763_v55 = vrot.slane %v3753_v32, 4  ;;  %v11506_v53 = vld [vmem:[#allocation3 + $0x374] sm:$0xf0]  ;;  %v15392_v43 = vpop.f32.mrf.mxu1 }
 0x627   : > { %6678 = vmatmul.bf16.vlgmr.msra.gmra.mxu2 %v13955_v3  ;;  %v11570_v10 = vld [vmem:[#allocation3 + $0x574] sm:$0xf0] }
 0x628   : > { %6746 = vmatpush.bf16.msrb.mxu2 %v10304_v61  ;;  %6766 = vmatpush.bf16.msra.mxu1 %v10528_v63  ;;  %v4369_v61 = vpop.permute.xlu2 %4368  ;;  %v3447_v25 = vsel %vm3089_vm1, %v17083_v31, %v3431_v37  ;;  %v3779_v48 = vsel %vm3089_vm1, %v17085_v18, %v3763_v55  ;;  %v10207_v63 = vld [vmem:[#allocation3 + $0x318] sm:$0xf] }
 0x629   : > { %6728 = vmatpush.bf16.msrb.mxu0 %v10016_v16  ;;  %v4379_v13 = vrot.slane %v4369_v61, 4  ;;  %v10240_v16 = vor.u32 %v11506_v53, %v10239_v9  ;;  %v3448_v23 = vsel %vm17084_vm2, %v14788_v5, %v3447_v25  ;;  %v3780_v34 = vsel %vm17086_vm12, %v14981_v50, %v3779_v48  ;;  %v15406_v5 = vpop.f32.mrf.mxu0  ;;  %v11498_v37 = vld [vmem:[#allocation3 + $0x334] sm:$0xf0]  ;;  %v15412_v55 = vpop.f32.mrf.mxu3 }
 0x62a   : > { %v10495_v62 = vld [vmem:[#allocation3 + $0x558] sm:$0xf]  ;;  %3464 = vst.msk [vmem:[#allocation3 + $0x178] sm:$0xff] %vm13328_vm15, %v3448_v23  ;;  %v10208_v50 = vor.u32 %v11498_v37, %v10207_v63  ;;  %v15417_v48 = vpop.f32.mrf.mxu2 }
 0x62b   : > { %v10496_v0 = vor.u32 %v11570_v10, %v10495_v62  ;;  %3796 = vst.msk [vmem:[#allocation3 + $0x278] sm:$0xff] %vm13328_vm15, %v3780_v34  ;;  %v11562_v32 = vld [vmem:[#allocation3 + $0x534] sm:$0xf0]  ;;  %6702 = vmatmul.bf16.gmra.mxu1 %v14319_v58  ;;  %v17088_v62 = vrot.slane %v14881_v2, 4 }
 0x62c   : > { %6747 = vmatpush.bf16.msrb.mxu2 %v10272_v26  ;;  %v4395_v26 = vsel %vm3089_vm1, %v17087_v21, %v4379_v13  ;;  %v10463_v53 = vld [vmem:[#allocation3 + $0x518] sm:$0xf] }
 0x62d   : > { %v4396_v9 = vsel %vm4381_vm4, %v15137_v6, %v4395_v26  ;;  %6767 = vmatpush.bf16.msra.mxu1 %v10496_v0  ;;  %v4525_v61 = vpop.permute.xlu1 %4524  ;;  %v10175_v31 = vld [vmem:[#allocation3 + $0x2d8] sm:$0xf]  ;;  %v4940_v13 = vpop.permute.xlu0 %4939  ;;  %v17090_v26 = vrot.slane %v15021_v42, 4 }
 0x62e   : > { %4412 = vst.msk [vmem:[#allocation3 + $0x478] sm:$0xff] %vm13328_vm15, %v4396_v9  ;;  %v4540_v25 = vrot.slane %v4525_v61, 4  ;;  %v4955_v23 = vrot.slane %v4940_v13, 4  ;;  %v11490_v18 = vld [vmem:[#allocation3 + $0x2f4] sm:$0xf0]  ;;  %v17091_v61 = vrot.slane %v15098_v57, 4 }
 0x62f   : > { %v10176_v21 = vor.u32 %v11490_v18, %v10175_v31  ;;  %v9983_v9 = vld [vmem:[#allocation3 + $0x158] sm:$0xf] }
 0x630   : > { %6748 = vmatpush.bf16.msrb.mxu2 %v10240_v16  ;;  %v10464_v16 = vor.u32 %v11562_v32, %v10463_v53  ;;  %v3660_v6 = vpop.permute.xlu2 %3659  ;;  %v4553_v10 = vsel %vm3089_vm1, %v17088_v62, %v4540_v25  ;;  %v4968_v0 = vsel %vm3089_vm1, %v17090_v26, %v4955_v23  ;;  %v10143_v32 = vld [vmem:[#allocation3 + $0x298] sm:$0xf] }
 0x631   : > { %v3675_v34 = vrot.slane %v3660_v6, 4  ;;  %v4554_v63 = vsel %vm17089_vm10, %v14881_v2, %v4553_v10  ;;  %v11442_v37 = vld [vmem:[#allocation3 + $0x174] sm:$0xf0]  ;;  %v15434_v2 = vpop.f32.mrf.mxu1  ;;  %v15443_v23 = vpop.f32.mrf.mxu0 }
 0x632   : > { %6768 = vmatpush.bf16.msra.mxu1 %v10464_v16  ;;  %4574 = vst.msk [vmem:[#allocation3 + $0x4d8] sm:$0xff] %vm13328_vm15, %v4554_v63  ;;  %v9984_v31 = vor.u32 %v11442_v37, %v9983_v9  ;;  %v11482_v13 = vld [vmem:[#allocation3 + $0x2b4] sm:$0xf0]  ;;  %v15445_v62 = vpop.f32.mrf.mxu3  ;;  %v17092_v9 = vrot.slane %v15055_v47, 4 }
 0x633   : > { %v3688_v53 = vsel %vm3089_vm1, %v17091_v61, %v3675_v34  ;;  %v11434_v16 = vld [vmem:[#allocation3 + $0x134] sm:$0xf0] }
 0x634   : > { %6749 = vmatpush.bf16.msrb.mxu2 %v10208_v50  ;;  %v4969_v50 = vsel %vm4962_vm3, %v15021_v42, %v4968_v0  ;;  %v3689_v25 = vsel %vm17050_vm8, %v15098_v57, %v3688_v53  ;;  %6664 = vmatmul.bf16.gmra.mxu0 %v14458_v54  ;;  %v10144_v42 = vor.u32 %v11482_v13, %v10143_v32  ;;  %v11474_v18 = vld [vmem:[#allocation3 + $0x274] sm:$0xf0]  ;;  %v17094_v13 = vrot.slane %v15203_v46, 4 }
 0x635   : > { %4989 = vst.msk [vmem:[#allocation3 + $0x618] sm:$0xff] %vm13328_vm15, %v4969_v50  ;;  %6729 = vmatpush.bf16.msrb.mxu0 %v9984_v31  ;;  %v4452_v6 = vpop.permute.xlu1 %4451  ;;  %v3670_v34 = vpop.permute.xlu0 %3669  ;;  %v10111_v0 = vld [vmem:[#allocation3 + $0x258] sm:$0xf] }
 0x636   : > { %3709 = vst.msk [vmem:[#allocation3 + $0x218] sm:$0xff] %vm13328_vm15, %v3689_v25  ;;  %v4462_v10 = vrot.slane %v4452_v6, 4  ;;  %v3680_v57 = vrot.slane %v3670_v34, 4  ;;  %v10112_v50 = vor.u32 %v11474_v18, %v10111_v0  ;;  %v9919_v61 = vld [vmem:[#allocation3 + $0xd8] sm:$0xf] }
 0x637   : > { %6683 = vmatmul.bf16.gmra.mxu2 %v14444_v20  ;;  %v11426_v53 = vld [vmem:[#allocation3 + $0xf4] sm:$0xf0] }
 0x638   : > { %6750 = vmatpush.bf16.msrb.mxu2 %v10176_v21  ;;  %v9951_v21 = vld [vmem:[#allocation3 + $0x118] sm:$0xf]  ;;  %v4286_v63 = vpop.permute.xlu2 %4285  ;;  %v4478_v37 = vsel %vm3089_vm1, %v17092_v9, %v4462_v10  ;;  %v17096_v10 = vrot.slane %v15142_v4, 4 }
 0x639   : > { %v9952_v26 = vor.u32 %v11434_v16, %v9951_v21  ;;  %v4296_v32 = vrot.slane %v4286_v63, 4  ;;  %v15451_v31 = vld [vmem:[#allocation3 + $0x34] sm:$0xf0]  ;;  %v4479_v25 = vsel %vm17093_vm14, %v15055_v47, %v4478_v37  ;;  %v15458_v21 = vpop.f32.mrf.mxu2  ;;  %v9920_v37 = vor.u32 %v11426_v53, %v9919_v61  ;;  %v11454_v61 = vld [vmem:[#allocation3 + $0x1dc] sm:$0xf] }
 0x63a   : > { %v10431_v16 = vld [vmem:[#allocation3 + $0x4d8] sm:$0xf]  ;;  %4495 = vst.msk [vmem:[#allocation3 + $0x4b8] sm:$0xff] %vm13328_vm15, %v4479_v25  ;;  %v15475_v25 = vld [vmem:[#allocation3 + $0x3dc] sm:$0xf] }
 0x63b   : > { %6730 = vmatpush.bf16.msrb.mxu0 %v9952_v26  ;;  %v11554_v6 = vld [vmem:[#allocation3 + $0x4f4] sm:$0xf0]  ;;  %v4312_v47 = vsel %vm3089_vm1, %v17096_v10, %v4296_v32  ;;  %v10049_v26 = vld [vmem:[#allocation3 + $0x1f8] sm:$0xf0] }
 0x63c   : > { %6751 = vmatpush.bf16.msrb.mxu2 %v10144_v42  ;;  %v3696_v42 = vsel %vm3089_vm1, %v17094_v13, %v3680_v57  ;;  %v11418_v34 = vld [vmem:[#allocation3 + $0xb4] sm:$0xf0]  ;;  %v10432_v63 = vor.u32 %v11554_v6, %v10431_v16  ;;  %v4313_v9 = vsel %vm4298_vm9, %v15142_v4, %v4312_v47  ;;  %v15481_v13 = vpop.f32.mrf.mxu1  ;;  %v15486_v53 = vld [vmem:[#allocation3 + $0x3b8] sm:$0xf0]  ;;  %v15501_v4 = vpop.f32.mrf.mxu3 }
 0x63d   : > { %v3697_v18 = vsel %vm17095_vm13, %v15203_v46, %v3696_v42  ;;  %v15467_v0 = vld [vmem:[#allocation3 + $0x58] sm:$0xf]  ;;  %v15477_v46 = vld [vmem:[#allocation3 + $0x39c] sm:$0xf]  ;;  %4329 = vst.msk [vmem:[#allocation3 + $0x438] sm:$0xff] %vm13328_vm15, %v4313_v9  ;;  %v4359_v42 = vpop.permute.xlu1 %4358  ;;  %v15488_v47 = vpop.permute.xlu0 %5218  ;;  %v15491_v9 = vor.u32 %v11454_v61, %v10049_v26 }
 0x63e   : > { %v15469_v57 = vld [vmem:[#allocation3 + $0x18] sm:$0xf]  ;;  %3713 = vst.msk [vmem:[#allocation3 + $0x238] sm:$0xff] %vm13328_vm15, %v3697_v18  ;;  %6769 = vmatpush.bf16.msra.mxu1 %v10432_v63  ;;  %v10305_v18 = vld [vmem:[#allocation3 + $0x3f8] sm:$0xf0]  ;;  %v4374_v10 = vrot.slane %v4359_v42, 4  ;;  %v6438_v26 = vadd.f32 %v15327_v36, %v15488_v47 }
 0x63f   : > { %v9887_v32 = vld [vmem:[#allocation3 + $0x98] sm:$0xf]  ;;  %6731 = vmatpush.bf16.msrb.mxu0 %v9920_v37  ;;  %17097 = vst [vmem:[#allocation33_spill] sm:$0xff] %v15488_v47  ;;  %v10308_v63 = vor.u32 %v15475_v25, %v10305_v18  ;;  %v17099_v25 = vrot.slane %v15019_v38, 4 }
 0x640   : > { %6752 = vmatpush.bf16.msrb.mxu2 %v10112_v50  ;;  %v11410_v50 = vld [vmem:[#allocation3 + $0x74] sm:$0xf0]  ;;  %v9888_v16 = vor.u32 %v11418_v34, %v9887_v32  ;;  %v6513_v34 = vpop.f32.mrf.mxu0  ;;  %v6362_v32 = vadd.f32 %v15197_v14, %v15488_v47 }
 0x641   : > { %v9856_v6 = vor.u32 %v11410_v50, %v15467_v0  ;;  %v6286_v0 = vadd.f32 %v15047_v56, %v15488_v47  ;;  %v15499_v50 = vpop.permute.xlu2 %5208  ;;  %v6514_v42 = vadd.f32 %v6513_v34, %v15488_v47  ;;  %v4387_v18 = vsel %vm3089_vm1, %v17099_v25, %v4374_v10  ;;  %v10399_v25 = vld [vmem:[#allocation3 + $0x498] sm:$0xf] }
 0x642   : > { %17098 = vst [vmem:[#allocation34_spill] sm:$0xff] %v15499_v50  ;;  %v6281_v61 = vadd.f32 %v14965_v52, %v15499_v50  ;;  %v6357_v56 = vadd.f32 %v15131_v44, %v15499_v50  ;;  %v6509_v14 = vadd.f32 %v15406_v5, %v15499_v50  ;;  %v4388_v37 = vsel %vm4381_vm4, %v15019_v38, %v4387_v18  ;;  %v11546_v47 = vld [vmem:[#allocation3 + $0x4b4] sm:$0xf0] }
 0x643   : > { %v6305_v34 = vadd.f32 %v15050_v19, %v6286_v0  ;;  %v6381_v36 = vadd.f32 %v15208_v41, %v6362_v32  ;;  %6732 = vmatpush.bf16.msrb.mxu0 %v9888_v16  ;;  %v6433_v10 = vadd.f32 %v15257_v39, %v15499_v50  ;;  %4408 = vst.msk [vmem:[#allocation3 + $0x458] sm:$0xff] %vm13328_vm15, %v4388_v37  ;;  %v10079_v38 = vld [vmem:[#allocation3 + $0x218] sm:$0xf]  ;;  %v6532_v32 = vpop.f32.mrf.mxu2  ;;  %v17101_v37 = vld [vmem:[#allocation14_spill] sm:$0xff] }
 0x644   : > { %v6300_v52 = vadd.f32 %v14969_v45, %v6281_v61  ;;  %v6376_v44 = vadd.f32 %v15133_v59, %v6357_v56  ;;  %v6528_v5 = vadd.f32 %v15417_v48, %v6509_v14  ;;  %v10400_v19 = vor.u32 %v11546_v47, %v10399_v25  ;;  %v17100_v50 = vld [vmem:[#allocation19_spill] sm:$0xff]  ;;  %v17102_v48 = vld [vmem:[#allocation9_spill] sm:$0xff] }
 0x645   : > { %v11466_v18 = vld [vmem:[#allocation3 + $0x234] sm:$0xf0]  ;;  %v6324_v41 = vadd.f32 %v15057_v12, %v6305_v34  ;;  %v6400_v16 = vadd.f32 %v15205_v49, %v6381_v36  ;;  %v6452_v39 = vadd.f32 %v15292_v35, %v6433_v10  ;;  %v6533_v59 = vadd.f32 %v6532_v32, %v6514_v42  ;;  %v4950_v49 = vpop.permute.xlu1 %4949  ;;  %v17105_v34 = vld [vmem:[#allocation13_spill] sm:$0xff]  ;;  %v6570_v32 = vpop.f32.mrf.mxu3 }
 0x646   : > { %v10080_v0 = vor.u32 %v11466_v18, %v10079_v38  ;;  %v6319_v58 = vadd.f32 %v17100_v50, %v6300_v52  ;;  %v6395_v7 = vadd.f32 %v17101_v37, %v6376_v44  ;;  %v6547_v45 = vadd.f32 %v15434_v2, %v6528_v5  ;;  %6770 = vmatpush.bf16.msra.mxu1 %v10400_v19  ;;  %v17103_v56 = vld [vmem:[#allocation11_spill] sm:$0xff]  ;;  %v6551_v2 = vpop.f32.mrf.mxu1  ;;  %v17106_v18 = vld [vmem:[#allocation10_spill] sm:$0xff] }
 0x647   : > { %v6343_v61 = vadd.f32 %v17102_v48, %v6324_v41  ;;  %v6419_v47 = vadd.f32 %v17103_v56, %v6400_v16  ;;  %v6471_v12 = vadd.f32 %v15286_v51, %v6452_v39  ;;  %6733 = vmatpush.bf16.msrb.mxu0 %v9856_v6  ;;  %v17104_v35 = vld [vmem:[#allocation7_spill] sm:$0xff]  ;;  %v4960_v10 = vrot.slane %v4950_v49, 4 }
 0x648   : > { %6753 = vmatpush.bf16.msrb.mxu2 %v10080_v0  ;;  %v6338_v14 = vadd.f32 %v17104_v35, %v6319_v58  ;;  %v6414_v36 = vadd.f32 %v17105_v34, %v6395_v7  ;;  %v6566_v50 = vadd.f32 %v15445_v62, %v6547_v45  ;;  %v11502_v44 = vld [vmem:[#allocation3 + $0x35c] sm:$0xf]  ;;  %v6552_v5 = vadd.f32 %v6551_v2, %v6533_v59  ;;  %v11538_v39 = vld [vmem:[#allocation3 + $0x474] sm:$0xf0] }
 0x649   : > { %v6895_v25 = vmax.f32 %v6343_v61, 0.0  ;;  %v6896_v42 = vmax.f32 %v6419_v47, 0.0  ;;  %v6490_v52 = vadd.f32 %v15299_v11, %v6471_v12  ;;  %v17107_v19 = vrot.slane %v17106_v18, 4  ;;  %v10017_v7 = vld [vmem:[#allocation3 + $0x1b8] sm:$0xf0] }
 0x64a   : > { %v6879_v38 = vmax.f32 %v6338_v14, 0.0  ;;  %v6880_v51 = vmax.f32 %v6414_v36, 0.0  ;;  %v6882_v6 = vmax.f32 %v6566_v50, 0.0  ;;  %v17108_v11 = vor.u32 %v15451_v31, %v15469_v57  ;;  %v10367_v16 = vld [vmem:[#allocation3 + $0x458] sm:$0xf] }
 0x64b   : > { %v4976_v58 = vsel %vm3089_vm1, %v17107_v19, %v4960_v10  ;;  %6754 = vmatmul.bf16.vlgmr.msrb.gmra.mxu2 %v13955_v3  ;;  %v6919_v62 = vpack.c.bf16 %v6896_v42, %v6895_v25  ;;  %v6881_v41 = vmax.f32 %v6490_v52, 0.0  ;;  %v6457_v0 = vadd.f32 %v15353_v40, %v6438_v26  ;;  %v11446_v57 = vld [vmem:[#allocation3 + $0x19c] sm:$0xf] }
 0x64c   : > { %6822 = vmatpush.bf16.msra.mxu2 %v10308_v63  ;;  %v4977_v63 = vsel %vm4962_vm3, %v17106_v18, %v4976_v58  ;;  %6734 = vmatpush.bf16.msrb.mxu0 %v17108_v11  ;;  %v6911_v37 = vpack.c.bf16 %v6880_v51, %v6879_v38  ;;  %v17109_v45 = vor.u32 %v15477_v46, %v15486_v53  ;;  %v10241_v61 = vld [vmem:[#allocation3 + $0x378] sm:$0xf0]  ;;  %v17112_v11 = vld [vmem:[#allocation8_spill] sm:$0xff]  ;;  %vm6982_vm3 = vcmask 261120  }
 0x64d   : > { %4993 = vst.msk [vmem:[#allocation3 + $0x638] sm:$0xff] %vm13328_vm15, %v4977_v63  ;;  %v10368_v59 = vor.u32 %v11538_v39, %v10367_v16  ;;  %v6571_v48 = vadd.f32 %v6570_v32, %v6552_v5  ;;  %v6912_v31 = vpack.c.bf16 %v6882_v6, %v6881_v41  ;;  %v6476_v56 = vadd.f32 %v15358_v1, %v6457_v0  ;;  %v4276_v47 = vpop.permute.xlu1 %4275  ;;  %v9985_v12 = vld [vmem:[#allocation3 + $0x178] sm:$0xf0]  ;;  %v17110_v1 = vld [vmem:[#allocation28_spill] sm:$0xff]  ;;  %v6515_v6 = vpop.f32.mrf.mxu0  ;;  %v17113_v39 = vld [vmem:[#allocation17_spill] sm:$0xff] }
 0x64e   : > { %6935 = vst [vmem:[#allocation5 + $0x40] sm:$0xff] %v6919_v62  ;;  %v10020_v40 = vor.u32 %v11446_v57, %v10017_v7  ;;  %v10244_v26 = vor.u32 %v11502_v44, %v10241_v61  ;;  %v11494_v49 = vld [vmem:[#allocation3 + $0x31c] sm:$0xf]  ;;  %v4291_v35 = vrot.slane %v4276_v47, 4  ;;  %v17111_v50 = vrot.slane %v17110_v1, 4  ;;  %v6534_v63 = vpop.f32.mrf.mxu2 }
 0x64f   : > { %6927 = vst [vmem:[#allocation5] sm:$0xff] %v6911_v37  ;;  %6735 = vmatmul.bf16.vlgmr.msrb.gmra.mxu0 %v13916_v28  ;;  %6771 = vmatpush.bf16.msra.mxu1 %v10368_v59  ;;  %v6495_v46 = vadd.f32 %v15370_v60, %v6476_v56  ;;  %v6898_v53 = vmax.f32 %v6571_v48, 0.0  ;;  %v11438_v14 = vld [vmem:[#allocation3 + $0x15c] sm:$0xf]  ;;  %v10591_v60 = vld [vmem:[#allocation3 + $0x618] sm:$0xf] }
 0x650   : > { %6803 = vmatpush.bf16.msra.mxu0 %v15491_v9  ;;  %6823 = vmatpush.bf16.msra.mxu2 %v17109_v45  ;;  %6928 = vst [vmem:[#allocation5 + $0x8] sm:$0xff] %v6912_v31  ;;  %v10209_v34 = vld [vmem:[#allocation3 + $0x338] sm:$0xf0]  ;;  %v4304_v10 = vsel %vm3089_vm1, %v17111_v50, %v4291_v35  ;;  %v15561_v2 = vor.u32 %v11438_v14, %v9985_v12  ;;  %v6553_v45 = vpop.f32.mrf.mxu1  ;;  %v17114_v31 = vld [vmem:[#allocation16_spill] sm:$0xff]  ;;  %vm8279_vm1 = vcmask 7168  }
 0x651   : > { %v6897_v36 = vmax.f32 %v6495_v46, 0.0  ;;  %v10212_v25 = vor.u32 %v11494_v49, %v10209_v34  ;;  %v9953_v42 = vld [vmem:[#allocation3 + $0x138] sm:$0xf0]  ;;  %v4305_v52 = vsel %vm4298_vm9, %v17110_v1, %v4304_v10  ;;  %v6572_v49 = vpop.f32.mrf.mxu3 }
 0x652   : > { %v11486_v38 = vld [vmem:[#allocation3 + $0x2dc] sm:$0xf]  ;;  %4325 = vst.msk [vmem:[#allocation3 + $0x418] sm:$0xff] %vm13328_vm15, %v4305_v52  ;;  %v17117_v52 = vld [vmem:[#allocation26_spill] sm:$0xff]  ;;  %vm9681_vm15 = vcmask 3072  }
 0x653   : > { %v6920_v44 = vpack.c.bf16 %v6898_v53, %v6897_v36  ;;  %v11430_v18 = vld [vmem:[#allocation3 + $0x11c] sm:$0xf]  ;;  %v17116_v36 = vld [vmem:[#allocation18_spill] sm:$0xff] }
 0x654   : > { %6804 = vmatpush.bf16.msra.mxu0 %v10020_v40  ;;  %6824 = vmatpush.bf16.msra.mxu2 %v10244_v26  ;;  %v11594_v5 = vld [vmem:[#allocation3 + $0x634] sm:$0xf0]  ;;  %v10177_v19 = vld [vmem:[#allocation3 + $0x2f8] sm:$0xf0]  ;;  %v15568_v58 = vor.u32 %v11430_v18, %v9953_v42 }
 0x655   : > { %v10592_v51 = vor.u32 %v11594_v5, %v10591_v60  ;;  %6936 = vst [vmem:[#allocation5 + $0x48] sm:$0xff] %v6920_v44  ;;  %v10180_v7 = vor.u32 %v11486_v38, %v10177_v19  ;;  %v9921_v62 = vld [vmem:[#allocation3 + $0xf8] sm:$0xf0]  ;;  %v15570_v41 = vpop.permute.xlu1 %5223  ;;  %v17118_v60 = vld [vmem:[#allocation12_spill] sm:$0xff] }
 0x656   : > { %v6288_v16 = vadd.f32 %v17112_v11, %v15570_v41  ;;  %v6364_v0 = vadd.f32 %v17113_v39, %v15570_v41  ;;  %v6516_v32 = vadd.f32 %v6515_v6, %v15570_v41  ;;  %v11422_v37 = vld [vmem:[#allocation3 + $0xdc] sm:$0xf]  ;;  %v6440_v48 = vadd.f32 %v15363_v22, %v15570_v41 }
 0x657   : > { %6791 = vmatpush.bf16.msra.mxu3 %v10592_v51  ;;  %v15581_v59 = vor.u32 %v11422_v37, %v9921_v62  ;;  %v9889_v47 = vld [vmem:[#allocation3 + $0xb8] sm:$0xf0]  ;;  %v17120_v37 = vld [vmem:[#allocation29_spill] sm:$0xff] }
 0x658   : > { %6805 = vmatpush.bf16.msra.mxu0 %v15561_v2  ;;  %6825 = vmatpush.bf16.msra.mxu2 %v10212_v25  ;;  %v6307_v57 = vadd.f32 %v17114_v31, %v6288_v16  ;;  %v6383_v61 = vadd.f32 %v15248_v30, %v6364_v0  ;;  %v6535_v56 = vadd.f32 %v6534_v63, %v6516_v32  ;;  %v11414_v53 = vld [vmem:[#allocation3 + $0x9c] sm:$0xf]  ;;  %v11530_v30 = vld [vmem:[#allocation3 + $0x434] sm:$0xf0]  ;;  %v17119_v0 = vld [vmem:[#allocation21_spill] sm:$0xff] }
 0x659   : > { %v6459_v12 = vadd.f32 %v15386_v24, %v6440_v48  ;;  %v10335_v46 = vld [vmem:[#allocation3 + $0x418] sm:$0xf]  ;;  %v10113_v35 = vld [vmem:[#allocation3 + $0x278] sm:$0xf0]  ;;  %v15593_v42 = vor.u32 %v11414_v53, %v9889_v47 }
 0x65a   : > { %10609 = vmatmul.msk.bf16.vlgmr.msra.gmra.mxu3 %vm4215_vm0, %v14066_v33  ;;  %v17115_v14 = vld [vmem:[#allocation27_spill] sm:$0xff]  ;;  %v6402_v22 = vadd.f32 %v17116_v36, %v6383_v61  ;;  %v6554_v1 = vadd.f32 %v6553_v45, %v6535_v56  ;;  %v17122_v56 = vld [vmem:[#allocation22_spill] sm:$0xff] }
 0x65b   : > { %11715 = vmatpush.bf16.msrb.mxu3 %v15491_v9  ;;  %v10145_v9 = vld [vmem:[#allocation3 + $0x2b8] sm:$0xf0]  ;;  %6759 = vmatmul.bf16.gmra.mxu2 %v14444_v20  ;;  %v6326_v34 = vadd.f32 %v17115_v14, %v6307_v57  ;;  %v6478_v25 = vadd.f32 %v15392_v43, %v6459_v12 }
 0x65c   : > { %6806 = vmatpush.bf16.msra.mxu0 %v15568_v58  ;;  %6826 = vmatpush.bf16.msra.mxu2 %v10180_v7  ;;  %v10148_v26 = vor.u32 %v11478_v17, %v10145_v9  ;;  %v10561_v50 = vld [vmem:[#allocation3 + $0x5f8] sm:$0xf0]  ;;  %v6421_v5 = vadd.f32 %v17118_v60, %v6402_v22  ;;  %v6573_v38 = vadd.f32 %v6572_v49, %v6554_v1  ;;  %v17125_v1 = vld [vmem:[#allocation30_spill] sm:$0xff] }
 0x65d   : > { %v11406_v10 = vld [vmem:[#allocation3 + $0x5c] sm:$0xf]  ;;  %v6345_v44 = vadd.f32 %v17117_v52, %v6326_v34  ;;  %v6497_v19 = vadd.f32 %v15412_v55, %v6478_v25  ;;  %v15599_v7 = vpop.permute.xlu1 %5213  ;;  %v17124_v34 = vld [vmem:[#allocation24_spill] sm:$0xff] }
 0x65e   : > { %v11470_v24 = vld [vmem:[#allocation3 + $0x25c] sm:$0xf]  ;;  %v6904_v16 = vmax.f32 %v6421_v5, 0.0  ;;  %v6906_v39 = vmax.f32 %v6573_v38, 0.0  ;;  %v6283_v32 = vadd.f32 %v17119_v0, %v15599_v7  ;;  %v6359_v45 = vadd.f32 %v17120_v37, %v15599_v7 }
 0x65f   : > { %11716 = vmatpush.bf16.msrb.mxu3 %v10020_v40  ;;  %v10336_v40 = vor.u32 %v11530_v30, %v10335_v46  ;;  %6740 = vmatmul.bf16.gmra.mxu0 %v14458_v54  ;;  %v10116_v51 = vor.u32 %v11470_v24, %v10113_v35  ;;  %v11582_v6 = vld [vmem:[#allocation3 + $0x5dc] sm:$0xf]  ;;  %v6903_v11 = vmax.f32 %v6345_v44, 0.0  ;;  %v6905_v55 = vmax.f32 %v6497_v19, 0.0  ;;  %v17127_v24 = vld [vmem:[#allocation32_spill] sm:$0xff] }
 0x660   : > { %6807 = vmatpush.bf16.msra.mxu0 %v15581_v59  ;;  %6827 = vmatpush.bf16.msra.mxu2 %v10148_v26  ;;  %v9857_v18 = vld [vmem:[#allocation3 + $0x78] sm:$0xf0]  ;;  %v10564_v43 = vor.u32 %v11582_v6, %v10561_v50  ;;  %v6511_v48 = vadd.f32 %v15443_v23, %v15599_v7  ;;  %v6302_v26 = vadd.f32 %v17122_v56, %v6283_v32  ;;  %v17129_v32 = vld [vmem:[#allocation20_spill] sm:$0xff] }
 0x661   : > { %6772 = vmatpush.bf16.msra.mxu1 %v10336_v40  ;;  %v15602_v62 = vor.u32 %v11406_v10, %v9857_v18  ;;  %v10081_v63 = vld [vmem:[#allocation3 + $0x238] sm:$0xf0]  ;;  %v6923_v61 = vpack.c.bf16 %v6904_v16, %v6903_v11  ;;  %v6924_v49 = vpack.c.bf16 %v6906_v39, %v6905_v55  ;;  %v17128_v18 = vld [vmem:[#allocation25_spill] sm:$0xff] }
 0x662   : > { %v10529_v17 = vld [vmem:[#allocation3 + $0x5b8] sm:$0xf0]  ;;  %v6530_v14 = vadd.f32 %v15458_v21, %v6511_v48  ;;  %v6321_v36 = vadd.f32 %v17124_v34, %v6302_v26  ;;  %v10627_v48 = vld [vmem:[#allocation5] sm:$0xf] }
 0x663   : > { %11717 = vmatpush.bf16.msrb.mxu3 %v15561_v2  ;;  %v17121_v2 = vld [vmem:[#allocation15_spill] sm:$0xff]  ;;  %6939 = vst [vmem:[#allocation5 + $0x60] sm:$0xff] %v6923_v61 }
 0x664   : > { %6808 = vmatpush.bf16.msra.mxu0 %v15593_v42  ;;  %6828 = vmatpush.bf16.msra.mxu2 %v10116_v51  ;;  %v6435_v9 = vadd.f32 %v17121_v2, %v15599_v7  ;;  %v11462_v31 = vld [vmem:[#allocation3 + $0x21c] sm:$0xf]  ;;  %6940 = vst [vmem:[#allocation5 + $0x68] sm:$0xff] %v6924_v49  ;;  %v6549_v10 = vadd.f32 %v15481_v13, %v6530_v14 }
 0x665   : > { %6841 = vmatpush.bf16.msrb.mxu1 %v10564_v43  ;;  %v11574_v57 = vld [vmem:[#allocation3 + $0x59c] sm:$0xf]  ;;  %v10084_v47 = vor.u32 %v11462_v31, %v10081_v63 }
 0x666   : > { %6773 = vmatmul.bf16.vlgmr.msra.gmra.mxu1 %v14234_v15  ;;  %v10532_v12 = vor.u32 %v11574_v57, %v10529_v17  ;;  %v17123_v46 = vld [vmem:[#allocation31_spill] sm:$0xff]  ;;  %v6454_v35 = vadd.f32 %v15321_v27, %v6435_v9  ;;  %v6568_v60 = vadd.f32 %v15501_v4, %v6549_v10  ;;  %v10783_v10 = vld [vmem:[#allocation5 + $0x48] sm:$0xf] }
 0x667   : > { %v6378_v53 = vadd.f32 %v17123_v46, %v6359_v45  ;;  %11718 = vmatpush.bf16.msrb.mxu3 %v15568_v58  ;;  %v9825_v23 = vld [vmem:[#allocation3 + $0x38] sm:$0xf0] }
 0x668   : > { %6809 = vmatpush.bf16.msra.mxu0 %v15602_v62  ;;  %6829 = vmatpush.bf16.msra.mxu2 %v10084_v47  ;;  %v11566_v22 = vld [vmem:[#allocation3 + $0x55c] sm:$0xf]  ;;  %v6473_v50 = vadd.f32 %v15325_v29, %v6454_v35  ;;  %v6890_v6 = vmax.f32 %v6568_v60, 0.0  ;;  %v6641_v14 = vpop.f32.mrf.mxu3 }
 0x669   : > { %v6397_v30 = vadd.f32 %v17125_v1, %v6378_v53  ;;  %6842 = vmatpush.bf16.msrb.mxu1 %v10532_v12  ;;  %v11398_v27 = vld [vmem:[#allocation3 + $0x1c] sm:$0xf] }
 0x66a   : > { %v17126_v21 = vld [vmem:[#allocation23_spill] sm:$0xff]  ;;  %v9828_v58 = vor.u32 %v11398_v27, %v9825_v23  ;;  %v6492_v44 = vadd.f32 %v15330_v8, %v6473_v50  ;;  %10610 = vmatmul.msk.bf16.gmra.mxu3 %vm4215_vm0, %v17128_v18 }
 0x66b   : > { %v6340_v25 = vadd.f32 %v17126_v21, %v6321_v36  ;;  %v10497_v40 = vld [vmem:[#allocation3 + $0x578] sm:$0xf0]  ;;  %v6416_v52 = vadd.f32 %v17127_v24, %v6397_v30  ;;  %11719 = vmatpush.bf16.msrb.mxu3 %v15581_v59  ;;  %6830 = vmatmul.bf16.vlgmr.msra.gmra.mxu2 %v13955_v3  ;;  %v10631_v59 = vld [vmem:[#allocation5 + $0x40] sm:$0xf]  ;;  %v11622_v27 = vld [vmem:[#allocation5 + $0x64] sm:$0xf0] }
 0x66c   : > { %v10500_v5 = vor.u32 %v11566_v22, %v10497_v40  ;;  %6810 = vmatpush.bf16.msra.mxu0 %v9828_v58  ;;  %v10465_v29 = vld [vmem:[#allocation3 + $0x538] sm:$0xf0]  ;;  %v6889_v13 = vmax.f32 %v6492_v44, 0.0  ;;  %v11598_v63 = vld [vmem:[#allocation5 + $0x5c] sm:$0xf0]  ;;  %v10784_v24 = vor.u32 %v11622_v27, %v10783_v10 }
 0x66d   : > { %v6887_v38 = vmax.f32 %v6340_v25, 0.0  ;;  %v6888_v51 = vmax.f32 %v6416_v52, 0.0  ;;  %v11558_v19 = vld [vmem:[#allocation3 + $0x51c] sm:$0xf]  ;;  %v10632_v17 = vor.u32 %v11598_v63, %v10631_v59  ;;  %v10779_v21 = vld [vmem:[#allocation5 + $0x8] sm:$0xf] }
 0x66e   : > { %6843 = vmatpush.bf16.msrb.mxu1 %v10500_v5  ;;  %v6916_v8 = vpack.c.bf16 %v6890_v6, %v6889_v13  ;;  %v10468_v4 = vor.u32 %v11558_v19, %v10465_v29  ;;  %v11550_v11 = vld [vmem:[#allocation3 + $0x4dc] sm:$0xf]  ;;  %v17131_v5 = vld [vmem:[#allocation34_spill] sm:$0xff]  ;;  %v10861_v6 = vld [vmem:[#allocation5 + $0x4c] sm:$0xf] }
 0x66f   : > { %v6915_v43 = vpack.c.bf16 %v6888_v51, %v6887_v38  ;;  %11720 = vmatpush.bf16.msrb.mxu3 %v15593_v42  ;;  %6811 = vmatmul.bf16.vlgmr.msra.gmra.mxu0 %v13916_v28  ;;  %v10433_v16 = vld [vmem:[#allocation3 + $0x4f8] sm:$0xf0] }
 0x670   : > { %6932 = vst [vmem:[#allocation5 + $0x28] sm:$0xff] %v6916_v8  ;;  %7112 = vrot.lane.b32.xlu1 %v10632_v17, %s16778_s15  ;;  %6978 = vrot.lane.b32.xlu2 %v10632_v17, %s16791_s23  ;;  %v10436_v3 = vor.u32 %v11550_v11, %v10433_v16  ;;  %v10401_v42 = vld [vmem:[#allocation3 + $0x4b8] sm:$0xf0]  ;;  %v15652_v34 = vpop.f32.mrf.mxu3 }
 0x671   : > { %6931 = vst [vmem:[#allocation5 + $0x20] sm:$0xff] %v6915_v43  ;;  %11723 = vmatpush.bf16.msrb.mxu2 %v10632_v17  ;;  %v10593_v39 = vld [vmem:[#allocation3 + $0x638] sm:$0xf0] }
 0x672   : > { %6844 = vmatpush.bf16.msrb.mxu1 %v10468_v4  ;;  %v11610_v0 = vld [vmem:[#allocation5 + $0x60] sm:$0xf0] }
 0x673   : > { %11721 = vmatpush.bf16.msrb.mxu3 %v15602_v62  ;;  %v11542_v55 = vld [vmem:[#allocation3 + $0x49c] sm:$0xf] }
 0x674   : > { %v11590_v37 = vld [vmem:[#allocation3 + $0x61c] sm:$0xf]  ;;  %v10404_v45 = vor.u32 %v11542_v55, %v10401_v42  ;;  %v6622_v35 = vpop.f32.mrf.mxu1 }
 0x675   : > { %v10596_v28 = vor.u32 %v11590_v37, %v10593_v39  ;;  %v10705_v2 = vld [vmem:[#allocation5 + $0x44] sm:$0xf] }
 0x676   : > { %6845 = vmatpush.bf16.msrb.mxu1 %v10436_v3  ;;  %v10706_v9 = vor.u32 %v11610_v0, %v10705_v2  ;;  %v11534_v57 = vld [vmem:[#allocation3 + $0x45c] sm:$0xf]  ;;  %v17132_v2 = vld [vmem:[#allocation33_spill] sm:$0xff] }
 0x677   : > { %6778 = vmatmul.bf16.gmra.mxu1 %v17129_v32  ;;  %11722 = vmatpush.bf16.msrb.mxu3 %v9828_v58  ;;  %v10369_v62 = vld [vmem:[#allocation3 + $0x478] sm:$0xf0] }
 0x678   : > { %v11597_v31 = vld [vmem:[#allocation5 + $0x1c] sm:$0xf0]  ;;  %7226 = vrot.lane.b32.xlu1 %v10706_v9, %s16809_s14  ;;  %7062 = vrot.lane.b32.xlu2 %v10632_v17, %s16849_s11  ;;  %v10372_v56 = vor.u32 %v11534_v57, %v10369_v62  ;;  %v11526_v26 = vld [vmem:[#allocation3 + $0x41c] sm:$0xf]  ;;  %v15660_v30 = vpop.f32.mrf.mxu3 }
 0x679   : > { %v10628_v61 = vor.u32 %v11597_v31, %v10627_v48  ;;  %v11609_v47 = vld [vmem:[#allocation5 + $0x20] sm:$0xf0] }
 0x67a   : > { %6846 = vmatpush.bf16.msrb.mxu1 %v10404_v45  ;;  %6816 = vmatmul.bf16.vlgmr.msrb.gmra.mxu3 %v14458_v54  ;;  %v10337_v12 = vld [vmem:[#allocation3 + $0x438] sm:$0xf0] }
 0x67b   : > { %6867 = vmatpush.bf16.msra.mxu3 %v10596_v28  ;;  %6976 = vrot.lane.b32.xlu0 %v10628_v61, %s16791_s23  ;;  %v10340_v49 = vor.u32 %v11526_v26, %v10337_v12  ;;  %v10701_v46 = vld [vmem:[#allocation5 + $0x4] sm:$0xf]  ;;  %v11633_v12 = vld [vmem:[#allocation5 + $0x28] sm:$0xf0] }
 0x67c   : > { %11724 = vmatpush.bf16.msrb.mxu2 %v10628_v61  ;;  %v10702_v53 = vor.u32 %v11609_v47, %v10701_v46  ;;  %v6584_v23 = vpop.f32.mrf.mxu0 }
 0x67d   : > { %6835 = vmatmul.bf16.gmra.mxu2 %v14444_v20  ;;  %v6624_v20 = vpop.f32.mrf.mxu1  ;;  %v6585_v38 = vadd.f32 %v6584_v23, %v17131_v5  ;;  %v10857_v23 = vld [vmem:[#allocation5 + $0xc] sm:$0xf] }
 0x67e   : > { %6847 = vmatpush.bf16.msrb.mxu1 %v10372_v56 }
 0x680   : > { %7224 = vrot.lane.b32.xlu1 %v10702_v53, %s16809_s14  ;;  %7060 = vrot.lane.b32.xlu2 %v10628_v61, %s16849_s11  ;;  %v15675_v52 = vpop.f32.mrf.mxu3 }
 0x682   : > { %6848 = vmatpush.bf16.msrb.mxu1 %v10340_v49 }
 0x683   : > { %7110 = vrot.lane.b32.xlu0 %v10628_v61, %s16778_s15 }
 0x684   : > { %v6586_v54 = vpop.f32.mrf.mxu0 }
 0x685   : > { %v15657_v22 = vpop.f32.mrf.mxu1  ;;  %v6587_v63 = vadd.f32 %v6586_v54, %v15599_v7  ;;  %v10858_v54 = vor.u32 %v11633_v12, %v10857_v23  ;;  %v11602_v12 = vld [vmem:[%s16513_s5 + $0x28] sm:$0xff]  ;;  %v11013_v23 = vld [vmem:[#allocation5 + $0x8] sm:$0xf] }
 0x686   : > { %7032 = vmatpush.bf16.msra.mxu1 %v10632_v17 }
 0x687   : > { %6849 = vmatmul.bf16.vlgmr.msrb.gmra.mxu1 %v14234_v15 }
 0x688   : > { %7276 = vrot.lane.b32.xlu1 %v10706_v9, %s16855_s26  ;;  %7160 = vrot.lane.b32.xlu2 %v10628_v61, %s16782_s17  ;;  %v6717_v13 = vpop.f32.mrf.mxu3 }
 0x689   : > { %v6603_v36 = vpop.f32.mrf.mxu2 }
 0x68a   : > { %7033 = vmatpush.bf16.msra.mxu1 %v10628_v61  ;;  %10611 = vmatmul.msk.bf16.vlgmr.msra.gmra.mxu3 %vm4215_vm0, %v14066_v33  ;;  %v11621_v33 = vld [vmem:[#allocation5 + $0x24] sm:$0xf0]  ;;  %v6604_v51 = vadd.f32 %v6603_v36, %v6585_v38  ;;  %v11595_v61 = vld [vmem:[%s16513_s5] sm:$0xff] }
 0x68b   : > { %7162 = vrot.lane.b32.xlu0 %v10632_v17, %s16782_s17  ;;  %v15669_v58 = vor.u32 %v11621_v33, %v10779_v21 }
 0x68c   : > { %v6589_v15 = vpop.f32.mrf.mxu0  ;;  %v6623_v19 = vadd.f32 %v6622_v35, %v6604_v51 }
 0x68d   : > { %v15671_v40 = vpop.f32.mrf.mxu1 }
 0x68e   : > { %v6642_v11 = vadd.f32 %v6641_v14, %v6623_v19 }
 0x690   : > { %7274 = vrot.lane.b32.xlu1 %v10702_v53, %s16855_s26  ;;  %7324 = vrot.lane.b32.xlu2 %v10702_v53, %s16830_s19  ;;  %v6719_v0 = vpop.f32.mrf.mxu3 }
 0x691   : > { %v6605_v1 = vpop.f32.mrf.mxu2 }
 0x692   : > { %v6606_v16 = vadd.f32 %v6605_v1, %v6587_v63 }
 0x693   : > { %7326 = vrot.lane.b32.xlu0 %v10706_v9, %s16830_s19 }
 0x694   : > { %v15667_v50 = vpop.f32.mrf.mxu0  ;;  %v6625_v55 = vadd.f32 %v6624_v20, %v6606_v16 }
 0x695   : > { %v6592_v36 = vadd.f32 %v15667_v50, %v15570_v41 }
 0x696   : > { %v6644_v62 = vadd.f32 %v15652_v34, %v6625_v55 }
 0x697   : > { %6854 = vmatmul.bf16.gmra.mxu1 %v17129_v32  ;;  %v6883_v32 = vmax.f32 %v6642_v11, 0.0 }
 0x698   : > { %7374 = vrot.lane.b32.xlu1 %v10702_v53, %s17130_s0  ;;  %7376 = vrot.lane.b32.xlu2 %v10706_v9, %s17130_s0  ;;  %v6698_v29 = vpop.f32.mrf.mxu1  ;;  %v6891_v46 = vmax.f32 %v6644_v62, 0.0  ;;  %v6722_v34 = vpop.f32.mrf.mxu3 }
 0x699   : > { %v6608_v25 = vpop.f32.mrf.mxu2 }
 0x69a   : > { %10612 = vmatmul.msk.bf16.gmra.mxu3 %vm4215_vm0, %v17128_v18  ;;  %v11634_v18 = vld [vmem:[#allocation5 + $0x68] sm:$0xf0] }
 0x69b   : > { %7426 = vrot.lane.b32.xlu0 %v10706_v9, %s16776_s22  ;;  %v15686_v59 = vor.u32 %v11634_v18, %v10861_v6  ;;  %v6590_v9 = vadd.f32 %v6589_v15, %v17132_v2 }
 0x69d   : > { %v6609_v56 = vadd.f32 %v6608_v25, %v6590_v9 }
 0x6a0   : > { %7538 = vrot.lane.b32.xlu1 %v15669_v58, %s16938_s12  ;;  %7540 = vrot.lane.b32.xlu2 %v10784_v24, %s16938_s12  ;;  %v6700_v42 = vpop.f32.mrf.mxu1 }
 0x6a1   : > { %v6660_v44 = vpop.f32.mrf.mxu0  ;;  %v15679_v60 = vpop.f32.mrf.mxu2 }
 0x6a2   : > { %v6661_v43 = vadd.f32 %v6660_v44, %v17131_v5  ;;  %v6611_v10 = vadd.f32 %v15679_v60, %v6592_v36  ;;  %v6724_v60 = vpop.f32.mrf.mxu3  ;;  %v11607_v36 = vld [vmem:[%s16513_s5 + $0x50] sm:$0xff] }
 0x6a3   : > { %7424 = vrot.lane.b32.xlu0 %v10702_v53, %s16776_s22  ;;  %v6628_v53 = vadd.f32 %v15657_v22, %v6609_v56  ;;  %s11842_s22 = smov 28  }
 0x6a4   : > { %v6630_v50 = vadd.f32 %v15671_v40, %v6611_v10 }
 0x6a5   : > { %v6647_v33 = vadd.f32 %v15660_v30, %v6628_v53 }
 0x6a7   : > { %10643 = vmatmul.msk.bf16.vlgmr.msra.gmra.mxu1 %vm6982_vm3, %v11595_v61  ;;  %v6899_v25 = vmax.f32 %v6647_v33, 0.0 }
 0x6a8   : > { %7590 = vrot.lane.b32.xlu1 %v10784_v24, %s16908_s28  ;;  %7640 = vrot.lane.b32.xlu2 %v10784_v24, %s16784_s24  ;;  %v6703_v49 = vpop.f32.mrf.mxu1 }
 0x6a9   : > { %v6662_v8 = vpop.f32.mrf.mxu0 }
 0x6aa   : > { %v6679_v4 = vpop.f32.mrf.mxu2  ;;  %v6663_v37 = vadd.f32 %v6662_v8, %v15599_v7 }
 0x6ab   : > { %7490 = vrot.lane.b32.xlu0 %v10784_v24, %s16842_s20  ;;  %v6680_v17 = vadd.f32 %v6679_v4, %v6661_v43 }
 0x6ad   : > { %v6699_v3 = vadd.f32 %v6698_v29, %v6680_v17 }
 0x6af   : > { %v6718_v39 = vadd.f32 %v6717_v13, %v6699_v3  ;;  %v6649_v13 = vadd.f32 %v15675_v52, %v6630_v50 }
 0x6b0   : > { %7754 = vrot.lane.b32.xlu1 %v15686_v59, %s11839_s29  ;;  %7638 = vrot.lane.b32.xlu2 %v15669_v58, %s16784_s24  ;;  %v6705_v29 = vpop.f32.mrf.mxu1 }
 0x6b1   : > { %v6884_v45 = vmax.f32 %v6718_v39, 0.0  ;;  %v6665_v57 = vpop.f32.mrf.mxu0  ;;  %v6907_v19 = vmax.f32 %v6649_v13, 0.0  ;;  %v11608_v13 = vld [vmem:[%s16513_s5 + $0x58] sm:$0xff] }
 0x6b2   : > { %v6681_v28 = vpop.f32.mrf.mxu2  ;;  %v6666_v35 = vadd.f32 %v6665_v57, %v17132_v2  ;;  %v11658_v57 = vld [vmem:[#allocation5 + $0x64] sm:$0xf0] }
 0x6b3   : > { %7488 = vrot.lane.b32.xlu0 %v15669_v58, %s16842_s20  ;;  %v6913_v48 = vpack.c.bf16 %v6884_v45, %v6883_v32  ;;  %v6682_v31 = vadd.f32 %v6681_v28, %v6663_v37 }
 0x6b5   : > { %6929 = vst [vmem:[#allocation5 + $0x10] sm:$0xff] %v6913_v48  ;;  %v6701_v26 = vadd.f32 %v6700_v42, %v6682_v31  ;;  %v11017_v31 = vld [vmem:[#allocation5 + $0x48] sm:$0xf] }
 0x6b6   : > { %v11018_v56 = vor.u32 %v11658_v57, %v11017_v31 }
 0x6b7   : > { %v6720_v47 = vadd.f32 %v6719_v0, %v6701_v26 }
 0x6b8   : > { %7854 = vrot.lane.b32.xlu1 %v15686_v59, %s16780_s21  ;;  %7690 = vrot.lane.b32.xlu2 %v10784_v24, %s16836_s18 }
 0x6b9   : > { %v6892_v14 = vmax.f32 %v6720_v47, 0.0  ;;  %v6667_v27 = vpop.f32.mrf.mxu0  ;;  %v11599_v47 = vld [vmem:[%s16513_s5 + $0x10] sm:$0xff] }
 0x6ba   : > { %v6684_v20 = vpop.f32.mrf.mxu2  ;;  %v6668_v24 = vadd.f32 %v6667_v27, %v15570_v41 }
 0x6bb   : > { %7588 = vrot.lane.b32.xlu0 %v15669_v58, %s16908_s28  ;;  %v6917_v15 = vpack.c.bf16 %v6892_v14, %v6891_v46  ;;  %v6685_v1 = vadd.f32 %v6684_v20, %v6666_v35  ;;  %v11657_v35 = vld [vmem:[#allocation5 + $0x24] sm:$0xf0] }
 0x6bc   : > { %v10935_v63 = vld [vmem:[#allocation5 + $0x14] sm:$0xf] }
 0x6bd   : > { %6933 = vst [vmem:[#allocation5 + $0x30] sm:$0xff] %v6917_v15  ;;  %v6704_v22 = vadd.f32 %v6703_v49, %v6685_v1  ;;  %v11603_v1 = vld [vmem:[%s16513_s5 + $0x30] sm:$0xff] }
 0x6bf   : > { %v6723_v21 = vadd.f32 %v6722_v34, %v6704_v22 }
 0x6c0   : > { %7852 = vrot.lane.b32.xlu1 %v10858_v54, %s16780_s21  ;;  %7688 = vrot.lane.b32.xlu2 %v15669_v58, %s16836_s18  ;;  %v11596_v58 = vld [vmem:[%s16513_s5 + $0x8] sm:$0xff] }
 0x6c1   : > { %v6900_v44 = vmax.f32 %v6723_v21, 0.0  ;;  %10644 = vmatmul.msk.bf16.vlgmr.msrb.gmra.mxu2 %vm6982_vm3, %v11596_v58 }
 0x6c2   : > { %v6686_v38 = vpop.f32.mrf.mxu2 }
 0x6c3   : > { %7752 = vrot.lane.b32.xlu0 %v10858_v54, %s11839_s29  ;;  %v6921_v30 = vpack.c.bf16 %v6900_v44, %v6899_v25  ;;  %v6687_v51 = vadd.f32 %v6686_v38, %v6668_v24  ;;  %v11600_v24 = vld [vmem:[%s16513_s5 + $0x18] sm:$0xff] }
 0x6c4   : > { %v11645_v4 = vld [vmem:[#allocation5 + $0x30] sm:$0xf0]  ;;  %v11091_v38 = vld [vmem:[#allocation5 + $0x4c] sm:$0xf] }
 0x6c5   : > { %6937 = vst [vmem:[#allocation5 + $0x50] sm:$0xff] %v6921_v30  ;;  %v6706_v40 = vadd.f32 %v6705_v29, %v6687_v51  ;;  %v15733_v17 = vor.u32 %v11645_v4, %v10935_v63  ;;  %v11670_v29 = vld [vmem:[#allocation5 + $0x68] sm:$0xf0] }
 0x6c6   : > { %v15826_v51 = vor.u32 %v11670_v29, %v11091_v38 }
 0x6c7   : > { %v6725_v6 = vadd.f32 %v6724_v60, %v6706_v40  ;;  %v11611_v40 = vld [vmem:[%s16513_s5 + $0x60] sm:$0xff] }
 0x6c8   : > { %7904 = vrot.lane.b32.xlu1 %v15686_v59, %s11841_s13  ;;  %7802 = vrot.lane.b32.xlu2 %v10858_v54, %s11842_s22 }
 0x6c9   : > { %v6908_v43 = vmax.f32 %v6725_v6, 0.0 }
 0x6ca   : > { %v6979_v18 = vpop.permute.xlu2 %6978 }
 0x6cb   : > { %7804 = vrot.lane.b32.xlu0 %v15686_v59, %s11842_s22  ;;  %6995 = vmatpush.bf16.msrb.mxu0 %v6979_v18  ;;  %v6925_v8 = vpack.c.bf16 %v6908_v43, %v6907_v19  ;;  %v11604_v43 = vld [vmem:[%s16513_s5 + $0x38] sm:$0xff] }
 0x6cc   : > { %v10939_v11 = vld [vmem:[#allocation5 + $0x54] sm:$0xf]  ;;  %v15739_v42 = vpop.f32.mrf.mxu0 }
 0x6cd   : > { %6941 = vst [vmem:[#allocation5 + $0x70] sm:$0xff] %v6925_v8  ;;  %v6737_v6 = vadd.f32 %v15739_v42, %v17131_v5 }
 0x6ce   : > { %v15741_v39 = vpop.f32.mrf.mxu2 }
 0x6cf   : > { %v6756_v4 = vadd.f32 %v15741_v39, %v6737_v6 }
 0x6d0   : > { %7902 = vrot.lane.b32.xlu1 %v10858_v54, %s11841_s13  ;;  %7952 = vrot.lane.b32.xlu2 %v10858_v54, %s16937_s27  ;;  %v15793_v54 = vor.u32 %v11657_v35, %v11013_v23 }
 0x6d2   : > { %v7063_v52 = vpop.permute.xlu2 %7062 }
 0x6d3   : > { %7954 = vrot.lane.b32.xlu0 %v15686_v59, %s16937_s27  ;;  %7078 = vmatpush.bf16.msrb.mxu1 %v7063_v52  ;;  %v11601_v59 = vld [vmem:[%s16513_s5 + $0x20] sm:$0xff] }
 0x6d4   : > { %v11646_v16 = vld [vmem:[#allocation5 + $0x70] sm:$0xf0]  ;;  %v15759_v28 = vpop.f32.mrf.mxu0 }
 0x6d5   : > { %v15737_v3 = vor.u32 %v11646_v16, %v10939_v11  ;;  %v11682_v38 = vld [vmem:[#allocation5 + $0x70] sm:$0xf0] }
 0x6d6   : > { %v15763_v9 = vpop.f32.mrf.mxu2 }
 0x6d8   : > { %8062 = vrot.lane.b32.xlu2 %v15733_v17, %s16791_s23  ;;  %8114 = vrot.lane.b32.xlu1 %v15737_v3, %s16849_s11 }
 0x6da   : > { %v7061_v0 = vpop.permute.xlu2 %7060 }
 0x6db   : > { %8064 = vrot.lane.b32.xlu0 %v15737_v3, %s16791_s23  ;;  %7079 = vmatpush.bf16.msrb.mxu1 %v7061_v0  ;;  %v6739_v0 = vadd.f32 %v15759_v28, %v15599_v7 }
 0x6dc   : > { %v15782_v46 = vpop.f32.mrf.mxu0 }
 0x6dd   : > { %v15750_v32 = vpop.f32.mrf.mxu3 }
 0x6de   : > { %10657 = vmatmul.msk.bf16.vlgmr.msrb.gmra.mxu1 %vm6982_vm3, %v11601_v59  ;;  %v15786_v14 = vpop.f32.mrf.mxu2 }
 0x6e0   : > { %8162 = vrot.lane.b32.xlu2 %v15733_v17, %s16778_s15  ;;  %8112 = vrot.lane.b32.xlu1 %v15733_v17, %s16849_s11 }
 0x6e2   : > { %v7113_v37 = vpop.permute.xlu1 %7112  ;;  %v7161_v45 = vpop.permute.xlu2 %7160 }
 0x6e3   : > { %v15753_v55 = vpop.f32.mrf.mxu1  ;;  %7128 = vmatpush.bf16.msrb.mxu3 %v7113_v37  ;;  %8164 = vrot.lane.b32.xlu0 %v15737_v3, %s16778_s15  ;;  %s17136_s15 = smov 112  }
 0x6e4   : > { %v15809_v22 = vpop.f32.mrf.mxu0  ;;  %v6775_v11 = vadd.f32 %v15753_v55, %v6756_v4  ;;  %v11669_v55 = vld [vmem:[#allocation5 + $0x28] sm:$0xf0] }
 0x6e5   : > { %v15765_v48 = vpop.f32.mrf.mxu3 }
 0x6e6   : > { %v15811_v27 = vpop.f32.mrf.mxu2 }
 0x6e8   : > { %8214 = vrot.lane.b32.xlu2 %v15737_v3, %s16782_s17  ;;  %8212 = vrot.lane.b32.xlu1 %v15733_v17, %s16782_s17 }
 0x6ea   : > { %v7227_v62 = vpop.permute.xlu1 %7226  ;;  %v15779_v49 = vpop.permute.xlu2 %7324 }
 0x6eb   : > { %v15767_v61 = vpop.f32.mrf.mxu1  ;;  %7242 = vmatpush.bf16.msra.mxu2 %v7227_v62  ;;  %8338 = vrot.lane.b32.xlu0 %v11018_v56, %s16938_s12 }
 0x6ec   : > { %v6812_v60 = vpop.f32.mrf.mxu0 }
 0x6ed   : > { %v6977_v26 = vpop.permute.xlu0 %6976  ;;  %v15784_v53 = vpop.f32.mrf.mxu3  ;;  %v6813_v63 = vadd.f32 %v6812_v60, %v17131_v5  ;;  %v11605_v5 = vld [vmem:[%s16513_s5 + $0x40] sm:$0xff] }
 0x6ee   : > { %6996 = vmatpush.bf16.msrb.mxu0 %v6977_v26  ;;  %10658 = vmatmul.msk.bf16.gmra.mxu1 %vm6982_vm3, %v11602_v12  ;;  %v6831_v18 = vpop.f32.mrf.mxu2  ;;  %v6758_v26 = vadd.f32 %v15763_v9, %v6739_v0 }
 0x6ef   : > { %v6832_v59 = vadd.f32 %v6831_v18, %v6813_v63 }
 0x6f0   : > { %8424 = vrot.lane.b32.xlu2 %v11018_v56, %s16908_s28  ;;  %8422 = vrot.lane.b32.xlu1 %v15793_v54, %s16908_s28  ;;  %v6777_v23 = vadd.f32 %v15767_v61, %v6758_v26  ;;  %v11613_v61 = vld [vmem:[%s16513_s5 + $0x70] sm:$0xff] }
 0x6f1   : > { %10633 = vmatmul.msk.bf16.vlgmr.msrb.gmra.mxu0 %vm6982_vm3, %v11599_v47 }
 0x6f2   : > { %v7225_v34 = vpop.permute.xlu1 %7224  ;;  %v7377_v33 = vpop.permute.xlu2 %7376 }
 0x6f3   : > { %7243 = vmatpush.bf16.msra.mxu2 %v7225_v34  ;;  %8336 = vrot.lane.b32.xlu0 %v15793_v54, %s16938_s12  ;;  %v11612_v34 = vld [vmem:[%s16513_s5 + $0x68] sm:$0xff] }
 0x6f4   : > { %v15790_v20 = vpop.f32.mrf.mxu1  ;;  %v6814_v39 = vpop.f32.mrf.mxu0 }
 0x6f5   : > { %v7111_v15 = vpop.permute.xlu0 %7110  ;;  %v15805_v10 = vpop.f32.mrf.mxu3  ;;  %v6815_v47 = vadd.f32 %v6814_v39, %v15599_v7  ;;  %v6742_v7 = vadd.f32 %v15782_v46, %v17132_v2  ;;  %v6796_v46 = vadd.f32 %v15765_v48, %v6777_v23  ;;  %v11169_v48 = vld [vmem:[#allocation5 + $0x54] sm:$0xf] }
 0x6f6   : > { %7129 = vmatpush.bf16.msrb.mxu3 %v7111_v15  ;;  %10707 = vmatmul.msk.bf16.vlgmr.msra.gmra.mxu2 %vm6982_vm3, %v11607_v36  ;;  %v6833_v31 = vpop.f32.mrf.mxu2  ;;  %v15897_v18 = vor.u32 %v11682_v38, %v11169_v48  ;;  %v11624_v48 = vld [vmem:[%s16513_s5 + $0xb8] sm:$0xff] }
 0x6f7   : > { %v6834_v9 = vadd.f32 %v6833_v31, %v6815_v47  ;;  %v6761_v29 = vadd.f32 %v15786_v14, %v6742_v7 }
 0x6f8   : > { %8522 = vrot.lane.b32.xlu2 %v11018_v56, %s16836_s18  ;;  %8473 = vrot.lane.b32.xlu1 %v11018_v56, %s16784_s24 }
 0x6f9   : > { %10671 = vmatmul.msk.bf16.vlgmr.msrb.gmra.mxu3 %vm6982_vm3, %v11603_v1  ;;  %v11617_v1 = vld [vmem:[%s16513_s5 + $0x90] sm:$0xff] }
 0x6fa   : > { %v7277_v25 = vpop.permute.xlu1 %7276  ;;  %v7541_v30 = vpop.permute.xlu2 %7540 }
 0x6fb   : > { %7292 = vmatpush.bf16.msra.mxu1 %v7277_v25  ;;  %8379 = vrot.lane.b32.xlu0 %v11018_v56, %s16842_s20  ;;  %v11087_v56 = vld [vmem:[#allocation5 + $0xc] sm:$0xf] }
 0x6fc   : > { %v15814_v21 = vpop.f32.mrf.mxu1 }
 0x6fd   : > { %v7163_v50 = vpop.permute.xlu0 %7162  ;;  %v15821_v44 = vpop.f32.mrf.mxu3 }
 0x6fe   : > { %7178 = vmatpush.bf16.msra.mxu0 %v7163_v50 }
 0x700   : > { %8520 = vrot.lane.b32.xlu2 %v15793_v54, %s16836_s18  ;;  %8634 = vrot.lane.b32.xlu1 %v15826_v51, %s11842_s22  ;;  %v6836_v50 = vpop.f32.mrf.mxu2 }
 0x701   : > { %10634 = vmatmul.msk.bf16.gmra.mxu0 %vm6982_vm3, %v11600_v24 }
 0x702   : > { %7179 = vmatpush.bf16.msra.mxu0 %v7161_v45  ;;  %v7275_v58 = vpop.permute.xlu1 %7274  ;;  %v7641_v16 = vpop.permute.xlu2 %7640  ;;  %v6794_v45 = vadd.f32 %v15750_v32, %v6775_v11  ;;  %v11681_v11 = vld [vmem:[#allocation5 + $0x30] sm:$0xf0] }
 0x703   : > { %7293 = vmatpush.bf16.msra.mxu1 %v7275_v58  ;;  %8377 = vrot.lane.b32.xlu0 %v15793_v54, %s16842_s20 }
 0x704   : > { %v6850_v8 = vpop.f32.mrf.mxu1  ;;  %v6885_v35 = vmax.f32 %v6794_v45, 0.0 }
 0x705   : > { %v7327_v19 = vpop.permute.xlu0 %7326  ;;  %v15843_v52 = vpop.f32.mrf.mxu3  ;;  %v6851_v28 = vadd.f32 %v6850_v8, %v6832_v59 }
 0x706   : > { %7392 = vmatpush.bf16.msrb.mxu0 %v7377_v33  ;;  %7342 = vmatpush.bf16.msra.mxu3 %v7327_v19 }
 0x707   : > { %10708 = vmatmul.msk.bf16.gmra.mxu2 %vm6982_vm3, %v11608_v13  ;;  %10721 = vmatmul.msk.bf16.vlgmr.msra.gmra.mxu1 %vm6982_vm3, %v11611_v40  ;;  %v6893_v13 = vmax.f32 %v6796_v46, 0.0  ;;  %v6780_v40 = vadd.f32 %v15790_v20, %v6761_v29  ;;  %v11606_v20 = vld [vmem:[%s16513_s5 + $0x48] sm:$0xff] }
 0x708   : > { %8585 = vrot.lane.b32.xlu2 %v15826_v51, %s11839_s29  ;;  %8732 = vrot.lane.b32.xlu1 %v15826_v51, %s11841_s13  ;;  %v6838_v59 = vpop.f32.mrf.mxu2  ;;  %v11616_v29 = vld [vmem:[%s16513_s5 + $0x88] sm:$0xff] }
 0x709   : > { %10672 = vmatmul.msk.bf16.gmra.mxu3 %vm6982_vm3, %v11604_v43  ;;  %v6799_v8 = vadd.f32 %v15784_v53, %v6780_v40  ;;  %v11629_v40 = vld [vmem:[%s16513_s5 + $0xe0] sm:$0xff] }
 0x70a   : > { %7343 = vmatpush.bf16.msra.mxu3 %v15779_v49  ;;  %v7375_v42 = vpop.permute.xlu1 %7374  ;;  %v15867_v49 = vor.u32 %v11669_v55, %v11087_v56  ;;  %v7639_v33 = vpop.permute.xlu2 %7638 }
 0x70b   : > { %7393 = vmatpush.bf16.msrb.mxu0 %v7375_v42  ;;  %8471 = vrot.lane.b32.xlu0 %v15793_v54, %s17133_s16  ;;  %v6820_v42 = vadd.f32 %v15843_v52, %v15570_v41  ;;  %v11619_v52 = vld [vmem:[%s16513_s5 + $0xa0] sm:$0xff] }
 0x70c   : > { %v6852_v57 = vpop.f32.mrf.mxu1 }
 0x70d   : > { %v7427_v37 = vpop.permute.xlu0 %7426  ;;  %v6869_v62 = vpop.f32.mrf.mxu3  ;;  %v6853_v25 = vadd.f32 %v6852_v57, %v6834_v9  ;;  %v11623_v9 = vld [vmem:[%s16513_s5 + $0xb0] sm:$0xff] }
 0x70e   : > { %7556 = vmatpush.bf16.msrb.mxu3 %v7541_v30  ;;  %7442 = vmatpush.bf16.msrb.mxu2 %v7427_v37  ;;  %v6870_v12 = vadd.f32 %v6869_v62, %v6851_v28  ;;  %v6818_v30 = vadd.f32 %v15821_v44, %v17132_v2  ;;  %v6744_v2 = vadd.f32 %v15809_v22, %v15570_v41  ;;  %v11165_v37 = vld [vmem:[#allocation5 + $0x14] sm:$0xf]  ;;  %v11614_v41 = vld [vmem:[%s16513_s5 + $0x78] sm:$0xff] }
 0x70f   : > { %v15916_v53 = vor.u32 %v11681_v11, %v11165_v37 }
 0x710   : > { %v6886_v54 = vmax.f32 %v6870_v12, 0.0  ;;  %8583 = vrot.lane.b32.xlu2 %v15867_v49, %s11839_s29  ;;  %8730 = vrot.lane.b32.xlu1 %v15867_v49, %s11841_s13  ;;  %v6837_v44 = vadd.f32 %v6836_v50, %v6818_v30 }
 0x711   : > { %10685 = vmatmul.msk.bf16.vlgmr.msra.gmra.mxu0 %vm6982_vm3, %v11605_v5  ;;  %v6901_v5 = vmax.f32 %v6799_v8, 0.0 }
 0x712   : > { %v7539_v32 = vpop.permute.xlu1 %7538  ;;  %v6914_v36 = vpack.c.bf16 %v6886_v54, %v6885_v35  ;;  %v7691_v22 = vpop.permute.xlu2 %7690  ;;  %v11615_v54 = vld [vmem:[%s16513_s5 + $0x80] sm:$0xff] }
 0x713   : > { %7557 = vmatpush.bf16.msrb.mxu3 %v7539_v32  ;;  %8632 = vrot.lane.b32.xlu0 %v15867_v49, %s11842_s22  ;;  %s17134_s22 = smov 24  }
 0x714   : > { %6930 = vst [vmem:[#allocation5 + $0x18] sm:$0xff] %v6914_v36  ;;  %v6855_v58 = vpop.f32.mrf.mxu1  ;;  %v11627_v36 = vld [vmem:[%s16513_s5 + $0xd0] sm:$0xff] }
 0x715   : > { %v7425_v15 = vpop.permute.xlu0 %7424  ;;  %v6871_v24 = vpop.f32.mrf.mxu3  ;;  %v6856_v4 = vadd.f32 %v6855_v58, %v6837_v44 }
 0x716   : > { %7443 = vmatpush.bf16.msrb.mxu2 %v7425_v15  ;;  %v6872_v60 = vadd.f32 %v6871_v24, %v6853_v25  ;;  %v11620_v15 = vld [vmem:[%s16513_s5 + $0xa8] sm:$0xff] }
 0x717   : > { %10722 = vmatmul.msk.bf16.gmra.mxu1 %vm6982_vm3, %v11612_v34 }
 0x718   : > { %v6894_v6 = vmax.f32 %v6872_v60, 0.0  ;;  %8681 = vrot.lane.b32.xlu2 %v15867_v49, %s17134_s22  ;;  %8938 = vrot.lane.b32.xlu1 %v15897_v18, %s16849_s11 }
 0x719   : > { %10735 = vmatmul.msk.bf16.vlgmr.msra.gmra.mxu3 %vm6982_vm3, %v11613_v61  ;;  %10763 = vmatmul.msk.bf16.vlgmr.msrb.gmra.mxu2 %vm6982_vm3, %v11617_v1 }
 0x71a   : > { %7656 = vmatpush.bf16.msra.mxu2 %v7641_v16  ;;  %v7591_v14 = vpop.permute.xlu1 %7590  ;;  %v6918_v19 = vpack.c.bf16 %v6894_v6, %v6893_v13  ;;  %v6763_v16 = vadd.f32 %v15811_v27, %v6744_v2  ;;  %v6839_v27 = vadd.f32 %v6838_v59, %v6820_v42  ;;  %v7689_v12 = vpop.permute.xlu2 %7688  ;;  %v11628_v13 = vld [vmem:[%s16513_s5 + $0xd8] sm:$0xff]  ;;  %v11631_v42 = vld [vmem:[%s16513_s5 + $0xf0] sm:$0xff] }
 0x71b   : > { %7606 = vmatpush.bf16.msra.mxu0 %v7591_v14  ;;  %8683 = vrot.lane.b32.xlu0 %v15826_v51, %s17134_s22  ;;  %v11243_v25 = vld [vmem:[#allocation5 + $0x18] sm:$0xf] }
 0x71c   : > { %6934 = vst [vmem:[#allocation5 + $0x38] sm:$0xff] %v6918_v19  ;;  %v6782_v39 = vadd.f32 %v15814_v21, %v6763_v16  ;;  %v6857_v45 = vpop.f32.mrf.mxu1  ;;  %v11618_v21 = vld [vmem:[%s16513_s5 + $0x98] sm:$0xff] }
 0x71d   : > { %v7491_v43 = vpop.permute.xlu0 %7490  ;;  %v6874_v63 = vpop.f32.mrf.mxu3  ;;  %v6858_v56 = vadd.f32 %v6857_v45, %v6839_v27  ;;  %v11632_v45 = vld [vmem:[%s16513_s5 + $0xf8] sm:$0xff] }
 0x71e   : > { %7657 = vmatpush.bf16.msra.mxu2 %v7639_v33  ;;  %7506 = vmatpush.bf16.msrb.mxu1 %v7491_v43  ;;  %v6875_v0 = vadd.f32 %v6874_v63, %v6856_v4  ;;  %v6801_v62 = vadd.f32 %v15805_v10, %v6782_v39  ;;  %v11625_v43 = vld [vmem:[%s16513_s5 + $0xc0] sm:$0xff] }
 0x720   : > { %v6902_v55 = vmax.f32 %v6875_v0, 0.0  ;;  %8779 = vrot.lane.b32.xlu2 %v15867_v49, %s16937_s27  ;;  %8936 = vrot.lane.b32.xlu1 %v15916_v53, %s16849_s11  ;;  %v11637_v0 = vld [vmem:[%s16513_s5 + $0x110] sm:$0xff] }
 0x721   : > { %10686 = vmatmul.msk.bf16.gmra.mxu0 %vm6982_vm3, %v11606_v20 }
 0x722   : > { %v7755_v31 = vpop.permute.xlu1 %7754  ;;  %v6922_v28 = vpack.c.bf16 %v6902_v55, %v6901_v5  ;;  %v7803_v32 = vpop.permute.xlu2 %7802  ;;  %v11626_v5 = vld [vmem:[%s16513_s5 + $0xc8] sm:$0xff] }
 0x723   : > { %7770 = vmatpush.bf16.msra.mxu3 %v7755_v31  ;;  %8781 = vrot.lane.b32.xlu0 %v15826_v51, %s16937_s27  ;;  %v6909_v51 = vmax.f32 %v6801_v62, 0.0  ;;  %s17135_s27 = smov 116   ;;  %v11693_v46 = vld [vmem:[#allocation5 + $0x34] sm:$0xf0]  ;;  %v11705_v20 = vld [vmem:[#allocation5 + $0x38] sm:$0xf0] }
 0x724   : > { %6938 = vst [vmem:[#allocation5 + $0x58] sm:$0xff] %v6922_v28  ;;  %v15964_v50 = vor.u32 %v11693_v46, %v11243_v25  ;;  %v7035_v19 = vpop.f32.mrf.mxu1  ;;  %v11638_v31 = vld [vmem:[%s16513_s5 + $0x118] sm:$0xff]  ;;  %v11639_v28 = vld [vmem:[%s16513_s5 + $0x120] sm:$0xff] }
 0x725   : > { %v7489_v57 = vpop.permute.xlu0 %7488  ;;  %v6876_v26 = vpop.f32.mrf.mxu3  ;;  %v8247_v46 = vld [vmem:[%s16514_s6] sm:$0xff] }
 0x726   : > { %7507 = vmatpush.bf16.msrb.mxu1 %v7489_v57  ;;  %v6877_v47 = vadd.f32 %v6876_v26, %v6858_v56  ;;  %v11635_v56 = vld [vmem:[%s16513_s5 + $0x100] sm:$0xff] }
 0x728   : > { %v6910_v49 = vmax.f32 %v6877_v47, 0.0  ;;  %8887 = vrot.lane.b32.xlu2 %v15916_v53, %s16791_s23  ;;  %8987 = vrot.lane.b32.xlu1 %v15897_v18, %s17135_s27 }
 0x729   : > { %10736 = vmatmul.msk.bf16.gmra.mxu3 %vm6982_vm3, %v11614_v41  ;;  %10764 = vmatmul.msk.bf16.gmra.mxu2 %vm6982_vm3, %v11618_v21 }
 0x72a   : > { %7706 = vmatpush.bf16.msra.mxu1 %v7691_v22  ;;  %v7855_v35 = vpop.permute.xlu1 %7854  ;;  %v6926_v10 = vpack.c.bf16 %v6910_v49, %v6909_v51  ;;  %v7953_v30 = vpop.permute.xlu2 %7952  ;;  %v11321_v22 = vld [vmem:[#allocation5 + $0x1c] sm:$0xf] }
 0x72b   : > { %10785 = vmatmul.msk.bf16.vlgmr.msrb.gmra.mxu1 %vm6982_vm3, %v11619_v52  ;;  %7870 = vmatpush.bf16.msrb.mxu2 %v7855_v35  ;;  %v11247_v61 = vld [vmem:[#allocation5 + $0x58] sm:$0xf]  ;;  %v11325_v2 = vld [vmem:[#allocation5 + $0x5c] sm:$0xf]  ;;  %v11322_v63 = vor.u32 %v11705_v20, %v11321_v22  ;;  %v9589_v52 = vld [vmem:[%s16514_s6 + $0x10] sm:$0xff] }
 0x72c   : > { %8889 = vrot.lane.b32.xlu0 %v15897_v18, %s16791_s23  ;;  %6942 = vst [vmem:[#allocation5 + $0x78] sm:$0xff] %v6926_v10  ;;  %v15999_v16 = vpop.f32.mrf.mxu1  ;;  %v9588_v49 = vld [vmem:[%s16514_s6 + $0x8] sm:$0xff]  ;;  %v11649_v20 = vld [vmem:[%s16513_s5 + $0x160] sm:$0xff] }
 0x72d   : > { %v7589_v23 = vpop.permute.xlu0 %7588 }
 0x72e   : > { %7707 = vmatpush.bf16.msra.mxu1 %v7689_v12  ;;  %7607 = vmatpush.bf16.msra.mxu0 %v7589_v23 }
 0x730   : > { %9034 = vrot.lane.b32.xlu2 %v15916_v53, %s17136_s15  ;;  %8985 = vrot.lane.b32.xlu1 %v15916_v53, %s17135_s27  ;;  %s9742_s27 = sshll.u32 %s17139_s10, 2 }
 0x731   : > { %10749 = vmatmul.msk.bf16.vlgmr.msrb.gmra.mxu0 %vm6982_vm3, %v11615_v54  ;;  %v8250_v54 = vld [vmem:[%s16514_s6 + $0x18] sm:$0xff] }
 0x732   : > { %v7853_v34 = vpop.permute.xlu1 %7852  ;;  %v8063_v14 = vpop.permute.xlu2 %8062 }
 0x733   : > { %7871 = vmatpush.bf16.msrb.mxu2 %v7853_v34  ;;  %v11694_v1 = vld [vmem:[#allocation5 + $0x74] sm:$0xf0]  ;;  %v11706_v6 = vld [vmem:[#allocation5 + $0x78] sm:$0xf0]  ;;  %v11647_v34 = vld [vmem:[%s16513_s5 + $0x150] sm:$0xff] }
 0x734   : > { %9036 = vrot.lane.b32.xlu0 %v15897_v18, %s17136_s15  ;;  %v11248_v33 = vor.u32 %v11694_v1, %v11247_v61  ;;  %v11326_v44 = vor.u32 %v11706_v6, %v11325_v2  ;;  %v11642_v2 = vld [vmem:[%s16513_s5 + $0x138] sm:$0xff] }
 0x735   : > { %v7753_v7 = vpop.permute.xlu0 %7752 }
 0x736   : > { %7771 = vmatpush.bf16.msra.mxu3 %v7753_v7 }
 0x738   : > { %9099 = vrot.lane.b32.xlu2 %v11248_v33, %s16809_s14  ;;  %9097 = vrot.lane.b32.xlu1 %v15964_v50, %s16809_s14 }
 0x739   : > { %10799 = vmatmul.msk.bf16.vlgmr.msrb.gmra.mxu3 %vm6982_vm3, %v11623_v9  ;;  %10827 = vmatmul.msk.bf16.vlgmr.msra.gmra.mxu2 %vm6982_vm3, %v11627_v36  ;;  %v11640_v36 = vld [vmem:[%s16513_s5 + $0x128] sm:$0xff] }
 0x73a   : > { %v7905_v24 = vpop.permute.xlu1 %7904  ;;  %v8163_v11 = vpop.permute.xlu2 %8162 }
 0x73b   : > { %10786 = vmatmul.msk.bf16.gmra.mxu1 %vm6982_vm3, %v11620_v15 }
 0x73c   : > { %7920 = vmatpush.bf16.msrb.mxu1 %v7905_v24  ;;  %9148 = vrot.lane.b32.xlu0 %v11248_v33, %s16855_s26 }
 0x73d   : > { %v7805_v38 = vpop.permute.xlu0 %7804 }
 0x73e   : > { %7820 = vmatpush.bf16.msrb.mxu0 %v7805_v38 }
 0x740   : > { %9246 = vrot.lane.b32.xlu2 %v11248_v33, %s17130_s0  ;;  %9244 = vrot.lane.b32.xlu1 %v15964_v50, %s17130_s0 }
 0x741   : > { %10750 = vmatmul.msk.bf16.gmra.mxu0 %vm6982_vm3, %v11616_v29  ;;  %v11636_v29 = vld [vmem:[%s16513_s5 + $0x108] sm:$0xff] }
 0x742   : > { %7821 = vmatpush.bf16.msrb.mxu0 %v7803_v32  ;;  %v7903_v60 = vpop.permute.xlu1 %7902  ;;  %v11641_v32 = vld [vmem:[%s16513_s5 + $0x130] sm:$0xff] }
 0x743   : > { %7921 = vmatpush.bf16.msrb.mxu1 %v7903_v60 }
 0x744   : > { %9146 = vrot.lane.b32.xlu0 %v15964_v50, %s16855_s26  ;;  %s17137_s26 = smov 80   ;;  %v7040_v41 = vpop.f32.mrf.mxu2 }
 0x745   : > { %v7955_v58 = vpop.permute.xlu0 %7954 }
 0x746   : > { %7970 = vmatpush.bf16.msrb.mxu3 %v7955_v58 }
 0x748   : > { %9358 = vrot.lane.b32.xlu2 %v11326_v44, %s16842_s20  ;;  %9295 = vrot.lane.b32.xlu1 %v11248_v33, %s17137_s26 }
 0x749   : > { %10800 = vmatmul.msk.bf16.gmra.mxu3 %vm6982_vm3, %v11624_v48  ;;  %10828 = vmatmul.msk.bf16.gmra.mxu2 %vm6982_vm3, %v11628_v13 }
 0x74a   : > { %7971 = vmatpush.bf16.msrb.mxu3 %v7953_v30  ;;  %v8115_v8 = vpop.permute.xlu1 %8114 }
 0x74b   : > { %10841 = vmatmul.msk.bf16.vlgmr.msra.gmra.mxu1 %vm6982_vm3, %v11629_v40 }
 0x74c   : > { %9197 = vrot.lane.b32.xlu0 %v11248_v33, %s16830_s19  ;;  %8130 = vmatpush.bf16.msra.mxu1 %v8115_v8  ;;  %v7042_v23 = vpop.f32.mrf.mxu2 }
 0x74d   : > { %v8065_v4 = vpop.permute.xlu0 %8064 }
 0x74e   : > { %8080 = vmatpush.bf16.msra.mxu2 %v8065_v4 }
 0x750   : > { %9356 = vrot.lane.b32.xlu2 %v11322_v63, %s16842_s20  ;;  %9456 = vrot.lane.b32.xlu1 %v11326_v44, %s16908_s28 }
 0x751   : > { %10813 = vmatmul.msk.bf16.vlgmr.msra.gmra.mxu0 %vm6982_vm3, %v11625_v43 }
 0x752   : > { %8030 = vmatpush.bf16.msra.mxu0 %v15737_v3  ;;  %8081 = vmatpush.bf16.msra.mxu2 %v8063_v14  ;;  %v11630_v3 = vld [vmem:[%s16513_s5 + $0xe8] sm:$0xff]  ;;  %v8113_v59 = vpop.permute.xlu1 %8112 }
 0x753   : > { %8131 = vmatpush.bf16.msra.mxu1 %v8113_v59 }
 0x754   : > { %9195 = vrot.lane.b32.xlu0 %v15964_v50, %s16830_s19  ;;  %s330_s19 = scalar_lea.vmem %s16517_s9, %s9742_s27 }
 0x755   : > { %v8165_v37 = vpop.permute.xlu0 %8164 }
 0x756   : > { %8031 = vmatpush.bf16.msra.mxu0 %v15733_v17  ;;  %v8215_v17 = vpop.permute.xlu2 %8214 }
 0x758   : > { %9407 = vrot.lane.b32.xlu2 %v11326_v44, %s16938_s12  ;;  %9554 = vrot.lane.b32.xlu1 %v11326_v44, %s16836_s18 }
 0x759   : > { %10863 = vmatmul.msk.bf16.vlgmr.msra.gmra.mxu3 %vm6982_vm3, %v11631_v42  ;;  %10891 = vmatmul.msk.bf16.vlgmr.msrb.gmra.mxu2 %vm6982_vm3, %v11637_v0  ;;  %v11643_v0 = vld [vmem:[%s16513_s5 + $0x140] sm:$0xff] }
 0x75a   : > { %8180 = vmatpush.bf16.msra.mxu3 %v8165_v37  ;;  %v8213_v62 = vpop.permute.xlu1 %8212 }
 0x75b   : > { %10842 = vmatmul.msk.bf16.gmra.mxu1 %vm6982_vm3, %v11630_v3  ;;  %v7081_v39 = vpop.f32.mrf.mxu1 }
 0x75c   : > { %9293 = vrot.lane.b32.xlu0 %v15964_v50, %s17137_s26 }
 0x75d   : > { %v8339_v55 = vpop.permute.xlu0 %8338 }
 0x75e   : > { %8181 = vmatpush.bf16.msra.mxu3 %v8163_v11  ;;  %8354 = vmatpush.bf16.msrb.mxu2 %v8339_v55  ;;  %v8425_v27 = vpop.permute.xlu2 %8424 }
 0x760   : > { %9405 = vrot.lane.b32.xlu2 %v11322_v63, %s16938_s12  ;;  %9552 = vrot.lane.b32.xlu1 %v11322_v63, %s16836_s18 }
 0x761   : > { %10814 = vmatmul.msk.bf16.gmra.mxu0 %vm6982_vm3, %v11626_v5 }
 0x762   : > { %v8423_v7 = vpop.permute.xlu1 %8422 }
 0x763   : > { %v7083_v57 = vpop.f32.mrf.mxu1 }
 0x764   : > { %9454 = vrot.lane.b32.xlu0 %v11322_v63, %s16908_s28 }
 0x765   : > { %v8337_v21 = vpop.permute.xlu0 %8336 }
 0x766   : > { %8355 = vmatpush.bf16.msrb.mxu2 %v8337_v21  ;;  %v8523_v12 = vpop.permute.xlu2 %8522 }
 0x768   : > { %9503 = vrot.lane.b32.xlu2 %v11322_v63, %s17133_s16  ;;  %9603 = vperm.xlu1 %11781, %v9589_v52  }
 0x769   : > { %10864 = vmatmul.msk.bf16.gmra.mxu3 %vm6982_vm3, %v11632_v45  ;;  %10892 = vmatmul.msk.bf16.gmra.mxu2 %vm6982_vm3, %v11638_v31 }
 0x76a   : > { %v8474_v58 = vpop.permute.xlu1 %8473 }
 0x76b   : > { %10905 = vmatmul.msk.bf16.vlgmr.msrb.gmra.mxu1 %vm6982_vm3, %v11639_v28  ;;  %v7086_v10 = vpop.f32.mrf.mxu1  ;;  %v11651_v28 = vld [vmem:[%s16513_s5 + $0x170] sm:$0xff] }
 0x76c   : > { %9505 = vrot.lane.b32.xlu0 %v11326_v44, %s17133_s16  ;;  %v11648_v44 = vld [vmem:[%s16513_s5 + $0x158] sm:$0xff] }
 0x76d   : > { %v8380_v51 = vpop.permute.xlu0 %8379 }
 0x76e   : > { %v6998_v26 = vpop.f32.mrf.mxu0  ;;  %8395 = vmatpush.bf16.msrb.mxu1 %v8380_v51  ;;  %v8521_v33 = vpop.permute.xlu2 %8520 }
 0x76f   : > { %v7036_v47 = vadd.f32 %v7035_v19, %v6998_v26 }
 0x770   : > { %9598 = vperm.xlu2 %11782, %v9588_v49   ;;  %8268 = vperm.xlu1 %11781, %v8250_v54  }
 0x771   : > { %10877 = vmatmul.msk.bf16.vlgmr.msrb.gmra.mxu0 %vm6982_vm3, %v11635_v56  ;;  %v7091_v35 = vadd.f32 %v7081_v39, %v7036_v47 }
 0x772   : > { %8230 = vmatpush.bf16.msrb.mxu0 %v8215_v17  ;;  %v8635_v22 = vpop.permute.xlu1 %8634 }
 0x773   : > { %v7088_v25 = vpop.f32.mrf.mxu1 }
 0x774   : > { %9608 = vperm.xlu0 %11783, %v8250_v54  }
 0x775   : > { %v8378_v61 = vpop.permute.xlu0 %8377 }
 0x776   : > { %8231 = vmatpush.bf16.msrb.mxu0 %v8213_v62  ;;  %v7000_v9 = vpop.f32.mrf.mxu0  ;;  %8396 = vmatpush.bf16.msrb.mxu1 %v8378_v61  ;;  %v8586_v40 = vpop.permute.xlu2 %8585  ;;  %v11650_v62 = vld [vmem:[%s16513_s5 + $0x168] sm:$0xff] }
 0x777   : > { %v7038_v15 = vadd.f32 %v15999_v16, %v7000_v9 }
 0x778   : > { %8263 = vperm.xlu2 %11782, %v9589_v52   ;;  %8253 = vperm.xlu1 %11781, %v8247_v46  }
 0x779   : > { %10919 = vmatmul.msk.bf16.vlgmr.msrb.gmra.mxu3 %vm6982_vm3, %v11641_v32  ;;  %10955 = vmatmul.msk.bf16.vlgmr.msra.gmra.mxu2 %vm6982_vm3, %v11647_v34  ;;  %v7092_v1 = vadd.f32 %v7083_v57, %v7038_v15  ;;  %v7245_v50 = vpop.f32.mrf.mxu2  ;;  %v11659_v57 = vld [vmem:[%s16513_s5 + $0x10] sm:$0xff] }
 0x77a   : > { %8440 = vmatpush.bf16.msrb.mxu3 %v8425_v27  ;;  %8538 = vmatpush.bf16.msra.mxu2 %v8523_v12  ;;  %v8733_v45 = vpop.permute.xlu1 %8732 }
 0x77b   : > { %10906 = vmatmul.msk.bf16.gmra.mxu1 %vm6982_vm3, %v11640_v36 }
 0x77c   : > { %v7131_v24 = vpop.f32.mrf.mxu3  ;;  %9593 = vperm.xlu0 %11783, %v8247_v46   ;;  %v11660_v46 = vld [vmem:[%s16513_s5 + $0x18] sm:$0xff] }
 0x77d   : > { %v7141_v38 = vadd.f32 %v7131_v24, %v7091_v35  ;;  %v8472_v11 = vpop.permute.xlu0 %8471  ;;  %v11644_v35 = vld [vmem:[%s16513_s5 + $0x148] sm:$0xff] }
 0x77e   : > { %8441 = vmatpush.bf16.msrb.mxu3 %v8423_v7  ;;  %v7003_v30 = vpop.f32.mrf.mxu0  ;;  %8539 = vmatpush.bf16.msra.mxu2 %v8521_v33  ;;  %v8584_v59 = vpop.permute.xlu2 %8583  ;;  %v11652_v33 = vld [vmem:[%s16513_s5 + $0x178] sm:$0xff] }
 0x77f   : > { %v7041_v60 = vadd.f32 %v7040_v41, %v7003_v30 }
 0x781   : > { %10878 = vmatmul.msk.bf16.gmra.mxu0 %vm6982_vm3, %v11636_v29  ;;  %v7093_v48 = vadd.f32 %v7086_v10, %v7041_v60  ;;  %v7247_v13 = vpop.f32.mrf.mxu2 }
 0x784   : > { %v7133_v6 = vpop.f32.mrf.mxu3  ;;  %v7295_v19 = vpop.f32.mrf.mxu1  ;;  %8258 = vperm.xlu0 %11783, %v9588_v49  }
 0x785   : > { %v7142_v14 = vadd.f32 %v7133_v6, %v7092_v1  ;;  %v8633_v21 = vpop.permute.xlu0 %8632 }
 0x786   : > { %v7005_v43 = vpop.f32.mrf.mxu0  ;;  %v8682_v9 = vpop.permute.xlu2 %8681 }
 0x787   : > { %v7043_v8 = vadd.f32 %v7042_v23, %v7005_v43  ;;  %v8731_v23 = vpop.permute.xlu1 %8730 }
 0x789   : > { %10920 = vmatmul.msk.bf16.gmra.mxu3 %vm6982_vm3, %v11642_v2  ;;  %10956 = vmatmul.msk.bf16.gmra.mxu2 %vm6982_vm3, %v11648_v44  ;;  %v7094_v4 = vadd.f32 %v7088_v25, %v7043_v8 }
 0x78a   : > { %v7250_v63 = vpop.f32.mrf.mxu2 }
 0x78b   : > { %10969 = vmatmul.msk.bf16.vlgmr.msra.gmra.mxu1 %vm6982_vm3, %v11649_v20 }
 0x78c   : > { %8601 = vmatpush.bf16.msra.mxu1 %v8586_v40  ;;  %v7136_v16 = vpop.f32.mrf.mxu3  ;;  %v7297_v3 = vpop.f32.mrf.mxu1  ;;  %v11653_v40 = vld [vmem:[%s16513_s5 + $0x180] sm:$0xff] }
 0x78d   : > { %v7143_v42 = vadd.f32 %v7136_v16, %v7093_v48  ;;  %v8684_v34 = vpop.permute.xlu0 %8683 }
 0x78e   : > { %v7181_v37 = vpop.f32.mrf.mxu0  ;;  %v8780_v6 = vpop.permute.xlu2 %8779 }
 0x78f   : > { %v7191_v17 = vadd.f32 %v7181_v37, %v7141_v38  ;;  %v8939_v2 = vpop.permute.xlu1 %8938 }
 0x790   : > { %8602 = vmatpush.bf16.msra.mxu1 %v8584_v59 }
 0x791   : > { %v7255_v5 = vadd.f32 %v7245_v50, %v7191_v17  ;;  %10941 = vmatmul.msk.bf16.vlgmr.msra.gmra.mxu0 %vm6982_vm3, %v11643_v0  ;;  %v11655_v50 = vld [vmem:[%s16513_s5] sm:$0xff] }
 0x792   : > { %8489 = vmatpush.bf16.msra.mxu0 %v8474_v58  ;;  %v7252_v55 = vpop.f32.mrf.mxu2 }
 0x793   : > { %v7305_v39 = vadd.f32 %v7295_v19, %v7255_v5 }
 0x794   : > { %v7138_v31 = vpop.f32.mrf.mxu3  ;;  %v7300_v41 = vpop.f32.mrf.mxu1 }
 0x795   : > { %v7144_v27 = vadd.f32 %v7138_v31, %v7094_v4  ;;  %v8782_v30 = vpop.permute.xlu0 %8781  ;;  %v11654_v31 = vld [vmem:[%s16513_s5 + $0x188] sm:$0xff] }
 0x796   : > { %8490 = vmatpush.bf16.msra.mxu0 %v8472_v11  ;;  %v7183_v52 = vpop.f32.mrf.mxu0  ;;  %v11665_v11 = vld [vmem:[%s16513_s5 + $0x40] sm:$0xff] }
 0x797   : > { %v7192_v56 = vadd.f32 %v7183_v52, %v7142_v14  ;;  %v8937_v59 = vpop.permute.xlu1 %8936 }
 0x799   : > { %v7256_v26 = vadd.f32 %v7247_v13, %v7192_v56  ;;  %10983 = vmatmul.msk.bf16.vlgmr.msra.gmra.mxu3 %vm6982_vm3, %v11651_v28  ;;  %11019 = vmatmul.msk.bf16.vlgmr.msrb.gmra.mxu2 %vm6982_vm3, %v11659_v57 }
 0x79a   : > { %8650 = vmatpush.bf16.msra.mxu3 %v8635_v22  ;;  %8748 = vmatpush.bf16.msrb.mxu2 %v8733_v45 }
 0x79b   : > { %10970 = vmatmul.msk.bf16.gmra.mxu1 %vm6982_vm3, %v11650_v62  ;;  %v7306_v47 = vadd.f32 %v7297_v3, %v7256_v26 }
 0x79c   : > { %v7345_v12 = vpop.f32.mrf.mxu3  ;;  %v7445_v51 = vpop.f32.mrf.mxu2 }
 0x79d   : > { %v7355_v49 = vadd.f32 %v7345_v12, %v7305_v39  ;;  %v7302_v10 = vpop.f32.mrf.mxu1 }
 0x79e   : > { %8651 = vmatpush.bf16.msra.mxu3 %v8633_v21  ;;  %v7186_v54 = vpop.f32.mrf.mxu0  ;;  %8749 = vmatpush.bf16.msrb.mxu2 %v8731_v23  ;;  %v8890_v17 = vpop.permute.xlu0 %8889 }
 0x79f   : > { %v7193_v32 = vadd.f32 %v7186_v54, %v7143_v42  ;;  %v11656_v42 = vld [vmem:[%s16513_s5 + $0x8] sm:$0xff] }
 0x7a1   : > { %v7257_v7 = vadd.f32 %v7250_v63, %v7193_v32  ;;  %10942 = vmatmul.msk.bf16.gmra.mxu0 %vm6982_vm3, %v11644_v35  ;;  %v11661_v63 = vld [vmem:[%s16513_s5 + $0x20] sm:$0xff] }
 0x7a3   : > { %v7307_v36 = vadd.f32 %v7300_v41, %v7257_v7 }
 0x7a4   : > { %v7347_v15 = vpop.f32.mrf.mxu3  ;;  %v7447_v61 = vpop.f32.mrf.mxu2 }
 0x7a5   : > { %v7356_v1 = vadd.f32 %v7347_v15, %v7306_v47  ;;  %v11662_v47 = vld [vmem:[%s16513_s5 + $0x28] sm:$0xff] }
 0x7a6   : > { %v7188_v25 = vpop.f32.mrf.mxu0  ;;  %v9037_v56 = vpop.permute.xlu0 %9036 }
 0x7a7   : > { %v7194_v24 = vadd.f32 %v7188_v25, %v7144_v27 }
 0x7a8   : > { %v7509_v38 = vpop.f32.mrf.mxu1 }
 0x7a9   : > { %v7258_v29 = vadd.f32 %v7252_v55, %v7194_v24  ;;  %10984 = vmatmul.msk.bf16.gmra.mxu3 %vm6982_vm3, %v11652_v33  ;;  %11020 = vmatmul.msk.bf16.gmra.mxu2 %vm6982_vm3, %v11660_v46 }
 0x7ab   : > { %11029 = vmatmul.msk.bf16.vlgmr.msrb.gmra.mxu1 %vm6982_vm3, %v11655_v50  ;;  %v7308_v60 = vadd.f32 %v7302_v10, %v7258_v29  ;;  %v11671_v29 = vld [vmem:[%s16513_s5 + $0x60] sm:$0xff] }
 0x7ac   : > { %8797 = vmatpush.bf16.msrb.mxu1 %v8782_v30  ;;  %v7350_v58 = vpop.f32.mrf.mxu3  ;;  %v7450_v48 = vpop.f32.mrf.mxu2  ;;  %v11675_v30 = vld [vmem:[%s16513_s5 + $0x80] sm:$0xff] }
 0x7ad   : > { %v7357_v13 = vadd.f32 %v7350_v58, %v7307_v36  ;;  %v11668_v58 = vld [vmem:[%s16513_s5 + $0x58] sm:$0xff] }
 0x7ae   : > { %v7395_v14 = vpop.f32.mrf.mxu0 }
 0x7af   : > { %v7405_v44 = vadd.f32 %v7395_v14, %v7355_v49  ;;  %v8888_v49 = vpop.permute.xlu2 %8887 }
 0x7b0   : > { %8798 = vmatpush.bf16.msrb.mxu1 %v8780_v6  ;;  %v7511_v19 = vpop.f32.mrf.mxu1 }
 0x7b1   : > { %v7455_v43 = vadd.f32 %v7445_v51, %v7405_v44  ;;  %10997 = vmatmul.msk.bf16.vlgmr.msrb.gmra.mxu0 %vm6982_vm3, %v11653_v40  ;;  %v11667_v51 = vld [vmem:[%s16513_s5 + $0x50] sm:$0xff] }
 0x7b2   : > { %8699 = vmatpush.bf16.msrb.mxu0 %v8684_v34 }
 0x7b3   : > { %v7519_v20 = vadd.f32 %v7509_v38, %v7455_v43 }
 0x7b4   : > { %v7352_v8 = vpop.f32.mrf.mxu3  ;;  %v7452_v4 = vpop.f32.mrf.mxu2 }
 0x7b5   : > { %v7358_v22 = vadd.f32 %v7352_v8, %v7308_v60 }
 0x7b6   : > { %8700 = vmatpush.bf16.msrb.mxu0 %v8682_v9  ;;  %v7397_v16 = vpop.f32.mrf.mxu0  ;;  %v11663_v9 = vld [vmem:[%s16513_s5 + $0x30] sm:$0xff] }
 0x7b7   : > { %v7406_v0 = vadd.f32 %v7397_v16, %v7356_v1  ;;  %v9035_v46 = vpop.permute.xlu2 %9034 }
 0x7b8   : > { %v7514_v3 = vpop.f32.mrf.mxu1 }
 0x7b9   : > { %v7456_v37 = vadd.f32 %v7447_v61, %v7406_v0  ;;  %11043 = vmatmul.msk.bf16.vlgmr.msrb.gmra.mxu3 %vm6982_vm3, %v11661_v63  ;;  %11071 = vmatmul.msk.bf16.vlgmr.msra.gmra.mxu2 %vm6982_vm3, %v11665_v11  ;;  %v9149_v61 = vpop.permute.xlu0 %9148  ;;  %v11672_v0 = vld [vmem:[%s16513_s5 + $0x68] sm:$0xff] }
 0x7ba   : > { %8856 = vmatpush.bf16.msrb.mxu3 %v15897_v18  ;;  %8954 = vmatpush.bf16.msra.mxu2 %v8939_v2  ;;  %v8988_v18 = vpop.permute.xlu1 %8987 }
 0x7bb   : > { %11030 = vmatmul.msk.bf16.gmra.mxu1 %vm6982_vm3, %v11656_v42  ;;  %v7520_v5 = vadd.f32 %v7511_v19, %v7456_v37  ;;  %v11664_v19 = vld [vmem:[%s16513_s5 + $0x38] sm:$0xff]  ;;  %v11677_v37 = vld [vmem:[%s16513_s5 + $0x90] sm:$0xff] }
 0x7bc   : > { %v7559_v39 = vpop.f32.mrf.mxu3  ;;  %v7659_v55 = vpop.f32.mrf.mxu2 }
 0x7bd   : > { %v7569_v45 = vadd.f32 %v7559_v39, %v7519_v20 }
 0x7be   : > { %8857 = vmatpush.bf16.msrb.mxu3 %v15916_v53  ;;  %v7400_v27 = vpop.f32.mrf.mxu0  ;;  %8955 = vmatpush.bf16.msra.mxu2 %v8937_v59  ;;  %v11666_v53 = vld [vmem:[%s16513_s5 + $0x48] sm:$0xff] }
 0x7bf   : > { %v7407_v28 = vadd.f32 %v7400_v27, %v7357_v13  ;;  %v9100_v14 = vpop.permute.xlu2 %9099  ;;  %v11673_v27 = vld [vmem:[%s16513_s5 + $0x70] sm:$0xff] }
 0x7c0   : > { %v7516_v57 = vpop.f32.mrf.mxu1 }
 0x7c1   : > { %v7457_v41 = vadd.f32 %v7450_v48, %v7407_v28  ;;  %10998 = vmatmul.msk.bf16.gmra.mxu0 %vm6982_vm3, %v11654_v31  ;;  %v9147_v40 = vpop.permute.xlu0 %9146 }
 0x7c2   : > { %v8986_v36 = vpop.permute.xlu1 %8985 }
 0x7c3   : > { %v7521_v21 = vadd.f32 %v7514_v3, %v7457_v41  ;;  %v11676_v3 = vld [vmem:[%s16513_s5 + $0x88] sm:$0xff] }
 0x7c4   : > { %v7561_v52 = vpop.f32.mrf.mxu3  ;;  %v7661_v62 = vpop.f32.mrf.mxu2 }
 0x7c5   : > { %v7570_v26 = vadd.f32 %v7561_v52, %v7520_v5 }
 0x7c6   : > { %v7402_v12 = vpop.f32.mrf.mxu0 }
 0x7c7   : > { %v7408_v35 = vadd.f32 %v7402_v12, %v7358_v22  ;;  %v9247_v42 = vpop.permute.xlu2 %9246 }
 0x7c8   : > { %v16150_v10 = vpop.f32.mrf.mxu1 }
 0x7c9   : > { %v7458_v23 = vadd.f32 %v7452_v4, %v7408_v35  ;;  %11044 = vmatmul.msk.bf16.gmra.mxu3 %vm6982_vm3, %v11662_v47  ;;  %11072 = vmatmul.msk.bf16.gmra.mxu2 %vm6982_vm3, %v11666_v53  ;;  %v9198_v63 = vpop.permute.xlu0 %9197  ;;  %v11678_v53 = vld [vmem:[%s16513_s5 + $0x98] sm:$0xff] }
 0x7ca   : > { %v9098_v20 = vpop.permute.xlu1 %9097 }
 0x7cb   : > { %11093 = vmatmul.msk.bf16.vlgmr.msra.gmra.mxu1 %vm6982_vm3, %v11667_v51  ;;  %v7522_v54 = vadd.f32 %v7516_v57, %v7458_v23 }
 0x7cc   : > { %9003 = vmatpush.bf16.msra.mxu1 %v8988_v18  ;;  %v7564_v32 = vpop.f32.mrf.mxu3  ;;  %v7664_v34 = vpop.f32.mrf.mxu2 }
 0x7cd   : > { %v7571_v7 = vadd.f32 %v7564_v32, %v7521_v21 }
 0x7ce   : > { %v7609_v15 = vpop.f32.mrf.mxu0 }
 0x7cf   : > { %v7619_v1 = vadd.f32 %v7609_v15, %v7569_v45  ;;  %v9359_v41 = vpop.permute.xlu2 %9358 }
 0x7d0   : > { %9004 = vmatpush.bf16.msra.mxu1 %v8986_v36  ;;  %v16158_v33 = vpop.f32.mrf.mxu1 }
 0x7d1   : > { %v16160_v25 = vadd.f32 %v7659_v55, %v7619_v1  ;;  %11057 = vmatmul.msk.bf16.vlgmr.msra.gmra.mxu0 %vm6982_vm3, %v11663_v9  ;;  %v9196_v28 = vpop.permute.xlu0 %9195  ;;  %v11686_v1 = vld [vmem:[%s16513_s5 + $0xc8] sm:$0xff] }
 0x7d2   : > { %8905 = vmatpush.bf16.msra.mxu0 %v8890_v17  ;;  %v9245_v39 = vpop.permute.xlu1 %9244 }
 0x7d4   : > { %v7566_v50 = vpop.f32.mrf.mxu3  ;;  %v7666_v24 = vpop.f32.mrf.mxu2 }
 0x7d5   : > { %v7572_v38 = vadd.f32 %v7566_v50, %v7522_v54  ;;  %v11674_v54 = vld [vmem:[%s16513_s5 + $0x78] sm:$0xff]  ;;  %v11687_v50 = vld [vmem:[%s16513_s5 + $0xd0] sm:$0xff] }
 0x7d6   : > { %8906 = vmatpush.bf16.msra.mxu0 %v8888_v49  ;;  %v7611_v60 = vpop.f32.mrf.mxu0 }
 0x7d7   : > { %v7620_v48 = vadd.f32 %v7611_v60, %v7570_v26  ;;  %v11685_v26 = vld [vmem:[%s16513_s5 + $0xc0] sm:$0xff]  ;;  %v9357_v51 = vpop.permute.xlu2 %9356  ;;  %v11683_v60 = vld [vmem:[%s16513_s5 + $0xb0] sm:$0xff] }
 0x7d8   : > { %v16172_v13 = vpop.f32.mrf.mxu1 }
 0x7d9   : > { %v16174_v6 = vadd.f32 %v7661_v62, %v7620_v48  ;;  %11107 = vmatmul.msk.bf16.vlgmr.msra.gmra.mxu3 %vm6982_vm3, %v11671_v29  ;;  %11135 = vmatmul.msk.bf16.vlgmr.msrb.gmra.mxu2 %vm6982_vm3, %v11675_v30  ;;  %v9294_v15 = vpop.permute.xlu0 %9293 }
 0x7da   : > { %9052 = vmatpush.bf16.msra.mxu3 %v9037_v56  ;;  %9164 = vmatpush.bf16.msrb.mxu2 %v9149_v61  ;;  %v9296_v21 = vpop.permute.xlu1 %9295  ;;  %v11679_v56 = vld [vmem:[%s16513_s5 + $0xa0] sm:$0xff]  ;;  %v11680_v61 = vld [vmem:[%s16513_s5 + $0xa8] sm:$0xff] }
 0x7db   : > { %11094 = vmatmul.msk.bf16.gmra.mxu1 %vm6982_vm3, %v11668_v58 }
 0x7dc   : > { %v16179_v2 = vpop.f32.mrf.mxu3  ;;  %v16181_v44 = vpop.f32.mrf.mxu2 }
 0x7de   : > { %9053 = vmatpush.bf16.msra.mxu3 %v9035_v46  ;;  %v7614_v43 = vpop.f32.mrf.mxu0  ;;  %9165 = vmatpush.bf16.msrb.mxu2 %v9147_v40 }
 0x7df   : > { %v7621_v8 = vadd.f32 %v7614_v43, %v7571_v7  ;;  %v9408_v7 = vpop.permute.xlu2 %9407  ;;  %v7719_v43 = vadd.f32 %v16150_v10, %v16160_v25  ;;  %v11688_v10 = vld [vmem:[%s16513_s5 + $0xd8] sm:$0xff] }
 0x7e0   : > { %v16186_v4 = vpop.f32.mrf.mxu1 }
 0x7e1   : > { %v16188_v22 = vadd.f32 %v7664_v34, %v7621_v8  ;;  %11058 = vmatmul.msk.bf16.gmra.mxu0 %vm6982_vm3, %v11664_v19  ;;  %v9455_v40 = vpop.permute.xlu0 %9454 }
 0x7e2   : > { %v9457_v23 = vpop.permute.xlu1 %9456 }
 0x7e4   : > { %v16191_v11 = vpop.f32.mrf.mxu3  ;;  %v16193_v16 = vpop.f32.mrf.mxu2 }
 0x7e6   : > { %v7616_v59 = vpop.f32.mrf.mxu0 }
 0x7e7   : > { %v7622_v17 = vadd.f32 %v7616_v59, %v7572_v38  ;;  %v9406_v58 = vpop.permute.xlu2 %9405 }
 0x7e8   : > { %v16204_v5 = vpop.f32.mrf.mxu1 }
 0x7e9   : > { %v16206_v55 = vadd.f32 %v7666_v24, %v7622_v17  ;;  %11108 = vmatmul.msk.bf16.gmra.mxu3 %vm6982_vm3, %v11672_v0  ;;  %11136 = vmatmul.msk.bf16.gmra.mxu2 %vm6982_vm3, %v11676_v3  ;;  %v11695_v0 = vld [vmem:[%s16513_s5 + $0x100] sm:$0xff]  ;;  %v16304_v25 = vpop.permute.xlu0 %9505 }
 0x7ea   : > { %v9555_v24 = vpop.permute.xlu1 %9554 }
 0x7eb   : > { %11149 = vmatmul.msk.bf16.vlgmr.msrb.gmra.mxu1 %vm6982_vm3, %v11677_v37 }
 0x7ec   : > { %9213 = vmatpush.bf16.msrb.mxu1 %v9198_v63  ;;  %v16211_v45 = vpop.f32.mrf.mxu3  ;;  %v16213_v31 = vpop.f32.mrf.mxu2  ;;  %v7783_v63 = vadd.f32 %v16179_v2, %v7719_v43  ;;  %v7720_v2 = vadd.f32 %v16158_v33, %v16174_v6 }
 0x7ee   : > { %v16218_v57 = vpop.f32.mrf.mxu0 }
 0x7ef   : > { %v7833_v59 = vadd.f32 %v16218_v57, %v7783_v63  ;;  %v7784_v57 = vadd.f32 %v16191_v11, %v7720_v2  ;;  %v7721_v11 = vadd.f32 %v16172_v13, %v16188_v22 }
 0x7f0   : > { %9214 = vmatpush.bf16.msrb.mxu1 %v9196_v28  ;;  %v16220_v18 = vpop.f32.mrf.mxu1 }
 0x7f1   : > { %11121 = vmatmul.msk.bf16.vlgmr.msrb.gmra.mxu0 %vm6982_vm3, %v11673_v27 }
 0x7f2   : > { %9115 = vmatpush.bf16.msrb.mxu0 %v9100_v14  ;;  %v9553_v19 = vpop.permute.xlu1 %9552 }
 0x7f4   : > { %v16223_v52 = vpop.f32.mrf.mxu3  ;;  %v16225_v62 = vpop.f32.mrf.mxu2 }
 0x7f6   : > { %9116 = vmatpush.bf16.msrb.mxu0 %v9098_v20  ;;  %v16233_v47 = vpop.f32.mrf.mxu0 }
 0x7f7   : > { %v7834_v33 = vadd.f32 %v16233_v47, %v7784_v57  ;;  %v11690_v47 = vld [vmem:[%s16513_s5 + $0xe8] sm:$0xff] }
 0x7f8   : > { %v16238_v12 = vpop.f32.mrf.mxu1 }
 0x7f9   : > { %11171 = vmatmul.msk.bf16.vlgmr.msrb.gmra.mxu3 %vm6982_vm3, %v11679_v56  ;;  %11199 = vmatmul.msk.bf16.vlgmr.msra.gmra.mxu2 %vm6982_vm3, %v11685_v26  ;;  %v16326_v26 = vpop.permute.xlu0 %9608 }
 0x7fa   : > { %9262 = vmatpush.bf16.msrb.mxu3 %v9247_v42  ;;  %9374 = vmatpush.bf16.msra.mxu2 %v9359_v41  ;;  %v11689_v42 = vld [vmem:[%s16513_s5 + $0xe0] sm:$0xff]  ;;  %v16310_v17 = vpop.permute.xlu1 %9603  ;;  %v11684_v41 = vld [vmem:[%s16513_s5 + $0xb8] sm:$0xff] }
 0x7fb   : > { %11150 = vmatmul.msk.bf16.gmra.mxu1 %vm6982_vm3, %v11678_v53  ;;  %v7884_v53 = vadd.f32 %v16193_v16, %v7834_v33 }
 0x7fc   : > { %v16243_v49 = vpop.f32.mrf.mxu3  ;;  %v16245_v35 = vpop.f32.mrf.mxu2 }
 0x7fd   : > { %v7934_v22 = vadd.f32 %v16220_v18, %v7884_v53  ;;  %v7722_v18 = vadd.f32 %v16186_v4, %v16206_v55 }
 0x7fe   : > { %9263 = vmatpush.bf16.msrb.mxu3 %v9245_v39  ;;  %v16250_v32 = vpop.f32.mrf.mxu0  ;;  %9375 = vmatpush.bf16.msra.mxu2 %v9357_v51  ;;  %v7883_v39 = vadd.f32 %v16181_v44, %v7833_v59 }
 0x800   : > { %v16252_v34 = vpop.f32.mrf.mxu1  ;;  %v7933_v56 = vadd.f32 %v16204_v5, %v7883_v39  ;;  %v7785_v5 = vadd.f32 %v16211_v45, %v7721_v11  ;;  %v11697_v45 = vld [vmem:[%s16513_s5 + $0x110] sm:$0xff] }
 0x801   : > { %11122 = vmatmul.msk.bf16.gmra.mxu0 %vm6982_vm3, %v11674_v54  ;;  %v16356_v43 = vpop.permute.xlu0 %9593 }
 0x802   : > { %v7983_v44 = vadd.f32 %v16243_v49, %v7933_v56  ;;  %v11696_v49 = vld [vmem:[%s16513_s5 + $0x108] sm:$0xff]  ;;  %v7835_v16 = vadd.f32 %v16250_v32, %v7785_v5  ;;  %v11698_v56 = vld [vmem:[%s16513_s5 + $0x118] sm:$0xff] }
 0x804   : > { %v16255_v9 = vpop.f32.mrf.mxu3  ;;  %v16257_v36 = vpop.f32.mrf.mxu2  ;;  %v7885_v32 = vadd.f32 %v16213_v31, %v7835_v16 }
 0x806   : > { %v16265_v46 = vpop.f32.mrf.mxu0  ;;  %v7935_v4 = vadd.f32 %v16238_v12, %v7885_v32  ;;  %v11700_v32 = vld [vmem:[%s16513_s5 + $0x128] sm:$0xff] }
 0x808   : > { %v16270_v38 = vpop.f32.mrf.mxu1 }
 0x809   : > { %11172 = vmatmul.msk.bf16.gmra.mxu3 %vm6982_vm3, %v11680_v61  ;;  %11200 = vmatmul.msk.bf16.gmra.mxu2 %vm6982_vm3, %v11686_v1  ;;  %v8259_v33 = vpop.permute.xlu0 %8258 }
 0x80b   : > { %11213 = vmatmul.msk.bf16.vlgmr.msra.gmra.mxu1 %vm6982_vm3, %v11687_v50  ;;  %v7984_v50 = vadd.f32 %v16255_v9, %v7934_v22 }
 0x80c   : > { %9423 = vmatpush.bf16.msra.mxu1 %v9408_v7  ;;  %v16275_v29 = vpop.f32.mrf.mxu3  ;;  %v16277_v30 = vpop.f32.mrf.mxu2 }
 0x80d   : > { %v16336_v7 = vpop.permute.xlu1 %8268 }
 0x80e   : > { %v8033_v48 = vpop.f32.mrf.mxu0 }
 0x80f   : > { %v8043_v51 = vadd.f32 %v8033_v48, %v7983_v44 }
 0x810   : > { %9424 = vmatpush.bf16.msra.mxu1 %v9406_v58  ;;  %v16282_v14 = vpop.f32.mrf.mxu1 }
 0x811   : > { %11185 = vmatmul.msk.bf16.vlgmr.msra.gmra.mxu0 %vm6982_vm3, %v11683_v60 }
 0x812   : > { %9311 = vmatpush.bf16.msra.mxu0 %v9296_v21 }
 0x814   : > { %v16287_v20 = vpop.f32.mrf.mxu3  ;;  %v16289_v8 = vpop.f32.mrf.mxu2 }
 0x816   : > { %9312 = vmatpush.bf16.msra.mxu0 %v9294_v15  ;;  %v8035_v3 = vpop.f32.mrf.mxu0  ;;  %v8093_v15 = vadd.f32 %v16245_v35, %v8043_v51 }
 0x817   : > { %v8044_v60 = vadd.f32 %v8035_v3, %v7984_v50 }
 0x818   : > { %v16299_v37 = vpop.f32.mrf.mxu1  ;;  %v8143_v35 = vadd.f32 %v16270_v38, %v8093_v15 }
 0x819   : > { %11227 = vmatmul.msk.bf16.vlgmr.msra.gmra.mxu3 %vm6982_vm3, %v11689_v42  ;;  %11263 = vmatmul.msk.bf16.vlgmr.msrb.gmra.mxu2 %vm6982_vm3, %v11695_v0  ;;  %v8094_v31 = vadd.f32 %v16257_v36, %v8044_v60  ;;  %v8254_v0 = vpop.permute.xlu1 %8253 }
 0x81a   : > { %9472 = vmatpush.bf16.msra.mxu3 %v9457_v23  ;;  %9570 = vmatpush.bf16.msrb.mxu2 %v9555_v24  ;;  %v9504_v24 = vpop.permute.xlu2 %9503 }
 0x81b   : > { %11214 = vmatmul.msk.bf16.gmra.mxu1 %vm6982_vm3, %v11688_v10  ;;  %v8144_v12 = vadd.f32 %v16282_v14, %v8094_v31 }
 0x81c   : > { %v8183_v27 = vpop.f32.mrf.mxu3  ;;  %v8357_v28 = vpop.f32.mrf.mxu2 }
 0x81d   : > { %v8193_v9 = vadd.f32 %v8183_v27, %v8143_v35  ;;  %v11704_v35 = vld [vmem:[%s16513_s5 + $0x148] sm:$0xff] }
 0x81e   : > { %9473 = vmatpush.bf16.msra.mxu3 %v9455_v40  ;;  %9571 = vmatpush.bf16.msrb.mxu2 %v9553_v19  ;;  %v8038_v21 = vpop.f32.mrf.mxu0  ;;  %v7786_v40 = vadd.f32 %v16223_v52, %v7722_v18  ;;  %v11691_v19 = vld [vmem:[%s16513_s5 + $0xf0] sm:$0xff]  ;;  %v7985_v52 = vadd.f32 %v16275_v29, %v7935_v4  ;;  %v11699_v29 = vld [vmem:[%s16513_s5 + $0x120] sm:$0xff] }
 0x820   : > { %v16320_v6 = vpop.f32.mrf.mxu1  ;;  %v7836_v55 = vadd.f32 %v16265_v46, %v7786_v40  ;;  %v8045_v46 = vadd.f32 %v8038_v21, %v7985_v52 }
 0x821   : > { %11186 = vmatmul.msk.bf16.gmra.mxu0 %vm6982_vm3, %v11684_v41 }
 0x822   : > { %v7886_v10 = vadd.f32 %v16225_v62, %v7836_v55  ;;  %v11703_v62 = vld [vmem:[%s16513_s5 + $0x140] sm:$0xff]  ;;  %v8095_v57 = vadd.f32 %v16277_v30, %v8045_v46 }
 0x823   : > { %v11713_v46 = vld [vmem:[%s16513_s5 + $0x180] sm:$0xff] }
 0x824   : > { %v8185_v23 = vpop.f32.mrf.mxu3  ;;  %v8359_v54 = vpop.f32.mrf.mxu2 }
 0x825   : > { %v8194_v27 = vadd.f32 %v8185_v23, %v8144_v12  ;;  %v11709_v12 = vld [vmem:[%s16513_s5 + $0x160] sm:$0xff] }
 0x826   : > { %v8040_v13 = vpop.f32.mrf.mxu0 }
 0x828   : > { %v8398_v61 = vpop.f32.mrf.mxu1 }
 0x829   : > { %v8399_v1 = vadd.f32 %v8398_v61, %v8357_v28  ;;  %11228 = vmatmul.msk.bf16.gmra.mxu3 %vm6982_vm3, %v11690_v47  ;;  %11264 = vmatmul.msk.bf16.gmra.mxu2 %vm6982_vm3, %v11696_v49  ;;  %v7936_v28 = vadd.f32 %v16252_v34, %v7886_v10  ;;  %v8145_v34 = vadd.f32 %v16299_v37, %v8095_v57  ;;  %v11692_v47 = vld [vmem:[%s16513_s5 + $0xf8] sm:$0xff] }
 0x82b   : > { %11277 = vmatmul.msk.bf16.vlgmr.msrb.gmra.mxu1 %vm6982_vm3, %v11697_v45  ;;  %v7986_v11 = vadd.f32 %v16287_v20, %v7936_v28 }
 0x82c   : > { %v8188_v58 = vpop.f32.mrf.mxu3  ;;  %v8362_v48 = vpop.f32.mrf.mxu2 }
 0x82d   : > { %v8046_v51 = vadd.f32 %v8040_v13, %v7986_v11  ;;  %v8195_v5 = vadd.f32 %v8188_v58, %v8145_v34 }
 0x82e   : > { %v8233_v63 = vpop.f32.mrf.mxu0 }
 0x82f   : > { %v8243_v38 = vadd.f32 %v8233_v63, %v8193_v9  ;;  %v8096_v37 = vadd.f32 %v16289_v8, %v8046_v51 }
 0x830   : > { %v8400_v42 = vpop.f32.mrf.mxu1 }
 0x831   : > { %v8401_v3 = vadd.f32 %v8400_v42, %v8359_v54  ;;  %v16362_v59 = vadd.f32 %v8254_v0, %v8243_v38  ;;  %11249 = vmatmul.msk.bf16.vlgmr.msrb.gmra.mxu0 %vm6982_vm3, %v11691_v19  ;;  %v8146_v45 = vadd.f32 %v16320_v6, %v8096_v37 }
 0x832   : > { %9521 = vmatpush.bf16.msrb.mxu0 %v16304_v25  ;;  %v16378_v25 = vpop.permute.xlu2 %9598 }
 0x833   : > { %v8275_v36 = vmax.f32 %v16362_v59, 0.0 }
 0x834   : > { %v8190_v2 = vpop.f32.mrf.mxu3  ;;  %v8364_v39 = vpop.f32.mrf.mxu2 }
 0x835   : > { %8280 = vst.msk [vmem:[#allocation6] sm:$0xff] %vm8279_vm1, %v8275_v36  ;;  %v8196_v18 = vadd.f32 %v8190_v2, %v8146_v45 }
 0x836   : > { %9522 = vmatpush.bf16.msrb.mxu0 %v9504_v24  ;;  %v8235_v14 = vpop.f32.mrf.mxu0 }
 0x837   : > { %v8244_v41 = vadd.f32 %v8235_v14, %v8194_v27 }
 0x838   : > { %v8403_v21 = vpop.f32.mrf.mxu1 }
 0x839   : > { %v8404_v44 = vadd.f32 %v8403_v21, %v8362_v48  ;;  %v16386_v53 = vadd.f32 %v8259_v33, %v8244_v41  ;;  %11291 = vmatmul.msk.bf16.vlgmr.msrb.gmra.mxu3 %vm6982_vm3, %v11699_v29  ;;  %11327 = vmatmul.msk.bf16.vlgmr.msra.gmra.mxu2 %vm6982_vm3, %v11703_v62  ;;  %v11707_v48 = vld [vmem:[%s16513_s5 + $0x150] sm:$0xff]  ;;  %v11708_v29 = vld [vmem:[%s16513_s5 + $0x158] sm:$0xff] }
 0x83a   : > { %v8264_v16 = vpop.permute.xlu2 %8263  ;;  %v11702_v21 = vld [vmem:[%s16513_s5 + $0x138] sm:$0xff] }
 0x83b   : > { %v8276_v30 = vmax.f32 %v16386_v53, 0.0  ;;  %11278 = vmatmul.msk.bf16.gmra.mxu1 %vm6982_vm3, %v11698_v56 }
 0x83c   : > { %v8443_v23 = vpop.f32.mrf.mxu3  ;;  %v8541_v54 = vpop.f32.mrf.mxu2 }
 0x83d   : > { %8281 = vst.msk [vmem:[#allocation6 + $0x8] sm:$0xff] %vm8279_vm1, %v8276_v30  ;;  %v8453_v20 = vadd.f32 %v8443_v23, %v8399_v1 }
 0x83e   : > { %v8238_v49 = vpop.f32.mrf.mxu0 }
 0x83f   : > { %v8245_v13 = vadd.f32 %v8238_v49, %v8195_v5  ;;  %v11710_v5 = vld [vmem:[%s16513_s5 + $0x168] sm:$0xff] }
 0x840   : > { %v8405_v22 = vpop.f32.mrf.mxu1 }
 0x841   : > { %v8406_v15 = vadd.f32 %v8405_v22, %v8364_v39  ;;  %v16400_v61 = vadd.f32 %v8264_v16, %v8245_v13  ;;  %11250 = vmatmul.msk.bf16.gmra.mxu0 %vm6982_vm3, %v11692_v47 }
 0x843   : > { %v8277_v50 = vmax.f32 %v16400_v61, 0.0 }
 0x844   : > { %v8445_v1 = vpop.f32.mrf.mxu3  ;;  %v8543_v24 = vpop.f32.mrf.mxu2 }
 0x845   : > { %8282 = vst.msk [vmem:[#allocation6 + $0x10] sm:$0xff] %vm8279_vm1, %v8277_v50  ;;  %v8454_v8 = vadd.f32 %v8445_v1, %v8401_v3  ;;  %v11711_v1 = vld [vmem:[%s16513_s5 + $0x170] sm:$0xff] }
 0x846   : > { %v8240_v60 = vpop.f32.mrf.mxu0 }
 0x847   : > { %v8246_v6 = vadd.f32 %v8240_v60, %v8196_v18 }
 0x848   : > { %v8604_v58 = vpop.f32.mrf.mxu1 }
 0x849   : > { %v16418_v40 = vadd.f32 %v16336_v7, %v8246_v6  ;;  %11292 = vmatmul.msk.bf16.gmra.mxu3 %vm6982_vm3, %v11700_v32  ;;  %11328 = vmatmul.msk.bf16.gmra.mxu2 %vm6982_vm3, %v11704_v35  ;;  %v11701_v7 = vld [vmem:[%s16513_s5 + $0x130] sm:$0xff] }
 0x84b   : > { %v8278_v9 = vmax.f32 %v16418_v40, 0.0  ;;  %11341 = vmatmul.msk.bf16.vlgmr.msra.gmra.mxu1 %vm6982_vm3, %v11707_v48 }
 0x84c   : > { %v8448_v19 = vpop.f32.mrf.mxu3  ;;  %v8546_v63 = vpop.f32.mrf.mxu2 }
 0x84d   : > { %8283 = vst.msk [vmem:[#allocation6 + $0x18] sm:$0xff] %vm8279_vm1, %v8278_v9  ;;  %v8455_v4 = vadd.f32 %v8448_v19, %v8404_v44 }
 0x84e   : > { %v8492_v55 = vpop.f32.mrf.mxu0 }
 0x84f   : > { %v8502_v31 = vadd.f32 %v8492_v55, %v8453_v20  ;;  %v11714_v20 = vld [vmem:[%s16513_s5 + $0x188] sm:$0xff] }
 0x850   : > { %v8606_v38 = vpop.f32.mrf.mxu1 }
 0x851   : > { %v8551_v42 = vadd.f32 %v8541_v54, %v8502_v31  ;;  %11305 = vmatmul.msk.bf16.vlgmr.msra.gmra.mxu0 %vm6982_vm3, %v11701_v7 }
 0x853   : > { %v8614_v0 = vadd.f32 %v8604_v58, %v8551_v42 }
 0x854   : > { %v8450_v3 = vpop.f32.mrf.mxu3  ;;  %v8548_v52 = vpop.f32.mrf.mxu2 }
 0x855   : > { %v8456_v10 = vadd.f32 %v8450_v3, %v8406_v15 }
 0x856   : > { %v8494_v2 = vpop.f32.mrf.mxu0 }
 0x857   : > { %v8503_v39 = vadd.f32 %v8494_v2, %v8454_v8 }
 0x858   : > { %v8609_v27 = vpop.f32.mrf.mxu1 }
 0x859   : > { %v8552_v62 = vadd.f32 %v8543_v24, %v8503_v39  ;;  %11355 = vmatmul.msk.bf16.vlgmr.msra.gmra.mxu3 %vm6982_vm3, %v11709_v12  ;;  %11383 = vmatmul.msk.bf16.vlgmr.msrb.gmra.mxu2 %vm6982_vm3, %v11713_v46 }
 0x85b   : > { %v8615_v14 = vadd.f32 %v8606_v38, %v8552_v62  ;;  %11342 = vmatmul.msk.bf16.gmra.mxu1 %vm6982_vm3, %v11708_v29  ;;  %v11712_v38 = vld [vmem:[%s16513_s5 + $0x178] sm:$0xff] }
 0x85c   : > { %v8653_v28 = vpop.f32.mrf.mxu3  ;;  %v8751_v57 = vpop.f32.mrf.mxu2 }
 0x85d   : > { %v8663_v41 = vadd.f32 %v8653_v28, %v8614_v0 }
 0x85e   : > { %v8497_v56 = vpop.f32.mrf.mxu0 }
 0x85f   : > { %v8504_v33 = vadd.f32 %v8497_v56, %v8455_v4 }
 0x860   : > { %v8611_v44 = vpop.f32.mrf.mxu1 }
 0x861   : > { %v8553_v11 = vadd.f32 %v8546_v63, %v8504_v33  ;;  %11306 = vmatmul.msk.bf16.gmra.mxu0 %vm6982_vm3, %v11702_v21 }
 0x863   : > { %v8616_v34 = vadd.f32 %v8609_v27, %v8553_v11 }
 0x864   : > { %v8655_v51 = vpop.f32.mrf.mxu3  ;;  %v8753_v23 = vpop.f32.mrf.mxu2 }
 0x865   : > { %v8664_v54 = vadd.f32 %v8655_v51, %v8615_v14 }
 0x866   : > { %v8499_v47 = vpop.f32.mrf.mxu0 }
 0x867   : > { %v8505_v49 = vadd.f32 %v8499_v47, %v8456_v10 }
 0x868   : > { %v8800_v13 = vpop.f32.mrf.mxu1 }
 0x869   : > { %v8554_v37 = vadd.f32 %v8548_v52, %v8505_v49  ;;  %11356 = vmatmul.msk.bf16.gmra.mxu3 %vm6982_vm3, %v11710_v5  ;;  %11384 = vmatmul.msk.bf16.gmra.mxu2 %vm6982_vm3, %v11714_v20 }
 0x86b   : > { %v8617_v22 = vadd.f32 %v8611_v44, %v8554_v37 }
 0x86c   : > { %v8658_v16 = vpop.f32.mrf.mxu3  ;;  %v8756_v15 = vpop.f32.mrf.mxu2 }
 0x86d   : > { %v8665_v45 = vadd.f32 %v8658_v16, %v8616_v34 }
 0x86e   : > { %v8702_v24 = vpop.f32.mrf.mxu0 }
 0x86f   : > { %v8712_v18 = vadd.f32 %v8702_v24, %v8663_v41 }
 0x870   : > { %v8802_v35 = vpop.f32.mrf.mxu1 }
 0x871   : > { %v8761_v8 = vadd.f32 %v8751_v57, %v8712_v18  ;;  %11369 = vmatmul.msk.bf16.vlgmr.msrb.gmra.mxu0 %vm6982_vm3, %v11711_v1 }
 0x873   : > { %v8810_v32 = vadd.f32 %v8800_v13, %v8761_v8 }
 0x874   : > { %v8660_v60 = vpop.f32.mrf.mxu3  ;;  %v8758_v6 = vpop.f32.mrf.mxu2 }
 0x875   : > { %v8666_v58 = vadd.f32 %v8660_v60, %v8617_v22 }
 0x876   : > { %v8704_v48 = vpop.f32.mrf.mxu0 }
 0x877   : > { %v8713_v19 = vadd.f32 %v8704_v48, %v8664_v54 }
 0x878   : > { %v8805_v42 = vpop.f32.mrf.mxu1 }
 0x879   : > { %v8762_v63 = vadd.f32 %v8753_v23, %v8713_v19 }
 0x87b   : > { %v8811_v4 = vadd.f32 %v8802_v35, %v8762_v63 }
 0x87c   : > { %v8859_v7 = vpop.f32.mrf.mxu3  ;;  %v8957_v55 = vpop.f32.mrf.mxu2 }
 0x87d   : > { %v8869_v31 = vadd.f32 %v8859_v7, %v8810_v32 }
 0x87e   : > { %v8707_v0 = vpop.f32.mrf.mxu0 }
 0x87f   : > { %v8714_v3 = vadd.f32 %v8707_v0, %v8665_v45 }
 0x880   : > { %v8807_v29 = vpop.f32.mrf.mxu1 }
 0x881   : > { %v8763_v52 = vadd.f32 %v8756_v15, %v8714_v3  ;;  %11370 = vmatmul.msk.bf16.gmra.mxu0 %vm6982_vm3, %v11712_v38 }
 0x883   : > { %v8812_v10 = vadd.f32 %v8805_v42, %v8763_v52 }
 0x884   : > { %v8861_v12 = vpop.f32.mrf.mxu3  ;;  %v8959_v46 = vpop.f32.mrf.mxu2 }
 0x885   : > { %v8870_v2 = vadd.f32 %v8861_v12, %v8811_v4 }
 0x886   : > { %v8709_v39 = vpop.f32.mrf.mxu0 }
 0x887   : > { %v8715_v27 = vadd.f32 %v8709_v39, %v8666_v58 }
 0x888   : > { %v9006_v44 = vpop.f32.mrf.mxu1 }
 0x889   : > { %v8764_v62 = vadd.f32 %v8758_v6, %v8715_v27 }
 0x88b   : > { %v8813_v14 = vadd.f32 %v8807_v29, %v8764_v62 }
 0x88c   : > { %v8864_v28 = vpop.f32.mrf.mxu3  ;;  %v8962_v57 = vpop.f32.mrf.mxu2 }
 0x88d   : > { %v8871_v41 = vadd.f32 %v8864_v28, %v8812_v10 }
 0x88e   : > { %v8908_v21 = vpop.f32.mrf.mxu0 }
 0x88f   : > { %v8918_v56 = vadd.f32 %v8908_v21, %v8869_v31 }
 0x890   : > { %v9008_v20 = vpop.f32.mrf.mxu1 }
 0x891   : > { %v8967_v33 = vadd.f32 %v8957_v55, %v8918_v56 }
 0x893   : > { %v9016_v10 = vadd.f32 %v9006_v44, %v8967_v33 }
 0x894   : > { %v8866_v11 = vpop.f32.mrf.mxu3  ;;  %v8964_v34 = vpop.f32.mrf.mxu2 }
 0x895   : > { %v8872_v51 = vadd.f32 %v8866_v11, %v8813_v14 }
 0x896   : > { %v8910_v23 = vpop.f32.mrf.mxu0 }
 0x897   : > { %v8919_v54 = vadd.f32 %v8910_v23, %v8870_v2 }
 0x898   : > { %v9011_v45 = vpop.f32.mrf.mxu1 }
 0x899   : > { %v8968_v5 = vadd.f32 %v8959_v46, %v8919_v54 }
 0x89b   : > { %v9017_v62 = vadd.f32 %v9008_v20, %v8968_v5 }
 0x89c   : > { %v9055_v47 = vpop.f32.mrf.mxu3  ;;  %v9167_v49 = vpop.f32.mrf.mxu2 }
 0x89d   : > { %v9065_v12 = vadd.f32 %v9055_v47, %v9016_v10 }
 0x89e   : > { %v8913_v37 = vpop.f32.mrf.mxu0 }
 0x89f   : > { %v8920_v13 = vadd.f32 %v8913_v37, %v8871_v41 }
 0x8a0   : > { %v9013_v60 = vpop.f32.mrf.mxu1 }
 0x8a1   : > { %v8969_v22 = vadd.f32 %v8962_v57, %v8920_v13 }
 0x8a4   : > { %v9057_v16 = vpop.f32.mrf.mxu3  ;;  %v9169_v15 = vpop.f32.mrf.mxu2 }
 0x8a5   : > { %v9066_v28 = vadd.f32 %v9057_v16, %v9017_v62 }
 0x8a6   : > { %v8915_v1 = vpop.f32.mrf.mxu0 }
 0x8a7   : > { %v8921_v24 = vadd.f32 %v8915_v1, %v8872_v51  ;;  %v9018_v51 = vadd.f32 %v9011_v45, %v8969_v22 }
 0x8a8   : > { %v9216_v19 = vpop.f32.mrf.mxu1 }
 0x8a9   : > { %v8970_v18 = vadd.f32 %v8964_v34, %v8921_v24 }
 0x8ab   : > { %v9019_v5 = vadd.f32 %v9013_v60, %v8970_v18 }
 0x8ac   : > { %v9060_v8 = vpop.f32.mrf.mxu3  ;;  %v9172_v35 = vpop.f32.mrf.mxu2 }
 0x8ad   : > { %v9067_v33 = vadd.f32 %v9060_v8, %v9018_v51 }
 0x8ae   : > { %v9118_v32 = vpop.f32.mrf.mxu0 }
 0x8af   : > { %v9128_v39 = vadd.f32 %v9118_v32, %v9065_v12 }
 0x8b0   : > { %v9218_v55 = vpop.f32.mrf.mxu1 }
 0x8b1   : > { %v9177_v14 = vadd.f32 %v9167_v49, %v9128_v39 }
 0x8b3   : > { %v9226_v41 = vadd.f32 %v9216_v19, %v9177_v14 }
 0x8b4   : > { %v9062_v6 = vpop.f32.mrf.mxu3  ;;  %v9174_v48 = vpop.f32.mrf.mxu2 }
 0x8b6   : > { %v9120_v58 = vpop.f32.mrf.mxu0 }
 0x8b7   : > { %v9129_v21 = vadd.f32 %v9120_v58, %v9066_v28  ;;  %v9068_v58 = vadd.f32 %v9062_v6, %v9019_v5 }
 0x8b8   : > { %v9221_v0 = vpop.f32.mrf.mxu1 }
 0x8b9   : > { %v9178_v23 = vadd.f32 %v9169_v15, %v9129_v21 }
 0x8bb   : > { %v9227_v47 = vadd.f32 %v9218_v55, %v9178_v23 }
 0x8bc   : > { %v9265_v63 = vpop.f32.mrf.mxu3  ;;  %v9377_v7 = vpop.f32.mrf.mxu2 }
 0x8bd   : > { %v9275_v11 = vadd.f32 %v9265_v63, %v9226_v41 }
 0x8be   : > { %v9123_v4 = vpop.f32.mrf.mxu0 }
 0x8bf   : > { %v9130_v13 = vadd.f32 %v9123_v4, %v9067_v33 }
 0x8c0   : > { %v9223_v27 = vpop.f32.mrf.mxu1 }
 0x8c1   : > { %v9179_v20 = vadd.f32 %v9172_v35, %v9130_v13 }
 0x8c3   : > { %v9228_v22 = vadd.f32 %v9221_v0, %v9179_v20 }
 0x8c4   : > { %v9267_v31 = vpop.f32.mrf.mxu3  ;;  %v9379_v42 = vpop.f32.mrf.mxu2 }
 0x8c5   : > { %v9276_v24 = vadd.f32 %v9267_v31, %v9227_v47 }
 0x8c6   : > { %v9125_v38 = vpop.f32.mrf.mxu0 }
 0x8c7   : > { %v9131_v15 = vadd.f32 %v9125_v38, %v9068_v58 }
 0x8c8   : > { %v9426_v34 = vpop.f32.mrf.mxu1 }
 0x8c9   : > { %v9180_v55 = vadd.f32 %v9174_v48, %v9131_v15  ;;  %v9645_v15 = vld [vmem:[#allocation6 + $0x8] sm:$0xff] }
 0x8cb   : > { %v9229_v6 = vadd.f32 %v9223_v27, %v9180_v55 }
 0x8cc   : > { %v9270_v52 = vpop.f32.mrf.mxu3  ;;  %v9382_v2 = vpop.f32.mrf.mxu2 }
 0x8cd   : > { %v9277_v8 = vadd.f32 %v9270_v52, %v9228_v22  ;;  %v9646_v22 = vld [vmem:[#allocation6 + $0x10] sm:$0xff] }
 0x8ce   : > { %v9314_v3 = vpop.f32.mrf.mxu0 }
 0x8cf   : > { %v9324_v54 = vadd.f32 %v9314_v3, %v9275_v11 }
 0x8d0   : > { %v9428_v19 = vpop.f32.mrf.mxu1 }
 0x8d1   : > { %v9387_v1 = vadd.f32 %v9377_v7, %v9324_v54 }
 0x8d3   : > { %v9436_v49 = vadd.f32 %v9426_v34, %v9387_v1 }
 0x8d4   : > { %v9272_v29 = vpop.f32.mrf.mxu3  ;;  %v9384_v56 = vpop.f32.mrf.mxu2 }
 0x8d6   : > { %v9316_v46 = vpop.f32.mrf.mxu0 }
 0x8d7   : > { %v9325_v16 = vadd.f32 %v9316_v46, %v9276_v24 }
 0x8d8   : > { %v9431_v46 = vpop.f32.mrf.mxu1 }
 0x8d9   : > { %v9388_v45 = vadd.f32 %v9379_v42, %v9325_v16  ;;  %v9278_v42 = vadd.f32 %v9272_v29, %v9229_v6 }
 0x8db   : > { %v9437_v4 = vadd.f32 %v9428_v19, %v9388_v45  ;;  %v9643_v45 = vld [vmem:[%s16515_s7] sm:$0xf] }
 0x8dc   : > { %v9475_v37 = vpop.f32.mrf.mxu3  ;;  %v9573_v32 = vpop.f32.mrf.mxu2 }
 0x8dd   : > { %v9485_v10 = vadd.f32 %v9475_v37, %v9436_v49 }
 0x8de   : > { %v9319_v57 = vpop.f32.mrf.mxu0 }
 0x8df   : > { %v9326_v7 = vadd.f32 %v9319_v57, %v9277_v8  ;;  %v9660_v8 = vld [vmem:[%s16516_s8] sm:$0xf] }
 0x8e1   : > { %v9389_v14 = vadd.f32 %v9382_v2, %v9326_v7  ;;  %v9433_v2 = vpop.f32.mrf.mxu1 }
 0x8e3   : > { %v9438_v52 = vadd.f32 %v9431_v46, %v9389_v14 }
 0x8e4   : > { %v9477_v63 = vpop.f32.mrf.mxu3  ;;  %v9575_v18 = vpop.f32.mrf.mxu2 }
 0x8e5   : > { %v9486_v35 = vadd.f32 %v9477_v63, %v9437_v4 }
 0x8e6   : > { %v9321_v44 = vpop.f32.mrf.mxu0 }
 0x8e7   : > { %v9327_v41 = vadd.f32 %v9321_v44, %v9278_v42 }
 0x8e9   : > { %v9390_v34 = vadd.f32 %v9384_v56, %v9327_v41 }
 0x8eb   : > { %v9439_v54 = vadd.f32 %v9433_v2, %v9390_v34 }
 0x8ec   : > { %v9480_v38 = vpop.f32.mrf.mxu3  ;;  %v9578_v11 = vpop.f32.mrf.mxu2 }
 0x8ed   : > { %v9487_v57 = vadd.f32 %v9480_v38, %v9438_v52 }
 0x8ee   : > { %v9524_v12 = vpop.f32.mrf.mxu0 }
 0x8ef   : > { %v9534_v3 = vadd.f32 %v9524_v12, %v9485_v10  ;;  %v9647_v12 = vld [vmem:[#allocation6 + $0x18] sm:$0xff] }
 0x8f1   : > { %v9583_v39 = vadd.f32 %v9573_v32, %v9534_v3  ;;  %v9644_v3 = vld [vmem:[#allocation6] sm:$0xff] }
 0x8f3   : > { %v9611_v31 = vadd.f32 %v16356_v43, %v9583_v39 }
 0x8f4   : > { %v9482_v23 = vpop.f32.mrf.mxu3  ;;  %v9580_v56 = vpop.f32.mrf.mxu2 }
 0x8f5   : > { %v9615_v60 = vmax.f32 %v9611_v31, 0.0  ;;  %v9488_v37 = vadd.f32 %v9482_v23, %v9439_v54 }
 0x8f6   : > { %v9526_v62 = vpop.f32.mrf.mxu0 }
 0x8f7   : > { %9619 = vst.msk [vmem:[#allocation6 + $0x40] sm:$0xff] %vm8279_vm1, %v9615_v60  ;;  %v9535_v0 = vadd.f32 %v9526_v62, %v9486_v35 }
 0x8f9   : > { %v9584_v28 = vadd.f32 %v9575_v18, %v9535_v0 }
 0x8fb   : > { %v9612_v48 = vadd.f32 %v16378_v25, %v9584_v28 }
 0x8fd   : > { %v9616_v21 = vmax.f32 %v9612_v48, 0.0 }
 0x8fe   : > { %v9529_v43 = vpop.f32.mrf.mxu0  ;;  %v9652_v16 = vld [vmem:[#allocation6 + $0x40] sm:$0xff] }
 0x8ff   : > { %9620 = vst.msk [vmem:[#allocation6 + $0x48] sm:$0xff] %vm8279_vm1, %v9616_v21  ;;  %v9536_v51 = vadd.f32 %v9529_v43, %v9487_v57  ;;  %9629 = vrot.lane.b32.xlu1 %v9616_v21, %s16849_s11 }
 0x901   : > { %v9585_v27 = vadd.f32 %v9578_v11, %v9536_v51 }
 0x903   : > { %v9613_v29 = vadd.f32 %v16310_v17, %v9585_v27 }
 0x905   : > { %v9617_v33 = vmax.f32 %v9613_v29, 0.0 }
 0x906   : > { %v9531_v44 = vpop.f32.mrf.mxu0  ;;  %v9653_v49 = vld [vmem:[#allocation6 + $0x48] sm:$0xff] }
 0x907   : > { %9621 = vst.msk [vmem:[#allocation6 + $0x50] sm:$0xff] %vm8279_vm1, %v9617_v33  ;;  %v9537_v25 = vadd.f32 %v9531_v44, %v9488_v37  ;;  %9631 = vrot.lane.b32.xlu0 %v9617_v33, %s16849_s11  ;;  %8292 = vrot.lane.b32.xlu1 %v8277_v50, %s16849_s11 }
 0x909   : > { %v9586_v47 = vadd.f32 %v9580_v56, %v9537_v25 }
 0x90b   : > { %v9614_v13 = vadd.f32 %v16326_v26, %v9586_v47 }
 0x90d   : > { %v9618_v1 = vmax.f32 %v9614_v13, 0.0 }
 0x90e   : > { %v9654_v20 = vld [vmem:[#allocation6 + $0x50] sm:$0xff] }
 0x90f   : > { %9622 = vst.msk [vmem:[#allocation6 + $0x58] sm:$0xff] %vm8279_vm1, %v9618_v1  ;;  %9633 = vrot.lane.b32.xlu2 %v9618_v1, %s16849_s11  ;;  %8294 = vrot.lane.b32.xlu0 %v8278_v9, %s16849_s11 }
 0x916   : > { %v9655_v32 = vld [vmem:[#allocation6 + $0x58] sm:$0xff] }
 0x917   : > { %9627 = vrot.lane.b32.xlu2 %v9615_v60, %s16849_s11  ;;  %8288 = vrot.lane.b32.xlu0 %v8275_v36, %s16849_s11 }
 0x91f   : > { %8290 = vrot.lane.b32.xlu2 %v8276_v30, %s16849_s11 }
 0x969   : > { %v9634_v17 = vpop.permute.xlu2 %9633 }
 0x96a   : > { %9642 = vst.msk [vmem:[#allocation6 + $0x78] sm:$0xff] %vm8279_vm1, %v9634_v17 }
 0x971   : > { %v9630_v26 = vpop.permute.xlu1 %9629  ;;  %v9628_v61 = vpop.permute.xlu2 %9627  ;;  %v9659_v50 = vld [vmem:[#allocation6 + $0x78] sm:$0xff] }
 0x972   : > { %9640 = vst.msk [vmem:[#allocation6 + $0x68] sm:$0xff] %vm8279_vm1, %v9630_v26  ;;  %9661 = vmatpush.msra.mxu0 %v9659_v50 }
 0x973   : > { %9639 = vst.msk [vmem:[#allocation6 + $0x60] sm:$0xff] %vm8279_vm1, %v9628_v61 }
 0x979   : > { %v9632_v40 = vpop.permute.xlu0 %9631  ;;  %v8293_v9 = vpop.permute.xlu1 %8292  ;;  %v9657_v30 = vld [vmem:[#allocation6 + $0x68] sm:$0xff] }
 0x97a   : > { %9641 = vst.msk [vmem:[#allocation6 + $0x70] sm:$0xff] %vm8279_vm1, %v9632_v40  ;;  %v8291_v59 = vpop.permute.xlu2 %8290  ;;  %v9656_v24 = vld [vmem:[#allocation6 + $0x60] sm:$0xff] }
 0x97b   : > { %8302 = vst.msk [vmem:[#allocation6 + $0x30] sm:$0xff] %vm8279_vm1, %v8293_v9 }
 0x97c   : > { %8301 = vst.msk [vmem:[#allocation6 + $0x28] sm:$0xff] %vm8279_vm1, %v8291_v59 }
 0x981   : > { %v8295_v36 = vpop.permute.xlu0 %8294  ;;  %v9658_v53 = vld [vmem:[#allocation6 + $0x70] sm:$0xff] }
 0x982   : > { %8303 = vst.msk [vmem:[#allocation6 + $0x38] sm:$0xff] %vm8279_vm1, %v8295_v36  ;;  %9662 = vmatpush.msra.mxu0 %v9658_v53  ;;  %v9650_v58 = vld [vmem:[#allocation6 + $0x30] sm:$0xff] }
 0x983   : > { %v9649_v10 = vld [vmem:[#allocation6 + $0x28] sm:$0xff] }
 0x984   : > { %9663 = vmatpush.msra.mxu0 %v9657_v30 }
 0x986   : > { %9664 = vmatpush.msra.mxu0 %v9656_v24 }
 0x988   : > { %9665 = vmatpush.msra.mxu0 %v9655_v32 }
 0x989   : > { %v8289_v5 = vpop.permute.xlu0 %8288  ;;  %v9651_v19 = vld [vmem:[#allocation6 + $0x38] sm:$0xff] }
 0x98a   : > { %8300 = vst.msk [vmem:[#allocation6 + $0x20] sm:$0xff] %vm8279_vm1, %v8289_v5  ;;  %9666 = vmatpush.msra.mxu0 %v9654_v20 }
 0x98c   : > { %9667 = vmatpush.msra.mxu0 %v9653_v49 }
 0x98e   : > { %9668 = vmatpush.msra.mxu0 %v9652_v16 }
 0x990   : > { %9669 = vmatpush.msra.mxu0 %v9651_v19 }
 0x991   : > { %v9648_v63 = vld [vmem:[#allocation6 + $0x20] sm:$0xff] }
 0x992   : > { %9670 = vmatpush.msra.mxu0 %v9650_v58 }
 0x994   : > { %9671 = vmatpush.msra.mxu0 %v9649_v10 }
 0x996   : > { %9672 = vmatpush.msra.mxu0 %v9648_v63 }
 0x998   : > { %9673 = vmatpush.msra.mxu0 %v9647_v12 }
 0x99a   : > { %9674 = vmatpush.msra.mxu0 %v9646_v22 }
 0x99c   : > { %9675 = vmatpush.msra.mxu0 %v9645_v15 }
 0x99e   : > { %9676 = vmatpush.msra.mxu0 %v9644_v3 }
 0x99f   : > { %9677 = vmatmul.f32.vlgmr.msra.gmra.mxu0 %v9643_v45 }
 0xa1c   : > { %v9678_v39 = vpop.f32.mrf.mxu0 }
 0xa1d   : > { %v9679_v55 = vadd.f32 %v9678_v39, %v9660_v8 }
 0xa1f   : > { %9682 = vst.msk [vmem:[%s330_s19] sm:$0xf] %vm9681_vm15, %v9679_v55 }
 0xa20 PF: > { %s19_s30 = sadd.s32 1, %s11794_s30  }
 0xa21   : > { %p16_p4 = scmp.ge.s32.totalorder %s19_s30, 4  }
 0xa23   :  { %18 = sbr.rel (!%p16_p4) target bundleno = 2 (0x2), region = 110 }

</bundles_post_ra>
